<compile_context>
chip_gen: v6e
topology: v6e:2x2x1
jax: 0.10.0
libtpu: 0.0.40
codegen_flags: <defaults>
</compile_context>

<pallas_src>
import numpy as np

import jax
import jax.numpy as jnp
from jax.experimental import pallas as pl
from jax.experimental.pallas import tpu as pltpu

EPS = 1e-5
FEAT_SIZE = 32
FEAT_PAD = 128               # fc2 output lane-padded 32 -> 128 (unmasked stores)

IMB = 8                      # images per grid step (16 would fill v6e/v7x's
                             # 256-row MXU on conv2; 8 keeps demo-batch padding low)
K = 7                        # conv kernel size
CIN, CIN_PAD = 3, 4          # input channels (padded to 4)
H0, W0 = 28, 28              # input spatial size (so the flatten == 256)
W0P = 32                     # W padded 28 -> 32  => x slab is 128 lanes
C1, C2, C3 = 16, 32, 64      # conv output channels
H1, W1 = H0 - K + 1, W0 - K + 1      # 22, 22  after conv1
W1P = 24                     # conv1 output width padded 22 -> 24 => 384 lanes
H2, W2 = H1 - K + 1, W1 - K + 1      # 16, 16  after conv2
HP, WP = H2 // 2, W2 // 2            # 8, 8    after AvgPool2d(2,2)
H3, W3 = HP - K + 1, WP - K + 1      # 2, 2    after conv3


# --------------------------------------------------------------------------
# Fused kernel: IMB images per grid step, everything VMEM-resident.
# Activation layout: 2-D slab, rows interleaved as  row = h*IMB + img,
# columns = (w, c).  Row-tap i of a 7x7 conv then lives at sublane-aligned
# offset i*IMB, so the 7 shifted slices concat (along lanes) into one wide-K
# matmul with M = IMB*h_out and no relayout copies.
# --------------------------------------------------------------------------
def _toy_fused_kernel(x_ref, t1_ref, bs1_ref, t2_ref, bs2_ref, ph_ref,
                      t3_ref, bs3_ref, fc1w_ref, fc1b_ref, fc2w_ref, fc2b_ref,
                      o_ref):
    f32, bf16 = jnp.float32, jnp.bfloat16

    def conv_block(act, t_ref, bs_ref, m_out):
        # act: bf16 (rows, wc_in); one wide-K matmul for all 7 row taps.
        lhs = jnp.concatenate(
            [act[i * IMB:i * IMB + m_out, :] for i in range(K)], axis=-1)
        out = jnp.dot(lhs, t_ref[...], preferred_element_type=f32)
        # f32 epilogue (v5e has no bf16 VPU): scaled bias -> ReLU -> BN shift.
        # Dropout = identity (eval).
        return jnp.maximum(out + bs_ref[0:1, :], 0.0) + bs_ref[1:2, :]

    x = x_ref[...]                                                  # (224, 128) bf16
    a1 = conv_block(x, t1_ref, bs1_ref, H1 * IMB).astype(bf16)      # (176, 384)
    a2 = conv_block(a1, t2_ref, bs2_ref, H2 * IMB).astype(bf16)     # (128, 512)

    # AvgPool2d(2,2): row half = tiny bf16 matmul (keeps interleaved layout),
    # width half is folded into conv3's Toeplitz weights.
    rp = jnp.dot(ph_ref[...], a2, preferred_element_type=f32).astype(bf16)  # (64, 512)

    a3 = conv_block(rp, t3_ref, bs3_ref, H3 * IMB).astype(bf16)     # (16, 128)

    # NCHW-flatten per image = lane-concat of the two aligned oh-row groups
    # (fc1 rows were pre-permuted to this (oh, ow, c) order).
    flat = jnp.concatenate([a3[0:IMB, :], a3[IMB:2 * IMB, :]], axis=-1)     # (8, 256)

    h = jnp.dot(flat, fc1w_ref[...], preferred_element_type=f32) + fc1b_ref[...]
    h = jnp.maximum(h, 0.0).astype(bf16)                 # Linear(256,512)+BN1d, ReLU
    o_ref[...] = (jnp.dot(h, fc2w_ref[...], preferred_element_type=f32)
                  + fc2b_ref[...])                       # (8, 128), cols >=32 are 0


# --------------------------------------------------------------------------
# Host-side prep: Toeplitz expansion, BN folding, pooling / flatten plumbing.
# --------------------------------------------------------------------------
def _bn_eval_scale_shift(c):
    # BatchNorm (eval) with default init: gamma=1, beta=0, mean=0, var=1.
    gamma = np.ones((c,), np.float32)
    beta = np.zeros((c,), np.float32)
    mean = np.zeros((c,), np.float32)
    var = np.ones((c,), np.float32)
    scale = gamma / np.sqrt(var + EPS)
    shift = beta - mean * scale
    return scale, shift


def _conv_toeplitz(w_oihw, b, w_in, w_out_valid, w_out_pad, cin_pad=None):
    """PyTorch conv weight (Cout,Cin,KH,KW) -> per-row-tap Toeplitz matrices.

    Returns:
      T  : (KH, w_in*Cin_eff, w_out_pad*Cout) f32, BN scale folded in
      bs : (2,  w_out_pad*Cout) f32; row0 = tiled bias*scale, row1 = tiled shift
           (padded output columns get 0 so they stay exactly zero).
    NOTE: folding the BN scale through ReLU is only valid for scale > 0 (true
    for the default gamma=1 / var=1 init used here).
    """
    w_oihw = np.asarray(w_oihw, np.float32)
    cout = w_oihw.shape[0]
    scale, shift = _bn_eval_scale_shift(cout)
    w = np.transpose(w_oihw, (2, 3, 1, 0)) * scale[None, None, None, :]  # (KH,KW,Cin,Cout)
    if cin_pad is not None and cin_pad > w.shape[2]:
        w = np.pad(w, ((0, 0), (0, 0), (0, cin_pad - w.shape[2]), (0, 0)))
    kh, kw, cin, _ = w.shape
    T = np.zeros((kh, w_in * cin, w_out_pad * cout), np.float32)
    for ow in range(w_out_valid):
        for j in range(kw):
            T[:, (ow + j) * cin:(ow + j + 1) * cin,
              ow * cout:(ow + 1) * cout] = w[:, j]
    bias = np.zeros((w_out_pad * cout,), np.float32)
    sh = np.zeros_like(bias)
    bias[:w_out_valid * cout] = np.tile(np.asarray(b, np.float32) * scale, w_out_valid)
    sh[:w_out_valid * cout] = np.tile(shift, w_out_valid)
    return T, np.stack([bias, sh])


def init_params(key, feat_size=FEAT_SIZE):
    assert feat_size <= FEAT_PAD
    ks = jax.random.split(key, 10)

    def u(k, shape, fan_in):                      # torch default uniform init
        bound = 1.0 / float(np.sqrt(fan_in))
        return np.asarray(jax.random.uniform(k, shape, jnp.float32, -bound, bound))

    p = {}

    # conv1: Cin padded 3->4, input width padded 28->32, output width 22->24.
    T1, bs1 = _conv_toeplitz(u(ks[0], (C1, CIN, K, K), CIN * K * K),
                             u(ks[1], (C1,), CIN * K * K),
                             w_in=W0P, w_out_valid=W1, w_out_pad=W1P,
                             cin_pad=CIN_PAD)
    p["t1"] = jnp.asarray(T1.reshape(K * W0P * CIN_PAD, W1P * C1), jnp.bfloat16)  # (896,384)
    p["bs1"] = jnp.asarray(bs1, jnp.float32)

    # conv2: input width 24 (incl. zero-pad cols), output 16x32 = 512 lanes.
    T2, bs2 = _conv_toeplitz(u(ks[2], (C2, C1, K, K), C1 * K * K),
                             u(ks[3], (C2,), C1 * K * K),
                             w_in=W1P, w_out_valid=W2, w_out_pad=W2)
    p["t2"] = jnp.asarray(T2.reshape(K * W1P * C1, W2 * C2), jnp.bfloat16)        # (2688,512)
    p["bs2"] = jnp.asarray(bs2, jnp.float32)

    # conv3, with the width half of AvgPool2d folded into its Toeplitz.
    T3, bs3 = _conv_toeplitz(u(ks[4], (C3, C2, K, K), C2 * K * K),
                             u(ks[5], (C3,), C2 * K * K),
                             w_in=WP, w_out_valid=W3, w_out_pad=W3)               # (7,256,128)
    PW = np.zeros((W2 * C2, WP * C2), np.float32)         # width-avgpool (right mult)
    for w2i in range(W2):
        for c in range(C2):
            PW[w2i * C2 + c, (w2i // 2) * C2 + c] = 0.5
    T3f = np.einsum("ij,kjn->kin", PW, T3)                                        # (7,512,128)
    p["t3"] = jnp.asarray(T3f.reshape(K * W2 * C2, W3 * C3), jnp.bfloat16)        # (3584,128)
    p["bs3"] = jnp.asarray(bs3, jnp.float32)

    # Row half of AvgPool2d as a tiny matmul on the interleaved slab
    # (row = h*IMB + img): pooled[hp*IMB+img] = 0.5*(a2[2hp*IMB+img]+a2[(2hp+1)*IMB+img]).
    PH = np.zeros((HP * IMB, H2 * IMB), np.float32)
    for hp in range(HP):
        for im in range(IMB):
            PH[hp * IMB + im, (2 * hp) * IMB + im] = 0.5
            PH[hp * IMB + im, (2 * hp + 1) * IMB + im] = 0.5
    p["ph"] = jnp.asarray(PH, jnp.bfloat16)

    # fc1 (Linear 256->512) + BatchNorm1d(512) fully folded.  Rows permuted from
    # torch's NCHW flatten order (c*4 + oh*2 + ow) to our (oh*128 + ow*64 + c).
    w_t = u(ks[6], (512, H3 * W3 * C3), H3 * W3 * C3)
    b_t = u(ks[7], (512,), H3 * W3 * C3)
    scale, shift = _bn_eval_scale_shift(512)
    w_perm = np.transpose(w_t.reshape(512, C3, H3, W3),
                          (2, 3, 1, 0)).reshape(H3 * W3 * C3, 512)
    p["fc1_w"] = jnp.asarray(w_perm * scale[None, :], jnp.bfloat16)               # (256,512)
    p["fc1_b"] = jnp.asarray((b_t * scale + shift).reshape(1, 512), jnp.float32)

    # fc2 (Linear 512->feat), output columns zero-padded feat -> 128.
    w_t = u(ks[8], (feat_size, 512), 512)
    b_t = u(ks[9], (feat_size,), 512)
    fc2w = np.zeros((512, FEAT_PAD), np.float32)
    fc2w[:, :feat_size] = w_t.T
    fc2b = np.zeros((1, FEAT_PAD), np.float32)
    fc2b[0, :feat_size] = b_t
    p["fc2_w"] = jnp.asarray(fc2w, jnp.bfloat16)
    p["fc2_b"] = jnp.asarray(fc2b, jnp.float32)

    # NOTE: self.preds (Linear(16, feat)) is unused by forward() and omitted.
    return p


# --------------------------------------------------------------------------
# Forward pass
# --------------------------------------------------------------------------
def _resident(a):
    """Whole-array VMEM-resident block (same block index for every grid step)."""
    zeros = (0,) * a.ndim
    return pl.BlockSpec(a.shape, lambda b, _z=zeros: _z)


@jax.jit
def toy_model_forward(x_nchw, params):
    B = x_nchw.shape[0]
    nblk = (B + IMB - 1) // IMB
    b_pad = nblk * IMB
    wc = W0P * CIN_PAD                                    # 128 lanes

    # NCHW -> NHWC, bf16 (halves the per-step DMA), pad batch / W(28->32) / Cin(3->4).
    x = jnp.transpose(x_nchw, (0, 2, 3, 1)).astype(jnp.bfloat16)
    x = jnp.pad(x, ((0, b_pad - B), (0, 0), (0, W0P - W0), (0, CIN_PAD - CIN)))
    x = x.reshape(b_pad, H0, wc)
    # Interleave rows within each IMB-image block: row = h*IMB + img.
    x = (x.reshape(nblk, IMB, H0, wc).transpose(0, 2, 1, 3)
           .reshape(nblk * H0 * IMB, wc))

    args = (x, params["t1"], params["bs1"], params["t2"], params["bs2"],
            params["ph"], params["t3"], params["bs3"],
            params["fc1_w"], params["fc1_b"], params["fc2_w"], params["fc2_b"])

    in_specs = [pl.BlockSpec((H0 * IMB, wc), lambda b: (b, 0))]
    in_specs += [_resident(a) for a in args[1:]]

    out = pl.pallas_call(
        _toy_fused_kernel,
        grid=(nblk,),
        out_shape=jax.ShapeDtypeStruct((b_pad, FEAT_PAD), jnp.float32),
        in_specs=in_specs,
        out_specs=pl.BlockSpec((IMB, FEAT_PAD), lambda b: (b, 0)),
        compiler_params=pltpu.CompilerParams(
            # For tiny batches keep one core so the ~4.5 MiB weight set is DMA'd
            # once; split the batch across v7x's two TensorCores only when each
            # core gets at least two 8-image blocks.
            dimension_semantics=(("parallel",) if nblk >= 4 else ("arbitrary",)),
            vmem_limit_bytes=32 * 1024 * 1024),
    )(*args)
    return out[:B, :FEAT_SIZE]


if __name__ == "__main__":
    key = jax.random.PRNGKey(0)
    k_x, k_p = jax.random.split(key)

    # 28x28 input is what the module implies: 28 -conv7-> 22 -conv7-> 16
    # -pool-> 8 -conv7-> 2, and 64*2*2 = 256 = fc1 input features.
    x = jax.random.normal(k_x, (2, CIN, H0, W0), dtype=jnp.float32)   # NCHW like torch
    params = init_params(k_p, FEAT_SIZE)

    out = toy_model_forward(x, params)
    out = jax.block_until_ready(out)
    assert out.shape == (2, FEAT_SIZE), out.shape
    assert bool(jnp.all(jnp.isfinite(out)))
    print("KERNEL_OK")
</pallas_src>

<mosaic_0001>
module attributes {stable_mosaic.version = 11 : i64} {
  func.func @_toy_fused_kernel(%arg0: i32, %arg1: memref<224x128xbf16, #tpu.memory_space<vmem>>, %arg2: memref<896x384xbf16, #tpu.memory_space<vmem>>, %arg3: memref<2x384xf32, #tpu.memory_space<vmem>>, %arg4: memref<2688x512xbf16, #tpu.memory_space<vmem>>, %arg5: memref<2x512xf32, #tpu.memory_space<vmem>>, %arg6: memref<64x128xbf16, #tpu.memory_space<vmem>>, %arg7: memref<3584x128xbf16, #tpu.memory_space<vmem>>, %arg8: memref<2x128xf32, #tpu.memory_space<vmem>>, %arg9: memref<256x512xbf16, #tpu.memory_space<vmem>>, %arg10: memref<1x512xf32, #tpu.memory_space<vmem>>, %arg11: memref<512x128xbf16, #tpu.memory_space<vmem>>, %arg12: memref<1x128xf32, #tpu.memory_space<vmem>>, %arg13: memref<8x128xf32, #tpu.memory_space<vmem>>) attributes {dimension_semantics = [#tpu.dimension_semantics<arbitrary>], iteration_bounds = array<i64: 1>, scalar_prefetch = 0 : i64, scratch_operands = 0 : i64, tpu.core_type = #tpu.core_type<tc>, window_params = [{transform_indices = @transform_0, window_bounds = array<i64: 224, 128>}, {pipeline_mode = #tpu.pipeline_mode<synchronous>, transform_indices = @transform_1, window_bounds = array<i64: 896, 384>}, {pipeline_mode = #tpu.pipeline_mode<synchronous>, transform_indices = @transform_2, window_bounds = array<i64: 2, 384>}, {pipeline_mode = #tpu.pipeline_mode<synchronous>, transform_indices = @transform_3, window_bounds = array<i64: 2688, 512>}, {pipeline_mode = #tpu.pipeline_mode<synchronous>, transform_indices = @transform_4, window_bounds = array<i64: 2, 512>}, {pipeline_mode = #tpu.pipeline_mode<synchronous>, transform_indices = @transform_5, window_bounds = array<i64: 64, 128>}, {pipeline_mode = #tpu.pipeline_mode<synchronous>, transform_indices = @transform_6, window_bounds = array<i64: 3584, 128>}, {pipeline_mode = #tpu.pipeline_mode<synchronous>, transform_indices = @transform_7, window_bounds = array<i64: 2, 128>}, {pipeline_mode = #tpu.pipeline_mode<synchronous>, transform_indices = @transform_8, window_bounds = array<i64: 256, 512>}, {pipeline_mode = #tpu.pipeline_mode<synchronous>, transform_indices = @transform_9, window_bounds = array<i64: 1, 512>}, {pipeline_mode = #tpu.pipeline_mode<synchronous>, transform_indices = @transform_10, window_bounds = array<i64: 512, 128>}, {pipeline_mode = #tpu.pipeline_mode<synchronous>, transform_indices = @transform_11, window_bounds = array<i64: 1, 128>}, {transform_indices = @transform_12, window_bounds = array<i64: 8, 128>}]} {
    %c0 = arith.constant 0 : index
    %c0_0 = arith.constant 0 : index
    %0 = vector.load %arg1[%c0, %c0_0] : memref<224x128xbf16, #tpu.memory_space<vmem>>, vector<224x128xbf16>
    %1 = vector.extract_strided_slice %0 {offsets = [0, 0], sizes = [176, 128], strides = [1, 1]} : vector<224x128xbf16> to vector<176x128xbf16>
    %2 = vector.extract_strided_slice %0 {offsets = [8, 0], sizes = [176, 128], strides = [1, 1]} : vector<224x128xbf16> to vector<176x128xbf16>
    %3 = vector.extract_strided_slice %0 {offsets = [16, 0], sizes = [176, 128], strides = [1, 1]} : vector<224x128xbf16> to vector<176x128xbf16>
    %4 = vector.extract_strided_slice %0 {offsets = [24, 0], sizes = [176, 128], strides = [1, 1]} : vector<224x128xbf16> to vector<176x128xbf16>
    %5 = vector.extract_strided_slice %0 {offsets = [32, 0], sizes = [176, 128], strides = [1, 1]} : vector<224x128xbf16> to vector<176x128xbf16>
    %6 = vector.extract_strided_slice %0 {offsets = [40, 0], sizes = [176, 128], strides = [1, 1]} : vector<224x128xbf16> to vector<176x128xbf16>
    %7 = vector.extract_strided_slice %0 {offsets = [48, 0], sizes = [176, 128], strides = [1, 1]} : vector<224x128xbf16> to vector<176x128xbf16>
    %8 = tpu.concatenate %1, %2, %3, %4, %5, %6, %7 in 1 : vector<176x128xbf16>, vector<176x128xbf16>, vector<176x128xbf16>, vector<176x128xbf16>, vector<176x128xbf16>, vector<176x128xbf16>, vector<176x128xbf16> -> vector<176x896xbf16>
    %c0_1 = arith.constant 0 : index
    %c0_2 = arith.constant 0 : index
    %9 = vector.load %arg2[%c0_1, %c0_2] : memref<896x384xbf16, #tpu.memory_space<vmem>>, vector<896x384xbf16>
    %cst = arith.constant dense<0.000000e+00> : vector<176x384xf32>
    %10 = tpu.matmul %8, %9, %cst {dimension_numbers = #tpu.dot_dimension_numbers<[1], [0], [0], [1], [0, 0, 1, 1], [], []>} : vector<176x896xbf16>, vector<896x384xbf16>, vector<176x384xf32> -> vector<176x384xf32>
    %c0_3 = arith.constant 0 : index
    %c0_4 = arith.constant 0 : index
    %11 = vector.load %arg3[%c0_3, %c0_4] : memref<2x384xf32, #tpu.memory_space<vmem>>, vector<1x384xf32>
    %12 = vector.broadcast %11 : vector<1x384xf32> to vector<176x384xf32>
    %13 = arith.addf %10, %12 : vector<176x384xf32>
    %cst_5 = arith.constant 0.000000e+00 : f32
    %14 = vector.broadcast %cst_5 : f32 to vector<176x384xf32>
    %15 = arith.maximumf %13, %14 : vector<176x384xf32>
    %c1 = arith.constant 1 : index
    %c0_6 = arith.constant 0 : index
    %16 = vector.load %arg3[%c1, %c0_6] : memref<2x384xf32, #tpu.memory_space<vmem>>, vector<1x384xf32>
    %17 = vector.broadcast %16 : vector<1x384xf32> to vector<176x384xf32>
    %18 = arith.addf %15, %17 : vector<176x384xf32>
    %19 = arith.truncf %18 : vector<176x384xf32> to vector<176x384xbf16>
    %20 = vector.extract_strided_slice %19 {offsets = [0, 0], sizes = [128, 384], strides = [1, 1]} : vector<176x384xbf16> to vector<128x384xbf16>
    %21 = vector.extract_strided_slice %19 {offsets = [8, 0], sizes = [128, 384], strides = [1, 1]} : vector<176x384xbf16> to vector<128x384xbf16>
    %22 = vector.extract_strided_slice %19 {offsets = [16, 0], sizes = [128, 384], strides = [1, 1]} : vector<176x384xbf16> to vector<128x384xbf16>
    %23 = vector.extract_strided_slice %19 {offsets = [24, 0], sizes = [128, 384], strides = [1, 1]} : vector<176x384xbf16> to vector<128x384xbf16>
    %24 = vector.extract_strided_slice %19 {offsets = [32, 0], sizes = [128, 384], strides = [1, 1]} : vector<176x384xbf16> to vector<128x384xbf16>
    %25 = vector.extract_strided_slice %19 {offsets = [40, 0], sizes = [128, 384], strides = [1, 1]} : vector<176x384xbf16> to vector<128x384xbf16>
    %26 = vector.extract_strided_slice %19 {offsets = [48, 0], sizes = [128, 384], strides = [1, 1]} : vector<176x384xbf16> to vector<128x384xbf16>
    %27 = tpu.concatenate %20, %21, %22, %23, %24, %25, %26 in 1 : vector<128x384xbf16>, vector<128x384xbf16>, vector<128x384xbf16>, vector<128x384xbf16>, vector<128x384xbf16>, vector<128x384xbf16>, vector<128x384xbf16> -> vector<128x2688xbf16>
    %c0_7 = arith.constant 0 : index
    %c0_8 = arith.constant 0 : index
    %28 = vector.load %arg4[%c0_7, %c0_8] : memref<2688x512xbf16, #tpu.memory_space<vmem>>, vector<2688x512xbf16>
    %cst_9 = arith.constant dense<0.000000e+00> : vector<128x512xf32>
    %29 = tpu.matmul %27, %28, %cst_9 {dimension_numbers = #tpu.dot_dimension_numbers<[1], [0], [0], [1], [0, 0, 1, 1], [], []>} : vector<128x2688xbf16>, vector<2688x512xbf16>, vector<128x512xf32> -> vector<128x512xf32>
    %c0_10 = arith.constant 0 : index
    %c0_11 = arith.constant 0 : index
    %30 = vector.load %arg5[%c0_10, %c0_11] : memref<2x512xf32, #tpu.memory_space<vmem>>, vector<1x512xf32>
    %31 = vector.broadcast %30 : vector<1x512xf32> to vector<128x512xf32>
    %32 = arith.addf %29, %31 : vector<128x512xf32>
    %cst_12 = arith.constant 0.000000e+00 : f32
    %33 = vector.broadcast %cst_12 : f32 to vector<128x512xf32>
    %34 = arith.maximumf %32, %33 : vector<128x512xf32>
    %c1_13 = arith.constant 1 : index
    %c0_14 = arith.constant 0 : index
    %35 = vector.load %arg5[%c1_13, %c0_14] : memref<2x512xf32, #tpu.memory_space<vmem>>, vector<1x512xf32>
    %36 = vector.broadcast %35 : vector<1x512xf32> to vector<128x512xf32>
    %37 = arith.addf %34, %36 : vector<128x512xf32>
    %38 = arith.truncf %37 : vector<128x512xf32> to vector<128x512xbf16>
    %c0_15 = arith.constant 0 : index
    %c0_16 = arith.constant 0 : index
    %39 = vector.load %arg6[%c0_15, %c0_16] : memref<64x128xbf16, #tpu.memory_space<vmem>>, vector<64x128xbf16>
    %cst_17 = arith.constant dense<0.000000e+00> : vector<64x512xf32>
    %40 = tpu.matmul %39, %38, %cst_17 {dimension_numbers = #tpu.dot_dimension_numbers<[1], [0], [0], [1], [0, 0, 1, 1], [], []>} : vector<64x128xbf16>, vector<128x512xbf16>, vector<64x512xf32> -> vector<64x512xf32>
    %41 = arith.truncf %40 : vector<64x512xf32> to vector<64x512xbf16>
    %42 = vector.extract_strided_slice %41 {offsets = [0, 0], sizes = [16, 512], strides = [1, 1]} : vector<64x512xbf16> to vector<16x512xbf16>
    %43 = vector.extract_strided_slice %41 {offsets = [8, 0], sizes = [16, 512], strides = [1, 1]} : vector<64x512xbf16> to vector<16x512xbf16>
    %44 = vector.extract_strided_slice %41 {offsets = [16, 0], sizes = [16, 512], strides = [1, 1]} : vector<64x512xbf16> to vector<16x512xbf16>
    %45 = vector.extract_strided_slice %41 {offsets = [24, 0], sizes = [16, 512], strides = [1, 1]} : vector<64x512xbf16> to vector<16x512xbf16>
    %46 = vector.extract_strided_slice %41 {offsets = [32, 0], sizes = [16, 512], strides = [1, 1]} : vector<64x512xbf16> to vector<16x512xbf16>
    %47 = vector.extract_strided_slice %41 {offsets = [40, 0], sizes = [16, 512], strides = [1, 1]} : vector<64x512xbf16> to vector<16x512xbf16>
    %48 = vector.extract_strided_slice %41 {offsets = [48, 0], sizes = [16, 512], strides = [1, 1]} : vector<64x512xbf16> to vector<16x512xbf16>
    %49 = tpu.concatenate %42, %43, %44, %45, %46, %47, %48 in 1 : vector<16x512xbf16>, vector<16x512xbf16>, vector<16x512xbf16>, vector<16x512xbf16>, vector<16x512xbf16>, vector<16x512xbf16>, vector<16x512xbf16> -> vector<16x3584xbf16>
    %c0_18 = arith.constant 0 : index
    %c0_19 = arith.constant 0 : index
    %50 = vector.load %arg7[%c0_18, %c0_19] : memref<3584x128xbf16, #tpu.memory_space<vmem>>, vector<3584x128xbf16>
    %cst_20 = arith.constant dense<0.000000e+00> : vector<16x128xf32>
    %51 = tpu.matmul %49, %50, %cst_20 {dimension_numbers = #tpu.dot_dimension_numbers<[1], [0], [0], [1], [0, 0, 1, 1], [], []>} : vector<16x3584xbf16>, vector<3584x128xbf16>, vector<16x128xf32> -> vector<16x128xf32>
    %c0_21 = arith.constant 0 : index
    %c0_22 = arith.constant 0 : index
    %52 = vector.load %arg8[%c0_21, %c0_22] : memref<2x128xf32, #tpu.memory_space<vmem>>, vector<1x128xf32>
    %53 = vector.broadcast %52 : vector<1x128xf32> to vector<16x128xf32>
    %54 = arith.addf %51, %53 : vector<16x128xf32>
    %cst_23 = arith.constant 0.000000e+00 : f32
    %55 = vector.broadcast %cst_23 : f32 to vector<16x128xf32>
    %56 = arith.maximumf %54, %55 : vector<16x128xf32>
    %c1_24 = arith.constant 1 : index
    %c0_25 = arith.constant 0 : index
    %57 = vector.load %arg8[%c1_24, %c0_25] : memref<2x128xf32, #tpu.memory_space<vmem>>, vector<1x128xf32>
    %58 = vector.broadcast %57 : vector<1x128xf32> to vector<16x128xf32>
    %59 = arith.addf %56, %58 : vector<16x128xf32>
    %60 = arith.truncf %59 : vector<16x128xf32> to vector<16x128xbf16>
    %61 = vector.extract_strided_slice %60 {offsets = [0, 0], sizes = [8, 128], strides = [1, 1]} : vector<16x128xbf16> to vector<8x128xbf16>
    %62 = vector.extract_strided_slice %60 {offsets = [8, 0], sizes = [8, 128], strides = [1, 1]} : vector<16x128xbf16> to vector<8x128xbf16>
    %63 = tpu.concatenate %61, %62 in 1 : vector<8x128xbf16>, vector<8x128xbf16> -> vector<8x256xbf16>
    %c0_26 = arith.constant 0 : index
    %c0_27 = arith.constant 0 : index
    %64 = vector.load %arg9[%c0_26, %c0_27] : memref<256x512xbf16, #tpu.memory_space<vmem>>, vector<256x512xbf16>
    %cst_28 = arith.constant dense<0.000000e+00> : vector<8x512xf32>
    %65 = tpu.matmul %63, %64, %cst_28 {dimension_numbers = #tpu.dot_dimension_numbers<[1], [0], [0], [1], [0, 0, 1, 1], [], []>} : vector<8x256xbf16>, vector<256x512xbf16>, vector<8x512xf32> -> vector<8x512xf32>
    %c0_29 = arith.constant 0 : index
    %c0_30 = arith.constant 0 : index
    %66 = vector.load %arg10[%c0_29, %c0_30] : memref<1x512xf32, #tpu.memory_space<vmem>>, vector<1x512xf32>
    %67 = vector.broadcast %66 : vector<1x512xf32> to vector<8x512xf32>
    %68 = arith.addf %65, %67 : vector<8x512xf32>
    %cst_31 = arith.constant 0.000000e+00 : f32
    %69 = vector.broadcast %cst_31 : f32 to vector<8x512xf32>
    %70 = arith.maximumf %68, %69 : vector<8x512xf32>
    %71 = arith.truncf %70 : vector<8x512xf32> to vector<8x512xbf16>
    %c0_32 = arith.constant 0 : index
    %c0_33 = arith.constant 0 : index
    %72 = vector.load %arg11[%c0_32, %c0_33] : memref<512x128xbf16, #tpu.memory_space<vmem>>, vector<512x128xbf16>
    %cst_34 = arith.constant dense<0.000000e+00> : vector<8x128xf32>
    %73 = tpu.matmul %71, %72, %cst_34 {dimension_numbers = #tpu.dot_dimension_numbers<[1], [0], [0], [1], [0, 0, 1, 1], [], []>} : vector<8x512xbf16>, vector<512x128xbf16>, vector<8x128xf32> -> vector<8x128xf32>
    %c0_35 = arith.constant 0 : index
    %c0_36 = arith.constant 0 : index
    %74 = vector.load %arg12[%c0_35, %c0_36] : memref<1x128xf32, #tpu.memory_space<vmem>>, vector<1x128xf32>
    %75 = vector.broadcast %74 : vector<1x128xf32> to vector<8x128xf32>
    %76 = arith.addf %73, %75 : vector<8x128xf32>
    %c0_37 = arith.constant 0 : index
    %c0_38 = arith.constant 0 : index
    %77 = vector.load %arg13[%c0_37, %c0_38] : memref<8x128xf32, #tpu.memory_space<vmem>>, vector<8x128xf32>
    tpu.vector_store %arg13[%c0_37, %c0_38], %76 {strides = array<i32>} : memref<8x128xf32, #tpu.memory_space<vmem>>, vector<8x128xf32>,
    return
  }
  func.func @transform_0(%arg0: i32) -> (i32, i32) {
    %c0_i32 = arith.constant 0 : i32
    %c0_i32_0 = arith.constant 0 : i32
    return %arg0, %c0_i32 : i32, i32
  }
  func.func @transform_1(%arg0: i32) -> (i32, i32) {
    %c0_i32 = arith.constant 0 : i32
    %c0_i32_0 = arith.constant 0 : i32
    %c0_i32_1 = arith.constant 0 : i32
    return %c0_i32, %c0_i32_0 : i32, i32
  }
  func.func @transform_2(%arg0: i32) -> (i32, i32) {
    %c0_i32 = arith.constant 0 : i32
    %c0_i32_0 = arith.constant 0 : i32
    %c0_i32_1 = arith.constant 0 : i32
    return %c0_i32, %c0_i32_0 : i32, i32
  }
  func.func @transform_3(%arg0: i32) -> (i32, i32) {
    %c0_i32 = arith.constant 0 : i32
    %c0_i32_0 = arith.constant 0 : i32
    %c0_i32_1 = arith.constant 0 : i32
    return %c0_i32, %c0_i32_0 : i32, i32
  }
  func.func @transform_4(%arg0: i32) -> (i32, i32) {
    %c0_i32 = arith.constant 0 : i32
    %c0_i32_0 = arith.constant 0 : i32
    %c0_i32_1 = arith.constant 0 : i32
    return %c0_i32, %c0_i32_0 : i32, i32
  }
  func.func @transform_5(%arg0: i32) -> (i32, i32) {
    %c0_i32 = arith.constant 0 : i32
    %c0_i32_0 = arith.constant 0 : i32
    %c0_i32_1 = arith.constant 0 : i32
    return %c0_i32, %c0_i32_0 : i32, i32
  }
  func.func @transform_6(%arg0: i32) -> (i32, i32) {
    %c0_i32 = arith.constant 0 : i32
    %c0_i32_0 = arith.constant 0 : i32
    %c0_i32_1 = arith.constant 0 : i32
    return %c0_i32, %c0_i32_0 : i32, i32
  }
  func.func @transform_7(%arg0: i32) -> (i32, i32) {
    %c0_i32 = arith.constant 0 : i32
    %c0_i32_0 = arith.constant 0 : i32
    %c0_i32_1 = arith.constant 0 : i32
    return %c0_i32, %c0_i32_0 : i32, i32
  }
  func.func @transform_8(%arg0: i32) -> (i32, i32) {
    %c0_i32 = arith.constant 0 : i32
    %c0_i32_0 = arith.constant 0 : i32
    %c0_i32_1 = arith.constant 0 : i32
    return %c0_i32, %c0_i32_0 : i32, i32
  }
  func.func @transform_9(%arg0: i32) -> (i32, i32) {
    %c0_i32 = arith.constant 0 : i32
    %c0_i32_0 = arith.constant 0 : i32
    %c0_i32_1 = arith.constant 0 : i32
    return %c0_i32, %c0_i32_0 : i32, i32
  }
  func.func @transform_10(%arg0: i32) -> (i32, i32) {
    %c0_i32 = arith.constant 0 : i32
    %c0_i32_0 = arith.constant 0 : i32
    %c0_i32_1 = arith.constant 0 : i32
    return %c0_i32, %c0_i32_0 : i32, i32
  }
  func.func @transform_11(%arg0: i32) -> (i32, i32) {
    %c0_i32 = arith.constant 0 : i32
    %c0_i32_0 = arith.constant 0 : i32
    %c0_i32_1 = arith.constant 0 : i32
    return %c0_i32, %c0_i32_0 : i32, i32
  }
  func.func @transform_12(%arg0: i32) -> (i32, i32) {
    %c0_i32 = arith.constant 0 : i32
    %c0_i32_0 = arith.constant 0 : i32
    return %arg0, %c0_i32 : i32, i32
  }
}

</mosaic_0001>

<bundles_post_ra>
// kernel: toy_model_forward.1
= control target key start
LH: loop header
LB: loop body
LE: loop exit
PB: predicated region body
PF: predicated region fallthrough
CT: control target
= control target key end

     0   :  { %17 = vsyncpa [#allocation3], 0  ;;  %s19888_s0 = inlined_call_operand.vmem [shape: bf16[224,128], index: 0, kind: input, shape index: {}]   ;;  %s19889_s1 = inlined_call_operand.hbm [shape: bf16[896,384], index: 1, kind: input, shape index: {}]   ;;  %s19890_s2 = inlined_call_operand.hbm [shape: f32[2,384], index: 2, kind: input, shape index: {}]   ;;  %s19891_s3 = inlined_call_operand.hbm [shape: bf16[2688,512], index: 3, kind: input, shape index: {}]   ;;  %s19892_s4 = inlined_call_operand.hbm [shape: f32[2,512], index: 4, kind: input, shape index: {}]   ;;  %s19893_s5 = inlined_call_operand.hbm [shape: bf16[64,128], index: 5, kind: input, shape index: {}]   ;;  %s19894_s6 = inlined_call_operand.hbm [shape: bf16[3584,128], index: 6, kind: input, shape index: {}]   ;;  %s19895_s7 = inlined_call_operand.hbm [shape: f32[2,128], index: 7, kind: input, shape index: {}]   ;;  %s19896_s8 = inlined_call_operand.hbm [shape: bf16[256,512], index: 8, kind: input, shape index: {}]   ;;  %s19897_s9 = inlined_call_operand.hbm [shape: f32[1,512], index: 9, kind: input, shape index: {}]   ;;  %s19898_s10 = inlined_call_operand.hbm [shape: bf16[512,128], index: 10, kind: input, shape index: {}]   ;;  %s19899_s11 = inlined_call_operand.hbm [shape: f32[1,128], index: 11, kind: input, shape index: {}]   ;;  %s19900_s12 = inlined_call_operand.vmem [shape: f32[8,128], index: 12, kind: output, shape index: {}]  }
   0x1   :  { %18 = vsyncpa [#allocation5], 0 }
   0x2   :  { %19 = vsyncpa [#allocation8], 0 }
   0x3   :  { %20 = vsyncpa [#allocation11], 0 }
   0x4   :  { %21 = vsyncpa [#allocation14], 0 }
   0x5   :  { %22 = vsyncpa [#allocation17], 0  ;;  %s16771_s21 = smov [#allocation4]   ;;  %s16772_s23 = smov [#allocation7]  }
   0x6   :  { %s43_s22 = sshll.u32 %s16771_s21, 4  ;;  %s65_s24 = sshll.u32 %s16772_s23, 4  ;;  %s44_s22 = int_to_ptr.vmem [resolvable:$true] %s43_s22  ;;  %s66_s24 = int_to_ptr.vmem [resolvable:$true] %s65_s24 }
   0x7   :  { %s16547_s25 = scalar_lea.vmem %s44_s22, 96  ;;  %p16552_p1 = scmp.lt.s32.totalorder %s44_s22, %s44_s22 }
   0x8   :  { %p16548_p0 = scmp.ne.s32.totalorder %s44_s22, %s16547_s25  ;;  %p16553_p2 = scmp.lt.s32.totalorder %s16547_s25, %s16547_s25 }
   0xa   :  { %p16554_p3 = por %p16553_p2, %p16552_p1 }
   0xc   :  { %p16555_p4 = pnand %p16554_p3, %p16548_p0 }
   0xe   :  { %16558 = shalt.err (!%p16555_p4)
}
   0xf   :  { %46 = dma.hbm_to_vmem [thread:$0]  %s19890_s2, 96, %s44_s22, [#allocation5]  }
  0x10   :  { %s16567_s28 = scalar_lea.vmem %s66_s24, 128  ;;  %p16572_p6 = scmp.lt.s32.totalorder %s66_s24, %s66_s24 }
  0x11   :  { %p16568_p5 = scmp.ne.s32.totalorder %s66_s24, %s16567_s28  ;;  %p16573_p7 = scmp.lt.s32.totalorder %s16567_s28, %s16567_s28 }
  0x13   :  { %p16574_p8 = por %p16573_p7, %p16572_p6 }
  0x15   :  { %p16575_p9 = pnand %p16574_p8, %p16568_p5 }
  0x17   :  { %16578 = shalt.err (!%p16575_p9)
}
  0x18   :  { %68 = dma.hbm_to_vmem [thread:$0]  %s19892_s4, 128, %s66_s24, [#allocation8]  }
  0x19   :  { %s16773_s13 = smov [#allocation10]  }
  0x1a   :  { %s86_s14 = sshll.u32 %s16773_s13, 4  ;;  %s87_s14 = int_to_ptr.vmem [resolvable:$true] %s86_s14 }
  0x1b   :  { %s16587_s15 = scalar_lea.vmem %s87_s14, 28672  ;;  %p16592_p11 = scmp.lt.s32.totalorder %s87_s14, %s87_s14 }
  0x1c   :  { %p16588_p10 = scmp.ne.s32.totalorder %s87_s14, %s16587_s15  ;;  %p16593_p12 = scmp.lt.s32.totalorder %s16587_s15, %s16587_s15 }
  0x1e   :  { %p16594_p13 = por %p16593_p12, %p16592_p11 }
  0x20   :  { %p16595_p0 = pnand %p16594_p13, %p16588_p10 }
  0x22   :  { %16598 = shalt.err (!%p16595_p0)
}
  0x23   :  { %s16774_s2 = smov 64   ;;  %s16775_s16 = smov 4  }
  0x24   :  { %92 = dma.hbm_to_vmem [thread:$0]  %s19894_s6, 28672, %s87_s14, [#allocation11], %s16774_s2, %s16774_s2, %s16775_s16  }
  0x25   :  { %s16776_s4 = smov [#allocation13]   ;;  %s16777_s20 = smov [#allocation16]  }
  0x26   :  { %s108_s19 = sshll.u32 %s16776_s4, 4  ;;  %s130_s21 = sshll.u32 %s16777_s20, 4  ;;  %s109_s19 = int_to_ptr.vmem [resolvable:$true] %s108_s19  ;;  %s131_s21 = int_to_ptr.vmem [resolvable:$true] %s130_s21 }
  0x27   :  { %s16607_s22 = scalar_lea.vmem %s109_s19, 8192  ;;  %p16612_p2 = scmp.lt.s32.totalorder %s109_s19, %s109_s19 }
  0x28   :  { %p16608_p1 = scmp.ne.s32.totalorder %s109_s19, %s16607_s22  ;;  %p16613_p3 = scmp.lt.s32.totalorder %s16607_s22, %s16607_s22 }
  0x2a   :  { %p16614_p4 = por %p16613_p3, %p16612_p2 }
  0x2c   :  { %p16615_p5 = pnand %p16614_p4, %p16608_p1 }
  0x2e   :  { %16618 = shalt.err (!%p16615_p5)
}
  0x2f   :  { %s16778_s23 = smov 256   ;;  %s16779_s24 = smov 16  }
  0x30   :  { %114 = dma.hbm_to_vmem [thread:$0]  %s19896_s8, 8192, %s109_s19, [#allocation14], %s16778_s23, %s16778_s23, %s16779_s24  }
  0x31   :  { %s16627_s6 = scalar_lea.vmem %s131_s21, 4096  ;;  %p16632_p7 = scmp.lt.s32.totalorder %s131_s21, %s131_s21 }
  0x32   :  { %p16628_p6 = scmp.ne.s32.totalorder %s131_s21, %s16627_s6  ;;  %p16633_p8 = scmp.lt.s32.totalorder %s16627_s6, %s16627_s6 }
  0x34   :  { %p16634_p9 = por %p16633_p8, %p16632_p7 }
  0x36   :  { %p16635_p10 = pnand %p16634_p9, %p16628_p6 }
  0x38   :  { %16638 = shalt.err (!%p16635_p10)
}
  0x39   :  { %136 = dma.hbm_to_vmem [thread:$0]  %s19898_s10, 4096, %s131_s21, [#allocation17], %s16774_s2, %s16774_s2, %s16775_s16  }
  0x3a   :  { %s16780_s29 = smov [#allocation2]  }
  0x3b   :  { %s30_s30 = sshll.u32 %s16780_s29, 4  ;;  %s31_s30 = int_to_ptr.vmem [resolvable:$true] %s30_s30 }
  0x3c   :  { %s16647_s13 = scalar_lea.vmem %s31_s30, 21504  ;;  %p16652_p12 = scmp.lt.s32.totalorder %s31_s30, %s31_s30 }
  0x3d   :  { %p16648_p11 = scmp.ne.s32.totalorder %s31_s30, %s16647_s13  ;;  %p16653_p13 = scmp.lt.s32.totalorder %s16647_s13, %s16647_s13 }
  0x3f   :  { %p16654_p0 = por %p16653_p13, %p16652_p12 }
  0x41   :  { %p16655_p1 = pnand %p16654_p0, %p16648_p11 }
  0x43   :  { %16658 = shalt.err (!%p16655_p1)
}
  0x44   :  { %s16781_s8 = smov 192   ;;  %s16782_s14 = smov 12  }
  0x45   :  { %36 = dma.hbm_to_vmem [thread:$0]  %s19889_s1, 21504, %s31_s30, [#allocation3], %s16781_s8, %s16781_s8, %s16782_s14  }
  0x46   :  { %s16783_s18 = smov [#allocation6]   ;;  %s16784_s19 = smov [#allocation9]  }
  0x47   :  { %s52_s4 = sshll.u32 %s16783_s18, 4  ;;  %s74_s10 = sshll.u32 %s16784_s19, 4  ;;  %s53_s4 = int_to_ptr.vmem [resolvable:$true] %s52_s4  ;;  %s75_s10 = int_to_ptr.vmem [resolvable:$true] %s74_s10 }
  0x48   :  { %s16667_s20 = scalar_lea.vmem %s53_s4, 86016  ;;  %p16672_p3 = scmp.lt.s32.totalorder %s53_s4, %s53_s4 }
  0x49   :  { %p16668_p2 = scmp.ne.s32.totalorder %s53_s4, %s16667_s20  ;;  %p16673_p4 = scmp.lt.s32.totalorder %s16667_s20, %s16667_s20 }
  0x4b   :  { %p16674_p5 = por %p16673_p4, %p16672_p3 }
  0x4d   :  { %p16675_p6 = pnand %p16674_p5, %p16668_p2 }
  0x4f   :  { %16678 = shalt.err (!%p16675_p6)
}
  0x50   :  { %58 = dma.hbm_to_vmem [thread:$0]  %s19891_s3, 86016, %s53_s4, [#allocation5], %s16778_s23, %s16778_s23, %s16779_s24  }
  0x51   :  { %s16687_s1 = scalar_lea.vmem %s75_s10, 512  ;;  %p16692_p8 = scmp.lt.s32.totalorder %s75_s10, %s75_s10 }
  0x52   :  { %p16688_p7 = scmp.ne.s32.totalorder %s75_s10, %s16687_s1  ;;  %p16693_p9 = scmp.lt.s32.totalorder %s16687_s1, %s16687_s1 }
  0x54   :  { %p16694_p10 = por %p16693_p9, %p16692_p8 }
  0x56   :  { %p16695_p11 = pnand %p16694_p10, %p16688_p7 }
  0x58   :  { %16698 = shalt.err (!%p16695_p11)
}
  0x59   :  { %80 = dma.hbm_to_vmem [thread:$0]  %s19893_s5, 512, %s75_s10, [#allocation8], %s16774_s2, %s16774_s2, %s16775_s16  }
  0x5a   :  { %s16785_s6 = smov [#allocation12]   ;;  %s16786_s28 = smov [#allocation15]  }
  0x5b   :  { %s99_s27 = sshll.u32 %s16785_s6, 4  ;;  %s121_s29 = sshll.u32 %s16786_s28, 4  ;;  %s100_s27 = int_to_ptr.vmem [resolvable:$true] %s99_s27  ;;  %s122_s29 = int_to_ptr.vmem [resolvable:$true] %s121_s29 }
  0x5c   :  { %s16707_s3 = scalar_lea.vmem %s100_s27, 32  ;;  %p16712_p13 = scmp.lt.s32.totalorder %s100_s27, %s100_s27 }
  0x5d   :  { %p16708_p12 = scmp.ne.s32.totalorder %s100_s27, %s16707_s3  ;;  %p16713_p0 = scmp.lt.s32.totalorder %s16707_s3, %s16707_s3 }
  0x5f   :  { %p16714_p1 = por %p16713_p0, %p16712_p13 }
  0x61   :  { %p16715_p2 = pnand %p16714_p1, %p16708_p12 }
  0x63   :  { %16718 = shalt.err (!%p16715_p2)
}
  0x64   :  { %102 = dma.hbm_to_vmem [thread:$0]  %s19895_s7, 32, %s100_s27, [#allocation11]  }
  0x65   :  { %s16727_s30 = scalar_lea.vmem %s122_s29, 64  ;;  %p16732_p4 = scmp.lt.s32.totalorder %s122_s29, %s122_s29 }
  0x66   :  { %p16728_p3 = scmp.ne.s32.totalorder %s122_s29, %s16727_s30  ;;  %p16733_p5 = scmp.lt.s32.totalorder %s16727_s30, %s16727_s30 }
  0x68   :  { %p16734_p6 = por %p16733_p5, %p16732_p4 }
  0x6a   :  { %p16735_p7 = pnand %p16734_p6, %p16728_p3 }
  0x6c   :  { %16738 = shalt.err (!%p16735_p7)
}
  0x6d   :  { %124 = dma.hbm_to_vmem [thread:$0]  %s19897_s9, 64, %s122_s29, [#allocation14]  }
  0x6e   :  { %s16787_s16 = smov [#allocation18]  }
  0x6f   :  { %s143_s13 = sshll.u32 %s16787_s16, 4  ;;  %s144_s13 = int_to_ptr.vmem [resolvable:$true] %s143_s13 }
  0x70   :  { %s16747_s8 = scalar_lea.vmem %s144_s13, 16  ;;  %s16751_s14 = scalar_lea.vmem %s144_s13, 32 }
  0x71   :  { %p16748_p8 = scmp.ne.s32.totalorder %s144_s13, %s16747_s8  ;;  %p16752_p9 = scmp.lt.s32.totalorder %s144_s13, %s144_s13 }
  0x72   :  { %p16753_p10 = scmp.lt.s32.totalorder %s16751_s14, %s16747_s8 }
  0x74   :  { %p16754_p11 = por %p16753_p10, %p16752_p9 }
  0x76   :  { %p16755_p12 = pnand %p16754_p11, %p16748_p8 }
  0x78   :  { %16758 = shalt.err (!%p16755_p12)
}
  0x79   :  { %146 = dma.hbm_to_vmem [thread:$0]  %s19899_s11, 16, %s144_s13, [#allocation17]  }
  0x7a   :  { %16759 = dma.done.wait [#allocation3], 21504  }
  0x7b   :  { %16760 = vsyncadd [#allocation3], 4294945792 }
  0x7c   :  { %16761 = dma.done.wait [#allocation5], 86112  }
  0x7d   :  { %16762 = vsyncadd [#allocation5], 4294881184 }
  0x7e   :  { %16763 = dma.done.wait [#allocation8], 640  }
  0x7f   :  { %16764 = vsyncadd [#allocation8], 4294966656 }
  0x80   :  { %16765 = dma.done.wait [#allocation11], 28704  }
  0x81   :  { %16766 = vsyncadd [#allocation11], 4294938592 }
  0x82   :  { %16767 = dma.done.wait [#allocation14], 8256  }
  0x83   :  { %16768 = vsyncadd [#allocation14], 4294959040 }
  0x84   :  { %16769 = dma.done.wait [#allocation17], 4112  }
  0x85   :  { %16770 = vsyncadd [#allocation17], 4294963184  ;;  %v14920_v0 = vld [vmem:[#allocation2 + $0xac] ss:$12 sps:$4 sm:$0xff]   ;;  %v14924_v2 = vld [vmem:[#allocation2 + $0xa8] ss:$12 sps:$4 sm:$0xff]  }
  0x86   :  { %v14922_v1 = vld [vmem:[#allocation2 + $0x22c] ss:$12 sps:$4 sm:$0xff]   ;;  %1456 = vmatprep.subr.bf16.mxu0 %v14920_v0  ;;  %v14925_v3 = vld [vmem:[#allocation2 + $0x228] ss:$12 sps:$4 sm:$0xff]   ;;  %v14930_v6 = vld [vmem:[#allocation2 + $0x90] ss:$12 sps:$4 sm:$0xff]  }
  0x87   :  { %1599 = vmatprep.subr.bf16.mxu1 %v14922_v1  ;;  %v14926_v4 = vld [vmem:[#allocation2 + $0x94] ss:$12 sps:$4 sm:$0xff]   ;;  %1457 = vmatpush1.bf16.msra.mxu0 %v14924_v2  ;;  %v14931_v7 = vld [vmem:[#allocation2 + $0x210] ss:$12 sps:$4 sm:$0xff]   ;;  %v14936_v10 = vld [vmem:[#allocation2 + $0x78] ss:$12 sps:$4 sm:$0xff]  }
  0x88   :  { %1600 = vmatpush1.bf16.msra.mxu1 %v14925_v3  ;;  %v14928_v5 = vld [vmem:[#allocation2 + $0x214] ss:$12 sps:$4 sm:$0xff]   ;;  %1458 = vmatprep.subr.bf16.mxu0 %v14926_v4  ;;  %v14932_v8 = vld [vmem:[#allocation2 + $0x7c] ss:$12 sps:$4 sm:$0xff]   ;;  %v14937_v11 = vld [vmem:[#allocation2 + $0x1f8] ss:$12 sps:$4 sm:$0xff]  }
  0x89   :  { %1601 = vmatprep.subr.bf16.mxu1 %v14928_v5  ;;  %v14934_v9 = vld [vmem:[#allocation2 + $0x1fc] ss:$12 sps:$4 sm:$0xff]   ;;  %v14938_v12 = vld [vmem:[#allocation2 + $0x64] ss:$12 sps:$4 sm:$0xff]   ;;  %v14942_v14 = vld [vmem:[#allocation2 + $0x60] ss:$12 sps:$4 sm:$0xff]  }
  0x8a   :  { %v14940_v13 = vld [vmem:[#allocation2 + $0x1e4] ss:$12 sps:$4 sm:$0xff]   ;;  %v14943_v15 = vld [vmem:[#allocation2 + $0x1e0] ss:$12 sps:$4 sm:$0xff]   ;;  %v14948_v18 = vld [vmem:[#allocation2 + $0x48] ss:$12 sps:$4 sm:$0xff]  }
  0x8b   :  { %1459 = vmatpush1.bf16.msra.mxu0 %v14930_v6  ;;  %v14944_v16 = vld [vmem:[#allocation2 + $0x4c] ss:$12 sps:$4 sm:$0xff]   ;;  %v14949_v19 = vld [vmem:[#allocation2 + $0x1c8] ss:$12 sps:$4 sm:$0xff]   ;;  %v14954_v22 = vld [vmem:[#allocation2 + $0x30] ss:$12 sps:$4 sm:$0xff]  }
  0x8c   :  { %1602 = vmatpush1.bf16.msra.mxu1 %v14931_v7  ;;  %1460 = vmatprep.subr.bf16.mxu0 %v14932_v8  ;;  %v14946_v17 = vld [vmem:[#allocation2 + $0x1cc] ss:$12 sps:$4 sm:$0xff]   ;;  %v14950_v20 = vld [vmem:[#allocation2 + $0x34] ss:$12 sps:$4 sm:$0xff]   ;;  %v14955_v23 = vld [vmem:[#allocation2 + $0x1b0] ss:$12 sps:$4 sm:$0xff]  }
  0x8d   :  { %1603 = vmatprep.subr.bf16.mxu1 %v14934_v9  ;;  %v14952_v21 = vld [vmem:[#allocation2 + $0x1b4] ss:$12 sps:$4 sm:$0xff]   ;;  %v14956_v24 = vld [vmem:[#allocation2 + $0x1c] ss:$12 sps:$4 sm:$0xff]   ;;  %v14960_v26 = vld [vmem:[#allocation2 + $0x18] ss:$12 sps:$4 sm:$0xff]  }
  0x8e   :  { %v14958_v25 = vld [vmem:[#allocation2 + $0x19c] ss:$12 sps:$4 sm:$0xff]   ;;  %v14961_v27 = vld [vmem:[#allocation2 + $0x198] ss:$12 sps:$4 sm:$0xff]   ;;  %v14966_v30 = vld [vmem:[#allocation2] ss:$12 sps:$4 sm:$0xff]  }
  0x8f   :  { %1461 = vmatpush1.bf16.msra.mxu0 %v14936_v10  ;;  %v14962_v28 = vld [vmem:[#allocation2 + $0x4] ss:$12 sps:$4 sm:$0xff]   ;;  %v14967_v31 = vld [vmem:[#allocation2 + $0x180] ss:$12 sps:$4 sm:$0xff]   ;;  %v14972_v34 = vld [vmem:[#allocation2 + $0x168] ss:$12 sps:$4 sm:$0xff]  }
  0x90   :  { %1604 = vmatpush1.bf16.msra.mxu1 %v14937_v11  ;;  %1462 = vmatprep.subr.bf16.mxu0 %v14938_v12  ;;  %v14964_v29 = vld [vmem:[#allocation2 + $0x184] ss:$12 sps:$4 sm:$0xff]   ;;  %v14968_v32 = vld [vmem:[#allocation2 + $0x16c] ss:$12 sps:$4 sm:$0xff]   ;;  %v14973_v35 = vld [vmem:[#allocation2 + $0x2e8] ss:$12 sps:$4 sm:$0xff]  }
  0x91   :  { %1605 = vmatprep.subr.bf16.mxu1 %v14940_v13  ;;  %v14970_v33 = vld [vmem:[#allocation2 + $0x2ec] ss:$12 sps:$4 sm:$0xff]   ;;  %v14974_v36 = vld [vmem:[#allocation2 + $0x154] ss:$12 sps:$4 sm:$0xff]   ;;  %v14978_v38 = vld [vmem:[#allocation2 + $0x150] ss:$12 sps:$4 sm:$0xff]  }
  0x92   :  { %v14976_v37 = vld [vmem:[#allocation2 + $0x2d4] ss:$12 sps:$4 sm:$0xff]   ;;  %v14979_v39 = vld [vmem:[#allocation2 + $0x2d0] ss:$12 sps:$4 sm:$0xff]   ;;  %v14984_v42 = vld [vmem:[#allocation2 + $0x138] ss:$12 sps:$4 sm:$0xff]  }
  0x93   :  { %1463 = vmatpush1.bf16.msra.mxu0 %v14942_v14  ;;  %v14980_v40 = vld [vmem:[#allocation2 + $0x13c] ss:$12 sps:$4 sm:$0xff]   ;;  %v14985_v43 = vld [vmem:[#allocation2 + $0x2b8] ss:$12 sps:$4 sm:$0xff]   ;;  %v184_v48 = vld [vmem:[%s19888_s0 + $0xc] sm:$0xf] }
  0x94   :  { %1606 = vmatpush1.bf16.msra.mxu1 %v14943_v15  ;;  %1464 = vmatprep.subr.bf16.mxu0 %v14944_v16  ;;  %v14982_v41 = vld [vmem:[#allocation2 + $0x2bc] ss:$12 sps:$4 sm:$0xff]   ;;  %v14986_v44 = vld [vmem:[#allocation2 + $0x124] ss:$12 sps:$4 sm:$0xff]   ;;  %v14990_v49 = vld [vmem:[#allocation2 + $0x120] ss:$12 sps:$4 sm:$0xff]  }
  0x95   :  { %1607 = vmatprep.subr.bf16.mxu1 %v14946_v17  ;;  %v14988_v45 = vld [vmem:[#allocation2 + $0x2a4] ss:$12 sps:$4 sm:$0xff]   ;;  %v183_v47 = vld [vmem:[%s19888_s0 + $0x8] sm:$0xf]  ;;  %v14991_v50 = vld [vmem:[#allocation2 + $0x2a0] ss:$12 sps:$4 sm:$0xff]  }
  0x96   :  { %v182_v46 = vld [vmem:[%s19888_s0 + $0x4] sm:$0xf]  ;;  %v16916_v51 = vld [vmem:[%s19888_s0 + $0x10] sm:$0xf]  ;;  %v14992_v53 = vld [vmem:[#allocation2 + $0x10c] ss:$12 sps:$4 sm:$0xff]   ;;  %v16936_v12 = vcombine.low %v183_v47, %v184_v48 }
  0x97   :  { %1465 = vmatpush1.bf16.msra.mxu0 %v14948_v18  ;;  %v16918_v52 = vcombine.low %v182_v46, %v183_v47  ;;  %v14994_v54 = vld [vmem:[#allocation2 + $0x28c] ss:$12 sps:$4 sm:$0xff]   ;;  %v16921_v55 = vcombine.low %v184_v48, %v16916_v51  ;;  %v14996_v56 = vld [vmem:[#allocation2 + $0x108] ss:$12 sps:$4 sm:$0xff]   ;;  %v15002_v60 = vld [vmem:[#allocation2 + $0xf0] ss:$12 sps:$4 sm:$0xff]  }
  0x98   :  { %1608 = vmatpush1.bf16.msra.mxu1 %v14949_v19  ;;  %1466 = vmatprep.subr.bf16.mxu0 %v14950_v20  ;;  %v14997_v57 = vld [vmem:[#allocation2 + $0x288] ss:$12 sps:$4 sm:$0xff]   ;;  %v15003_v61 = vld [vmem:[#allocation2 + $0x270] ss:$12 sps:$4 sm:$0xff]   ;;  %v15008_v0 = vld [vmem:[#allocation2 + $0xd8] ss:$12 sps:$4 sm:$0xff]  }
  0x99   :  { %1609 = vmatprep.subr.bf16.mxu1 %v14952_v21  ;;  %1488 = vmatprep.mubr.bf16.mxu0 %v16918_v52  ;;  %v14998_v58 = vld [vmem:[#allocation2 + $0xf4] ss:$12 sps:$4 sm:$0xff]   ;;  %v15004_v62 = vld [vmem:[#allocation2 + $0xdc] ss:$12 sps:$4 sm:$0xff]   ;;  %v15009_v1 = vld [vmem:[#allocation2 + $0x258] ss:$12 sps:$4 sm:$0xff]  }
  0x9a   :  { %1631 = vmatprep.mubr.bf16.mxu1 %v16921_v55  ;;  %v15000_v59 = vld [vmem:[#allocation2 + $0x274] ss:$12 sps:$4 sm:$0xff]   ;;  %v15006_v63 = vld [vmem:[#allocation2 + $0x25c] ss:$12 sps:$4 sm:$0xff]   ;;  %v15010_v2 = vld [vmem:[#allocation2 + $0xc4] ss:$12 sps:$4 sm:$0xff]  }
  0x9b   :  { %1467 = vmatpush1.bf16.msra.mxu0 %v14954_v22  ;;  %v15012_v3 = vld [vmem:[#allocation2 + $0x244] ss:$12 sps:$4 sm:$0xff]   ;;  %v15014_v4 = vld [vmem:[#allocation2 + $0xc0] ss:$12 sps:$4 sm:$0xff]   ;;  %v186_v7 = vld [vmem:[%s19888_s0 + $0x14] sm:$0xf] }
  0x9c   :  { %1610 = vmatpush1.bf16.msra.mxu1 %v14955_v23  ;;  %1468 = vmatprep.subr.bf16.mxu0 %v14956_v24  ;;  %v15015_v5 = vld [vmem:[#allocation2 + $0x240] ss:$12 sps:$4 sm:$0xff]   ;;  %v187_v8 = vld [vmem:[%s19888_s0 + $0x18] sm:$0xf]  ;;  %v15026_v14 = vld [vmem:[#allocation2 + $0x3a8] ss:$12 sps:$4 sm:$0xff]   ;;  %v16951_v24 = vcombine.low %v16916_v51, %v186_v7 }
  0x9d   :  { %1611 = vmatprep.subr.bf16.mxu1 %v14958_v25  ;;  %v181_v6 = vld [vmem:[%s19888_s0] sm:$0xf]  ;;  %v15028_v9 = vld [vmem:[#allocation2 + $0x3ac] ss:$12 sps:$4 sm:$0xff]   ;;  %v16938_v13 = vcombine.low %v186_v7, %v187_v8  ;;  %v15040_v15 = vld [vmem:[#allocation2 + $0x528] ss:$12 sps:$4 sm:$0xff]  }
  0x9e   :  { %v15042_v10 = vld [vmem:[#allocation2 + $0x52c] ss:$12 sps:$4 sm:$0xff]   ;;  %v16934_v11 = vcombine.low %v181_v6, %v182_v46  ;;  %v15031_v16 = vld [vmem:[#allocation2 + $0x394] ss:$12 sps:$4 sm:$0xff]   ;;  %v188_v18 = vld [vmem:[%s19888_s0 + $0x1c] sm:$0xf] }
  0x9f   :  { %1469 = vmatpush1.bf16.msra.mxu0 %v14960_v26  ;;  %v15058_v17 = vld [vmem:[#allocation2 + $0x514] ss:$12 sps:$4 sm:$0xff]   ;;  %v15029_v20 = vld [vmem:[#allocation2 + $0x390] ss:$12 sps:$4 sm:$0xff]   ;;  %v15034_v26 = vld [vmem:[#allocation2 + $0x378] ss:$12 sps:$4 sm:$0xff]  }
  0xa0   :  { %1612 = vmatpush1.bf16.msra.mxu1 %v14961_v27  ;;  %1470 = vmatprep.subr.bf16.mxu0 %v14962_v28  ;;  %v189_v19 = vld [vmem:[%s19888_s0 + $0x20] sm:$0xf]  ;;  %v15056_v21 = vld [vmem:[#allocation2 + $0x510] ss:$12 sps:$4 sm:$0xff]   ;;  %v15070_v28 = vld [vmem:[#allocation2 + $0x4f8] ss:$12 sps:$4 sm:$0xff]  }
  0xa1   :  { %1613 = vmatprep.subr.bf16.mxu1 %v14964_v29  ;;  %v15036_v22 = vld [vmem:[#allocation2 + $0x37c] ss:$12 sps:$4 sm:$0xff]   ;;  %v16953_v25 = vcombine.low %v188_v18, %v189_v19  ;;  %v15039_v27 = vld [vmem:[#allocation2 + $0x364] ss:$12 sps:$4 sm:$0xff]   ;;  %vm16790_vm0 = vmmov 0   ;;  %vm2722_vm1 = vcmask 1043456  }
  0xa2   :  { %v15072_v23 = vld [vmem:[#allocation2 + $0x4fc] ss:$12 sps:$4 sm:$0xff]   ;;  %v15083_v29 = vld [vmem:[#allocation2 + $0x4e4] ss:$12 sps:$4 sm:$0xff]  }
  0xa3   :  { %1471 = vmatpush1.bf16.msra.mxu0 %v14966_v30  ;;  %v190_v30 = vld [vmem:[%s19888_s0 + $0x24] sm:$0xf]  ;;  %v15095_v46 = vld [vmem:[#allocation2 + $0x4b0] ss:$12 sps:$4 sm:$0xff]  }
  0xa4   :  { %1614 = vmatpush1.bf16.msra.mxu1 %v14967_v31  ;;  %1472 = vmatprep.subr.bf16.mxu0 %v14968_v32  ;;  %v191_v31 = vld [vmem:[%s19888_s0 + $0x28] sm:$0xf]  ;;  %v15037_v32 = vld [vmem:[#allocation2 + $0x360] ss:$12 sps:$4 sm:$0xff]   ;;  %v16979_v48 = vcombine.low %v189_v19, %v190_v30  ;;  %v15061_v51 = vld [vmem:[#allocation2 + $0x304] ss:$12 sps:$4 sm:$0xff]  }
  0xa5   :  { %1615 = vmatprep.subr.bf16.mxu1 %v14970_v33  ;;  %v15081_v33 = vld [vmem:[#allocation2 + $0x4e0] ss:$12 sps:$4 sm:$0xff]   ;;  %v15105_v47 = vld [vmem:[#allocation2 + $0x49c] ss:$12 sps:$4 sm:$0xff]  }
  0xa6   :  { %v15086_v19 = vld [vmem:[#allocation2 + $0x408] ss:$12 sps:$4 sm:$0xff]  }
  0xa7   :  { %1473 = vmatpush2.bf16.msra.mxu0 %v14972_v34  ;;  %v15047_v34 = vld [vmem:[#allocation2 + $0x34c] ss:$12 sps:$4 sm:$0xff]  }
  0xa8   :  { %1616 = vmatpush2.bf16.msra.mxu1 %v14973_v35  ;;  %1474 = vmatprep.subr.bf16.mxu0 %v14974_v36  ;;  %v15091_v35 = vld [vmem:[#allocation2 + $0x4cc] ss:$12 sps:$4 sm:$0xff]   ;;  %v16965_v36 = vcombine.low %v187_v8, %v188_v18 }
  0xa9   :  { %1617 = vmatprep.subr.bf16.mxu1 %v14976_v37  ;;  %v16967_v37 = vcombine.low %v190_v30, %v191_v31  ;;  %v15075_v8 = vld [vmem:[#allocation2 + $0x438] ss:$12 sps:$4 sm:$0xff]  }
  0xaa   :  { %v15108_v30 = vld [vmem:[#allocation2 + $0x3c4] ss:$12 sps:$4 sm:$0xff]  }
  0xab   :  { %1475 = vmatpush2.bf16.msra.mxu0 %v14978_v38  ;;  %v15045_v38 = vld [vmem:[#allocation2 + $0x348] ss:$12 sps:$4 sm:$0xff]  }
  0xac   :  { %1618 = vmatpush2.bf16.msra.mxu1 %v14979_v39  ;;  %1476 = vmatprep.subr.bf16.mxu0 %v14980_v40  ;;  %v15089_v39 = vld [vmem:[#allocation2 + $0x4c8] ss:$12 sps:$4 sm:$0xff]  }
  0xad   :  { %1619 = vmatprep.subr.bf16.mxu1 %v14982_v41  ;;  %v15050_v40 = vld [vmem:[#allocation2 + $0x334] ss:$12 sps:$4 sm:$0xff]  }
  0xae   :  { %v15097_v41 = vld [vmem:[#allocation2 + $0x4b4] ss:$12 sps:$4 sm:$0xff]  }
  0xaf   :  { %1477 = vmatpush2.bf16.msra.mxu0 %v14984_v42  ;;  %v192_v42 = vld [vmem:[%s19888_s0 + $0x2c] sm:$0xf] }
  0xb0   :  { %1620 = vmatpush2.bf16.msra.mxu1 %v14985_v43  ;;  %1478 = vmatprep.subr.bf16.mxu0 %v14986_v44  ;;  %v193_v43 = vld [vmem:[%s19888_s0 + $0x30] sm:$0xf] }
  0xb1   :  { %1621 = vmatprep.subr.bf16.mxu1 %v14988_v45  ;;  %v15048_v44 = vld [vmem:[#allocation2 + $0x330] ss:$12 sps:$4 sm:$0xff]  }
  0xb2   :  { %v15055_v45 = vld [vmem:[#allocation2 + $0x31c] ss:$12 sps:$4 sm:$0xff]  }
  0xb3   :  { %1479 = vmatpush2.bf16.msra.mxu0 %v14990_v49  ;;  %v15053_v49 = vld [vmem:[#allocation2 + $0x318] ss:$12 sps:$4 sm:$0xff]  }
  0xb4   :  { %1622 = vmatpush2.bf16.msra.mxu1 %v14991_v50  ;;  %1480 = vmatprep.subr.bf16.mxu0 %v14992_v53  ;;  %v16981_v50 = vcombine.low %v192_v42, %v193_v43  ;;  %v15103_v53 = vld [vmem:[#allocation2 + $0x498] ss:$12 sps:$4 sm:$0xff]  }
  0xb5   :  { %1623 = vmatprep.subr.bf16.mxu1 %v14994_v54  ;;  %v15111_v54 = vld [vmem:[#allocation2 + $0x484] ss:$12 sps:$4 sm:$0xff]  }
  0xb7   :  { %1481 = vmatpush2.bf16.msra.mxu0 %v14996_v56  ;;  %v194_v56 = vld [vmem:[%s19888_s0 + $0x34] sm:$0xf] }
  0xb8   :  { %1624 = vmatpush2.bf16.msra.mxu1 %v14997_v57  ;;  %1482 = vmatprep.subr.bf16.mxu0 %v14998_v58  ;;  %v195_v57 = vld [vmem:[%s19888_s0 + $0x38] sm:$0xf]  ;;  %v15059_v58 = vld [vmem:[#allocation2 + $0x300] ss:$12 sps:$4 sm:$0xff]   ;;  %v17007_v6 = vcombine.low %v193_v43, %v194_v56 }
  0xb9   :  { %1625 = vmatprep.subr.bf16.mxu1 %v15000_v59  ;;  %v15066_v59 = vld [vmem:[#allocation2 + $0x46c] ss:$12 sps:$4 sm:$0xff]  }
  0xbb   :  { %1483 = vmatpush2.bf16.msra.mxu0 %v15002_v60  ;;  %v15109_v60 = vld [vmem:[#allocation2 + $0x480] ss:$12 sps:$4 sm:$0xff]  }
  0xbc   :  { %1626 = vmatpush2.bf16.msra.mxu1 %v15003_v61  ;;  %1484 = vmatprep.subr.bf16.mxu0 %v15004_v62  ;;  %v15114_v61 = vld [vmem:[#allocation2 + $0x2f0] ss:$12 sps:$4 sm:$0xff]   ;;  %v16993_v62 = vcombine.low %v191_v31, %v192_v42  ;;  %v202_v31 = vld [vmem:[%s19888_s0 + $0x54] sm:$0xf] }
  0xbd   :  { %1627 = vmatprep.subr.bf16.mxu1 %v15006_v63  ;;  %v16995_v63 = vcombine.low %v194_v56, %v195_v57  ;;  %v15122_v56 = vld [vmem:[#allocation2 + $0x2c0] ss:$12 sps:$4 sm:$0xff]  }
  0xbf   :  { %1485 = vmatpush2.bf16.msra.mxu0 %v15008_v0  ;;  %v15064_v0 = vld [vmem:[#allocation2 + $0x468] ss:$12 sps:$4 sm:$0xff]  }
  0xc0   :  { %1628 = vmatpush2.bf16.msra.mxu1 %v15009_v1  ;;  %1486 = vmatprep.subr.bf16.mxu0 %v15010_v2  ;;  %v15069_v1 = vld [vmem:[#allocation2 + $0x454] ss:$12 sps:$4 sm:$0xff]   ;;  %v196_v2 = vld [vmem:[%s19888_s0 + $0x3c] sm:$0xf] }
  0xc1   :  { %1629 = vmatprep.subr.bf16.mxu1 %v15012_v3  ;;  %v197_v3 = vld [vmem:[%s19888_s0 + $0x40] sm:$0xf] }
  0xc2   :  { %v17009_v7 = vcombine.low %v196_v2, %v197_v3 }
  0xc3   :  { %1487 = vmatpush2.bf16.msra.mxu0 %v15014_v4  ;;  %v15067_v4 = vld [vmem:[#allocation2 + $0x450] ss:$12 sps:$4 sm:$0xff]  }
  0xc4   :  { %1630 = vmatpush2.bf16.msra.mxu1 %v15015_v5  ;;  %1742 = vmatprep.subr.bf16.mxu0 %v15028_v9  ;;  %v15077_v5 = vld [vmem:[#allocation2 + $0x43c] ss:$12 sps:$4 sm:$0xff]   ;;  %v15080_v9 = vld [vmem:[#allocation2 + $0x424] ss:$12 sps:$4 sm:$0xff]  }
  0xc5   :  { %1885 = vmatprep.subr.bf16.mxu1 %v15042_v10  ;;  %v198_v10 = vld [vmem:[%s19888_s0 + $0x44] sm:$0xf] }
  0xc6   :  { %1489 = vmatmul.mubr.bf16.vlgmr.msra.gmra.mxu0 %v16934_v11 }
  0xc7   :  { %1632 = vmatmul.mubr.bf16.vlgmr.msra.gmra.mxu1 %v16936_v12  ;;  %1498 = vmatprep.mubr.bf16.mxu0 %v16921_v55 }
  0xc8   :  { %1641 = vmatprep.mubr.bf16.mxu1 %v16938_v13  ;;  %1743 = vmatpush1.bf16.msra.mxu0 %v15026_v14  ;;  %v199_v14 = vld [vmem:[%s19888_s0 + $0x48] sm:$0xf] }
  0xc9   :  { %1886 = vmatpush1.bf16.msra.mxu1 %v15040_v15  ;;  %1744 = vmatprep.subr.bf16.mxu0 %v15031_v16  ;;  %v15078_v15 = vld [vmem:[#allocation2 + $0x420] ss:$12 sps:$4 sm:$0xff]   ;;  %v17023_v18 = vcombine.low %v198_v10, %v199_v14 }
  0xca   :  { %1887 = vmatprep.subr.bf16.mxu1 %v15058_v17  ;;  %v15088_v16 = vld [vmem:[#allocation2 + $0x40c] ss:$12 sps:$4 sm:$0xff]   ;;  %v17021_v17 = vcombine.low %v195_v57, %v196_v2  ;;  %v15130_v2 = vld [vmem:[#allocation2 + $0x290] ss:$12 sps:$4 sm:$0xff]  }
  0xcb   :  { %v15121_v57 = vld [vmem:[#allocation2 + $0x80] ss:$12 sps:$4 sm:$0xff]  }
  0xcc   :  { %1745 = vmatpush1.bf16.msra.mxu0 %v15029_v20  ;;  %v15094_v20 = vld [vmem:[#allocation2 + $0x3f4] ss:$12 sps:$4 sm:$0xff]  }
  0xcd   :  { %1888 = vmatpush1.bf16.msra.mxu1 %v15056_v21  ;;  %1746 = vmatprep.subr.bf16.mxu0 %v15036_v22  ;;  %v200_v21 = vld [vmem:[%s19888_s0 + $0x4c] sm:$0xf]  ;;  %v201_v22 = vld [vmem:[%s19888_s0 + $0x50] sm:$0xf] }
  0xce   :  { %1889 = vmatprep.subr.bf16.mxu1 %v15072_v23  ;;  %1499 = vmatmul.mubr.bf16.gmra.mxu0 %v16936_v12  ;;  %v15092_v23 = vld [vmem:[#allocation2 + $0x3f0] ss:$12 sps:$4 sm:$0xff]  }
  0xcf   :  { %1642 = vmatmul.mubr.bf16.gmra.mxu1 %v16951_v24  ;;  %1508 = vmatprep.mubr.bf16.mxu0 %v16938_v13 }
  0xd0   :  { %1651 = vmatprep.mubr.bf16.mxu1 %v16953_v25  ;;  %1747 = vmatpush1.bf16.msra.mxu0 %v15034_v26  ;;  %v15102_v26 = vld [vmem:[#allocation2 + $0x3dc] ss:$12 sps:$4 sm:$0xff]  }
  0xd1   :  { %1890 = vmatpush1.bf16.msra.mxu1 %v15070_v28  ;;  %1748 = vmatprep.subr.bf16.mxu0 %v15039_v27  ;;  %v17035_v27 = vcombine.low %v197_v3, %v198_v10  ;;  %v15100_v28 = vld [vmem:[#allocation2 + $0x3d8] ss:$12 sps:$4 sm:$0xff]   ;;  %v15131_v3 = vld [vmem:[#allocation2 + $0x50] ss:$12 sps:$4 sm:$0xff]  }
  0xd2   :  { %1891 = vmatprep.subr.bf16.mxu1 %v15083_v29  ;;  %v17037_v29 = vcombine.low %v200_v21, %v201_v22  ;;  %v15136_v10 = vld [vmem:[#allocation2 + $0x1b8] ss:$12 sps:$4 sm:$0xff]  }
  0xd4   :  { %1749 = vmatpush1.bf16.msra.mxu0 %v15037_v32  ;;  %v203_v32 = vld [vmem:[%s19888_s0 + $0x58] sm:$0xf] }
  0xd5   :  { %1892 = vmatpush1.bf16.msra.mxu1 %v15081_v33  ;;  %1750 = vmatprep.subr.bf16.mxu0 %v15047_v34  ;;  %v15106_v33 = vld [vmem:[#allocation2 + $0x3c0] ss:$12 sps:$4 sm:$0xff]   ;;  %v15112_v34 = vld [vmem:[#allocation2 + $0x170] ss:$12 sps:$4 sm:$0xff]  }
  0xd6   :  { %1893 = vmatprep.subr.bf16.mxu1 %v15091_v35  ;;  %1509 = vmatmul.mubr.bf16.gmra.mxu0 %v16951_v24  ;;  %v17049_v35 = vcombine.low %v199_v14, %v200_v21  ;;  %v15139_v14 = vld [vmem:[#allocation2 + $0xe0] ss:$12 sps:$4 sm:$0xff]   ;;  %v15144_v21 = vld [vmem:[#allocation2 + $0x248] ss:$12 sps:$4 sm:$0xff]  }
  0xd7   :  { %1652 = vmatmul.mubr.bf16.gmra.mxu1 %v16965_v36  ;;  %1518 = vmatprep.mubr.bf16.mxu0 %v16953_v25 }
  0xd8   :  { %1661 = vmatprep.mubr.bf16.mxu1 %v16967_v37  ;;  %1751 = vmatpush1.bf16.msra.mxu0 %v15045_v38  ;;  %v17051_v38 = vcombine.low %v202_v31, %v203_v32 }
  0xd9   :  { %1894 = vmatpush1.bf16.msra.mxu1 %v15089_v39  ;;  %1752 = vmatprep.subr.bf16.mxu0 %v15050_v40  ;;  %v204_v39 = vld [vmem:[%s19888_s0 + $0x5c] sm:$0xf]  ;;  %v17061_v40 = vld [vmem:[%s19888_s0 + $0x60] sm:$0xf] }
  0xda   :  { %1895 = vmatprep.subr.bf16.mxu1 %v15097_v41  ;;  %v17065_v41 = vcombine.low %v201_v22, %v202_v31  ;;  %v17068_v42 = vcombine.low %v204_v39, %v17061_v40  ;;  %v17074_v43 = vcombine.low %v203_v32, %v204_v39  ;;  %v15145_v22 = vld [vmem:[#allocation2 + $0x8] ss:$12 sps:$4 sm:$0xff]  }
  0xdb   :  { %v207_v31 = vld [vmem:[%s19888_s0 + $0x68] sm:$0xf] }
  0xdc   :  { %1753 = vmatpush1.bf16.msra.mxu0 %v15048_v44  ;;  %20105 = vst [vmem:[#allocation25_spill] sm:$0xff] %v17068_v42  ;;  %20106 = vst [vmem:[#allocation26_spill] sm:$0xff] %v17074_v43  ;;  %v19901_v44 = vmov 0  }
  0xdd   :  { %1896 = vmatpush1.bf16.msra.mxu1 %v15095_v46  ;;  %1754 = vmatprep.subr.bf16.mxu0 %v15055_v45  ;;  %v15113_v45 = vld [vmem:[#allocation2 + $0xb0] ss:$12 sps:$4 sm:$0xff]  }
  0xde   :  { %1897 = vmatprep.subr.bf16.mxu1 %v15105_v47  ;;  %1519 = vmatmul.mubr.bf16.gmra.mxu0 %v16965_v36  ;;  %v15115_v46 = vld [vmem:[#allocation2 + $0x230] ss:$12 sps:$4 sm:$0xff]   ;;  %v15116_v47 = vld [vmem:[#allocation2 + $0x158] ss:$12 sps:$4 sm:$0xff]  }
  0xdf   :  { %1662 = vmatmul.mubr.bf16.gmra.mxu1 %v16979_v48  ;;  %1528 = vmatprep.mubr.bf16.mxu0 %v16967_v37 }
  0xe0   :  { %1671 = vmatprep.mubr.bf16.mxu1 %v16981_v50  ;;  %1755 = vmatpush1.bf16.msra.mxu0 %v15053_v49  ;;  %v15118_v49 = vld [vmem:[#allocation2 + $0x2d8] ss:$12 sps:$4 sm:$0xff]  }
  0xe1   :  { %1898 = vmatpush1.bf16.msra.mxu1 %v15103_v53  ;;  %1756 = vmatprep.subr.bf16.mxu0 %v15061_v51  ;;  %v15117_v51 = vld [vmem:[#allocation2 + $0x98] ss:$12 sps:$4 sm:$0xff]  }
  0xe2   :  { %1899 = vmatprep.subr.bf16.mxu1 %v15111_v54  ;;  %v15119_v53 = vld [vmem:[#allocation2 + $0x218] ss:$12 sps:$4 sm:$0xff]   ;;  %v15120_v54 = vld [vmem:[#allocation2 + $0x140] ss:$12 sps:$4 sm:$0xff]  }
  0xe4   :  { %1757 = vmatpush1.bf16.msra.mxu0 %v15059_v58  ;;  %v15123_v58 = vld [vmem:[#allocation2 + $0x200] ss:$12 sps:$4 sm:$0xff]  }
  0xe5   :  { %1900 = vmatpush1.bf16.msra.mxu1 %v15109_v60  ;;  %1758 = vmatprep.subr.bf16.mxu0 %v15066_v59  ;;  %v15124_v59 = vld [vmem:[#allocation2 + $0x128] ss:$12 sps:$4 sm:$0xff]  }
  0xe6   :  { %14305 = vmatprep.subr.bf16.mxu1 %v15114_v61  ;;  %1529 = vmatmul.mubr.bf16.gmra.mxu0 %v16979_v48  ;;  %v15126_v60 = vld [vmem:[#allocation2 + $0x2a8] ss:$12 sps:$4 sm:$0xff]  }
  0xe7   :  { %1672 = vmatmul.mubr.bf16.gmra.mxu1 %v16993_v62  ;;  %1538 = vmatprep.mubr.bf16.mxu0 %v16981_v50  ;;  %v15125_v61 = vld [vmem:[#allocation2 + $0x68] ss:$12 sps:$4 sm:$0xff]  }
  0xe8   :  { %1681 = vmatprep.mubr.bf16.mxu1 %v16995_v63  ;;  %1759 = vmatpush2.bf16.msra.mxu0 %v15064_v0  ;;  %v15127_v0 = vld [vmem:[#allocation2 + $0x1e8] ss:$12 sps:$4 sm:$0xff]  }
  0xe9   :  { %1760 = vmatprep.subr.bf16.mxu0 %v15069_v1  ;;  %v15129_v1 = vld [vmem:[#allocation2 + $0x110] ss:$12 sps:$4 sm:$0xff]  }
  0xec   :  { %1761 = vmatpush2.bf16.msra.mxu0 %v15067_v4  ;;  %v15132_v4 = vld [vmem:[#allocation2 + $0x1d0] ss:$12 sps:$4 sm:$0xff]  }
  0xed   :  { %1762 = vmatprep.subr.bf16.mxu0 %v15077_v5  ;;  %v15133_v5 = vld [vmem:[#allocation2 + $0xf8] ss:$12 sps:$4 sm:$0xff]  }
  0xee   :  { %1539 = vmatmul.mubr.bf16.gmra.mxu0 %v16993_v62 }
  0xef   :  { %1682 = vmatmul.mubr.bf16.gmra.mxu1 %v17007_v6  ;;  %1548 = vmatprep.mubr.bf16.mxu0 %v16995_v63 }
  0xf0   :  { %1691 = vmatprep.mubr.bf16.mxu1 %v17009_v7  ;;  %1763 = vmatpush2.bf16.msra.mxu0 %v15075_v8  ;;  %v15134_v8 = vld [vmem:[#allocation2 + $0x278] ss:$12 sps:$4 sm:$0xff]  }
  0xf1   :  { %1764 = vmatprep.subr.bf16.mxu0 %v15080_v9  ;;  %v15135_v9 = vld [vmem:[#allocation2 + $0x38] ss:$12 sps:$4 sm:$0xff]  }
  0xf4   :  { %1765 = vmatpush2.bf16.msra.mxu0 %v15078_v15  ;;  %v15140_v15 = vld [vmem:[#allocation2 + $0x260] ss:$12 sps:$4 sm:$0xff]  }
  0xf5   :  { %1766 = vmatprep.subr.bf16.mxu0 %v15088_v16  ;;  %v15141_v16 = vld [vmem:[#allocation2 + $0x20] ss:$12 sps:$4 sm:$0xff]  }
  0xf6   :  { %1549 = vmatmul.mubr.bf16.gmra.mxu0 %v17007_v6 }
  0xf7   :  { %1692 = vmatmul.mubr.bf16.gmra.mxu1 %v17021_v17  ;;  %1558 = vmatprep.mubr.bf16.mxu0 %v17009_v7 }
  0xf8   :  { %1701 = vmatprep.mubr.bf16.mxu1 %v17023_v18  ;;  %1767 = vmatpush2.bf16.msra.mxu0 %v15086_v19  ;;  %v15142_v19 = vld [vmem:[#allocation2 + $0x1a0] ss:$12 sps:$4 sm:$0xff]  }
  0xf9   :  { %1768 = vmatprep.subr.bf16.mxu0 %v15094_v20  ;;  %v15143_v20 = vld [vmem:[#allocation2 + $0xc8] ss:$12 sps:$4 sm:$0xff]  }
  0xfc   :  { %1769 = vmatpush2.bf16.msra.mxu0 %v15092_v23  ;;  %v15146_v23 = vld [vmem:[#allocation2 + $0x188] ss:$12 sps:$4 sm:$0xff]  }
  0xfd   :  { %1770 = vmatprep.subr.bf16.mxu0 %v15102_v26  ;;  %v15147_v26 = vld [vmem:[#allocation2 + $0x470] ss:$12 sps:$4 sm:$0xff]  }
  0xfe   :  { %1559 = vmatmul.mubr.bf16.gmra.mxu0 %v17021_v17 }
  0xff   :  { %1702 = vmatmul.mubr.bf16.gmra.mxu1 %v17035_v27  ;;  %1568 = vmatprep.mubr.bf16.mxu0 %v17023_v18 }
 0x100   :  { %1711 = vmatprep.mubr.bf16.mxu1 %v17037_v29  ;;  %1771 = vmatpush2.bf16.msra.mxu0 %v15100_v28  ;;  %v19903_v28 = vmov 0.0  }
 0x101   :  { %1772 = vmatprep.subr.bf16.mxu0 %v15108_v30  ;;  %v206_v30 = vld [vmem:[%s19888_s0 + $0x64] sm:$0xf] }
 0x102   :  { %v17124_v32 = vcombine.low %v17061_v40, %v206_v30  ;;  %v15148_v40 = vld [vmem:[#allocation2 + $0x3b0] ss:$12 sps:$4 sm:$0xff]  }
 0x104   :  { %1773 = vmatpush2.bf16.msra.mxu0 %v15106_v33  ;;  %20107 = vst [vmem:[#allocation27_spill] sm:$0xff] %v17124_v32  ;;  %v17126_v33 = vcombine.low %v206_v30, %v207_v31 }
 0x105   :  { %14223 = vmatprep.subr.bf16.mxu0 %v15112_v34  ;;  %v208_v34 = vld [vmem:[%s19888_s0 + $0x6c] sm:$0xf] }
 0x106   :  { %1569 = vmatmul.mubr.bf16.gmra.mxu0 %v17035_v27  ;;  %20108 = vst [vmem:[#allocation28_spill] sm:$0xff] %v17126_v33  ;;  %v17135_v39 = vcombine.low %v207_v31, %v208_v34 }
 0x107   :  { %1712 = vmatmul.mubr.bf16.gmra.mxu1 %v17049_v35  ;;  %1578 = vmatprep.mubr.bf16.mxu0 %v17037_v29 }
 0x108   :  { %1721 = vmatprep.mubr.bf16.mxu1 %v17051_v38  ;;  %20109 = vst [vmem:[#allocation29_spill] sm:$0xff] %v17135_v39 }
 0x10e   :  { %1579 = vmatmul.mubr.bf16.gmra.mxu0 %v17049_v35 }
 0x10f   :  { %1722 = vmatmul.mubr.bf16.gmra.mxu1 %v17065_v41  ;;  %1588 = vmatprep.mubr.bf16.mxu0 %v17051_v38 }
 0x110   :  { %1731 = vmatprep.mubr.bf16.mxu1 %v17068_v42 }
 0x116   :  { %1589 = vmatmul.mubr.bf16.gmra.mxu0 %v17065_v41 }
 0x117   :  { %1732 = vmatmul.mubr.bf16.gmra.mxu1 %v17074_v43  ;;  %1774 = vmatprep.mubr.bf16.mxu0 %v16938_v13 }
 0x118   :  { %1917 = vmatprep.mubr.bf16.mxu1 %v19901_v44 }
 0x11e   :  { %1775 = vmatmul.mubr.bf16.vlgmr.msra.gmra.mxu0 %v16951_v24 }
 0x11f   :  { %1918 = vmatmul.mubr.bf16.vlgmr.msra.gmra.mxu1 %v16965_v36  ;;  %1784 = vmatprep.mubr.bf16.mxu0 %v16953_v25 }
 0x120   :  { %1927 = vmatprep.mubr.bf16.mxu1 %v19901_v44  ;;  %14224 = vmatpush3.bf16.msra.mxu0 %v15113_v45  ;;  %v15149_v45 = vld [vmem:[#allocation2 + $0x530] ss:$12 sps:$4 sm:$0xff]  }
 0x121   :  { %14306 = vmatpush3.bf16.msra.mxu1 %v15115_v46  ;;  %14225 = vmatprep.subr.bf16.mxu0 %v15116_v47  ;;  %v15150_v46 = vld [vmem:[#allocation2 + $0x458] ss:$12 sps:$4 sm:$0xff]  }
 0x122   :  { %14307 = vmatprep.subr.bf16.mxu1 %v15118_v49  ;;  %v15151_v47 = vld [vmem:[#allocation2 + $0x398] ss:$12 sps:$4 sm:$0xff]  }
 0x123   :  { %v15152_v49 = vld [vmem:[#allocation2 + $0x518] ss:$12 sps:$4 sm:$0xff]  }
 0x124   :  { %14226 = vmatpush3.bf16.msra.mxu0 %v15117_v51  ;;  %v545_v51 = vlaneseq }
 0x125   :  { %14308 = vmatpush3.bf16.msra.mxu1 %v15119_v53  ;;  %14227 = vmatprep.subr.bf16.mxu0 %v15120_v54  ;;  %v15154_v53 = vld [vmem:[#allocation2 + $0x380] ss:$12 sps:$4 sm:$0xff]  }
 0x126   :  { %14309 = vmatprep.subr.bf16.mxu1 %v15122_v56  ;;  %1785 = vmatmul.mubr.bf16.gmra.mxu0 %v16965_v36  ;;  %v15155_v54 = vld [vmem:[#allocation2 + $0x500] ss:$12 sps:$4 sm:$0xff]   ;;  %v17146_v56 = vshrl.u32 %v545_v51, 7 }
 0x127   :  { %1928 = vmatmul.mubr.bf16.gmra.mxu1 %v16979_v48  ;;  %1794 = vmatprep.mubr.bf16.mxu0 %v16967_v37 }
 0x128   :  { %1937 = vmatprep.mubr.bf16.mxu1 %v19901_v44  ;;  %14228 = vmatpush3.bf16.msra.mxu0 %v15121_v57  ;;  %20110 = vst [vmem:[#allocation30_spill] sm:$0xff] %v17146_v56  ;;  %v15157_v57 = vld [vmem:[#allocation2 + $0x368] ss:$12 sps:$4 sm:$0xff]  }
 0x129   :  { %14310 = vmatpush3.bf16.msra.mxu1 %v15123_v58  ;;  %14229 = vmatprep.subr.bf16.mxu0 %v15124_v59  ;;  %v15158_v58 = vld [vmem:[#allocation2 + $0x4e8] ss:$12 sps:$4 sm:$0xff]   ;;  %v17154_v59 = vsub.s32 0, %v17146_v56 }
 0x12a   :  { %14311 = vmatprep.subr.bf16.mxu1 %v15126_v60  ;;  %v17157_v60 = vsub.s32 1, %v17146_v56 }
 0x12b   :  { %20111 = vst [vmem:[#allocation31_spill] sm:$0xff] %v17154_v59 }
 0x12c   :  { %14230 = vmatpush3.bf16.msra.mxu0 %v15125_v61  ;;  %20112 = vst [vmem:[#allocation32_spill] sm:$0xff] %v17157_v60  ;;  %v15160_v61 = vld [vmem:[#allocation2 + $0x350] ss:$12 sps:$4 sm:$0xff]  }
 0x12d   :  { %14312 = vmatpush3.bf16.msra.mxu1 %v15127_v0  ;;  %14231 = vmatprep.subr.bf16.mxu0 %v15129_v1  ;;  %v15161_v0 = vld [vmem:[#allocation2 + $0x4d0] ss:$12 sps:$4 sm:$0xff]  }
 0x12e   :  { %14313 = vmatprep.subr.bf16.mxu1 %v15130_v2  ;;  %1795 = vmatmul.mubr.bf16.gmra.mxu0 %v16979_v48 }
 0x12f   :  { %1938 = vmatmul.mubr.bf16.gmra.mxu1 %v16993_v62  ;;  %1804 = vmatprep.mubr.bf16.mxu0 %v16981_v50 }
 0x130   :  { %1947 = vmatprep.mubr.bf16.mxu1 %v19901_v44  ;;  %14232 = vmatpush3.bf16.msra.mxu0 %v15131_v3  ;;  %v15162_v3 = vld [vmem:[#allocation2 + $0x3f8] ss:$12 sps:$4 sm:$0xff]  }
 0x131   :  { %14314 = vmatpush3.bf16.msra.mxu1 %v15132_v4  ;;  %14233 = vmatprep.subr.bf16.mxu0 %v15133_v5 }
 0x132   :  { %14315 = vmatprep.subr.bf16.mxu1 %v15134_v8  ;;  %v15163_v8 = vld [vmem:[#allocation2 + $0x338] ss:$12 sps:$4 sm:$0xff]  }
 0x134   :  { %14234 = vmatpush3.bf16.msra.mxu0 %v15135_v9  ;;  %v15164_v9 = vld [vmem:[#allocation2 + $0x4b8] ss:$12 sps:$4 sm:$0xff]  }
 0x135   :  { %14316 = vmatpush3.bf16.msra.mxu1 %v15136_v10  ;;  %14235 = vmatprep.subr.bf16.mxu0 %v15139_v14 }
 0x136   :  { %14317 = vmatprep.subr.bf16.mxu1 %v15140_v15  ;;  %1805 = vmatmul.mubr.bf16.gmra.mxu0 %v16993_v62 }
 0x137   :  { %1948 = vmatmul.mubr.bf16.gmra.mxu1 %v17007_v6  ;;  %1814 = vmatprep.mubr.bf16.mxu0 %v16995_v63 }
 0x138   :  { %1957 = vmatprep.mubr.bf16.mxu1 %v19901_v44  ;;  %14236 = vmatpush3.bf16.msra.mxu0 %v15141_v16 }
 0x139   :  { %14318 = vmatpush3.bf16.msra.mxu1 %v15142_v19  ;;  %14237 = vmatprep.subr.bf16.mxu0 %v15143_v20  ;;  %v15165_v20 = vld [vmem:[#allocation2 + $0x3e0] ss:$12 sps:$4 sm:$0xff]  }
 0x13a   :  { %14319 = vmatprep.subr.bf16.mxu1 %v15144_v21 }
 0x13c   :  { %14238 = vmatpush3.bf16.msra.mxu0 %v15145_v22 }
 0x13d   :  { %14320 = vmatpush3.bf16.msra.mxu1 %v15146_v23  ;;  %14387 = vmatprep.subr.bf16.mxu0 %v15147_v26  ;;  %v15166_v23 = vld [vmem:[#allocation2 + $0x320] ss:$12 sps:$4 sm:$0xff]  }
 0x13e   :  { %14840 = vmatprep.subr.bf16.mxu1 %v19903_v28  ;;  %1815 = vmatmul.mubr.bf16.gmra.mxu0 %v17007_v6  ;;  %v15167_v26 = vld [vmem:[#allocation2 + $0x4a0] ss:$12 sps:$4 sm:$0xff]  }
 0x13f   :  { %1958 = vmatmul.mubr.bf16.gmra.mxu1 %v17021_v17  ;;  %1824 = vmatprep.mubr.bf16.mxu0 %v17009_v7 }
 0x140   :  { %1967 = vmatprep.mubr.bf16.mxu1 %v19901_v44 }
 0x146   :  { %1825 = vmatmul.mubr.bf16.gmra.mxu0 %v17021_v17 }
 0x147   :  { %1968 = vmatmul.mubr.bf16.gmra.mxu1 %v17035_v27  ;;  %1834 = vmatprep.mubr.bf16.mxu0 %v17023_v18 }
 0x148   :  { %1977 = vmatprep.mubr.bf16.mxu1 %v19901_v44 }
 0x14e   :  { %1835 = vmatmul.mubr.bf16.gmra.mxu0 %v17035_v27 }
 0x14f   :  { %1978 = vmatmul.mubr.bf16.gmra.mxu1 %v17049_v35  ;;  %1844 = vmatprep.mubr.bf16.mxu0 %v17037_v29 }
 0x150   :  { %1987 = vmatprep.mubr.bf16.mxu1 %v19901_v44 }
 0x156   :  { %1845 = vmatmul.mubr.bf16.gmra.mxu0 %v17049_v35 }
 0x157   :  { %1988 = vmatmul.mubr.bf16.gmra.mxu1 %v17065_v41  ;;  %1854 = vmatprep.mubr.bf16.mxu0 %v17051_v38 }
 0x158   :  { %1997 = vmatprep.mubr.bf16.mxu1 %v19901_v44 }
 0x15e   :  { %1855 = vmatmul.mubr.bf16.gmra.mxu0 %v17065_v41 }
 0x15f   :  { %1998 = vmatmul.mubr.bf16.gmra.mxu1 %v17074_v43  ;;  %1864 = vmatprep.mubr.bf16.mxu0 %v17068_v42 }
 0x160   :  { %2007 = vmatprep.mubr.bf16.mxu1 %v19901_v44 }
 0x166   :  { %1865 = vmatmul.mubr.bf16.gmra.mxu0 %v17074_v43 }
 0x167   :  { %2008 = vmatmul.mubr.bf16.gmra.mxu1 %v17124_v32  ;;  %1874 = vmatprep.mubr.bf16.mxu0 %v17126_v33 }
 0x168   :  { %2017 = vmatprep.mubr.bf16.mxu1 %v19901_v44 }
 0x16e   :  { %1875 = vmatmul.mubr.bf16.gmra.mxu0 %v17124_v32 }
 0x16f   :  { %2018 = vmatmul.mubr.bf16.gmra.mxu1 %v17135_v39  ;;  %2060 = vmatprep.mubr.bf16.mxu0 %v16918_v52  ;;  %v15153_v52 = vld [vmem:[#allocation2 + $0x440] ss:$12 sps:$4 sm:$0xff]  }
 0x170   :  { %2181 = vmatprep.mubr.bf16.mxu1 %v16921_v55 }
 0x176   :  { %2061 = vmatmul.mubr.bf16.vlgmr.msra.gmra.mxu0 %v16934_v11  ;;  %v15156_v11 = vld [vmem:[#allocation2 + $0x428] ss:$12 sps:$4 sm:$0xff]  }
 0x177   :  { %2182 = vmatmul.mubr.bf16.vlgmr.msra.gmra.mxu1 %v16936_v12  ;;  %2068 = vmatprep.mubr.bf16.mxu0 %v16921_v55  ;;  %v543_v55 = vld [vmem:[#allocation4] ss:$2 sm:$0x7] }
 0x178   :  { %2189 = vmatprep.mubr.bf16.mxu1 %v16938_v13  ;;  %14388 = vmatpush3.bf16.msra.mxu0 %v15148_v40  ;;  %v17161_v1 = vrot.slane %v543_v55, %v17154_v59  ;;  %v17164_v2 = vrot.slane %v543_v55, %v17157_v60 }
 0x179   :  { %14841 = vmatpush3.bf16.msra.mxu1 %v15149_v45  ;;  %14389 = vmatprep.subr.bf16.mxu0 %v15150_v46 }
 0x17a   :  { %14842 = vmatprep.subr.bf16.mxu1 %v19903_v28 }
 0x17c   :  { %14390 = vmatpush3.bf16.msra.mxu0 %v15151_v47  ;;  %v15168_v47 = vld [vmem:[#allocation2 + $0x3c8] ss:$12 sps:$4 sm:$0xff]  }
 0x17d   :  { %14843 = vmatpush3.bf16.msra.mxu1 %v15152_v49  ;;  %14391 = vmatprep.subr.bf16.mxu0 %v15153_v52  ;;  %v15169_v52 = vld [vmem:[#allocation2 + $0x308] ss:$12 sps:$4 sm:$0xff]  }
 0x17e   :  { %14844 = vmatprep.subr.bf16.mxu1 %v19903_v28  ;;  %2069 = vmatmul.mubr.bf16.gmra.mxu0 %v16936_v12  ;;  %v15159_v12 = vld [vmem:[#allocation2 + $0x410] ss:$12 sps:$4 sm:$0xff]  }
 0x17f   :  { %2190 = vmatmul.mubr.bf16.gmra.mxu1 %v16951_v24  ;;  %2076 = vmatprep.mubr.bf16.mxu0 %v16938_v13 }
 0x180   :  { %2197 = vmatprep.mubr.bf16.mxu1 %v16953_v25  ;;  %14392 = vmatpush3.bf16.msra.mxu0 %v15154_v53  ;;  %v15170_v53 = vld [vmem:[#allocation2 + $0x488] ss:$12 sps:$4 sm:$0xff]  }
 0x181   :  { %14845 = vmatpush3.bf16.msra.mxu1 %v15155_v54  ;;  %14393 = vmatprep.subr.bf16.mxu0 %v15156_v11 }
 0x182   :  { %14846 = vmatprep.subr.bf16.mxu1 %v19903_v28 }
 0x184   :  { %14394 = vmatpush3.bf16.msra.mxu0 %v15157_v57 }
 0x185   :  { %14847 = vmatpush3.bf16.msra.mxu1 %v15158_v58  ;;  %14395 = vmatprep.subr.bf16.mxu0 %v15159_v12 }
 0x186   :  { %14848 = vmatprep.subr.bf16.mxu1 %v19903_v28  ;;  %v1490_v4 = vpop.f32.mrf.mxu0  ;;  %2077 = vmatmul.mubr.bf16.gmra.mxu0 %v16951_v24 }
 0x187   :  { %v1633_v5 = vpop.f32.mrf.mxu1  ;;  %2198 = vmatmul.mubr.bf16.gmra.mxu1 %v16965_v36  ;;  %v1491_v10 = vadd.f32 %v1490_v4, %v17161_v1  ;;  %2084 = vmatprep.mubr.bf16.mxu0 %v16953_v25 }
 0x188   :  { %2205 = vmatprep.mubr.bf16.mxu1 %v16967_v37  ;;  %v1492_v14 = vpop.f32.mrf.mxu0  ;;  %14396 = vmatpush3.bf16.msra.mxu0 %v15160_v61  ;;  %v15173_v61 = vld [vmem:[#allocation6 + $0xe4] ss:$16 sps:$4 sm:$0xff]  }
 0x189   :  { %v1635_v15 = vpop.f32.mrf.mxu1  ;;  %14849 = vmatpush3.bf16.msra.mxu1 %v15161_v0  ;;  %v17172_v16 = vadd.f32 %v1633_v5, %v1491_v10  ;;  %v1493_v19 = vadd.f32 %v1492_v14, %v17164_v2  ;;  %14397 = vmatprep.subr.bf16.mxu0 %v15162_v3 }
 0x18a   :  { %14850 = vmatprep.subr.bf16.mxu1 %v19903_v28  ;;  %v1494_v21 = vpop.f32.mrf.mxu0 }
 0x18b   :  { %v1637_v22 = vpop.f32.mrf.mxu1  ;;  %v17176_v30 = vadd.f32 %v1635_v15, %v1493_v19  ;;  %v1495_v31 = vadd.f32 %v1494_v21, %v17161_v1 }
 0x18c   :  { %v1496_v34 = vpop.f32.mrf.mxu0  ;;  %14398 = vmatpush3.bf16.msra.mxu0 %v15163_v8 }
 0x18d   :  { %v1639_v40 = vpop.f32.mrf.mxu1  ;;  %14851 = vmatpush3.bf16.msra.mxu1 %v15164_v9  ;;  %v17179_v45 = vadd.f32 %v1637_v22, %v1495_v31  ;;  %v1497_v46 = vadd.f32 %v1496_v34, %v17164_v2  ;;  %14399 = vmatprep.subr.bf16.mxu0 %v15165_v20 }
 0x18e   :  { %14852 = vmatprep.subr.bf16.mxu1 %v19903_v28  ;;  %v1500_v49 = vpop.f32.mrf.mxu0  ;;  %2085 = vmatmul.mubr.bf16.gmra.mxu0 %v16965_v36 }
 0x18f   :  { %v1643_v51 = vpop.f32.mrf.mxu1  ;;  %2206 = vmatmul.mubr.bf16.gmra.mxu1 %v16979_v48  ;;  %v17185_v54 = vadd.f32 %v1639_v40, %v1497_v46  ;;  %v1501_v11 = vadd.f32 %v1500_v49, %v17161_v1  ;;  %2092 = vmatprep.mubr.bf16.mxu0 %v16967_v37 }
 0x190   :  { %2213 = vmatprep.mubr.bf16.mxu1 %v16981_v50  ;;  %v1502_v55 = vpop.f32.mrf.mxu0  ;;  %14400 = vmatpush3.bf16.msra.mxu0 %v15166_v23 }
 0x191   :  { %v1645_v57 = vpop.f32.mrf.mxu1  ;;  %14853 = vmatpush3.bf16.msra.mxu1 %v15167_v26  ;;  %v17190_v58 = vadd.f32 %v1643_v51, %v1501_v11  ;;  %v1503_v12 = vadd.f32 %v1502_v55, %v17164_v2  ;;  %14401 = vmatprep.subr.bf16.mxu0 %v15168_v47 }
 0x192   :  { %14854 = vmatprep.subr.bf16.mxu1 %v19903_v28  ;;  %v1504_v0 = vpop.f32.mrf.mxu0 }
 0x193   :  { %v1647_v3 = vpop.f32.mrf.mxu1  ;;  %v17194_v4 = vadd.f32 %v1645_v57, %v1503_v12  ;;  %v1505_v5 = vadd.f32 %v1504_v0, %v17161_v1 }
 0x194   :  { %v1506_v8 = vpop.f32.mrf.mxu0  ;;  %14402 = vmatpush3.bf16.msra.mxu0 %v15169_v52 }
 0x195   :  { %v1649_v9 = vpop.f32.mrf.mxu1  ;;  %14855 = vmatpush3.bf16.msra.mxu1 %v15170_v53  ;;  %v17197_v10 = vadd.f32 %v1647_v3, %v1505_v5  ;;  %v1507_v14 = vadd.f32 %v1506_v8, %v17164_v2  ;;  %6876 = vmatprep.subr.bf16.mxu0 %v15173_v61 }
 0x196   :  { %v1510_v15 = vpop.f32.mrf.mxu0  ;;  %2093 = vmatmul.mubr.bf16.gmra.mxu0 %v16979_v48 }
 0x197   :  { %v1653_v19 = vpop.f32.mrf.mxu1  ;;  %2214 = vmatmul.mubr.bf16.gmra.mxu1 %v16993_v62  ;;  %v17202_v20 = vadd.f32 %v1649_v9, %v1507_v14  ;;  %v1511_v21 = vadd.f32 %v1510_v15, %v17161_v1  ;;  %2100 = vmatprep.mubr.bf16.mxu0 %v16981_v50 }
 0x198   :  { %2221 = vmatprep.mubr.bf16.mxu1 %v16995_v63  ;;  %v1512_v22 = vpop.f32.mrf.mxu0 }
 0x199   :  { %v1655_v23 = vpop.f32.mrf.mxu1  ;;  %v17207_v26 = vadd.f32 %v1653_v19, %v1511_v21  ;;  %v1513_v31 = vadd.f32 %v1512_v22, %v17164_v2 }
 0x19a   :  { %v1514_v34 = vpop.f32.mrf.mxu0 }
 0x19b   :  { %v1657_v40 = vpop.f32.mrf.mxu1  ;;  %v17210_v46 = vadd.f32 %v1655_v23, %v1513_v31  ;;  %v1515_v47 = vadd.f32 %v1514_v34, %v17161_v1 }
 0x19c   :  { %v1516_v49 = vpop.f32.mrf.mxu0 }
 0x19d   :  { %v1659_v51 = vpop.f32.mrf.mxu1  ;;  %v17213_v52 = vadd.f32 %v1657_v40, %v1515_v47  ;;  %v1517_v53 = vadd.f32 %v1516_v49, %v17164_v2 }
 0x19e   :  { %v1520_v11 = vpop.f32.mrf.mxu0  ;;  %2101 = vmatmul.mubr.bf16.gmra.mxu0 %v16993_v62 }
 0x19f   :  { %v1663_v55 = vpop.f32.mrf.mxu1  ;;  %2222 = vmatmul.mubr.bf16.gmra.mxu1 %v17007_v6  ;;  %v17218_v57 = vadd.f32 %v1659_v51, %v1517_v53  ;;  %v1521_v12 = vadd.f32 %v1520_v11, %v17161_v1  ;;  %2108 = vmatprep.mubr.bf16.mxu0 %v16995_v63 }
 0x1a0   :  { %2229 = vmatprep.mubr.bf16.mxu1 %v17009_v7  ;;  %v1522_v61 = vpop.f32.mrf.mxu0 }
 0x1a1   :  { %v1665_v0 = vpop.f32.mrf.mxu1  ;;  %v17223_v3 = vadd.f32 %v1663_v55, %v1521_v12  ;;  %v1523_v5 = vadd.f32 %v1522_v61, %v17164_v2 }
 0x1a2   :  { %v1524_v8 = vpop.f32.mrf.mxu0 }
 0x1a3   :  { %v1667_v9 = vpop.f32.mrf.mxu1  ;;  %v17226_v14 = vadd.f32 %v1665_v0, %v1523_v5  ;;  %v1525_v15 = vadd.f32 %v1524_v8, %v17161_v1 }
 0x1a4   :  { %v1526_v19 = vpop.f32.mrf.mxu0 }
 0x1a5   :  { %v1669_v21 = vpop.f32.mrf.mxu1  ;;  %v17229_v22 = vadd.f32 %v1667_v9, %v1525_v15  ;;  %v1527_v23 = vadd.f32 %v1526_v19, %v17164_v2 }
 0x1a6   :  { %v1530_v31 = vpop.f32.mrf.mxu0  ;;  %2109 = vmatmul.mubr.bf16.gmra.mxu0 %v17007_v6 }
 0x1a7   :  { %v1673_v34 = vpop.f32.mrf.mxu1  ;;  %2230 = vmatmul.mubr.bf16.gmra.mxu1 %v17021_v17  ;;  %v17234_v40 = vadd.f32 %v1669_v21, %v1527_v23  ;;  %v1531_v47 = vadd.f32 %v1530_v31, %v17161_v1  ;;  %2116 = vmatprep.mubr.bf16.mxu0 %v17009_v7 }
 0x1a8   :  { %2237 = vmatprep.mubr.bf16.mxu1 %v17023_v18  ;;  %v1532_v49 = vpop.f32.mrf.mxu0 }
 0x1a9   :  { %v1675_v51 = vpop.f32.mrf.mxu1  ;;  %v17239_v53 = vadd.f32 %v1673_v34, %v1531_v47  ;;  %v1533_v11 = vadd.f32 %v1532_v49, %v17164_v2 }
 0x1aa   :  { %v1534_v55 = vpop.f32.mrf.mxu0 }
 0x1ab   :  { %v1677_v12 = vpop.f32.mrf.mxu1  ;;  %v17242_v61 = vadd.f32 %v1675_v51, %v1533_v11  ;;  %v1535_v0 = vadd.f32 %v1534_v55, %v17161_v1 }
 0x1ac   :  { %v1536_v5 = vpop.f32.mrf.mxu0 }
 0x1ad   :  { %v1679_v8 = vpop.f32.mrf.mxu1  ;;  %v17245_v9 = vadd.f32 %v1677_v12, %v1535_v0  ;;  %v1537_v15 = vadd.f32 %v1536_v5, %v17164_v2 }
 0x1ae   :  { %v1540_v19 = vpop.f32.mrf.mxu0  ;;  %2117 = vmatmul.mubr.bf16.gmra.mxu0 %v17021_v17 }
 0x1af   :  { %v1683_v21 = vpop.f32.mrf.mxu1  ;;  %2238 = vmatmul.mubr.bf16.gmra.mxu1 %v17035_v27  ;;  %v17250_v23 = vadd.f32 %v1679_v8, %v1537_v15  ;;  %v1541_v31 = vadd.f32 %v1540_v19, %v17161_v1  ;;  %2124 = vmatprep.mubr.bf16.mxu0 %v17023_v18 }
 0x1b0   :  { %2245 = vmatprep.mubr.bf16.mxu1 %v17037_v29  ;;  %v1542_v34 = vpop.f32.mrf.mxu0 }
 0x1b1   :  { %v1685_v47 = vpop.f32.mrf.mxu1  ;;  %v17255_v49 = vadd.f32 %v1683_v21, %v1541_v31  ;;  %v1543_v51 = vadd.f32 %v1542_v34, %v17164_v2 }
 0x1b2   :  { %v1544_v11 = vpop.f32.mrf.mxu0 }
 0x1b3   :  { %v1687_v55 = vpop.f32.mrf.mxu1  ;;  %v17258_v12 = vadd.f32 %v1685_v47, %v1543_v51  ;;  %v1545_v0 = vadd.f32 %v1544_v11, %v17161_v1 }
 0x1b4   :  { %v1546_v5 = vpop.f32.mrf.mxu0 }
 0x1b5   :  { %v1689_v8 = vpop.f32.mrf.mxu1  ;;  %v17261_v15 = vadd.f32 %v1687_v55, %v1545_v0  ;;  %v1547_v19 = vadd.f32 %v1546_v5, %v17164_v2 }
 0x1b6   :  { %v1550_v44 = vpop.f32.mrf.mxu0  ;;  %2125 = vmatmul.mubr.bf16.gmra.mxu0 %v17035_v27 }
 0x1b7   :  { %v1693_v28 = vpop.f32.mrf.mxu1  ;;  %2246 = vmatmul.mubr.bf16.gmra.mxu1 %v17049_v35  ;;  %v17266_v21 = vadd.f32 %v1689_v8, %v1547_v19  ;;  %v1551_v31 = vadd.f32 %v1550_v44, %v17161_v1  ;;  %2132 = vmatprep.mubr.bf16.mxu0 %v17037_v29 }
 0x1b8   :  { %2253 = vmatprep.mubr.bf16.mxu1 %v17051_v38  ;;  %v1552_v34 = vpop.f32.mrf.mxu0 }
 0x1b9   :  { %v1695_v47 = vpop.f32.mrf.mxu1  ;;  %v17271_v51 = vadd.f32 %v1693_v28, %v1551_v31  ;;  %v1553_v11 = vadd.f32 %v1552_v34, %v17164_v2 }
 0x1ba   :  { %v1554_v55 = vpop.f32.mrf.mxu0 }
 0x1bb   :  { %20113 = vst [vmem:[#allocation33_spill] sm:$0xff] %v17271_v51  ;;  %v1697_v0 = vpop.f32.mrf.mxu1  ;;  %v17274_v5 = vadd.f32 %v1695_v47, %v1553_v11  ;;  %v1555_v56 = vadd.f32 %v1554_v55, %v17161_v1 }
 0x1bc   :  { %v1556_v8 = vpop.f32.mrf.mxu0 }
 0x1bd   :  { %20114 = vst [vmem:[#allocation34_spill] sm:$0xff] %v17274_v5  ;;  %v1699_v19 = vpop.f32.mrf.mxu1  ;;  %v17277_v39 = vadd.f32 %v1697_v0, %v1555_v56  ;;  %v1557_v44 = vadd.f32 %v1556_v8, %v17164_v2 }
 0x1be   :  { %v1560_v33 = vpop.f32.mrf.mxu0  ;;  %2133 = vmatmul.mubr.bf16.gmra.mxu0 %v17049_v35 }
 0x1bf   :  { %20115 = vst [vmem:[#allocation35_spill] sm:$0xff] %v17277_v39  ;;  %v1703_v32 = vpop.f32.mrf.mxu1  ;;  %2254 = vmatmul.mubr.bf16.gmra.mxu1 %v17065_v41  ;;  %v17282_v28 = vadd.f32 %v1699_v19, %v1557_v44  ;;  %v1561_v31 = vadd.f32 %v1560_v33, %v17161_v1  ;;  %2140 = vmatprep.mubr.bf16.mxu0 %v17051_v38 }
 0x1c0   :  { %2261 = vmatprep.mubr.bf16.mxu1 %v17068_v42  ;;  %v1562_v34 = vpop.f32.mrf.mxu0 }
 0x1c1   :  { %20116 = vst [vmem:[#allocation36_spill] sm:$0xff] %v17282_v28  ;;  %v1705_v47 = vpop.f32.mrf.mxu1  ;;  %v17287_v56 = vadd.f32 %v1703_v32, %v1561_v31  ;;  %v1563_v11 = vadd.f32 %v1562_v34, %v17164_v2  ;;  %v20121_v34 = vmov 0.0  }
 0x1c2   :  { %v1564_v55 = vpop.f32.mrf.mxu0 }
 0x1c3   :  { %20117 = vst [vmem:[#allocation37_spill] sm:$0xff] %v17287_v56  ;;  %v1707_v0 = vpop.f32.mrf.mxu1  ;;  %v17290_v8 = vadd.f32 %v1705_v47, %v1563_v11  ;;  %v1565_v39 = vadd.f32 %v1564_v55, %v17161_v1 }
 0x1c4   :  { %v1566_v19 = vpop.f32.mrf.mxu0 }
 0x1c5   :  { %20118 = vst [vmem:[#allocation38_spill] sm:$0xff] %v17290_v8  ;;  %v1709_v44 = vpop.f32.mrf.mxu1  ;;  %v17293_v28 = vadd.f32 %v1707_v0, %v1565_v39  ;;  %v1567_v33 = vadd.f32 %v1566_v19, %v17164_v2 }
 0x1c6   :  { %v1570_v5 = vpop.f32.mrf.mxu0  ;;  %2141 = vmatmul.mubr.bf16.gmra.mxu0 %v17065_v41 }
 0x1c7   :  { %20119 = vst [vmem:[#allocation39_spill] sm:$0xff] %v17293_v28  ;;  %v1713_v42 = vpop.f32.mrf.mxu1  ;;  %2262 = vmatmul.mubr.bf16.gmra.mxu1 %v17074_v43  ;;  %v17298_v32 = vadd.f32 %v1709_v44, %v1567_v33  ;;  %v1571_v31 = vadd.f32 %v1570_v5, %v17161_v1  ;;  %2302 = vmatprep.mubr.bf16.mxu0 %v16938_v13  ;;  %v15171_v28 = vld [vmem:[#allocation6 + $0xe0] ss:$16 sps:$4 sm:$0xff]   ;;  %v15176_v5 = vld [vmem:[#allocation6 + $0xc4] ss:$16 sps:$4 sm:$0xff]  }
 0x1c8   :  { %14856 = vmatprep.mubr.msk.bf16.mxu1 %vm16790_vm0, %v20121_v34  ;;  %v1572_v39 = vpop.f32.mrf.mxu0 }
 0x1c9   :  { %20120 = vst [vmem:[#allocation40_spill] sm:$0xff] %v17298_v32  ;;  %v1715_v47 = vpop.f32.mrf.mxu1  ;;  %v17304_v11 = vadd.f32 %v1713_v42, %v1571_v31  ;;  %v1573_v55 = vadd.f32 %v1572_v39, %v17164_v2  ;;  %v15174_v42 = vld [vmem:[#allocation6 + $0xc0] ss:$16 sps:$4 sm:$0xff]  }
 0x1ca   :  { %v1574_v0 = vpop.f32.mrf.mxu0 }
 0x1cb   :  { %v1717_v19 = vpop.f32.mrf.mxu1  ;;  %v17307_v8 = vadd.f32 %v1715_v47, %v1573_v55  ;;  %v1575_v44 = vadd.f32 %v1574_v0, %v17161_v1  ;;  %v15179_v47 = vld [vmem:[#allocation6 + $0xa4] ss:$16 sps:$4 sm:$0xff]  }
 0x1cc   :  { %v1576_v33 = vpop.f32.mrf.mxu0 }
 0x1cd   :  { %20122 = vst [vmem:[#allocation41_spill] sm:$0xff] %v17307_v8  ;;  %v1719_v13 = vpop.f32.mrf.mxu1  ;;  %v17310_v32 = vadd.f32 %v1717_v19, %v1575_v44  ;;  %v1577_v56 = vadd.f32 %v1576_v33, %v17164_v2 }
 0x1ce   :  { %v1580_v51 = vpop.f32.mrf.mxu0  ;;  %2303 = vmatmul.mubr.bf16.vlgmr.msra.gmra.mxu0 %v16951_v24 }
 0x1cf   :  { %20123 = vst [vmem:[#allocation42_spill] sm:$0xff] %v17310_v32  ;;  %v1723_v43 = vpop.f32.mrf.mxu1  ;;  %14857 = vmatmul.mubr.bf16.vlgmr.msra.gmra.mxu1 %v16965_v36  ;;  %v17315_v31 = vadd.f32 %v1719_v13, %v1577_v56  ;;  %v1581_v39 = vadd.f32 %v1580_v51, %v17161_v1  ;;  %2310 = vmatprep.mubr.bf16.mxu0 %v16953_v25  ;;  %v15177_v56 = vld [vmem:[#allocation6 + $0xa0] ss:$16 sps:$4 sm:$0xff]   ;;  %v15182_v25 = vld [vmem:[#allocation6 + $0x84] ss:$16 sps:$4 sm:$0xff]  }
 0x1d0   :  { %14860 = vmatprep.mubr.msk.bf16.mxu1 %vm16790_vm0, %v20121_v34  ;;  %v1582_v55 = vpop.f32.mrf.mxu0  ;;  %6877 = vmatpush1.bf16.msra.mxu0 %v15171_v28 }
 0x1d1   :  { %20124 = vst [vmem:[#allocation43_spill] sm:$0xff] %v17315_v31  ;;  %v1725_v0 = vpop.f32.mrf.mxu1  ;;  %v17321_v19 = vadd.f32 %v1723_v43, %v1581_v39  ;;  %v1583_v24 = vadd.f32 %v1582_v55, %v17164_v2  ;;  %6878 = vmatprep.subr.bf16.mxu0 %v15176_v5  ;;  %v15180_v5 = vld [vmem:[#allocation6 + $0x80] ss:$16 sps:$4 sm:$0xff]  }
 0x1d2   :  { %v1584_v44 = vpop.f32.mrf.mxu0 }
 0x1d3   :  { %v1727_v33 = vpop.f32.mrf.mxu1  ;;  %v17324_v13 = vadd.f32 %v1725_v0, %v1583_v24  ;;  %v1585_v51 = vadd.f32 %v1584_v44, %v17161_v1 }
 0x1d4   :  { %v1586_v31 = vpop.f32.mrf.mxu0  ;;  %6879 = vmatpush1.bf16.msra.mxu0 %v15174_v42  ;;  %v15185_v42 = vld [vmem:[#allocation6 + $0x64] ss:$16 sps:$4 sm:$0xff]  }
 0x1d5   :  { %v1729_v32 = vpop.f32.mrf.mxu1  ;;  %v17327_v8 = vadd.f32 %v1727_v33, %v1585_v51  ;;  %v1587_v28 = vadd.f32 %v1586_v31, %v17164_v2  ;;  %6880 = vmatprep.subr.bf16.mxu0 %v15179_v47 }
 0x1d6   :  { %v1590_v43 = vpop.f32.mrf.mxu0  ;;  %2311 = vmatmul.mubr.bf16.gmra.mxu0 %v16965_v36 }
 0x1d7   :  { %20125 = vst [vmem:[#allocation44_spill] sm:$0xff] %v17327_v8  ;;  %v1733_v39 = vpop.f32.mrf.mxu1  ;;  %14861 = vmatmul.mubr.bf16.gmra.mxu1 %v16979_v48  ;;  %v17332_v55 = vadd.f32 %v1729_v32, %v1587_v28  ;;  %v1591_v0 = vadd.f32 %v1590_v43, %v17161_v1  ;;  %2318 = vmatprep.mubr.bf16.mxu0 %v16967_v37  ;;  %v15183_v32 = vld [vmem:[#allocation6 + $0x60] ss:$16 sps:$4 sm:$0xff]   ;;  %v15188_v37 = vld [vmem:[#allocation6 + $0x44] ss:$16 sps:$4 sm:$0xff]  }
 0x1d8   :  { %14864 = vmatprep.mubr.msk.bf16.mxu1 %vm16790_vm0, %v20121_v34  ;;  %v1592_v24 = vpop.f32.mrf.mxu0  ;;  %6881 = vmatpush1.bf16.msra.mxu0 %v15177_v56 }
 0x1d9   :  { %20126 = vst [vmem:[#allocation45_spill] sm:$0xff] %v17332_v55  ;;  %v1735_v31 = vpop.f32.mrf.mxu1  ;;  %v17338_v47 = vadd.f32 %v1733_v39, %v1591_v0  ;;  %v1593_v36 = vadd.f32 %v1592_v24, %v17164_v2  ;;  %6882 = vmatprep.subr.bf16.mxu0 %v15182_v25  ;;  %v15186_v25 = vld [vmem:[#allocation6 + $0x40] ss:$16 sps:$4 sm:$0xff]  }
 0x1da   :  { %v1594_v44 = vpop.f32.mrf.mxu0 }
 0x1db   :  { %v1737_v33 = vpop.f32.mrf.mxu1  ;;  %v17341_v51 = vadd.f32 %v1735_v31, %v1593_v36  ;;  %v1595_v28 = vadd.f32 %v1594_v44, %v17161_v1  ;;  %v2579_v31 = vld [vmem:[#allocation4 + $0x1] ss:$2 sm:$0x7]  ;;  %v15221_v36 = vld [vmem:[#allocation6 + $0x2e4] ss:$16 sps:$4 sm:$0xff]  }
 0x1dc   :  { %v1596_v43 = vpop.f32.mrf.mxu0  ;;  %6883 = vmatpush1.bf16.msra.mxu0 %v15180_v5  ;;  %v15191_v5 = vld [vmem:[#allocation6 + $0x24] ss:$16 sps:$4 sm:$0xff]   ;;  %6989 = vmatprep.subr.bf16.mxu1 %v15221_v36 }
 0x1dd   :  { %v1739_v55 = vpop.f32.mrf.mxu1  ;;  %v17344_v8 = vadd.f32 %v1737_v33, %v1595_v28  ;;  %v1597_v56 = vadd.f32 %v1596_v43, %v17164_v2  ;;  %6884 = vmatprep.subr.bf16.mxu0 %v15185_v42  ;;  %v15219_v33 = vld [vmem:[#allocation6 + $0x2e0] ss:$16 sps:$4 sm:$0xff]  }
 0x1de   :  { %v1776_v39 = vpop.f32.mrf.mxu0  ;;  %2319 = vmatmul.mubr.bf16.gmra.mxu0 %v16979_v48  ;;  %v15189_v43 = vld [vmem:[#allocation6 + $0x20] ss:$16 sps:$4 sm:$0xff]   ;;  %6990 = vmatpush1.bf16.msra.mxu1 %v15219_v33 }
 0x1df   :  { %20127 = vst [vmem:[#allocation46_spill] sm:$0xff] %v17344_v8  ;;  %v1919_v0 = vpop.f32.mrf.mxu1  ;;  %14865 = vmatmul.mubr.bf16.gmra.mxu1 %v16993_v62  ;;  %v17349_v24 = vadd.f32 %v1739_v55, %v1597_v56  ;;  %v1777_v1 = vadd.f32 %v1776_v39, %v17172_v16  ;;  %2326 = vmatprep.mubr.bf16.mxu0 %v16981_v50  ;;  %v15194_v56 = vld [vmem:[#allocation6 + $0x4] ss:$16 sps:$4 sm:$0xff]  }
 0x1e0   :  { %14868 = vmatprep.mubr.msk.bf16.mxu1 %vm16790_vm0, %v20121_v34  ;;  %v1778_v2 = vpop.f32.mrf.mxu0  ;;  %6885 = vmatpush1.bf16.msra.mxu0 %v15183_v32  ;;  %v15224_v8 = vld [vmem:[#allocation6 + $0x2c4] ss:$16 sps:$4 sm:$0xff]  }
 0x1e1   :  { %20128 = vst [vmem:[#allocation47_spill] sm:$0xff] %v17349_v24  ;;  %v1921_v42 = vpop.f32.mrf.mxu1  ;;  %v1920_v44 = vadd.f32 %v1919_v0, %v1777_v1  ;;  %v1779_v48 = vadd.f32 %v1778_v2, %v17176_v30  ;;  %6886 = vmatprep.subr.bf16.mxu0 %v15188_v37  ;;  %v17358_v0 = vrot.slane %v2579_v31, %v17154_v59  ;;  %v15222_v1 = vld [vmem:[#allocation6 + $0x2c0] ss:$16 sps:$4 sm:$0xff]  }
 0x1e2   :  { %v1780_v55 = vpop.f32.mrf.mxu0  ;;  %v17362_v2 = vrot.slane %v2579_v31, %v17157_v60  ;;  %6991 = vmatprep.subr.bf16.mxu1 %v15224_v8 }
 0x1e3   :  { %v1923_v28 = vpop.f32.mrf.mxu1  ;;  %v1922_v16 = vadd.f32 %v1921_v42, %v1779_v48  ;;  %v1781_v50 = vadd.f32 %v1780_v55, %v17179_v45  ;;  %v2512_v32 = vmax.f32 %v1920_v44, 0.0  ;;  %v15227_v55 = vld [vmem:[#allocation6 + $0x2a4] ss:$16 sps:$4 sm:$0xff]   ;;  %6992 = vmatpush1.bf16.msra.mxu1 %v15222_v1 }
 0x1e4   :  { %v1782_v39 = vpop.f32.mrf.mxu0  ;;  %6887 = vmatpush1.bf16.msra.mxu0 %v15186_v25  ;;  %v15192_v25 = vld [vmem:[#allocation6] ss:$16 sps:$4 sm:$0xff]   ;;  %6993 = vmatprep.subr.bf16.mxu1 %v15227_v55 }
 0x1e5   :  { %v1925_v24 = vpop.f32.mrf.mxu1  ;;  %v1924_v30 = vadd.f32 %v1923_v28, %v1781_v50  ;;  %v1783_v37 = vadd.f32 %v1782_v39, %v17185_v54  ;;  %6888 = vmatprep.subr.bf16.mxu0 %v15191_v5  ;;  %v2513_v36 = vmax.f32 %v1922_v16, 0.0  ;;  %v15197_v54 = vld [vmem:[#allocation6 + $0x1e4] ss:$16 sps:$4 sm:$0xff]  }
 0x1e6   :  { %v1786_v42 = vpop.f32.mrf.mxu0  ;;  %2327 = vmatmul.mubr.bf16.gmra.mxu0 %v16993_v62  ;;  %v2596_v62 = vadd.f32 %v17358_v0, %v2512_v32 }
 0x1e7   :  { %v1929_v45 = vpop.f32.mrf.mxu1  ;;  %14869 = vmatmul.mubr.bf16.gmra.mxu1 %v17007_v6  ;;  %v2515_v44 = vmax.f32 %v1924_v30, 0.0  ;;  %v1926_v48 = vadd.f32 %v1925_v24, %v1783_v37  ;;  %v1787_v33 = vadd.f32 %v1786_v42, %v17190_v58  ;;  %2334 = vmatprep.mubr.bf16.mxu0 %v16995_v63  ;;  %v15225_v58 = vld [vmem:[#allocation6 + $0x2a0] ss:$16 sps:$4 sm:$0xff]   ;;  %v2597_v30 = vadd.f32 %v17362_v2, %v2513_v36 }
 0x1e8   :  { %14872 = vmatprep.mubr.msk.bf16.mxu1 %vm16790_vm0, %v20121_v34  ;;  %v1788_v5 = vpop.f32.mrf.mxu0  ;;  %6889 = vmatpush1.bf16.msra.mxu0 %v15189_v43  ;;  %v15228_v36 = vld [vmem:[#allocation6 + $0x280] ss:$16 sps:$4 sm:$0xff]  }
 0x1e9   :  { %v1931_v31 = vpop.f32.mrf.mxu1  ;;  %v2599_v28 = vadd.f32 %v17358_v0, %v2515_v44  ;;  %v2516_v16 = vmax.f32 %v1926_v48, 0.0  ;;  %v1789_v24 = vadd.f32 %v1788_v5, %v17194_v4  ;;  %6890 = vmatprep.subr.bf16.mxu0 %v15194_v56  ;;  %v1930_v63 = vadd.f32 %v1929_v45, %v1787_v33  ;;  %v15195_v4 = vld [vmem:[#allocation6 + $0x1e0] ss:$16 sps:$4 sm:$0xff]   ;;  %v15230_v56 = vld [vmem:[#allocation6 + $0x284] ss:$16 sps:$4 sm:$0xff]   ;;  %6994 = vmatpush1.bf16.msra.mxu1 %v15225_v58 }
 0x1ea   :  { %v1790_v50 = vpop.f32.mrf.mxu0  ;;  %v15200_v45 = vld [vmem:[#allocation6 + $0x1c4] ss:$16 sps:$4 sm:$0xff]   ;;  %6995 = vmatprep.subr.bf16.mxu1 %v15230_v56 }
 0x1eb   :  { %v1933_v39 = vpop.f32.mrf.mxu1  ;;  %v17374_v37 = vpack.c.bf16 %v2599_v28, %v2596_v62  ;;  %v2600_v8 = vadd.f32 %v17362_v2, %v2516_v16  ;;  %v1932_v43 = vadd.f32 %v1931_v31, %v1789_v24  ;;  %v1791_v32 = vadd.f32 %v1790_v50, %v17197_v10  ;;  %v15198_v16 = vld [vmem:[#allocation6 + $0x1c0] ss:$16 sps:$4 sm:$0xff]   ;;  %v15236_v24 = vld [vmem:[#allocation6 + $0x264] ss:$16 sps:$4 sm:$0xff]  }
 0x1ec   :  { %v1792_v42 = vpop.f32.mrf.mxu0  ;;  %6891 = vmatpush1.bf16.msra.mxu0 %v15192_v25  ;;  %v2518_v33 = vmax.f32 %v1930_v63, 0.0  ;;  %v15203_v50 = vld [vmem:[#allocation6 + $0x1a4] ss:$16 sps:$4 sm:$0xff]  }
 0x1ed   :  { %20129 = vst [vmem:[#allocation48_spill] sm:$0xff] %v17374_v37  ;;  %v1935_v44 = vpop.f32.mrf.mxu1  ;;  %v1793_v1 = vadd.f32 %v1792_v42, %v17202_v20  ;;  %6892 = vmatprep.subr.bf16.mxu0 %v15197_v54  ;;  %v17379_v48 = vpack.c.bf16 %v2600_v8, %v2597_v30  ;;  %v1934_v5 = vadd.f32 %v1933_v39, %v1791_v32  ;;  %v2519_v10 = vmax.f32 %v1932_v43, 0.0 }
 0x1ee   :  { %v1796_v55 = vpop.f32.mrf.mxu0  ;;  %2335 = vmatmul.mubr.bf16.gmra.mxu0 %v17007_v6  ;;  %6996 = vmatpush1.bf16.msra.mxu1 %v15228_v36  ;;  %v15242_v36 = vld [vmem:[#allocation6 + $0x244] ss:$16 sps:$4 sm:$0xff]  }
 0x1ef   :  { %20130 = vst [vmem:[#allocation49_spill] sm:$0xff] %v17379_v48  ;;  %v1939_v62 = vpop.f32.mrf.mxu1  ;;  %14873 = vmatmul.mubr.bf16.gmra.mxu1 %v17021_v17  ;;  %v1936_v25 = vadd.f32 %v1935_v44, %v1793_v1  ;;  %v1797_v31 = vadd.f32 %v1796_v55, %v17207_v26  ;;  %2342 = vmatprep.mubr.bf16.mxu0 %v17009_v7  ;;  %v2521_v20 = vmax.f32 %v1934_v5, 0.0  ;;  %v15234_v26 = vld [vmem:[#allocation6 + $0x260] ss:$16 sps:$4 sm:$0xff]   ;;  %v15206_v55 = vld [vmem:[#allocation6 + $0x184] ss:$16 sps:$4 sm:$0xff]  }
 0x1f0   :  { %14876 = vmatprep.mubr.msk.bf16.mxu1 %vm16790_vm0, %v20121_v34  ;;  %v1798_v54 = vpop.f32.mrf.mxu0  ;;  %6893 = vmatpush2.bf16.msra.mxu0 %v15195_v4  ;;  %v2602_v7 = vadd.f32 %v17358_v0, %v2518_v33  ;;  %v2603_v43 = vadd.f32 %v17362_v2, %v2519_v10 }
 0x1f1   :  { %v1941_v28 = vpop.f32.mrf.mxu1  ;;  %v2522_v58 = vmax.f32 %v1936_v25, 0.0  ;;  %v1940_v6 = vadd.f32 %v1939_v62, %v1797_v31  ;;  %v1799_v63 = vadd.f32 %v1798_v54, %v17210_v46  ;;  %6894 = vmatprep.subr.bf16.mxu0 %v15200_v45  ;;  %v2605_v39 = vadd.f32 %v17358_v0, %v2521_v20  ;;  %6997 = vmatprep.subr.bf16.mxu1 %v15236_v24  ;;  %v15201_v45 = vld [vmem:[#allocation6 + $0x1a0] ss:$16 sps:$4 sm:$0xff]  }
 0x1f2   :  { %v1800_v30 = vpop.f32.mrf.mxu0  ;;  %6998 = vmatpush1.bf16.msra.mxu1 %v15234_v26  ;;  %v15240_v62 = vld [vmem:[#allocation6 + $0x240] ss:$16 sps:$4 sm:$0xff]  }
 0x1f3   :  { %v1943_v8 = vpop.f32.mrf.mxu1  ;;  %v2606_v32 = vadd.f32 %v17362_v2, %v2522_v58  ;;  %v1801_v42 = vadd.f32 %v1800_v30, %v17213_v52  ;;  %v17393_v44 = vpack.c.bf16 %v2605_v39, %v2602_v7  ;;  %v2524_v46 = vmax.f32 %v1940_v6, 0.0  ;;  %v15204_v58 = vld [vmem:[#allocation6 + $0x180] ss:$16 sps:$4 sm:$0xff]   ;;  %6999 = vmatprep.subr.bf16.mxu1 %v15242_v36 }
 0x1f4   :  { %v1942_v4 = vadd.f32 %v1941_v28, %v1799_v63  ;;  %v1802_v56 = vpop.f32.mrf.mxu0  ;;  %6895 = vmatpush2.bf16.msra.mxu0 %v15198_v16 }
 0x1f5   :  { %20131 = vst [vmem:[#allocation50_spill] sm:$0xff] %v17393_v44  ;;  %v1945_v1 = vpop.f32.mrf.mxu1  ;;  %v17395_v33 = vpack.c.bf16 %v2606_v32, %v2603_v43  ;;  %v1944_v5 = vadd.f32 %v1943_v8, %v1801_v42  ;;  %6896 = vmatprep.subr.bf16.mxu0 %v15203_v50  ;;  %v1803_v10 = vadd.f32 %v1802_v56, %v17218_v57  ;;  %v15246_v50 = vld [vmem:[#allocation6 + $0x220] ss:$16 sps:$4 sm:$0xff]   ;;  %v15254_v56 = vld [vmem:[#allocation6 + $0x204] ss:$16 sps:$4 sm:$0xff]  }
 0x1f6   :  { %v1806_v25 = vpop.f32.mrf.mxu0  ;;  %2343 = vmatmul.mubr.bf16.gmra.mxu0 %v17021_v17  ;;  %v2608_v54 = vadd.f32 %v17358_v0, %v2524_v46  ;;  %v2525_v28 = vmax.f32 %v1942_v4, 0.0  ;;  %v15248_v17 = vld [vmem:[#allocation6 + $0x224] ss:$16 sps:$4 sm:$0xff]   ;;  %7000 = vmatpush1.bf16.msra.mxu1 %v15240_v62 }
 0x1f7   :  { %20132 = vst [vmem:[#allocation51_spill] sm:$0xff] %v17395_v33  ;;  %v1949_v52 = vpop.f32.mrf.mxu1  ;;  %14877 = vmatmul.mubr.bf16.gmra.mxu1 %v17035_v27  ;;  %v2527_v31 = vmax.f32 %v1944_v5, 0.0  ;;  %v1807_v20 = vadd.f32 %v1806_v25, %v17223_v3  ;;  %2350 = vmatprep.mubr.bf16.mxu0 %v17023_v18  ;;  %v1946_v16 = vadd.f32 %v1945_v1, %v1803_v10  ;;  %v15209_v18 = vld [vmem:[#allocation6 + $0x164] ss:$16 sps:$4 sm:$0xff]  }
 0x1f8   :  { %14880 = vmatprep.mubr.msk.bf16.mxu1 %vm16790_vm0, %v20121_v34  ;;  %v1808_v24 = vpop.f32.mrf.mxu0  ;;  %6897 = vmatpush2.bf16.msra.mxu0 %v15201_v45  ;;  %v2609_v32 = vadd.f32 %v17362_v2, %v2525_v28  ;;  %v15212_v5 = vld [vmem:[#allocation6 + $0x144] ss:$16 sps:$4 sm:$0xff]   ;;  %v15210_v28 = vld [vmem:[#allocation6 + $0x140] ss:$16 sps:$4 sm:$0xff]  }
 0x1f9   :  { %v1951_v57 = vpop.f32.mrf.mxu1  ;;  %v2611_v6 = vadd.f32 %v17358_v0, %v2527_v31  ;;  %v1950_v63 = vadd.f32 %v1949_v52, %v1807_v20  ;;  %v1809_v3 = vadd.f32 %v1808_v24, %v17226_v14  ;;  %6898 = vmatprep.subr.bf16.mxu0 %v15206_v55  ;;  %v2528_v26 = vmax.f32 %v1946_v16, 0.0  ;;  %7001 = vmatprep.subr.bf16.mxu1 %v15248_v17  ;;  %v15207_v14 = vld [vmem:[#allocation6 + $0x160] ss:$16 sps:$4 sm:$0xff]   ;;  %v15260_v16 = vld [vmem:[#allocation6 + $0x3e4] ss:$16 sps:$4 sm:$0xff]  }
 0x1fa   :  { %v1810_v7 = vpop.f32.mrf.mxu0  ;;  %7002 = vmatpush1.bf16.msra.mxu1 %v15246_v50  ;;  %v15252_v55 = vld [vmem:[#allocation6 + $0x200] ss:$16 sps:$4 sm:$0xff]  }
 0x1fb   :  { %v1953_v39 = vpop.f32.mrf.mxu1  ;;  %v17407_v30 = vpack.c.bf16 %v2611_v6, %v2608_v54  ;;  %v1952_v8 = vadd.f32 %v1951_v57, %v1809_v3  ;;  %v1811_v43 = vadd.f32 %v1810_v7, %v17229_v22  ;;  %v2612_v42 = vadd.f32 %v17362_v2, %v2528_v26  ;;  %7003 = vmatprep.subr.bf16.mxu1 %v15254_v56 }
 0x1fc   :  { %v1812_v46 = vpop.f32.mrf.mxu0  ;;  %6899 = vmatpush2.bf16.msra.mxu0 %v15204_v58  ;;  %v2530_v1 = vmax.f32 %v1950_v63, 0.0 }
 0x1fd   :  { %20133 = vst [vmem:[#allocation52_spill] sm:$0xff] %v17407_v30  ;;  %v1955_v4 = vpop.f32.mrf.mxu1  ;;  %v1954_v45 = vadd.f32 %v1953_v39, %v1811_v43  ;;  %v1813_v36 = vadd.f32 %v1812_v46, %v17234_v40  ;;  %6900 = vmatprep.subr.bf16.mxu0 %v15209_v18  ;;  %v17413_v62 = vpack.c.bf16 %v2612_v42, %v2609_v32  ;;  %v2531_v25 = vmax.f32 %v1952_v8, 0.0  ;;  %v15266_v43 = vld [vmem:[#allocation6 + $0x3c4] ss:$16 sps:$4 sm:$0xff]  }
 0x1fe   :  { %v1816_v22 = vpop.f32.mrf.mxu0  ;;  %2351 = vmatmul.mubr.bf16.gmra.mxu0 %v17035_v27  ;;  %v2614_v27 = vadd.f32 %v17358_v0, %v2530_v1  ;;  %7004 = vmatpush1.bf16.msra.mxu1 %v15252_v55  ;;  %v15218_v46 = vld [vmem:[#allocation6 + $0x104] ss:$16 sps:$4 sm:$0xff]  }
 0x1ff   :  { %20134 = vst [vmem:[#allocation53_spill] sm:$0xff] %v17413_v62  ;;  %v1959_v10 = vpop.f32.mrf.mxu1  ;;  %14881 = vmatmul.mubr.bf16.gmra.mxu1 %v17049_v35  ;;  %v2533_v52 = vmax.f32 %v1954_v45, 0.0  ;;  %v1956_v31 = vadd.f32 %v1955_v4, %v1813_v36  ;;  %v1817_v20 = vadd.f32 %v1816_v22, %v17239_v53  ;;  %2358 = vmatprep.mubr.bf16.mxu0 %v17037_v29  ;;  %v15215_v53 = vld [vmem:[#allocation6 + $0x124] ss:$16 sps:$4 sm:$0xff]   ;;  %v15258_v29 = vld [vmem:[#allocation6 + $0x3e0] ss:$16 sps:$4 sm:$0xff]  }
 0x200   :  { %14884 = vmatprep.mubr.msk.bf16.mxu1 %vm16790_vm0, %v20121_v34  ;;  %v1818_v40 = vpop.f32.mrf.mxu0  ;;  %6901 = vmatpush2.bf16.msra.mxu0 %v15207_v14  ;;  %v2615_v3 = vadd.f32 %v17362_v2, %v2531_v25  ;;  %v15264_v4 = vld [vmem:[#allocation6 + $0x3c0] ss:$16 sps:$4 sm:$0xff]   ;;  %v15272_v25 = vld [vmem:[#allocation6 + $0x3a4] ss:$16 sps:$4 sm:$0xff]  }
 0x201   :  { %v1961_v54 = vpop.f32.mrf.mxu1  ;;  %v2617_v24 = vadd.f32 %v17358_v0, %v2533_v52  ;;  %v2534_v57 = vmax.f32 %v1956_v31, 0.0  ;;  %v1819_v58 = vadd.f32 %v1818_v40, %v17242_v61  ;;  %6902 = vmatprep.subr.bf16.mxu0 %v15212_v5  ;;  %v1960_v17 = vadd.f32 %v1959_v10, %v1817_v20  ;;  %7005 = vmatprep.subr.bf16.mxu1 %v15260_v16  ;;  %v15213_v61 = vld [vmem:[#allocation6 + $0x120] ss:$16 sps:$4 sm:$0xff]   ;;  %v15233_v20 = vld [vmem:[#allocation6 + $0x4e4] ss:$16 sps:$4 sm:$0xff]  }
 0x202   :  { %v1820_v6 = vpop.f32.mrf.mxu0  ;;  %7006 = vmatpush2.bf16.msra.mxu1 %v15258_v29  ;;  %v15216_v10 = vld [vmem:[#allocation6 + $0x100] ss:$16 sps:$4 sm:$0xff]   ;;  %v15278_v29 = vld [vmem:[#allocation6 + $0x384] ss:$16 sps:$4 sm:$0xff]  }
 0x203   :  { %v1963_v63 = vpop.f32.mrf.mxu1  ;;  %v17425_v18 = vpack.c.bf16 %v2617_v24, %v2614_v27  ;;  %v2618_v50 = vadd.f32 %v17362_v2, %v2534_v57  ;;  %v1962_v26 = vadd.f32 %v1961_v54, %v1819_v58  ;;  %v1821_v7 = vadd.f32 %v1820_v6, %v17245_v9  ;;  %7007 = vmatprep.subr.bf16.mxu1 %v15266_v43  ;;  %v20141_v43 = vld [vmem:[#allocation25_spill] sm:$0xff] }
 0x204   :  { %v1822_v39 = vpop.f32.mrf.mxu0  ;;  %6903 = vmatpush2.bf16.msra.mxu0 %v15210_v28  ;;  %v2536_v14 = vmax.f32 %v1960_v17, 0.0 }
 0x205   :  { %20135 = vst [vmem:[#allocation54_spill] sm:$0xff] %v17425_v18  ;;  %v1965_v8 = vpop.f32.mrf.mxu1  ;;  %v17429_v32 = vpack.c.bf16 %v2618_v50, %v2615_v3  ;;  %v1823_v42 = vadd.f32 %v1822_v39, %v17250_v23  ;;  %6904 = vmatprep.subr.bf16.mxu0 %v15215_v53  ;;  %v1964_v56 = vadd.f32 %v1963_v63, %v1821_v7  ;;  %v2537_v9 = vmax.f32 %v1962_v26, 0.0  ;;  %v15276_v3 = vld [vmem:[#allocation6 + $0x380] ss:$16 sps:$4 sm:$0xff]  }
 0x206   :  { %v1826_v1 = vpop.f32.mrf.mxu0  ;;  %2359 = vmatmul.mubr.bf16.gmra.mxu0 %v17049_v35  ;;  %7008 = vmatpush2.bf16.msra.mxu1 %v15264_v4 }
 0x207   :  { %20136 = vst [vmem:[#allocation55_spill] sm:$0xff] %v17429_v32  ;;  %v1969_v45 = vpop.f32.mrf.mxu1  ;;  %14885 = vmatmul.mubr.bf16.gmra.mxu1 %v17065_v41  ;;  %v1966_v36 = vadd.f32 %v1965_v8, %v1823_v42  ;;  %v1827_v5 = vadd.f32 %v1826_v1, %v17255_v49  ;;  %2366 = vmatprep.mubr.bf16.mxu0 %v17051_v38  ;;  %v2539_v23 = vmax.f32 %v1964_v56, 0.0  ;;  %v15270_v49 = vld [vmem:[#allocation6 + $0x3a0] ss:$16 sps:$4 sm:$0xff]  }
 0x208   :  { %14888 = vmatprep.mubr.msk.bf16.mxu1 %vm16790_vm0, %v20121_v34  ;;  %v1828_v55 = vpop.f32.mrf.mxu0  ;;  %6905 = vmatpush2.bf16.msra.mxu0 %v15213_v61  ;;  %v2620_v38 = vadd.f32 %v17358_v0, %v2536_v14  ;;  %v2621_v16 = vadd.f32 %v17362_v2, %v2537_v9  ;;  %v20140_v8 = vld [vmem:[#allocation33_spill] sm:$0xff] }
 0x209   :  { %v1971_v22 = vpop.f32.mrf.mxu1  ;;  %v2540_v52 = vmax.f32 %v1966_v36, 0.0  ;;  %v1970_v35 = vadd.f32 %v1969_v45, %v1827_v5  ;;  %v1829_v31 = vadd.f32 %v1828_v55, %v17258_v12  ;;  %6906 = vmatprep.subr.bf16.mxu0 %v15218_v46  ;;  %v2623_v40 = vadd.f32 %v17358_v0, %v2539_v23  ;;  %7009 = vmatprep.subr.bf16.mxu1 %v15272_v25  ;;  %v20142_v45 = vld [vmem:[#allocation34_spill] sm:$0xff]  ;;  %v15282_v36 = vld [vmem:[#allocation6 + $0x360] ss:$16 sps:$4 sm:$0xff]  }
 0x20a   :  { %v1830_v54 = vpop.f32.mrf.mxu0  ;;  %7010 = vmatpush2.bf16.msra.mxu1 %v15270_v49  ;;  %v20144_v25 = vld [vmem:[#allocation35_spill] sm:$0xff] }
 0x20b   :  { %v1973_v28 = vpop.f32.mrf.mxu1  ;;  %v2624_v27 = vadd.f32 %v17362_v2, %v2540_v52  ;;  %v1831_v24 = vadd.f32 %v1830_v54, %v17261_v15  ;;  %v17444_v57 = vpack.c.bf16 %v2623_v40, %v2620_v38  ;;  %v1972_v12 = vadd.f32 %v1971_v22, %v1829_v31  ;;  %v20139_v15 = vld [vmem:[#allocation26_spill] sm:$0xff]  ;;  %7011 = vmatprep.subr.bf16.mxu1 %v15278_v29  ;;  %v15290_v38 = vld [vmem:[#allocation6 + $0x344] ss:$16 sps:$4 sm:$0xff]  }
 0x20c   :  { %v1832_v58 = vpop.f32.mrf.mxu0  ;;  %6907 = vmatpush2.bf16.msra.mxu0 %v15216_v10  ;;  %v2542_v6 = vmax.f32 %v1970_v35, 0.0  ;;  %v20147_v29 = vld [vmem:[#allocation27_spill] sm:$0xff] }
 0x20d   :  { %20137 = vst [vmem:[#allocation56_spill] sm:$0xff] %v17444_v57  ;;  %v1975_v53 = vpop.f32.mrf.mxu1  ;;  %v17446_v17 = vpack.c.bf16 %v2624_v27, %v2621_v16  ;;  %v1974_v63 = vadd.f32 %v1973_v28, %v1831_v24  ;;  %7102 = vmatprep.subr.bf16.mxu0 %v15233_v20  ;;  %v1833_v50 = vadd.f32 %v1832_v58, %v17266_v21  ;;  %v2543_v42 = vmax.f32 %v1972_v12, 0.0  ;;  %v15284_v21 = vld [vmem:[#allocation6 + $0x364] ss:$16 sps:$4 sm:$0xff]   ;;  %v20145_v28 = vld [vmem:[#allocation36_spill] sm:$0xff] }
 0x20e   :  { %v1836_v26 = vpop.f32.mrf.mxu0  ;;  %2367 = vmatmul.mubr.bf16.gmra.mxu0 %v17065_v41  ;;  %v2626_v56 = vadd.f32 %v17358_v0, %v2542_v6  ;;  %7012 = vmatpush2.bf16.msra.mxu1 %v15276_v3  ;;  %v15288_v27 = vld [vmem:[#allocation6 + $0x340] ss:$16 sps:$4 sm:$0xff]  }
 0x20f   :  { %20138 = vst [vmem:[#allocation57_spill] sm:$0xff] %v17446_v17  ;;  %v1979_v7 = vpop.f32.mrf.mxu1  ;;  %14889 = vmatmul.mubr.bf16.gmra.mxu1 %v20139_v15  ;;  %v2545_v39 = vmax.f32 %v1974_v63, 0.0  ;;  %v1837_v61 = vadd.f32 %v1836_v26, %v20140_v8  ;;  %2374 = vmatprep.mubr.bf16.mxu0 %v20141_v43  ;;  %v1976_v46 = vadd.f32 %v1975_v53, %v1833_v50  ;;  %v20148_v3 = vld [vmem:[#allocation37_spill] sm:$0xff]  ;;  %v20149_v26 = vld [vmem:[#allocation28_spill] sm:$0xff]  ;;  %v19914_v8 = vrot.slane %v17393_v44, 4 }
 0x210   :  { %14892 = vmatprep.mubr.msk.bf16.mxu1 %vm16790_vm0, %v20121_v34  ;;  %v1838_v4 = vpop.f32.mrf.mxu0  ;;  %7013 = vmatprep.subr.bf16.mxu1 %v15284_v21  ;;  %v2627_v35 = vadd.f32 %v17362_v2, %v2543_v42 }
 0x211   :  { %v1981_v14 = vpop.f32.mrf.mxu1  ;;  %v2629_v41 = vadd.f32 %v17358_v0, %v2545_v39  ;;  %v1980_v1 = vadd.f32 %v1979_v7, %v1837_v61  ;;  %v1839_v9 = vadd.f32 %v1838_v4, %v20142_v45  ;;  %v2546_v5 = vmax.f32 %v1976_v46, 0.0  ;;  %v15296_v61 = vld [vmem:[#allocation6 + $0x324] ss:$16 sps:$4 sm:$0xff]   ;;  %v20150_v46 = vld [vmem:[#allocation38_spill] sm:$0xff] }
 0x212   :  { %v1840_v23 = vpop.f32.mrf.mxu0  ;;  %7014 = vmatpush2.bf16.msra.mxu1 %v15282_v36  ;;  %v20152_v36 = vld [vmem:[#allocation39_spill] sm:$0xff] }
 0x213   :  { %v1983_v55 = vpop.f32.mrf.mxu1  ;;  %v17458_v22 = vpack.c.bf16 %v2629_v41, %v2626_v56  ;;  %v1982_v10 = vadd.f32 %v1981_v14, %v1839_v9  ;;  %v1841_v52 = vadd.f32 %v1840_v23, %v20144_v25  ;;  %v2630_v31 = vadd.f32 %v17362_v2, %v2546_v5  ;;  %7015 = vmatprep.subr.bf16.mxu1 %v15290_v38  ;;  %v15294_v14 = vld [vmem:[#allocation6 + $0x320] ss:$16 sps:$4 sm:$0xff]   ;;  %v15302_v25 = vld [vmem:[#allocation6 + $0x304] ss:$16 sps:$4 sm:$0xff]  }
 0x214   :  { %v1842_v20 = vpop.f32.mrf.mxu0  ;;  %v2548_v40 = vmax.f32 %v1980_v1, 0.0 }
 0x215   :  { %20143 = vst [vmem:[#allocation26_spill] sm:$0xff] %v17458_v22  ;;  %v1985_v49 = vpop.f32.mrf.mxu1  ;;  %v1984_v54 = vadd.f32 %v1983_v55, %v1841_v52  ;;  %v1843_v16 = vadd.f32 %v1842_v20, %v20145_v28  ;;  %v17464_v24 = vpack.c.bf16 %v2630_v31, %v2627_v35  ;;  %v2549_v12 = vmax.f32 %v1982_v10, 0.0  ;;  %v20154_v35 = vld [vmem:[#allocation40_spill] sm:$0xff]  ;;  %v15300_v20 = vld [vmem:[#allocation6 + $0x300] ss:$16 sps:$4 sm:$0xff]  }
 0x216   :  { %v1846_v58 = vpop.f32.mrf.mxu0  ;;  %2375 = vmatmul.mubr.bf16.gmra.mxu0 %v20139_v15  ;;  %v2632_v15 = vadd.f32 %v17358_v0, %v2548_v40  ;;  %7016 = vmatpush2.bf16.msra.mxu1 %v15288_v27  ;;  %v2723_v10 = vrot.slane %v17374_v37, 4  ;;  %v20155_v28 = vld [vmem:[#allocation29_spill] sm:$0xff] }
 0x217   :  { %20146 = vst [vmem:[#allocation33_spill] sm:$0xff] %v17464_v24  ;;  %v1989_v53 = vpop.f32.mrf.mxu1  ;;  %14893 = vmatmul.mubr.bf16.gmra.mxu1 %v20147_v29  ;;  %v2551_v6 = vmax.f32 %v1984_v54, 0.0  ;;  %v1986_v63 = vadd.f32 %v1985_v49, %v1843_v16  ;;  %v1847_v50 = vadd.f32 %v1846_v58, %v20148_v3  ;;  %2382 = vmatprep.mubr.bf16.mxu0 %v20149_v26  ;;  %v20157_v26 = vld [vmem:[#allocation41_spill] sm:$0xff] }
 0x218   :  { %14896 = vmatprep.mubr.msk.bf16.mxu1 %vm16790_vm0, %v20121_v34  ;;  %v1848_v7 = vpop.f32.mrf.mxu0  ;;  %7017 = vmatprep.subr.bf16.mxu1 %v15296_v61  ;;  %v2633_v34 = vadd.f32 %v17362_v2, %v2549_v12  ;;  %v17490_v16 = vsel %vm2722_vm1, %v2723_v10, %v19914_v8 }
 0x219   :  { %v1991_v39 = vpop.f32.mrf.mxu1  ;;  %v2635_v43 = vadd.f32 %v17358_v0, %v2551_v6  ;;  %v2552_v42 = vmax.f32 %v1986_v63, 0.0  ;;  %v1849_v4 = vadd.f32 %v1848_v7, %v20150_v46  ;;  %v1990_v21 = vadd.f32 %v1989_v53, %v1847_v50  ;;  %20156 = vst [vmem:[#allocation35_spill] sm:$0xff] %v17490_v16 }
 0x21a   :  { %v1850_v56 = vpop.f32.mrf.mxu0  ;;  %7018 = vmatpush2.bf16.msra.mxu1 %v15294_v14  ;;  %v20158_v14 = vld [vmem:[#allocation42_spill] sm:$0xff] }
 0x21b   :  { %v1993_v41 = vpop.f32.mrf.mxu1  ;;  %v17477_v1 = vpack.c.bf16 %v2635_v43, %v2632_v15  ;;  %v2636_v45 = vadd.f32 %v17362_v2, %v2552_v42  ;;  %v1992_v9 = vadd.f32 %v1991_v39, %v1849_v4  ;;  %v1851_v5 = vadd.f32 %v1850_v56, %v20152_v36  ;;  %7019 = vmatprep.subr.bf16.mxu1 %v15302_v25  ;;  %v15231_v39 = vld [vmem:[#allocation6 + $0x4e0] ss:$16 sps:$4 sm:$0xff]  }
 0x21c   :  { %v1852_v23 = vpop.f32.mrf.mxu0  ;;  %v2554_v49 = vmax.f32 %v1990_v21, 0.0 }
 0x21d   :  { %20151 = vst [vmem:[#allocation25_spill] sm:$0xff] %v17477_v1  ;;  %v1995_v55 = vpop.f32.mrf.mxu1  ;;  %v17482_v52 = vpack.c.bf16 %v2636_v45, %v2633_v34  ;;  %v1853_v31 = vadd.f32 %v1852_v23, %v20154_v35  ;;  %v1994_v38 = vadd.f32 %v1993_v41, %v1851_v5  ;;  %v2555_v27 = vmax.f32 %v1992_v9, 0.0  ;;  %v15239_v45 = vld [vmem:[#allocation6 + $0x4c4] ss:$16 sps:$4 sm:$0xff]   ;;  %v15237_v23 = vld [vmem:[#allocation6 + $0x4c0] ss:$16 sps:$4 sm:$0xff]  }
 0x21e   :  { %v1856_v40 = vpop.f32.mrf.mxu0  ;;  %2383 = vmatmul.mubr.bf16.gmra.mxu0 %v20147_v29  ;;  %v15311_v29 = vld [vmem:[#allocation6 + $0x6e4] ss:$16 sps:$4 sm:$0xff]   ;;  %7020 = vmatpush2.bf16.msra.mxu1 %v15300_v20  ;;  %v2638_v61 = vadd.f32 %v17358_v0, %v2554_v49 }
 0x21f   :  { %20153 = vst [vmem:[#allocation34_spill] sm:$0xff] %v17482_v52  ;;  %v1999_v54 = vpop.f32.mrf.mxu1  ;;  %14897 = vmatmul.mubr.bf16.gmra.mxu1 %v20155_v28  ;;  %v1996_v12 = vadd.f32 %v1995_v55, %v1853_v31  ;;  %v1857_v58 = vadd.f32 %v1856_v40, %v17304_v11  ;;  %6908 = vmatprep.mubr.bf16.mxu0 %v17379_v48  ;;  %v2557_v53 = vmax.f32 %v1994_v38, 0.0  ;;  %v20161_v55 = vld [vmem:[#allocation43_spill] sm:$0xff] }
 0x220   :  { %7021 = vmatprep.mubr.bf16.mxu1 %v17490_v16  ;;  %v1858_v6 = vpop.f32.mrf.mxu0  ;;  %7215 = vmatprep.subr.bf16.mxu1 %v15311_v29  ;;  %v2639_v42 = vadd.f32 %v17362_v2, %v2555_v27  ;;  %v15245_v28 = vld [vmem:[#allocation6 + $0x4a4] ss:$16 sps:$4 sm:$0xff]  }
 0x221   :  { %v2001_v63 = vpop.f32.mrf.mxu1  ;;  %v2558_v3 = vmax.f32 %v1996_v12, 0.0  ;;  %v2000_v50 = vadd.f32 %v1999_v54, %v1857_v58  ;;  %v1859_v7 = vadd.f32 %v1858_v6, %v20157_v26  ;;  %v2641_v15 = vadd.f32 %v17358_v0, %v2557_v53  ;;  %v15243_v6 = vld [vmem:[#allocation6 + $0x4a0] ss:$16 sps:$4 sm:$0xff]   ;;  %v20163_v26 = vld [vmem:[#allocation44_spill] sm:$0xff] }
 0x222   :  { %v1860_v11 = vpop.f32.mrf.mxu0 }
 0x223   :  { %v2003_v43 = vpop.f32.mrf.mxu1  ;;  %v2642_v46 = vadd.f32 %v17362_v2, %v2558_v3  ;;  %v2002_v4 = vadd.f32 %v2001_v63, %v1859_v7  ;;  %v1861_v21 = vadd.f32 %v1860_v11, %v20158_v14  ;;  %v17501_v56 = vpack.c.bf16 %v2641_v15, %v2638_v61  ;;  %v15249_v14 = vld [vmem:[#allocation6 + $0x480] ss:$16 sps:$4 sm:$0xff]  }
 0x224   :  { %v1862_v41 = vpop.f32.mrf.mxu0  ;;  %v2560_v36 = vmax.f32 %v2000_v50, 0.0 }
 0x225   :  { %20159 = vst [vmem:[#allocation36_spill] sm:$0xff] %v17501_v56  ;;  %v2005_v34 = vpop.f32.mrf.mxu1  ;;  %v17503_v9 = vpack.c.bf16 %v2642_v46, %v2639_v42  ;;  %v2004_v5 = vadd.f32 %v2003_v43, %v1861_v21  ;;  %v1863_v10 = vadd.f32 %v1862_v41, %v20161_v55  ;;  %v2561_v49 = vmax.f32 %v2002_v4, 0.0  ;;  %v15251_v42 = vld [vmem:[#allocation6 + $0x484] ss:$16 sps:$4 sm:$0xff]  }
 0x226   :  { %v1866_v25 = vpop.f32.mrf.mxu0  ;;  %6909 = vmatmul.mubr.bf16.vlgmr.msra.gmra.mxu0 %v17374_v37  ;;  %v2644_v27 = vadd.f32 %v17358_v0, %v2560_v36  ;;  %v20164_v46 = vld [vmem:[#allocation45_spill] sm:$0xff] }
 0x227   :  { %20160 = vst [vmem:[#allocation27_spill] sm:$0xff] %v17503_v9  ;;  %v2009_v35 = vpop.f32.mrf.mxu1  ;;  %v2563_v31 = vmax.f32 %v2004_v5, 0.0  ;;  %v1867_v20 = vadd.f32 %v1866_v25, %v17321_v19  ;;  %6918 = vmatprep.mubr.bf16.mxu0 %v17395_v33  ;;  %7103 = vmatpush1.bf16.msra.mxu0 %v15231_v39  ;;  %v2006_v38 = vadd.f32 %v2005_v34, %v1863_v10 }
 0x228   :  { %v1868_v40 = vpop.f32.mrf.mxu0  ;;  %7104 = vmatprep.subr.bf16.mxu0 %v15239_v45  ;;  %v2645_v39 = vadd.f32 %v17362_v2, %v2561_v49 }
 0x229   :  { %v2011_v54 = vpop.f32.mrf.mxu1  ;;  %v2647_v12 = vadd.f32 %v17358_v0, %v2563_v31  ;;  %v2010_v58 = vadd.f32 %v2009_v35, %v1867_v20  ;;  %v1869_v53 = vadd.f32 %v1868_v40, %v17324_v13  ;;  %v2564_v63 = vmax.f32 %v2006_v38, 0.0  ;;  %v20166_v35 = vld [vmem:[#allocation30_spill] sm:$0xff]  ;;  %v15257_v20 = vld [vmem:[#allocation6 + $0x464] ss:$16 sps:$4 sm:$0xff]  }
 0x22a   :  { %v1870_v29 = vpop.f32.mrf.mxu0  ;;  %v17525_v31 = vsub.s32 2, %v20166_v35 }
 0x22b   :  { %v2013_v19 = vpop.f32.mrf.mxu1  ;;  %v17512_v3 = vpack.c.bf16 %v2647_v12, %v2644_v27  ;;  %v2012_v50 = vadd.f32 %v2011_v54, %v1869_v53  ;;  %v1871_v7 = vadd.f32 %v1870_v29, %v20163_v26  ;;  %7105 = vmatpush1.bf16.msra.mxu0 %v15237_v23  ;;  %v2648_v61 = vadd.f32 %v17362_v2, %v2564_v63  ;;  %v20169_v63 = vld [vmem:[#allocation46_spill] sm:$0xff]  ;;  %v15263_v26 = vld [vmem:[#allocation6 + $0x444] ss:$16 sps:$4 sm:$0xff]  }
 0x22c   :  { %v2566_v15 = vmax.f32 %v2010_v58, 0.0  ;;  %v1872_v11 = vpop.f32.mrf.mxu0  ;;  %7106 = vmatprep.subr.bf16.mxu0 %v15245_v28  ;;  %20167 = vst [vmem:[#allocation38_spill] sm:$0xff] %v17525_v31  ;;  %v15255_v28 = vld [vmem:[#allocation6 + $0x460] ss:$16 sps:$4 sm:$0xff]  }
 0x22d   :  { %20162 = vst [vmem:[#allocation37_spill] sm:$0xff] %v17512_v3  ;;  %v2015_v43 = vpop.f32.mrf.mxu1  ;;  %v2014_v13 = vadd.f32 %v2013_v19, %v1871_v7  ;;  %v1873_v4 = vadd.f32 %v1872_v11, %v20164_v46  ;;  %v17518_v21 = vpack.c.bf16 %v2648_v61, %v2645_v39  ;;  %v2567_v41 = vmax.f32 %v2012_v50, 0.0  ;;  %v15261_v61 = vld [vmem:[#allocation6 + $0x440] ss:$16 sps:$4 sm:$0xff]  }
 0x22e   :  { %v1876_v34 = vpop.f32.mrf.mxu0  ;;  %6919 = vmatmul.mubr.bf16.gmra.mxu0 %v17393_v44  ;;  %v2650_v55 = vadd.f32 %v17358_v0, %v2566_v15 }
 0x22f   :  { %20165 = vst [vmem:[#allocation28_spill] sm:$0xff] %v17518_v21  ;;  %v2019_v45 = vpop.f32.mrf.mxu1  ;;  %v2569_v36 = vmax.f32 %v2014_v13, 0.0  ;;  %v2016_v5 = vadd.f32 %v2015_v43, %v1873_v4  ;;  %v1877_v23 = vadd.f32 %v1876_v34, %v17338_v47  ;;  %6928 = vmatprep.mubr.bf16.mxu0 %v17413_v62  ;;  %7107 = vmatpush1.bf16.msra.mxu0 %v15243_v6  ;;  %v16535_v4 = vld [vmem:[#allocation4] ss:$2 sm:$0x7] }
 0x230   :  { %v1878_v10 = vpop.f32.mrf.mxu0  ;;  %7108 = vmatprep.subr.bf16.mxu0 %v15251_v42  ;;  %v2651_v12 = vadd.f32 %v17362_v2, %v2567_v41 }
 0x231   :  { %v2021_v25 = vpop.f32.mrf.mxu1  ;;  %v2653_v49 = vadd.f32 %v17358_v0, %v2569_v36  ;;  %v2570_v38 = vmax.f32 %v2016_v5, 0.0  ;;  %v2020_v40 = vadd.f32 %v2019_v45, %v1877_v23  ;;  %v1879_v54 = vadd.f32 %v1878_v10, %v17341_v51  ;;  %v20171_v51 = vld [vmem:[#allocation47_spill] sm:$0xff] }
 0x232   :  { %v1880_v47 = vpop.f32.mrf.mxu0  ;;  %v15269_v36 = vld [vmem:[#allocation6 + $0x424] ss:$16 sps:$4 sm:$0xff]   ;;  %v15267_v10 = vld [vmem:[#allocation6 + $0x420] ss:$16 sps:$4 sm:$0xff]  }
 0x233   :  { %v2023_v27 = vpop.f32.mrf.mxu1  ;;  %v17530_v58 = vpack.c.bf16 %v2653_v49, %v2650_v55  ;;  %v2654_v53 = vadd.f32 %v17362_v2, %v2570_v38  ;;  %v2022_v6 = vadd.f32 %v2021_v25, %v1879_v54  ;;  %7109 = vmatpush1.bf16.msra.mxu0 %v15249_v14  ;;  %v1881_v29 = vadd.f32 %v1880_v47, %v20169_v63 }
 0x234   :  { %v1882_v19 = vpop.f32.mrf.mxu0  ;;  %7110 = vmatprep.subr.bf16.mxu0 %v15257_v20  ;;  %v2572_v15 = vmax.f32 %v2020_v40, 0.0  ;;  %v17540_v14 = vrot.slane %v16535_v4, %v17525_v31 }
 0x235   :  { %20168 = vst [vmem:[#allocation39_spill] sm:$0xff] %v17530_v58  ;;  %v2025_v50 = vpop.f32.mrf.mxu1  ;;  %v17534_v7 = vpack.c.bf16 %v2654_v53, %v2651_v12  ;;  %v1883_v39 = vadd.f32 %v1882_v19, %v20171_v51  ;;  %v2024_v11 = vadd.f32 %v2023_v27, %v1881_v29  ;;  %v2573_v13 = vmax.f32 %v2022_v6, 0.0  ;;  %v15275_v53 = vld [vmem:[#allocation6 + $0x404] ss:$16 sps:$4 sm:$0xff]   ;;  %v15273_v29 = vld [vmem:[#allocation6 + $0x400] ss:$16 sps:$4 sm:$0xff]  }
 0x236   :  { %v14239_v43 = vpop.f32.mrf.mxu0  ;;  %6929 = vmatmul.mubr.bf16.gmra.mxu0 %v17407_v30  ;;  %v2656_v25 = vadd.f32 %v17358_v0, %v2572_v15 }
 0x237   :  { %20170 = vst [vmem:[#allocation40_spill] sm:$0xff] %v17534_v7  ;;  %v14321_v42 = vpop.f32.mrf.mxu1  ;;  %v2026_v46 = vadd.f32 %v2025_v50, %v1883_v39  ;;  %6938 = vmatprep.mubr.bf16.mxu0 %v17429_v32  ;;  %7111 = vmatpush1.bf16.msra.mxu0 %v15255_v28  ;;  %v2575_v41 = vmax.f32 %v2024_v11, 0.0  ;;  %v2657_v40 = vadd.f32 %v17362_v2, %v2573_v13 }
 0x238   :  { %v14240_v34 = vpop.f32.mrf.mxu0  ;;  %7112 = vmatprep.subr.bf16.mxu0 %v15263_v26 }
 0x239   :  { %v14322_v45 = vpop.f32.mrf.mxu1  ;;  %v2576_v5 = vmax.f32 %v2026_v46, 0.0  ;;  %v14241_v23 = vadd.f32 %v14240_v34, %v14239_v43  ;;  %v2659_v20 = vadd.f32 %v17358_v0, %v2575_v41 }
 0x23a   :  { %v14323_v55 = vadd.f32 %v14322_v45, %v14321_v42  ;;  %v14242_v49 = vpop.f32.mrf.mxu0  ;;  %v15279_v42 = vld [vmem:[#allocation6 + $0x5e0] ss:$16 sps:$4 sm:$0xff]   ;;  %v15287_v45 = vld [vmem:[#allocation6 + $0x5c4] ss:$16 sps:$4 sm:$0xff]  }
 0x23b   :  { %v14324_v38 = vpop.f32.mrf.mxu1  ;;  %v2660_v54 = vadd.f32 %v17362_v2, %v2576_v5  ;;  %v2063_v28 = vadd.f32 %v14241_v23, %v17540_v14  ;;  %7113 = vmatpush1.bf16.msra.mxu0 %v15261_v61  ;;  %v17547_v47 = vpack.c.bf16 %v2659_v20, %v2656_v25  ;;  %v15281_v61 = vld [vmem:[#allocation6 + $0x5e4] ss:$16 sps:$4 sm:$0xff]   ;;  %v15285_v23 = vld [vmem:[#allocation6 + $0x5c0] ss:$16 sps:$4 sm:$0xff]  }
 0x23c   :  { %v14243_v27 = vpop.f32.mrf.mxu0  ;;  %7114 = vmatprep.subr.bf16.mxu0 %v15269_v36 }
 0x23d   :  { %20172 = vst [vmem:[#allocation29_spill] sm:$0xff] %v17547_v47  ;;  %v14325_v12 = vpop.f32.mrf.mxu1  ;;  %v17549_v6 = vpack.c.bf16 %v2660_v54, %v2657_v40  ;;  %v17551_v63 = vadd.f32 %v14323_v55, %v2063_v28  ;;  %v14244_v0 = vadd.f32 %v14243_v27, %v14242_v49  ;;  %v15293_v40 = vld [vmem:[#allocation6 + $0x5a4] ss:$16 sps:$4 sm:$0xff]  }
 0x23e   :  { %v14245_v19 = vpop.f32.mrf.mxu0  ;;  %6939 = vmatmul.mubr.bf16.gmra.mxu0 %v17425_v18  ;;  %v14326_v26 = vadd.f32 %v14325_v12, %v14324_v38  ;;  %v15291_v12 = vld [vmem:[#allocation6 + $0x5a0] ss:$16 sps:$4 sm:$0xff]  }
 0x23f   :  { %20173 = vst [vmem:[#allocation41_spill] sm:$0xff] %v17549_v6  ;;  %v14327_v50 = vpop.f32.mrf.mxu1  ;;  %v2066_v2 = vadd.f32 %v14244_v0, %v17540_v14  ;;  %6948 = vmatprep.mubr.bf16.mxu0 %v17446_v17  ;;  %7115 = vmatpush1.bf16.msra.mxu0 %v15267_v10 }
 0x240   :  { %v14246_v51 = vpop.f32.mrf.mxu0  ;;  %7116 = vmatprep.subr.bf16.mxu0 %v15275_v53 }
 0x241   :  { %v14328_v39 = vpop.f32.mrf.mxu1  ;;  %v17556_v15 = vadd.f32 %v14326_v26, %v2066_v2  ;;  %v14247_v11 = vadd.f32 %v14246_v51, %v14245_v19  ;;  %v15299_v2 = vld [vmem:[#allocation6 + $0x584] ss:$16 sps:$4 sm:$0xff]  }
 0x242   :  { %v14329_v43 = vadd.f32 %v14328_v39, %v14327_v50  ;;  %v14248_v13 = vpop.f32.mrf.mxu0  ;;  %v15297_v39 = vld [vmem:[#allocation6 + $0x580] ss:$16 sps:$4 sm:$0xff]  }
 0x243   :  { %v14330_v46 = vpop.f32.mrf.mxu1  ;;  %v2071_v4 = vadd.f32 %v14247_v11, %v17540_v14  ;;  %7117 = vmatpush1.bf16.msra.mxu0 %v15273_v29 }
 0x244   :  { %v14249_v41 = vpop.f32.mrf.mxu0  ;;  %7118 = vmatprep.subr.bf16.mxu0 %v15281_v61 }
 0x245   :  { %v14331_v34 = vpop.f32.mrf.mxu1  ;;  %v17559_v36 = vadd.f32 %v14329_v43, %v2071_v4  ;;  %v14250_v5 = vadd.f32 %v14249_v41, %v14248_v13  ;;  %v15305_v4 = vld [vmem:[#allocation6 + $0x564] ss:$16 sps:$4 sm:$0xff]  }
 0x246   :  { %v14251_v55 = vpop.f32.mrf.mxu0  ;;  %6949 = vmatmul.mubr.bf16.gmra.mxu0 %v17444_v57  ;;  %v14332_v20 = vadd.f32 %v14331_v34, %v14330_v46 }
 0x247   :  { %v14333_v10 = vpop.f32.mrf.mxu1  ;;  %v2074_v25 = vadd.f32 %v14250_v5, %v17540_v14  ;;  %6958 = vmatprep.mubr.bf16.mxu0 %v17464_v24  ;;  %7119 = vmatpush2.bf16.msra.mxu0 %v15279_v42  ;;  %v15303_v5 = vld [vmem:[#allocation6 + $0x560] ss:$16 sps:$4 sm:$0xff]  }
 0x248   :  { %v14252_v49 = vpop.f32.mrf.mxu0  ;;  %7120 = vmatprep.subr.bf16.mxu0 %v15287_v45 }
 0x249   :  { %v14334_v38 = vpop.f32.mrf.mxu1  ;;  %v17564_v54 = vadd.f32 %v14332_v20, %v2074_v25  ;;  %v14253_v28 = vadd.f32 %v14252_v49, %v14251_v55  ;;  %v15308_v49 = vld [vmem:[#allocation6 + $0x544] ss:$16 sps:$4 sm:$0xff]  }
 0x24a   :  { %v14335_v27 = vadd.f32 %v14334_v38, %v14333_v10  ;;  %v14254_v53 = vpop.f32.mrf.mxu0 }
 0x24b   :  { %v14336_v0 = vpop.f32.mrf.mxu1  ;;  %v2079_v29 = vadd.f32 %v14253_v28, %v17540_v14  ;;  %7121 = vmatpush2.bf16.msra.mxu0 %v15285_v23  ;;  %v15306_v28 = vld [vmem:[#allocation6 + $0x540] ss:$16 sps:$4 sm:$0xff]  }
 0x24c   :  { %v14255_v19 = vpop.f32.mrf.mxu0  ;;  %7122 = vmatprep.subr.bf16.mxu0 %v15293_v40 }
 0x24d   :  { %v14337_v50 = vpop.f32.mrf.mxu1  ;;  %v17567_v26 = vadd.f32 %v14335_v27, %v2079_v29  ;;  %v14256_v51 = vadd.f32 %v14255_v19, %v14254_v53 }
 0x24e   :  { %v14257_v61 = vpop.f32.mrf.mxu0  ;;  %6959 = vmatmul.mubr.bf16.gmra.mxu0 %v17458_v22  ;;  %v14338_v42 = vadd.f32 %v14337_v50, %v14336_v0  ;;  %v15314_v50 = vld [vmem:[#allocation6 + $0x524] ss:$16 sps:$4 sm:$0xff]  }
 0x24f   :  { %v14339_v11 = vpop.f32.mrf.mxu1  ;;  %v2082_v43 = vadd.f32 %v14256_v51, %v17540_v14  ;;  %6968 = vmatprep.mubr.bf16.mxu0 %v17482_v52  ;;  %7123 = vmatpush2.bf16.msra.mxu0 %v15291_v12 }
 0x250   :  { %v14258_v13 = vpop.f32.mrf.mxu0  ;;  %7124 = vmatprep.subr.bf16.mxu0 %v15299_v2 }
 0x251   :  { %v14340_v46 = vpop.f32.mrf.mxu1  ;;  %v17572_v41 = vadd.f32 %v14338_v42, %v2082_v43  ;;  %v14259_v34 = vadd.f32 %v14258_v13, %v14257_v61  ;;  %v15312_v61 = vld [vmem:[#allocation6 + $0x520] ss:$16 sps:$4 sm:$0xff]  }
 0x252   :  { %v14341_v45 = vadd.f32 %v14340_v46, %v14339_v11  ;;  %v14260_v23 = vpop.f32.mrf.mxu0 }
 0x253   :  { %v14342_v55 = vpop.f32.mrf.mxu1  ;;  %v2087_v10 = vadd.f32 %v14259_v34, %v17540_v14  ;;  %7125 = vmatpush2.bf16.msra.mxu0 %v15297_v39 }
 0x254   :  { %v14261_v25 = vpop.f32.mrf.mxu0  ;;  %7126 = vmatprep.subr.bf16.mxu0 %v15305_v4  ;;  %v15320_v4 = vld [vmem:[#allocation6 + $0x504] ss:$16 sps:$4 sm:$0xff]  }
 0x255   :  { %v14343_v20 = vpop.f32.mrf.mxu1  ;;  %v17575_v38 = vadd.f32 %v14341_v45, %v2087_v10  ;;  %v14262_v40 = vadd.f32 %v14261_v25, %v14260_v23 }
 0x256   :  { %v14263_v27 = vpop.f32.mrf.mxu0  ;;  %6969 = vmatmul.mubr.bf16.gmra.mxu0 %v17477_v1  ;;  %v14344_v0 = vadd.f32 %v14343_v20, %v14342_v55 }
 0x257   :  { %v14345_v12 = vpop.f32.mrf.mxu1  ;;  %v2090_v53 = vadd.f32 %v14262_v40, %v17540_v14  ;;  %6978 = vmatprep.mubr.bf16.mxu0 %v17503_v9  ;;  %7127 = vmatpush2.bf16.msra.mxu0 %v15303_v5  ;;  %v15318_v5 = vld [vmem:[#allocation6 + $0x500] ss:$16 sps:$4 sm:$0xff]   ;;  %v15329_v40 = vld [vmem:[#allocation6 + $0x8e4] ss:$16 sps:$4 sm:$0xff]  }
 0x258   :  { %v14264_v29 = vpop.f32.mrf.mxu0  ;;  %7128 = vmatprep.subr.bf16.mxu0 %v15308_v49 }
 0x259   :  { %v14346_v19 = vpop.f32.mrf.mxu1  ;;  %v17580_v2 = vadd.f32 %v14344_v0, %v2090_v53  ;;  %v14265_v51 = vadd.f32 %v14264_v29, %v14263_v27 }
 0x25a   :  { %v14347_v39 = vadd.f32 %v14346_v19, %v14345_v12  ;;  %v14266_v11 = vpop.f32.mrf.mxu0 }
 0x25b   :  { %v14348_v43 = vpop.f32.mrf.mxu1  ;;  %v2095_v42 = vadd.f32 %v14265_v51, %v17540_v14  ;;  %7129 = vmatpush2.bf16.msra.mxu0 %v15306_v28 }
 0x25c   :  { %v14267_v13 = vpop.f32.mrf.mxu0  ;;  %7130 = vmatprep.subr.bf16.mxu0 %v15314_v50 }
 0x25d   :  { %v14349_v46 = vpop.f32.mrf.mxu1  ;;  %v17583_v34 = vadd.f32 %v14347_v39, %v2095_v42  ;;  %v14268_v45 = vadd.f32 %v14267_v13, %v14266_v11 }
 0x25e   :  { %v14269_v23 = vpop.f32.mrf.mxu0  ;;  %6979 = vmatmul.mubr.bf16.gmra.mxu0 %v17501_v56  ;;  %v14350_v25 = vadd.f32 %v14349_v46, %v14348_v43 }
 0x25f   :  { %v14351_v55 = vpop.f32.mrf.mxu1  ;;  %v2098_v10 = vadd.f32 %v14268_v45, %v17540_v14  ;;  %7131 = vmatpush2.bf16.msra.mxu0 %v15312_v61 }
 0x260   :  { %v14270_v20 = vpop.f32.mrf.mxu0  ;;  %7132 = vmatprep.subr.bf16.mxu0 %v15320_v4 }
 0x261   :  { %v14352_v49 = vpop.f32.mrf.mxu1  ;;  %v17587_v28 = vadd.f32 %v14350_v25, %v2098_v10  ;;  %v14271_v27 = vadd.f32 %v14270_v20, %v14269_v23 }
 0x262   :  { %v14353_v12 = vadd.f32 %v14352_v49, %v14351_v55  ;;  %v14272_v53 = vpop.f32.mrf.mxu0 }
 0x263   :  { %v14354_v0 = vpop.f32.mrf.mxu1  ;;  %v2103_v29 = vadd.f32 %v14271_v27, %v17540_v14  ;;  %7133 = vmatpush2.bf16.msra.mxu0 %v15318_v5 }
 0x264   :  { %v14273_v19 = vpop.f32.mrf.mxu0  ;;  %7328 = vmatprep.subr.bf16.mxu0 %v15329_v40 }
 0x265   :  { %v14355_v50 = vpop.f32.mrf.mxu1  ;;  %v17590_v51 = vadd.f32 %v14353_v12, %v2103_v29  ;;  %v14274_v39 = vadd.f32 %v14273_v19, %v14272_v53 }
 0x266   :  { %v14275_v61 = vpop.f32.mrf.mxu0  ;;  %v14356_v42 = vadd.f32 %v14355_v50, %v14354_v0 }
 0x267   :  { %v14357_v11 = vpop.f32.mrf.mxu1  ;;  %v2106_v43 = vadd.f32 %v14274_v39, %v17540_v14 }
 0x268   :  { %v14276_v13 = vpop.f32.mrf.mxu0 }
 0x269   :  { %v14358_v46 = vpop.f32.mrf.mxu1  ;;  %v17593_v4 = vadd.f32 %v14356_v42, %v2106_v43  ;;  %v14277_v45 = vadd.f32 %v14276_v13, %v14275_v61 }
 0x26a   :  { %v14359_v23 = vadd.f32 %v14358_v46, %v14357_v11  ;;  %v14278_v55 = vpop.f32.mrf.mxu0 }
 0x26b   :  { %v14360_v10 = vpop.f32.mrf.mxu1  ;;  %v2111_v5 = vadd.f32 %v14277_v45, %v17540_v14 }
 0x26c   :  { %v14279_v25 = vpop.f32.mrf.mxu0 }
 0x26d   :  { %v14361_v20 = vpop.f32.mrf.mxu1  ;;  %v17596_v49 = vadd.f32 %v14359_v23, %v2111_v5  ;;  %v14280_v40 = vadd.f32 %v14279_v25, %v14278_v55 }
 0x26e   :  { %v14281_v27 = vpop.f32.mrf.mxu0  ;;  %v14362_v0 = vadd.f32 %v14361_v20, %v14360_v10 }
 0x26f   :  { %v14363_v12 = vpop.f32.mrf.mxu1  ;;  %v2114_v53 = vadd.f32 %v14280_v40, %v17540_v14 }
 0x270   :  { %v14282_v29 = vpop.f32.mrf.mxu0 }
 0x271   :  { %v14364_v19 = vpop.f32.mrf.mxu1  ;;  %v17599_v50 = vadd.f32 %v14362_v0, %v2114_v53  ;;  %v14283_v39 = vadd.f32 %v14282_v29, %v14281_v27 }
 0x272   :  { %v14365_v61 = vadd.f32 %v14364_v19, %v14363_v12  ;;  %v14284_v11 = vpop.f32.mrf.mxu0 }
 0x273   :  { %v14366_v43 = vpop.f32.mrf.mxu1  ;;  %v2119_v42 = vadd.f32 %v14283_v39, %v17540_v14 }
 0x274   :  { %v14285_v13 = vpop.f32.mrf.mxu0 }
 0x275   :  { %v14367_v46 = vpop.f32.mrf.mxu1  ;;  %v17602_v45 = vadd.f32 %v14365_v61, %v2119_v42  ;;  %v14286_v23 = vadd.f32 %v14285_v13, %v14284_v11 }
 0x276   :  { %v14287_v55 = vpop.f32.mrf.mxu0  ;;  %v14368_v10 = vadd.f32 %v14367_v46, %v14366_v43 }
 0x277   :  { %v14369_v5 = vpop.f32.mrf.mxu1  ;;  %v2122_v25 = vadd.f32 %v14286_v23, %v17540_v14 }
 0x278   :  { %v14288_v20 = vpop.f32.mrf.mxu0 }
 0x279   :  { %v14370_v40 = vpop.f32.mrf.mxu1  ;;  %v17605_v53 = vadd.f32 %v14368_v10, %v2122_v25  ;;  %v14289_v27 = vadd.f32 %v14288_v20, %v14287_v55 }
 0x27a   :  { %v14371_v12 = vadd.f32 %v14370_v40, %v14369_v5  ;;  %v14290_v0 = vpop.f32.mrf.mxu0 }
 0x27b   :  { %v14372_v29 = vpop.f32.mrf.mxu1  ;;  %v2127_v19 = vadd.f32 %v14289_v27, %v17540_v14 }
 0x27c   :  { %v14291_v39 = vpop.f32.mrf.mxu0 }
 0x27d   :  { %v14373_v8 = vpop.f32.mrf.mxu1  ;;  %v17608_v61 = vadd.f32 %v14371_v12, %v2127_v19  ;;  %v14292_v11 = vadd.f32 %v14291_v39, %v14290_v0 }
 0x27e   :  { %v14293_v42 = vpop.f32.mrf.mxu0  ;;  %v14374_v43 = vadd.f32 %v14373_v8, %v14372_v29 }
 0x27f   :  { %v14375_v13 = vpop.f32.mrf.mxu1  ;;  %v2130_v23 = vadd.f32 %v14292_v11, %v17540_v14 }
 0x280   :  { %v14294_v46 = vpop.f32.mrf.mxu0 }
 0x281   :  { %v14376_v35 = vpop.f32.mrf.mxu1  ;;  %v17611_v25 = vadd.f32 %v14374_v43, %v2130_v23  ;;  %v14295_v55 = vadd.f32 %v14294_v46, %v14293_v42 }
 0x282   :  { %v14377_v5 = vadd.f32 %v14376_v35, %v14375_v13  ;;  %v14296_v10 = vpop.f32.mrf.mxu0 }
 0x283   :  { %v14378_v20 = vpop.f32.mrf.mxu1  ;;  %v2135_v40 = vadd.f32 %v14295_v55, %v17540_v14 }
 0x284   :  { %v14297_v27 = vpop.f32.mrf.mxu0 }
 0x285   :  { %v14379_v16 = vpop.f32.mrf.mxu1  ;;  %v17614_v12 = vadd.f32 %v14377_v5, %v2135_v40  ;;  %v14298_v0 = vadd.f32 %v14297_v27, %v14296_v10 }
 0x286   :  { %v14299_v19 = vpop.f32.mrf.mxu0  ;;  %v14380_v8 = vadd.f32 %v14379_v16, %v14378_v20 }
 0x287   :  { %v14381_v39 = vpop.f32.mrf.mxu1  ;;  %v2138_v11 = vadd.f32 %v14298_v0, %v17540_v14 }
 0x288   :  { %v14300_v29 = vpop.f32.mrf.mxu0 }
 0x289   :  { %v14382_v37 = vpop.f32.mrf.mxu1  ;;  %v17617_v23 = vadd.f32 %v14380_v8, %v2138_v11  ;;  %v14301_v42 = vadd.f32 %v14300_v29, %v14299_v19 }
 0x28a   :  { %v14383_v35 = vadd.f32 %v14382_v37, %v14381_v39  ;;  %v14302_v13 = vpop.f32.mrf.mxu0 }
 0x28b   :  { %v14384_v43 = vpop.f32.mrf.mxu1  ;;  %v2143_v46 = vadd.f32 %v14301_v42, %v17540_v14 }
 0x28c   :  { %v14303_v55 = vpop.f32.mrf.mxu0 }
 0x28d   :  { %v14385_v6 = vpop.f32.mrf.mxu1  ;;  %v17620_v5 = vadd.f32 %v14383_v35, %v2143_v46  ;;  %v14304_v10 = vadd.f32 %v14303_v55, %v14302_v13 }
 0x28e   :  { %v14403_v40 = vpop.f32.mrf.mxu0  ;;  %v14386_v16 = vadd.f32 %v14385_v6, %v14384_v43  ;;  %v16536_v43 = vld [vmem:[#allocation4 + $0x1] ss:$2 sm:$0x7] }
 0x28f   :  { %v2425_v27 = vpop.f32.mrf.mxu1  ;;  %v2146_v0 = vadd.f32 %v14304_v10, %v17540_v14 }
 0x290   :  { %v14404_v20 = vpop.f32.mrf.mxu0 }
 0x291   :  { %v14858_v47 = vpop.f32.mrf.mxu1  ;;  %v17623_v11 = vadd.f32 %v14386_v16, %v2146_v0  ;;  %v14405_v19 = vadd.f32 %v14404_v20, %v14403_v40 }
 0x292   :  { %v14406_v37 = vpop.f32.mrf.mxu0  ;;  %v17628_v47 = vrot.slane %v16536_v43, %v17525_v31 }
 0x293   :  { %v2428_v39 = vpop.f32.mrf.mxu1  ;;  %v2305_v8 = vadd.f32 %v14405_v19, %v17551_v63 }
 0x294   :  { %v14407_v29 = vpop.f32.mrf.mxu0 }
 0x295   :  { %v14859_v42 = vpop.f32.mrf.mxu1  ;;  %v2426_v60 = vadd.f32 %v2425_v27, %v2305_v8  ;;  %v14408_v35 = vadd.f32 %v14407_v29, %v14406_v37  ;;  %v2732_v37 = vrot.slane %v17407_v30, 4 }
 0x296   :  { %v14409_v46 = vpop.f32.mrf.mxu0  ;;  %v15309_v42 = vld [vmem:[#allocation6 + $0x6e0] ss:$16 sps:$4 sm:$0xff]  }
 0x297   :  { %v2433_v13 = vpop.f32.mrf.mxu1  ;;  %v2308_v55 = vadd.f32 %v14408_v35, %v17556_v15  ;;  %v2514_v6 = vmax.f32 %v2426_v60, 0.0  ;;  %v15317_v35 = vld [vmem:[#allocation6 + $0x6c4] ss:$16 sps:$4 sm:$0xff]  }
 0x298   :  { %v14410_v59 = vpop.f32.mrf.mxu0 }
 0x299   :  { %v14862_v14 = vpop.f32.mrf.mxu1  ;;  %v2429_v10 = vadd.f32 %v2428_v39, %v2308_v55  ;;  %v14411_v40 = vadd.f32 %v14410_v59, %v14409_v46  ;;  %v2598_v15 = vadd.f32 %v17628_v47, %v2514_v6  ;;  %v20175_v6 = vrot.slane %v17393_v44, 4 }
 0x29a   :  { %v14412_v0 = vpop.f32.mrf.mxu0 }
 0x29b   :  { %v2436_v16 = vpop.f32.mrf.mxu1  ;;  %v2517_v63 = vmax.f32 %v2429_v10, 0.0  ;;  %v2313_v20 = vadd.f32 %v14411_v40, %v17559_v36 }
 0x29c   :  { %v14413_v27 = vpop.f32.mrf.mxu0 }
 0x29d   :  { %v14863_v19 = vpop.f32.mrf.mxu1  ;;  %v2601_v8 = vadd.f32 %v17628_v47, %v2517_v63  ;;  %v2434_v60 = vadd.f32 %v2433_v13, %v2313_v20  ;;  %v14414_v29 = vadd.f32 %v14413_v27, %v14412_v0  ;;  %v17641_v13 = vsel %vm2722_vm1, %v20175_v6, %v2732_v37  ;;  %v15315_v0 = vld [vmem:[#allocation6 + $0x6c0] ss:$16 sps:$4 sm:$0xff]   ;;  %v15323_v63 = vld [vmem:[#allocation6 + $0x6a4] ss:$16 sps:$4 sm:$0xff]  }
 0x29e   :  { %v14415_v14 = vpop.f32.mrf.mxu0  ;;  %20176 = vst [vmem:[#allocation43_spill] sm:$0xff] %v17641_v13  ;;  %v15326_v6 = vld [vmem:[#allocation6 + $0x684] ss:$16 sps:$4 sm:$0xff]  }
 0x29f   :  { %v2441_v39 = vpop.f32.mrf.mxu1  ;;  %v17634_v59 = vpack.c.bf16 %v2601_v8, %v2598_v15  ;;  %v2316_v46 = vadd.f32 %v14414_v29, %v17564_v54  ;;  %v2520_v43 = vmax.f32 %v2434_v60, 0.0 }
 0x2a0   :  { %v14416_v55 = vpop.f32.mrf.mxu0 }
 0x2a1   :  { %20174 = vst [vmem:[#allocation42_spill] sm:$0xff] %v17634_v59  ;;  %v14866_v36 = vpop.f32.mrf.mxu1  ;;  %v2437_v10 = vadd.f32 %v2436_v16, %v2316_v46  ;;  %v14417_v40 = vadd.f32 %v14416_v55, %v14415_v14  ;;  %7022 = vmatmul.mubr.bf16.vlgmr.msra.gmra.mxu1 %v17634_v59  ;;  %v2726_v16 = vrot.slane %v17379_v48, 4  ;;  %v2604_v46 = vadd.f32 %v17628_v47, %v2520_v43 }
 0x2a2   :  { %v14418_v20 = vpop.f32.mrf.mxu0  ;;  %7031 = vmatprep.mubr.bf16.mxu1 %v17641_v13  ;;  %7216 = vmatpush1.bf16.msra.mxu1 %v15309_v42  ;;  %v20178_v43 = vrot.slane %v17425_v18, 4 }
 0x2a3   :  { %v2444_v27 = vpop.f32.mrf.mxu1  ;;  %v2523_v54 = vmax.f32 %v2437_v10, 0.0  ;;  %v2321_v19 = vadd.f32 %v14417_v40, %v17567_v26  ;;  %7217 = vmatprep.subr.bf16.mxu1 %v15317_v35  ;;  %v15321_v10 = vld [vmem:[#allocation6 + $0x6a0] ss:$16 sps:$4 sm:$0xff]  }
 0x2a4   :  { %v14419_v15 = vpop.f32.mrf.mxu0 }
 0x2a5   :  { %v14867_v8 = vpop.f32.mrf.mxu1  ;;  %v2607_v55 = vadd.f32 %v17628_v47, %v2523_v54  ;;  %v2442_v36 = vadd.f32 %v2441_v39, %v2321_v19  ;;  %v14420_v42 = vadd.f32 %v14419_v15, %v14418_v20  ;;  %v17658_v54 = vsel %vm2722_vm1, %v2732_v37, %v20178_v43  ;;  %v15324_v20 = vld [vmem:[#allocation6 + $0x680] ss:$16 sps:$4 sm:$0xff]  }
 0x2a6   :  { %v14421_v26 = vpop.f32.mrf.mxu0  ;;  %7218 = vmatpush1.bf16.msra.mxu1 %v15315_v0  ;;  %20179 = vst [vmem:[#allocation45_spill] sm:$0xff] %v17658_v54  ;;  %v2729_v39 = vrot.slane %v17634_v59, 4  ;;  %v15327_v19 = vld [vmem:[#allocation6 + $0x8e0] ss:$16 sps:$4 sm:$0xff]  }
 0x2a7   :  { %v2449_v35 = vpop.f32.mrf.mxu1  ;;  %v17651_v40 = vpack.c.bf16 %v2607_v55, %v2604_v46  ;;  %v2324_v8 = vadd.f32 %v14420_v42, %v17572_v41  ;;  %7219 = vmatprep.subr.bf16.mxu1 %v15323_v63  ;;  %v2526_v15 = vmax.f32 %v2442_v36, 0.0  ;;  %v15332_v63 = vld [vmem:[#allocation6 + $0x664] ss:$16 sps:$4 sm:$0xff]   ;;  %v20181_v36 = vrot.slane %v17395_v33, 4 }
 0x2a8   :  { %v14422_v60 = vpop.f32.mrf.mxu0 }
 0x2a9   :  { %20177 = vst [vmem:[#allocation44_spill] sm:$0xff] %v17651_v40  ;;  %v14870_v14 = vpop.f32.mrf.mxu1  ;;  %v2445_v46 = vadd.f32 %v2444_v27, %v2324_v8  ;;  %v14423_v55 = vadd.f32 %v14422_v60, %v14421_v26  ;;  %7032 = vmatmul.mubr.bf16.gmra.mxu1 %v17651_v40  ;;  %v2730_v41 = vrot.slane %v17651_v40, 4  ;;  %v17673_v26 = vsel %vm2722_vm1, %v2726_v16, %v20181_v36  ;;  %v15330_v8 = vld [vmem:[#allocation6 + $0x660] ss:$16 sps:$4 sm:$0xff]  }
 0x2aa   :  { %v15335_v14 = vld [vmem:[#allocation6 + $0x8c4] ss:$16 sps:$4 sm:$0xff]   ;;  %v14424_v42 = vpop.f32.mrf.mxu0  ;;  %7041 = vmatprep.mubr.bf16.mxu1 %v17658_v54  ;;  %7220 = vmatpush1.bf16.msra.mxu1 %v15321_v10  ;;  %20182 = vst [vmem:[#allocation47_spill] sm:$0xff] %v17673_v26 }
 0x2ab   :  { %v2452_v29 = vpop.f32.mrf.mxu1  ;;  %v2529_v37 = vmax.f32 %v2445_v46, 0.0  ;;  %v2329_v43 = vadd.f32 %v14423_v55, %v17575_v38  ;;  %v17667_v31 = vsel %vm2722_vm1, %v2729_v39, %v2730_v41  ;;  %7221 = vmatprep.subr.bf16.mxu1 %v15326_v6  ;;  %v2610_v38 = vadd.f32 %v17628_v47, %v2526_v15  ;;  %v15333_v55 = vld [vmem:[#allocation6 + $0x8c0] ss:$16 sps:$4 sm:$0xff]  }
 0x2ac   :  { %20180 = vst [vmem:[#allocation46_spill] sm:$0xff] %v17667_v31  ;;  %v14425_v27 = vpop.f32.mrf.mxu0  ;;  %7134 = vmatprep.mubr.bf16.mxu0 %v17667_v31 }
 0x2ad   :  { %v14871_v60 = vpop.f32.mrf.mxu1  ;;  %v2613_v39 = vadd.f32 %v17628_v47, %v2529_v37  ;;  %v2450_v46 = vadd.f32 %v2449_v35, %v2329_v43  ;;  %v14426_v6 = vadd.f32 %v14425_v27, %v14424_v42  ;;  %7135 = vmatmul.mubr.bf16.vlgmr.msra.gmra.mxu0 %v17673_v26  ;;  %v20184_v35 = vrot.slane %v17444_v57, 4  ;;  %v15336_v27 = vld [vmem:[#allocation6 + $0x640] ss:$16 sps:$4 sm:$0xff]  }
 0x2ae   :  { %v15338_v60 = vld [vmem:[#allocation6 + $0x644] ss:$16 sps:$4 sm:$0xff]   ;;  %v14427_v31 = vpop.f32.mrf.mxu0  ;;  %7222 = vmatpush1.bf16.msra.mxu1 %v15324_v20  ;;  %7329 = vmatpush1.bf16.msra.mxu0 %v15327_v19  ;;  %v20185_v42 = vrot.slane %v17425_v18, 4 }
 0x2af   :  { %v2457_v59 = vpop.f32.mrf.mxu1  ;;  %v17680_v16 = vpack.c.bf16 %v2613_v39, %v2610_v38  ;;  %v2332_v36 = vadd.f32 %v14426_v6, %v17580_v2  ;;  %7223 = vmatprep.subr.bf16.mxu1 %v15332_v63  ;;  %7330 = vmatprep.subr.bf16.mxu0 %v15335_v14  ;;  %v15341_v20 = vld [vmem:[#allocation6 + $0x8a4] ss:$16 sps:$4 sm:$0xff]   ;;  %v2532_v19 = vmax.f32 %v2450_v46, 0.0  ;;  %v15339_v63 = vld [vmem:[#allocation6 + $0x8a0] ss:$16 sps:$4 sm:$0xff]   ;;  %v20189_v46 = vrot.slane %v17395_v33, 4 }
 0x2b0   :  { %v14428_v10 = vpop.f32.mrf.mxu0  ;;  %v17689_v43 = vsel %vm2722_vm1, %v20185_v42, %v20184_v35  ;;  %v15344_v14 = vld [vmem:[#allocation6 + $0x624] ss:$16 sps:$4 sm:$0xff]  }
 0x2b1   :  { %20183 = vst [vmem:[#allocation58_spill] sm:$0xff] %v17680_v16  ;;  %v14874_v37 = vpop.f32.mrf.mxu1  ;;  %20186 = vst [vmem:[#allocation59_spill] sm:$0xff] %v17689_v43  ;;  %v2453_v38 = vadd.f32 %v2452_v29, %v2332_v36  ;;  %v14429_v39 = vadd.f32 %v14428_v10, %v14427_v31  ;;  %7042 = vmatmul.mubr.bf16.gmra.mxu1 %v17680_v16  ;;  %v2736_v2 = vrot.slane %v17680_v16, 4  ;;  %v20188_v10 = vrot.slane %v17413_v62, 4 }
 0x2b2   :  { %v14430_v6 = vpop.f32.mrf.mxu0  ;;  %7051 = vmatprep.mubr.bf16.mxu1 %v17689_v43  ;;  %7224 = vmatpush1.bf16.msra.mxu1 %v15330_v8  ;;  %v15342_v8 = vld [vmem:[#allocation6 + $0x620] ss:$16 sps:$4 sm:$0xff]  }
 0x2b3   :  { %v2460_v37 = vpop.f32.mrf.mxu1  ;;  %v2535_v15 = vmax.f32 %v2453_v38, 0.0  ;;  %v2337_v35 = vadd.f32 %v14429_v39, %v17583_v34  ;;  %7331 = vmatpush1.bf16.msra.mxu0 %v15333_v55  ;;  %v17696_v42 = vsel %vm2722_vm1, %v2730_v41, %v2736_v2  ;;  %7225 = vmatprep.subr.bf16.mxu1 %v15338_v60  ;;  %v17704_v36 = vsel %vm2722_vm1, %v20189_v46, %v20188_v10  ;;  %v15347_v38 = vld [vmem:[#allocation6 + $0x884] ss:$16 sps:$4 sm:$0xff]   ;;  %v15345_v39 = vld [vmem:[#allocation6 + $0x880] ss:$16 sps:$4 sm:$0xff]  }
 0x2b4   :  { %20187 = vst [vmem:[#allocation60_spill] sm:$0xff] %v17696_v42  ;;  %v14431_v31 = vpop.f32.mrf.mxu0  ;;  %7144 = vmatprep.mubr.bf16.mxu0 %v17696_v42  ;;  %20190 = vst [vmem:[#allocation61_spill] sm:$0xff] %v17704_v36  ;;  %7332 = vmatprep.subr.bf16.mxu0 %v15341_v20  ;;  %v2616_v34 = vadd.f32 %v17628_v47, %v2532_v19 }
 0x2b5   :  { %v14875_v29 = vpop.f32.mrf.mxu1  ;;  %v2619_v41 = vadd.f32 %v17628_v47, %v2535_v15  ;;  %v2458_v55 = vadd.f32 %v2457_v59, %v2337_v35  ;;  %v14432_v60 = vadd.f32 %v14431_v31, %v14430_v6  ;;  %7145 = vmatmul.mubr.bf16.gmra.mxu0 %v17704_v36  ;;  %v20192_v59 = vrot.slane %v17458_v22, 4  ;;  %v15348_v35 = vld [vmem:[#allocation6 + $0x600] ss:$16 sps:$4 sm:$0xff]  }
 0x2b6   :  { %v15350_v29 = vld [vmem:[#allocation6 + $0x604] ss:$16 sps:$4 sm:$0xff]   ;;  %v14433_v0 = vpop.f32.mrf.mxu0  ;;  %7226 = vmatpush1.bf16.msra.mxu1 %v15336_v27  ;;  %v20193_v15 = vrot.slane %v17444_v57, 4 }
 0x2b7   :  { %v2465_v26 = vpop.f32.mrf.mxu1  ;;  %v17709_v48 = vpack.c.bf16 %v2619_v41, %v2616_v34  ;;  %v2340_v10 = vadd.f32 %v14432_v60, %v17587_v28  ;;  %7333 = vmatpush1.bf16.msra.mxu0 %v15339_v63  ;;  %7227 = vmatprep.subr.bf16.mxu1 %v15344_v14  ;;  %v15353_v27 = vld [vmem:[#allocation6 + $0x864] ss:$16 sps:$4 sm:$0xff]   ;;  %v2538_v31 = vmax.f32 %v2458_v55, 0.0  ;;  %v15351_v63 = vld [vmem:[#allocation6 + $0x860] ss:$16 sps:$4 sm:$0xff]   ;;  %v20196_v55 = vrot.slane %v17429_v32, 4 }
 0x2b8   :  { %v14434_v19 = vpop.f32.mrf.mxu0  ;;  %7334 = vmatprep.subr.bf16.mxu0 %v15347_v38  ;;  %v17718_v6 = vsel %vm2722_vm1, %v20193_v15, %v20192_v59  ;;  %v15356_v14 = vld [vmem:[#allocation6 + $0x7e4] ss:$16 sps:$4 sm:$0xff]  }
 0x2b9   :  { %20191 = vst [vmem:[#allocation62_spill] sm:$0xff] %v17709_v48  ;;  %v14878_v46 = vpop.f32.mrf.mxu1  ;;  %20194 = vst [vmem:[#allocation63_spill] sm:$0xff] %v17718_v6  ;;  %v2461_v34 = vadd.f32 %v2460_v37, %v2340_v10  ;;  %v14435_v41 = vadd.f32 %v14434_v19, %v14433_v0  ;;  %7052 = vmatmul.mubr.bf16.gmra.mxu1 %v17709_v48  ;;  %v2742_v28 = vrot.slane %v17709_v48, 4  ;;  %v20197_v10 = vrot.slane %v17413_v62, 4 }
 0x2ba   :  { %v14436_v60 = vpop.f32.mrf.mxu0  ;;  %7061 = vmatprep.mubr.bf16.mxu1 %v17718_v6  ;;  %7228 = vmatpush1.bf16.msra.mxu1 %v15342_v8  ;;  %v15354_v8 = vld [vmem:[#allocation6 + $0x7e0] ss:$16 sps:$4 sm:$0xff]  }
 0x2bb   :  { %v2468_v38 = vpop.f32.mrf.mxu1  ;;  %v2541_v46 = vmax.f32 %v2461_v34, 0.0  ;;  %v2345_v59 = vadd.f32 %v14435_v41, %v17590_v51  ;;  %7335 = vmatpush1.bf16.msra.mxu0 %v15345_v39  ;;  %v17725_v15 = vsel %vm2722_vm1, %v2736_v2, %v2742_v28  ;;  %7229 = vmatprep.subr.bf16.mxu1 %v15350_v29  ;;  %v17733_v19 = vsel %vm2722_vm1, %v20197_v10, %v20196_v55  ;;  %v15359_v34 = vld [vmem:[#allocation6 + $0x844] ss:$16 sps:$4 sm:$0xff]   ;;  %v15357_v41 = vld [vmem:[#allocation6 + $0x840] ss:$16 sps:$4 sm:$0xff]  }
 0x2bc   :  { %20195 = vst [vmem:[#allocation64_spill] sm:$0xff] %v17725_v15  ;;  %v14437_v0 = vpop.f32.mrf.mxu0  ;;  %7154 = vmatprep.mubr.bf16.mxu0 %v17725_v15  ;;  %20198 = vst [vmem:[#allocation65_spill] sm:$0xff] %v17733_v19  ;;  %7336 = vmatprep.subr.bf16.mxu0 %v15353_v27  ;;  %v2622_v51 = vadd.f32 %v17628_v47, %v2538_v31 }
 0x2bd   :  { %v14879_v37 = vpop.f32.mrf.mxu1  ;;  %v2625_v2 = vadd.f32 %v17628_v47, %v2541_v46  ;;  %v2466_v39 = vadd.f32 %v2465_v26, %v2345_v59  ;;  %v14438_v29 = vadd.f32 %v14437_v0, %v14436_v60  ;;  %7155 = vmatmul.mubr.bf16.gmra.mxu0 %v17733_v19  ;;  %v20200_v26 = vrot.slane %v17477_v1, 4  ;;  %v15360_v59 = vld [vmem:[#allocation6 + $0x7c0] ss:$16 sps:$4 sm:$0xff]  }
 0x2be   :  { %v15362_v37 = vld [vmem:[#allocation6 + $0x7c4] ss:$16 sps:$4 sm:$0xff]   ;;  %v14439_v20 = vpop.f32.mrf.mxu0  ;;  %7230 = vmatpush1.bf16.msra.mxu1 %v15348_v35  ;;  %v20201_v60 = vrot.slane %v17458_v22, 4 }
 0x2bf   :  { %v2473_v7 = vpop.f32.mrf.mxu1  ;;  %v17738_v15 = vpack.c.bf16 %v2625_v2, %v2622_v51  ;;  %v2348_v55 = vadd.f32 %v14438_v29, %v17593_v4  ;;  %7337 = vmatpush1.bf16.msra.mxu0 %v15351_v63  ;;  %7231 = vmatprep.subr.bf16.mxu1 %v15356_v14  ;;  %v15365_v35 = vld [vmem:[#allocation6 + $0x824] ss:$16 sps:$4 sm:$0xff]   ;;  %v2544_v0 = vmax.f32 %v2466_v39, 0.0  ;;  %v15363_v63 = vld [vmem:[#allocation6 + $0x820] ss:$16 sps:$4 sm:$0xff]   ;;  %v20204_v39 = vrot.slane %v17446_v17, 4 }
 0x2c0   :  { %v14440_v31 = vpop.f32.mrf.mxu0  ;;  %7338 = vmatprep.subr.bf16.mxu0 %v15359_v34  ;;  %v17747_v46 = vsel %vm2722_vm1, %v20201_v60, %v20200_v26  ;;  %v15368_v14 = vld [vmem:[#allocation6 + $0x7a4] ss:$16 sps:$4 sm:$0xff]  }
 0x2c1   :  { %20199 = vst [vmem:[#allocation66_spill] sm:$0xff] %v17738_v15  ;;  %v14882_v10 = vpop.f32.mrf.mxu1  ;;  %20202 = vst [vmem:[#allocation67_spill] sm:$0xff] %v17747_v46  ;;  %v2469_v51 = vadd.f32 %v2468_v38, %v2348_v55  ;;  %v14441_v2 = vadd.f32 %v14440_v31, %v14439_v20  ;;  %7062 = vmatmul.mubr.bf16.gmra.mxu1 %v17738_v15  ;;  %v2748_v4 = vrot.slane %v17738_v15, 4  ;;  %v20205_v55 = vrot.slane %v17429_v32, 4 }
 0x2c2   :  { %v14442_v29 = vpop.f32.mrf.mxu0  ;;  %7071 = vmatprep.mubr.bf16.mxu1 %v17747_v46  ;;  %7232 = vmatpush2.bf16.msra.mxu1 %v15354_v8  ;;  %v15366_v8 = vld [vmem:[#allocation6 + $0x7a0] ss:$16 sps:$4 sm:$0xff]  }
 0x2c3   :  { %v2476_v34 = vpop.f32.mrf.mxu1  ;;  %v2547_v10 = vmax.f32 %v2469_v51, 0.0  ;;  %v2353_v26 = vadd.f32 %v14441_v2, %v17596_v49  ;;  %7339 = vmatpush1.bf16.msra.mxu0 %v15357_v41  ;;  %v17754_v60 = vsel %vm2722_vm1, %v2742_v28, %v2748_v4  ;;  %7233 = vmatprep.subr.bf16.mxu1 %v15362_v37  ;;  %v17762_v31 = vsel %vm2722_vm1, %v20205_v55, %v20204_v39  ;;  %v15371_v51 = vld [vmem:[#allocation6 + $0x804] ss:$16 sps:$4 sm:$0xff]   ;;  %v15369_v2 = vld [vmem:[#allocation6 + $0x800] ss:$16 sps:$4 sm:$0xff]  }
 0x2c4   :  { %20203 = vst [vmem:[#allocation68_spill] sm:$0xff] %v17754_v60  ;;  %v14443_v20 = vpop.f32.mrf.mxu0  ;;  %7164 = vmatprep.mubr.bf16.mxu0 %v17754_v60  ;;  %20206 = vst [vmem:[#allocation69_spill] sm:$0xff] %v17762_v31  ;;  %7340 = vmatprep.subr.bf16.mxu0 %v15365_v35  ;;  %v2628_v49 = vadd.f32 %v17628_v47, %v2544_v0 }
 0x2c5   :  { %v14883_v38 = vpop.f32.mrf.mxu1  ;;  %v2631_v28 = vadd.f32 %v17628_v47, %v2547_v10  ;;  %v2474_v41 = vadd.f32 %v2473_v7, %v2353_v26  ;;  %v14444_v37 = vadd.f32 %v14443_v20, %v14442_v29  ;;  %7165 = vmatmul.mubr.bf16.gmra.mxu0 %v17762_v31  ;;  %v20208_v7 = vrot.slane %v17501_v56, 4  ;;  %v15372_v26 = vld [vmem:[#allocation6 + $0x780] ss:$16 sps:$4 sm:$0xff]  }
 0x2c6   :  { %v15374_v38 = vld [vmem:[#allocation6 + $0x784] ss:$16 sps:$4 sm:$0xff]   ;;  %v14445_v27 = vpop.f32.mrf.mxu0  ;;  %7234 = vmatpush2.bf16.msra.mxu1 %v15360_v59  ;;  %v20209_v29 = vrot.slane %v17477_v1, 4 }
 0x2c7   :  { %v2481_v60 = vpop.f32.mrf.mxu1  ;;  %v17767_v19 = vpack.c.bf16 %v2631_v28, %v2628_v49  ;;  %v2356_v39 = vadd.f32 %v14444_v37, %v17599_v50  ;;  %7341 = vmatpush1.bf16.msra.mxu0 %v15363_v63  ;;  %7235 = vmatprep.subr.bf16.mxu1 %v15368_v14  ;;  %v15377_v59 = vld [vmem:[#allocation6 + $0x9e4] ss:$16 sps:$4 sm:$0xff]   ;;  %v2550_v20 = vmax.f32 %v2474_v41, 0.0  ;;  %v15375_v63 = vld [vmem:[#allocation6 + $0x9e0] ss:$16 sps:$4 sm:$0xff]   ;;  %v20212_v41 = vrot.slane %v17464_v24, 4 }
 0x2c8   :  { %v14446_v0 = vpop.f32.mrf.mxu0  ;;  %7342 = vmatprep.subr.bf16.mxu0 %v15371_v51  ;;  %v17776_v10 = vsel %vm2722_vm1, %v20209_v29, %v20208_v7  ;;  %v15380_v14 = vld [vmem:[#allocation6 + $0x764] ss:$16 sps:$4 sm:$0xff]  }
 0x2c9   :  { %20207 = vst [vmem:[#allocation70_spill] sm:$0xff] %v17767_v19  ;;  %v14886_v55 = vpop.f32.mrf.mxu1  ;;  %20210 = vst [vmem:[#allocation71_spill] sm:$0xff] %v17776_v10  ;;  %v2477_v49 = vadd.f32 %v2476_v34, %v2356_v39  ;;  %v14447_v28 = vadd.f32 %v14446_v0, %v14445_v27  ;;  %7072 = vmatmul.mubr.bf16.gmra.mxu1 %v17767_v19  ;;  %v2754_v50 = vrot.slane %v17767_v19, 4  ;;  %v20213_v39 = vrot.slane %v17446_v17, 4 }
 0x2ca   :  { %v14448_v37 = vpop.f32.mrf.mxu0  ;;  %7081 = vmatprep.mubr.bf16.mxu1 %v17776_v10  ;;  %7236 = vmatpush2.bf16.msra.mxu1 %v15366_v8  ;;  %v15378_v8 = vld [vmem:[#allocation6 + $0x760] ss:$16 sps:$4 sm:$0xff]  }
 0x2cb   :  { %v2484_v51 = vpop.f32.mrf.mxu1  ;;  %v2553_v55 = vmax.f32 %v2477_v49, 0.0  ;;  %v2361_v7 = vadd.f32 %v14447_v28, %v17602_v45  ;;  %7343 = vmatpush1.bf16.msra.mxu0 %v15369_v2  ;;  %v17783_v29 = vsel %vm2722_vm1, %v2748_v4, %v2754_v50  ;;  %7237 = vmatprep.subr.bf16.mxu1 %v15374_v38  ;;  %v17791_v0 = vsel %vm2722_vm1, %v20213_v39, %v20212_v41  ;;  %v15383_v49 = vld [vmem:[#allocation6 + $0x9c4] ss:$16 sps:$4 sm:$0xff]   ;;  %v15381_v28 = vld [vmem:[#allocation6 + $0x9c0] ss:$16 sps:$4 sm:$0xff]  }
 0x2cc   :  { %20211 = vst [vmem:[#allocation72_spill] sm:$0xff] %v17783_v29  ;;  %v14449_v27 = vpop.f32.mrf.mxu0  ;;  %7174 = vmatprep.mubr.bf16.mxu0 %v17783_v29  ;;  %20214 = vst [vmem:[#allocation73_spill] sm:$0xff] %v17791_v0  ;;  %7344 = vmatprep.subr.bf16.mxu0 %v15377_v59  ;;  %v2634_v45 = vadd.f32 %v17628_v47, %v2550_v20 }
 0x2cd   :  { %v14887_v34 = vpop.f32.mrf.mxu1  ;;  %v2637_v4 = vadd.f32 %v17628_v47, %v2553_v55  ;;  %v2482_v2 = vadd.f32 %v2481_v60, %v2361_v7  ;;  %v14450_v38 = vadd.f32 %v14449_v27, %v14448_v37  ;;  %7175 = vmatmul.mubr.bf16.gmra.mxu0 %v17791_v0  ;;  %v20216_v60 = vrot.slane %v17512_v3, 4  ;;  %v15384_v7 = vld [vmem:[#allocation6 + $0x740] ss:$16 sps:$4 sm:$0xff]  }
 0x2ce   :  { %v15386_v34 = vld [vmem:[#allocation6 + $0x744] ss:$16 sps:$4 sm:$0xff]   ;;  %v14451_v35 = vpop.f32.mrf.mxu0  ;;  %7238 = vmatpush2.bf16.msra.mxu1 %v15372_v26  ;;  %v20217_v37 = vrot.slane %v17501_v56, 4 }
 0x2cf   :  { %v2489_v29 = vpop.f32.mrf.mxu1  ;;  %v17796_v31 = vpack.c.bf16 %v2637_v4, %v2634_v45  ;;  %v2364_v41 = vadd.f32 %v14450_v38, %v17605_v53  ;;  %7345 = vmatpush2.bf16.msra.mxu0 %v15375_v63  ;;  %7239 = vmatprep.subr.bf16.mxu1 %v15380_v14  ;;  %v15389_v26 = vld [vmem:[#allocation6 + $0x9a4] ss:$16 sps:$4 sm:$0xff]   ;;  %v2556_v39 = vmax.f32 %v2482_v2, 0.0  ;;  %v15387_v63 = vld [vmem:[#allocation6 + $0x9a0] ss:$16 sps:$4 sm:$0xff]   ;;  %v20221_v2 = vrot.slane %v17464_v24, 4 }
 0x2d0   :  { %v14452_v20 = vpop.f32.mrf.mxu0  ;;  %7346 = vmatprep.subr.bf16.mxu0 %v15383_v49  ;;  %v17805_v55 = vsel %vm2722_vm1, %v20217_v37, %v20216_v60  ;;  %v15392_v14 = vld [vmem:[#allocation6 + $0x724] ss:$16 sps:$4 sm:$0xff]  }
 0x2d1   :  { %20215 = vst [vmem:[#allocation74_spill] sm:$0xff] %v17796_v31  ;;  %20218 = vst [vmem:[#allocation75_spill] sm:$0xff] %v17805_v55  ;;  %v14890_v27 = vpop.f32.mrf.mxu1  ;;  %v2485_v45 = vadd.f32 %v2484_v51, %v2364_v41  ;;  %v14453_v4 = vadd.f32 %v14452_v20, %v14451_v35  ;;  %7082 = vmatmul.mubr.bf16.gmra.mxu1 %v17796_v31  ;;  %v2760_v53 = vrot.slane %v17796_v31, 4  ;;  %v20220_v51 = vrot.slane %v17482_v52, 4  ;;  %v15395_v20 = vld [vmem:[#allocation6 + $0x984] ss:$16 sps:$4 sm:$0xff]  }
 0x2d2   :  { %v14454_v49 = vpop.f32.mrf.mxu0  ;;  %7091 = vmatprep.mubr.bf16.mxu1 %v17805_v55  ;;  %7240 = vmatpush2.bf16.msra.mxu1 %v15378_v8  ;;  %v15390_v8 = vld [vmem:[#allocation6 + $0x720] ss:$16 sps:$4 sm:$0xff]  }
 0x2d3   :  { %v2492_v38 = vpop.f32.mrf.mxu1  ;;  %v2559_v59 = vmax.f32 %v2485_v45, 0.0  ;;  %7347 = vmatpush2.bf16.msra.mxu0 %v15381_v28  ;;  %v2369_v60 = vadd.f32 %v14453_v4, %v17608_v61  ;;  %v17812_v37 = vsel %vm2722_vm1, %v2754_v50, %v2760_v53  ;;  %7241 = vmatprep.subr.bf16.mxu1 %v15386_v34  ;;  %v17820_v41 = vsel %vm2722_vm1, %v20221_v2, %v20220_v51  ;;  %v15393_v45 = vld [vmem:[#allocation6 + $0x980] ss:$16 sps:$4 sm:$0xff]   ;;  %v15398_v4 = vld [vmem:[#allocation6 + $0x704] ss:$16 sps:$4 sm:$0xff]  }
 0x2d4   :  { %20219 = vst [vmem:[#allocation76_spill] sm:$0xff] %v17812_v37  ;;  %v14455_v35 = vpop.f32.mrf.mxu0  ;;  %7184 = vmatprep.mubr.bf16.mxu0 %v17812_v37  ;;  %20222 = vst [vmem:[#allocation77_spill] sm:$0xff] %v17820_v41  ;;  %7348 = vmatprep.subr.bf16.mxu0 %v15389_v26  ;;  %v2640_v61 = vadd.f32 %v17628_v47, %v2556_v39  ;;  %v19946_v51 = vrot.slane %v17503_v9, 4 }
 0x2d5   :  { %v14891_v28 = vpop.f32.mrf.mxu1  ;;  %v2643_v50 = vadd.f32 %v17628_v47, %v2559_v59  ;;  %v14456_v27 = vadd.f32 %v14455_v35, %v14454_v49  ;;  %v2490_v34 = vadd.f32 %v2489_v29, %v2369_v60  ;;  %7185 = vmatmul.mubr.bf16.gmra.mxu0 %v17820_v41  ;;  %v15396_v59 = vld [vmem:[#allocation6 + $0x700] ss:$16 sps:$4 sm:$0xff]   ;;  %v15401_v49 = vld [vmem:[#allocation6 + $0x964] ss:$16 sps:$4 sm:$0xff]  }
 0x2d6   :  { %v14457_v37 = vpop.f32.mrf.mxu0  ;;  %7242 = vmatpush2.bf16.msra.mxu1 %v15384_v7  ;;  %v15399_v28 = vld [vmem:[#allocation6 + $0x960] ss:$16 sps:$4 sm:$0xff]  }
 0x2d7   :  { %v2497_v0 = vpop.f32.mrf.mxu1  ;;  %v17825_v36 = vpack.c.bf16 %v2643_v50, %v2640_v61  ;;  %7349 = vmatpush2.bf16.msra.mxu0 %v15387_v63  ;;  %v2372_v26 = vadd.f32 %v14456_v27, %v17611_v25  ;;  %7243 = vmatprep.subr.bf16.mxu1 %v15392_v14  ;;  %v2562_v60 = vmax.f32 %v2490_v34, 0.0  ;;  %v15407_v61 = vld [vmem:[#allocation6 + $0xae4] ss:$16 sps:$4 sm:$0xff]  }
 0x2d8   :  { %v14458_v39 = vpop.f32.mrf.mxu0  ;;  %7350 = vmatprep.subr.bf16.mxu0 %v15395_v20  ;;  %v15404_v27 = vld [vmem:[#allocation6 + $0x944] ss:$16 sps:$4 sm:$0xff]  }
 0x2d9   :  { %20223 = vst [vmem:[#allocation78_spill] sm:$0xff] %v17825_v36  ;;  %v14894_v29 = vpop.f32.mrf.mxu1  ;;  %v14459_v35 = vadd.f32 %v14458_v39, %v14457_v37  ;;  %v2493_v2 = vadd.f32 %v2492_v38, %v2372_v26  ;;  %7092 = vmatmul.mubr.bf16.gmra.mxu1 %v17825_v36  ;;  %v2766_v7 = vrot.slane %v17825_v36, 4  ;;  %v20225_v37 = vrot.slane %v17482_v52, 4  ;;  %v15405_v39 = vld [vmem:[#allocation6 + $0xae0] ss:$16 sps:$4 sm:$0xff]  }
 0x2da   :  { %v14460_v63 = vpop.f32.mrf.mxu0  ;;  %7244 = vmatpush2.bf16.msra.mxu1 %v15390_v8  ;;  %7247 = vmatprep.mubr.bf16.mxu1 %v17395_v33  ;;  %v15513_v33 = vld [vmem:[#allocation6 + $0xea0] ss:$16 sps:$4 sm:$0xff]  }
 0x2db   :  { %v2500_v25 = vpop.f32.mrf.mxu1  ;;  %v2565_v14 = vmax.f32 %v2493_v2, 0.0  ;;  %7351 = vmatpush2.bf16.msra.mxu0 %v15393_v45  ;;  %v2377_v20 = vadd.f32 %v14459_v35, %v17614_v12  ;;  %v17834_v50 = vsel %vm2722_vm1, %v2760_v53, %v2766_v7  ;;  %7245 = vmatprep.subr.bf16.mxu1 %v15398_v4  ;;  %v17842_v8 = vsel %vm2722_vm1, %v20225_v37, %v19946_v51  ;;  %v15402_v4 = vld [vmem:[#allocation6 + $0x940] ss:$16 sps:$4 sm:$0xff]   ;;  %v15413_v37 = vld [vmem:[#allocation6 + $0xac4] ss:$16 sps:$4 sm:$0xff]  }
 0x2dc   :  { %20224 = vst [vmem:[#allocation79_spill] sm:$0xff] %v17834_v50  ;;  %v14461_v38 = vpop.f32.mrf.mxu0  ;;  %7194 = vmatprep.mubr.bf16.mxu0 %v17834_v50  ;;  %20226 = vst [vmem:[#allocation80_spill] sm:$0xff] %v17842_v8  ;;  %7352 = vmatprep.subr.bf16.mxu0 %v15401_v49  ;;  %v2646_v45 = vadd.f32 %v17628_v47, %v2562_v60  ;;  %v19947_v60 = vrot.slane %v17518_v21, 4 }
 0x2dd   :  { %v14895_v34 = vpop.f32.mrf.mxu1  ;;  %v2649_v12 = vadd.f32 %v17628_v47, %v2565_v14  ;;  %v14462_v53 = vadd.f32 %v14461_v38, %v14460_v63  ;;  %v2498_v26 = vadd.f32 %v2497_v0, %v2377_v20  ;;  %7195 = vmatmul.mubr.bf16.gmra.mxu0 %v17842_v8  ;;  %v15410_v63 = vld [vmem:[#allocation6 + $0x924] ss:$16 sps:$4 sm:$0xff]  }
 0x2de   :  { %v14463_v29 = vpop.f32.mrf.mxu0  ;;  %7246 = vmatpush2.bf16.msra.mxu1 %v15396_v59 }
 0x2df   :  { %v2505_v35 = vpop.f32.mrf.mxu1  ;;  %v17847_v2 = vpack.c.bf16 %v2649_v12, %v2646_v45  ;;  %7353 = vmatpush2.bf16.msra.mxu0 %v15399_v28  ;;  %v2380_v49 = vadd.f32 %v14462_v53, %v17617_v23  ;;  %7441 = vmatprep.subr.bf16.mxu1 %v15407_v61  ;;  %v2568_v14 = vmax.f32 %v2498_v26, 0.0  ;;  %v15408_v45 = vld [vmem:[#allocation6 + $0x920] ss:$16 sps:$4 sm:$0xff]   ;;  %v15419_v28 = vld [vmem:[#allocation6 + $0xaa4] ss:$16 sps:$4 sm:$0xff]   ;;  %v20229_v26 = vrot.slane %v17503_v9, 4 }
 0x2e0   :  { %v14464_v34 = vpop.f32.mrf.mxu0  ;;  %7354 = vmatprep.subr.bf16.mxu0 %v15404_v27  ;;  %v15411_v12 = vld [vmem:[#allocation6 + $0xac0] ss:$16 sps:$4 sm:$0xff]  }
 0x2e1   :  { %20227 = vst [vmem:[#allocation81_spill] sm:$0xff] %v17847_v2  ;;  %v14898_v0 = vpop.f32.mrf.mxu1  ;;  %v14465_v20 = vadd.f32 %v14464_v34, %v14463_v29  ;;  %v2501_v38 = vadd.f32 %v2500_v25, %v2380_v49  ;;  %7248 = vmatmul.mubr.bf16.vlgmr.msra.gmra.mxu1 %v17393_v44  ;;  %v19948_v59 = vrot.slane %v17847_v2, 4 }
 0x2e2   :  { %v14466_v51 = vpop.f32.mrf.mxu0  ;;  %7257 = vmatprep.mubr.bf16.mxu1 %v17413_v62  ;;  %7442 = vmatpush1.bf16.msra.mxu1 %v15405_v39  ;;  %v17866_v39 = vsel %vm2722_vm1, %v20229_v26, %v19947_v60  ;;  %v15417_v0 = vld [vmem:[#allocation6 + $0xaa0] ss:$16 sps:$4 sm:$0xff]   ;;  %v15500_v60 = vld [vmem:[#allocation6 + $0xd44] ss:$16 sps:$4 sm:$0xff]  }
 0x2e3   :  { %v2508_v23 = vpop.f32.mrf.mxu1  ;;  %v2571_v61 = vmax.f32 %v2501_v38, 0.0  ;;  %7355 = vmatpush2.bf16.msra.mxu0 %v15402_v4  ;;  %v2385_v27 = vadd.f32 %v14465_v20, %v17620_v5  ;;  %v17858_v25 = vsel %vm2722_vm1, %v2766_v7, %v19948_v59  ;;  %7443 = vmatprep.subr.bf16.mxu1 %v15413_v37  ;;  %20230 = vst [vmem:[#allocation83_spill] sm:$0xff] %v17866_v39  ;;  %v15416_v4 = vld [vmem:[#allocation6 + $0x904] ss:$16 sps:$4 sm:$0xff]   ;;  %v15414_v37 = vld [vmem:[#allocation6 + $0x900] ss:$16 sps:$4 sm:$0xff]  }
 0x2e4   :  { %20228 = vst [vmem:[#allocation82_spill] sm:$0xff] %v17858_v25  ;;  %v14467_v53 = vpop.f32.mrf.mxu0  ;;  %7204 = vmatprep.mubr.bf16.mxu0 %v17858_v25  ;;  %7356 = vmatprep.subr.bf16.mxu0 %v15410_v63  ;;  %v2652_v5 = vadd.f32 %v17628_v47, %v2568_v14  ;;  %v15422_v38 = vld [vmem:[#allocation6 + $0xa84] ss:$16 sps:$4 sm:$0xff]   ;;  %v15498_v59 = vld [vmem:[#allocation6 + $0xd40] ss:$16 sps:$4 sm:$0xff]  }
 0x2e5   :  { %v14899_v29 = vpop.f32.mrf.mxu1  ;;  %v2655_v49 = vadd.f32 %v17628_v47, %v2571_v61  ;;  %v14468_v7 = vadd.f32 %v14467_v53, %v14466_v51  ;;  %v2506_v34 = vadd.f32 %v2505_v35, %v2385_v27  ;;  %7205 = vmatmul.mubr.bf16.gmra.mxu0 %v17866_v39  ;;  %v15425_v14 = vld [vmem:[#allocation6 + $0xce4] ss:$16 sps:$4 sm:$0xff]   ;;  %v15420_v51 = vld [vmem:[#allocation6 + $0xa80] ss:$16 sps:$4 sm:$0xff]  }
 0x2e6   :  { %7360 = vmatprep.mubr.bf16.mxu0 %v17641_v13  ;;  %7444 = vmatpush1.bf16.msra.mxu1 %v15411_v12  ;;  %v15423_v35 = vld [vmem:[#allocation6 + $0xce0] ss:$16 sps:$4 sm:$0xff]   ;;  %v15428_v27 = vld [vmem:[#allocation6 + $0xa64] ss:$16 sps:$4 sm:$0xff]   ;;  %v17880_v29 = vpop.f32.mrf.mxu0  ;;  %v20236_v13 = vld [vmem:[#allocation64_spill] sm:$0xff] }
 0x2e7   :  { %v17872_v20 = vpack.c.bf16 %v2655_v49, %v2652_v5  ;;  %7357 = vmatpush2.bf16.msra.mxu0 %v15408_v45  ;;  %v2388_v63 = vadd.f32 %v14468_v7, %v17623_v11  ;;  %7445 = vmatprep.subr.bf16.mxu1 %v15419_v28  ;;  %v2574_v26 = vmax.f32 %v2506_v34, 0.0  ;;  %v15431_v12 = vld [vmem:[#allocation6 + $0xcc4] ss:$16 sps:$4 sm:$0xff]   ;;  %v15426_v11 = vld [vmem:[#allocation6 + $0xa60] ss:$16 sps:$4 sm:$0xff]  }
 0x2e8   :  { %7358 = vmatprep.subr.bf16.mxu0 %v15416_v4  ;;  %v15429_v4 = vld [vmem:[#allocation6 + $0xcc0] ss:$16 sps:$4 sm:$0xff]   ;;  %v15437_v49 = vld [vmem:[#allocation6 + $0xca4] ss:$16 sps:$4 sm:$0xff]  }
 0x2e9   :  { %20231 = vst [vmem:[#allocation84_spill] sm:$0xff] %v17872_v20  ;;  %v2509_v61 = vadd.f32 %v2508_v23, %v2388_v63  ;;  %7258 = vmatmul.mubr.bf16.gmra.mxu1 %v17407_v30  ;;  %v2658_v45 = vadd.f32 %v17628_v47, %v2574_v26  ;;  %v15434_v23 = vld [vmem:[#allocation6 + $0xa44] ss:$16 sps:$4 sm:$0xff]   ;;  %v15432_v7 = vld [vmem:[#allocation6 + $0xa40] ss:$16 sps:$4 sm:$0xff]  }
 0x2ea   :  { %7267 = vmatprep.mubr.bf16.mxu1 %v17429_v32  ;;  %7446 = vmatpush1.bf16.msra.mxu1 %v15417_v0  ;;  %v15435_v34 = vld [vmem:[#allocation6 + $0xca0] ss:$16 sps:$4 sm:$0xff]   ;;  %v17887_v0 = vpop.f32.mrf.mxu0  ;;  %v15449_v26 = vld [vmem:[#allocation6 + $0xc64] ss:$16 sps:$4 sm:$0xff]  }
 0x2eb   :  { %v2577_v53 = vmax.f32 %v2509_v61, 0.0  ;;  %7359 = vmatpush2.bf16.msra.mxu0 %v15414_v37  ;;  %7447 = vmatprep.subr.bf16.mxu1 %v15422_v38  ;;  %v15443_v37 = vld [vmem:[#allocation6 + $0xc84] ss:$16 sps:$4 sm:$0xff]   ;;  %v15438_v63 = vld [vmem:[#allocation6 + $0xa20] ss:$16 sps:$4 sm:$0xff]  }
 0x2ec   :  { %7554 = vmatprep.subr.bf16.mxu0 %v15425_v14  ;;  %v15441_v38 = vld [vmem:[#allocation6 + $0xc80] ss:$16 sps:$4 sm:$0xff]   ;;  %v15446_v14 = vld [vmem:[#allocation6 + $0xa04] ss:$16 sps:$4 sm:$0xff]   ;;  %v17890_v61 = vpop.f32.mrf.mxu0 }
 0x2ed   :  { %v2661_v28 = vadd.f32 %v17628_v47, %v2577_v53  ;;  %v15440_v47 = vld [vmem:[#allocation6 + $0xa24] ss:$16 sps:$4 sm:$0xff]  }
 0x2ee   :  { %7361 = vmatmul.mubr.bf16.vlgmr.msra.gmra.mxu0 %v17651_v40  ;;  %7448 = vmatpush1.bf16.msra.mxu1 %v15420_v51  ;;  %v15444_v51 = vld [vmem:[#allocation6 + $0xa00] ss:$16 sps:$4 sm:$0xff]   ;;  %v17895_v53 = vpop.f32.mrf.mxu0 }
 0x2ef   :  { %v17882_v5 = vpack.c.bf16 %v2661_v28, %v2658_v45  ;;  %7370 = vmatprep.mubr.bf16.mxu0 %v17658_v54  ;;  %7555 = vmatpush1.bf16.msra.mxu0 %v15423_v35  ;;  %v15447_v35 = vld [vmem:[#allocation6 + $0xc60] ss:$16 sps:$4 sm:$0xff]   ;;  %v15458_v28 = vld [vmem:[#allocation6 + $0xbc4] ss:$16 sps:$4 sm:$0xff]  }
 0x2f0   :  { %7449 = vmatprep.subr.bf16.mxu1 %v15428_v27  ;;  %7556 = vmatprep.subr.bf16.mxu0 %v15431_v12  ;;  %v15452_v27 = vld [vmem:[#allocation6 + $0xbe4] ss:$16 sps:$4 sm:$0xff]   ;;  %v15453_v45 = vld [vmem:[#allocation6 + $0xc40] ss:$16 sps:$4 sm:$0xff]  }
 0x2f1   :  { %20232 = vst [vmem:[#allocation85_spill] sm:$0xff] %v17882_v5  ;;  %7268 = vmatmul.mubr.bf16.gmra.mxu1 %v17425_v18  ;;  %v15455_v12 = vld [vmem:[#allocation6 + $0xc44] ss:$16 sps:$4 sm:$0xff]   ;;  %v15507_v40 = vld [vmem:[#allocation6 + $0xec0] ss:$16 sps:$4 sm:$0xff]  }
 0x2f2   :  { %7277 = vmatprep.mubr.bf16.mxu1 %v17446_v17  ;;  %7450 = vmatpush1.bf16.msra.mxu1 %v15426_v11  ;;  %v15450_v11 = vld [vmem:[#allocation6 + $0xbe0] ss:$16 sps:$4 sm:$0xff]   ;;  %v15527_v5 = vld [vmem:[#allocation6 + $0x10c4] ss:$16 sps:$4 sm:$0xff]  }
 0x2f3   :  { %7557 = vmatpush1.bf16.msra.mxu0 %v15429_v4  ;;  %7451 = vmatprep.subr.bf16.mxu1 %v15434_v23  ;;  %v15461_v4 = vld [vmem:[#allocation6 + $0xc24] ss:$16 sps:$4 sm:$0xff]   ;;  %v17898_v23 = vpop.f32.mrf.mxu0 }
 0x2f4   :  { %7558 = vmatprep.subr.bf16.mxu0 %v15437_v49  ;;  %v15456_v49 = vld [vmem:[#allocation6 + $0xbc0] ss:$16 sps:$4 sm:$0xff]  }
 0x2f6   :  { %7371 = vmatmul.mubr.bf16.gmra.mxu0 %v17680_v16  ;;  %7452 = vmatpush1.bf16.msra.mxu1 %v15432_v7  ;;  %v15459_v7 = vld [vmem:[#allocation6 + $0xc20] ss:$16 sps:$4 sm:$0xff]  }
 0x2f7   :  { %7380 = vmatprep.mubr.bf16.mxu0 %v17689_v43  ;;  %7559 = vmatpush1.bf16.msra.mxu0 %v15435_v34  ;;  %v15464_v34 = vld [vmem:[#allocation6 + $0xba4] ss:$16 sps:$4 sm:$0xff]  }
 0x2f8   :  { %7453 = vmatprep.subr.bf16.mxu1 %v15440_v47  ;;  %7560 = vmatprep.subr.bf16.mxu0 %v15443_v37  ;;  %v15467_v47 = vld [vmem:[#allocation6 + $0xc04] ss:$16 sps:$4 sm:$0xff]   ;;  %v17903_v37 = vpop.f32.mrf.mxu0 }
 0x2f9   :  { %7278 = vmatmul.mubr.bf16.gmra.mxu1 %v17444_v57 }
 0x2fa   :  { %7287 = vmatprep.mubr.bf16.mxu1 %v17464_v24  ;;  %7454 = vmatpush1.bf16.msra.mxu1 %v15438_v63  ;;  %v15462_v63 = vld [vmem:[#allocation6 + $0xba0] ss:$16 sps:$4 sm:$0xff]  }
 0x2fb   :  { %7561 = vmatpush1.bf16.msra.mxu0 %v15441_v38  ;;  %7455 = vmatprep.subr.bf16.mxu1 %v15446_v14  ;;  %v15465_v38 = vld [vmem:[#allocation6 + $0xc00] ss:$16 sps:$4 sm:$0xff]   ;;  %v15470_v14 = vld [vmem:[#allocation6 + $0xb84] ss:$16 sps:$4 sm:$0xff]  }
 0x2fc   :  { %7562 = vmatprep.subr.bf16.mxu0 %v15449_v26  ;;  %v15473_v26 = vld [vmem:[#allocation6 + $0xde4] ss:$16 sps:$4 sm:$0xff]  }
 0x2fe   :  { %7381 = vmatmul.mubr.bf16.gmra.mxu0 %v17709_v48  ;;  %7456 = vmatpush1.bf16.msra.mxu1 %v15444_v51  ;;  %v17906_v51 = vpop.f32.mrf.mxu0 }
 0x2ff   :  { %7390 = vmatprep.mubr.bf16.mxu0 %v17718_v6  ;;  %7563 = vmatpush1.bf16.msra.mxu0 %v15447_v35  ;;  %v15468_v35 = vld [vmem:[#allocation6 + $0xb80] ss:$16 sps:$4 sm:$0xff]  }
 0x300   :  { %7457 = vmatprep.subr.bf16.mxu1 %v15452_v27  ;;  %7564 = vmatprep.subr.bf16.mxu0 %v15455_v12  ;;  %v15471_v27 = vld [vmem:[#allocation6 + $0xde0] ss:$16 sps:$4 sm:$0xff]   ;;  %v17911_v12 = vpop.f32.mrf.mxu0 }
 0x301   :  { %7288 = vmatmul.mubr.bf16.gmra.mxu1 %v17458_v22 }
 0x302   :  { %7297 = vmatprep.mubr.bf16.mxu1 %v17482_v52  ;;  %7458 = vmatpush2.bf16.msra.mxu1 %v15450_v11  ;;  %v15476_v11 = vld [vmem:[#allocation6 + $0xb64] ss:$16 sps:$4 sm:$0xff]  }
 0x303   :  { %7565 = vmatpush1.bf16.msra.mxu0 %v15453_v45  ;;  %7459 = vmatprep.subr.bf16.mxu1 %v15458_v28  ;;  %v15474_v45 = vld [vmem:[#allocation6 + $0xb60] ss:$16 sps:$4 sm:$0xff]   ;;  %v15479_v28 = vld [vmem:[#allocation6 + $0xdc4] ss:$16 sps:$4 sm:$0xff]  }
 0x304   :  { %7566 = vmatprep.subr.bf16.mxu0 %v15461_v4  ;;  %v15477_v4 = vld [vmem:[#allocation6 + $0xdc0] ss:$16 sps:$4 sm:$0xff]  }
 0x306   :  { %7391 = vmatmul.mubr.bf16.gmra.mxu0 %v17738_v15  ;;  %7460 = vmatpush2.bf16.msra.mxu1 %v15456_v49  ;;  %v17914_v49 = vpop.f32.mrf.mxu0 }
 0x307   :  { %7400 = vmatprep.mubr.bf16.mxu0 %v17747_v46  ;;  %7567 = vmatpush1.bf16.msra.mxu0 %v15459_v7  ;;  %v15482_v7 = vld [vmem:[#allocation6 + $0xb44] ss:$16 sps:$4 sm:$0xff]  }
 0x308   :  { %7461 = vmatprep.subr.bf16.mxu1 %v15464_v34  ;;  %7568 = vmatprep.subr.bf16.mxu0 %v15467_v47  ;;  %v15480_v34 = vld [vmem:[#allocation6 + $0xb40] ss:$16 sps:$4 sm:$0xff]   ;;  %v15485_v47 = vld [vmem:[#allocation6 + $0xda4] ss:$16 sps:$4 sm:$0xff]  }
 0x309   :  { %7298 = vmatmul.mubr.bf16.gmra.mxu1 %v17477_v1 }
 0x30a   :  { %7307 = vmatprep.mubr.bf16.mxu1 %v17503_v9  ;;  %7462 = vmatpush2.bf16.msra.mxu1 %v15462_v63  ;;  %v15483_v63 = vld [vmem:[#allocation6 + $0xda0] ss:$16 sps:$4 sm:$0xff]  }
 0x30b   :  { %7569 = vmatpush1.bf16.msra.mxu0 %v15465_v38  ;;  %7463 = vmatprep.subr.bf16.mxu1 %v15470_v14  ;;  %v17919_v38 = vpop.f32.mrf.mxu0  ;;  %v15488_v14 = vld [vmem:[#allocation6 + $0xb24] ss:$16 sps:$4 sm:$0xff]  }
 0x30c   :  { %7570 = vmatprep.subr.bf16.mxu0 %v15473_v26  ;;  %v15486_v26 = vld [vmem:[#allocation6 + $0xb20] ss:$16 sps:$4 sm:$0xff]  }
 0x30e   :  { %7401 = vmatmul.mubr.bf16.gmra.mxu0 %v17767_v19  ;;  %7464 = vmatpush2.bf16.msra.mxu1 %v15468_v35  ;;  %v15491_v35 = vld [vmem:[#allocation6 + $0xd84] ss:$16 sps:$4 sm:$0xff]  }
 0x30f   :  { %7410 = vmatprep.mubr.bf16.mxu0 %v17776_v10  ;;  %7571 = vmatpush2.bf16.msra.mxu0 %v15471_v27  ;;  %v15489_v27 = vld [vmem:[#allocation6 + $0xd80] ss:$16 sps:$4 sm:$0xff]  }
 0x310   :  { %7465 = vmatprep.subr.bf16.mxu1 %v15476_v11  ;;  %7572 = vmatprep.subr.bf16.mxu0 %v15479_v28  ;;  %v17922_v11 = vpop.f32.mrf.mxu0  ;;  %v15494_v28 = vld [vmem:[#allocation6 + $0xb04] ss:$16 sps:$4 sm:$0xff]  }
 0x311   :  { %7308 = vmatmul.mubr.bf16.gmra.mxu1 %v17501_v56 }
 0x312   :  { %7317 = vmatprep.mubr.bf16.mxu1 %v17518_v21  ;;  %7466 = vmatpush2.bf16.msra.mxu1 %v15474_v45  ;;  %v15497_v45 = vld [vmem:[#allocation6 + $0xd64] ss:$16 sps:$4 sm:$0xff]  }
 0x313   :  { %7573 = vmatpush2.bf16.msra.mxu0 %v15477_v4  ;;  %7467 = vmatprep.subr.bf16.mxu1 %v15482_v7  ;;  %v19957_v4 = vrot.slane %v17530_v58, 4  ;;  %v15492_v7 = vld [vmem:[#allocation6 + $0xb00] ss:$16 sps:$4 sm:$0xff]  }
 0x314   :  { %7574 = vmatprep.subr.bf16.mxu0 %v15485_v47  ;;  %v17928_v47 = vpop.f32.mrf.mxu0 }
 0x316   :  { %7411 = vmatmul.mubr.bf16.gmra.mxu0 %v17796_v31  ;;  %7468 = vmatpush2.bf16.msra.mxu1 %v15480_v34  ;;  %v15495_v34 = vld [vmem:[#allocation6 + $0xd60] ss:$16 sps:$4 sm:$0xff]  }
 0x317   :  { %7420 = vmatprep.mubr.bf16.mxu0 %v17805_v55  ;;  %7575 = vmatpush2.bf16.msra.mxu0 %v15483_v63  ;;  %v15503_v63 = vld [vmem:[#allocation6 + $0xee4] ss:$16 sps:$4 sm:$0xff]  }
 0x318   :  { %7469 = vmatprep.subr.bf16.mxu1 %v15488_v14  ;;  %7576 = vmatprep.subr.bf16.mxu0 %v15491_v35  ;;  %v15501_v14 = vld [vmem:[#allocation6 + $0xee0] ss:$16 sps:$4 sm:$0xff]   ;;  %v20233_v35 = vrot.slane %v17512_v3, 4 }
 0x319   :  { %7318 = vmatmul.mubr.bf16.gmra.mxu1 %v17512_v3 }
 0x31a   :  { %7470 = vmatpush2.bf16.msra.mxu1 %v15486_v26  ;;  %7473 = vmatprep.mubr.bf16.mxu1 %v17696_v42  ;;  %v17936_v26 = vsel %vm2722_vm1, %v20233_v35, %v19957_v4  ;;  %v17938_v42 = vpop.f32.mrf.mxu0  ;;  %v15504_v35 = vld [vmem:[#allocation6 + $0xd20] ss:$16 sps:$4 sm:$0xff]   ;;  %v15515_v4 = vld [vmem:[#allocation6 + $0xea4] ss:$16 sps:$4 sm:$0xff]  }
 0x31b   :  { %7577 = vmatpush2.bf16.msra.mxu0 %v15489_v27  ;;  %7471 = vmatprep.subr.bf16.mxu1 %v15494_v28  ;;  %20234 = vst [vmem:[#allocation86_spill] sm:$0xff] %v17936_v26  ;;  %v15509_v27 = vld [vmem:[#allocation6 + $0xec4] ss:$16 sps:$4 sm:$0xff]  }
 0x31c   :  { %7578 = vmatprep.subr.bf16.mxu0 %v15497_v45  ;;  %v15506_v28 = vld [vmem:[#allocation6 + $0xd24] ss:$16 sps:$4 sm:$0xff]   ;;  %v17943_v44 = vpop.f32.mrf.mxu0 }
 0x31d   :  { %v20235_v45 = vld [vmem:[#allocation61_spill] sm:$0xff] }
 0x31e   :  { %7421 = vmatmul.mubr.bf16.gmra.mxu0 %v17825_v36  ;;  %7472 = vmatpush2.bf16.msra.mxu1 %v15492_v7  ;;  %v15512_v7 = vld [vmem:[#allocation6 + $0xd04] ss:$16 sps:$4 sm:$0xff]  }
 0x31f   :  { %7430 = vmatprep.mubr.bf16.mxu0 %v17936_v26  ;;  %7579 = vmatpush2.bf16.msra.mxu0 %v15495_v34  ;;  %v15510_v34 = vld [vmem:[#allocation6 + $0xd00] ss:$16 sps:$4 sm:$0xff]   ;;  %v15533_v26 = vld [vmem:[#allocation6 + $0x10a4] ss:$16 sps:$4 sm:$0xff]  }
 0x320   :  { %7580 = vmatprep.subr.bf16.mxu0 %v15500_v60  ;;  %7667 = vmatprep.subr.bf16.mxu1 %v15503_v63  ;;  %v17946_v60 = vpop.f32.mrf.mxu0  ;;  %v15518_v63 = vld [vmem:[#allocation6 + $0xe84] ss:$16 sps:$4 sm:$0xff]  }
 0x321   :  { %7474 = vmatmul.mubr.bf16.vlgmr.msra.gmra.mxu1 %v20235_v45 }
 0x322   :  { %7483 = vmatprep.mubr.bf16.mxu1 %v20236_v13  ;;  %7668 = vmatpush1.bf16.msra.mxu1 %v15501_v14  ;;  %v15521_v14 = vld [vmem:[#allocation6 + $0x10e4] ss:$16 sps:$4 sm:$0xff]   ;;  %v17951_v45 = vpop.f32.mrf.mxu0 }
 0x323   :  { %7581 = vmatpush2.bf16.msra.mxu0 %v15498_v59  ;;  %7669 = vmatprep.subr.bf16.mxu1 %v15509_v27  ;;  %v20237_v59 = vld [vmem:[#allocation65_spill] sm:$0xff]  ;;  %v20238_v27 = vld [vmem:[#allocation68_spill] sm:$0xff]  ;;  %20239 = vst [vmem:[#allocation87_spill] sm:$0xff] %v17951_v45 }
 0x324   :  { %7582 = vmatprep.subr.bf16.mxu0 %v15506_v28  ;;  %v15516_v28 = vld [vmem:[#allocation6 + $0xe80] ss:$16 sps:$4 sm:$0xff]   ;;  %v15545_v45 = vld [vmem:[#allocation6 + $0x1064] ss:$16 sps:$4 sm:$0xff]  }
 0x326   :  { %7431 = vmatmul.mubr.bf16.gmra.mxu0 %v17847_v2  ;;  %7670 = vmatpush1.bf16.msra.mxu1 %v15507_v40  ;;  %v15519_v40 = vld [vmem:[#allocation6 + $0x10e0] ss:$16 sps:$4 sm:$0xff]  }
 0x327   :  { %7583 = vmatpush2.bf16.msra.mxu0 %v15504_v35  ;;  %7586 = vmatprep.mubr.bf16.mxu0 %v17413_v62  ;;  %v15524_v35 = vld [vmem:[#allocation6 + $0xe64] ss:$16 sps:$4 sm:$0xff]   ;;  %v15525_v62 = vld [vmem:[#allocation6 + $0x10c0] ss:$16 sps:$4 sm:$0xff]  }
 0x328   :  { %7584 = vmatprep.subr.bf16.mxu0 %v15512_v7  ;;  %7671 = vmatprep.subr.bf16.mxu1 %v15515_v4  ;;  %v15522_v7 = vld [vmem:[#allocation6 + $0xe60] ss:$16 sps:$4 sm:$0xff]   ;;  %v17954_v4 = vpop.f32.mrf.mxu0 }
 0x329   :  { %7484 = vmatmul.mubr.bf16.gmra.mxu1 %v20237_v59 }
 0x32a   :  { %7493 = vmatprep.mubr.bf16.mxu1 %v20238_v27  ;;  %7672 = vmatpush1.bf16.msra.mxu1 %v15513_v33  ;;  %v15530_v33 = vld [vmem:[#allocation6 + $0xe44] ss:$16 sps:$4 sm:$0xff]   ;;  %v17959_v36 = vpop.f32.mrf.mxu0 }
 0x32b   :  { %7585 = vmatpush2.bf16.msra.mxu0 %v15510_v34  ;;  %7673 = vmatprep.subr.bf16.mxu1 %v15518_v63  ;;  %v20240_v34 = vld [vmem:[#allocation69_spill] sm:$0xff]  ;;  %v20241_v63 = vld [vmem:[#allocation72_spill] sm:$0xff] }
 0x32c   :  { %7780 = vmatprep.subr.bf16.mxu0 %v15521_v14  ;;  %v15528_v14 = vld [vmem:[#allocation6 + $0xe40] ss:$16 sps:$4 sm:$0xff]  }
 0x32e   :  { %7587 = vmatmul.mubr.bf16.vlgmr.msra.gmra.mxu0 %v17407_v30  ;;  %7674 = vmatpush1.bf16.msra.mxu1 %v15516_v28  ;;  %v15531_v28 = vld [vmem:[#allocation6 + $0x10a0] ss:$16 sps:$4 sm:$0xff]   ;;  %v15536_v30 = vld [vmem:[#allocation6 + $0xe24] ss:$16 sps:$4 sm:$0xff]  }
 0x32f   :  { %7596 = vmatprep.mubr.bf16.mxu0 %v17429_v32  ;;  %7781 = vmatpush1.bf16.msra.mxu0 %v15519_v40  ;;  %v15539_v32 = vld [vmem:[#allocation6 + $0x1084] ss:$16 sps:$4 sm:$0xff]   ;;  %v15534_v40 = vld [vmem:[#allocation6 + $0xe20] ss:$16 sps:$4 sm:$0xff]  }
 0x330   :  { %7675 = vmatprep.subr.bf16.mxu1 %v15524_v35  ;;  %7782 = vmatprep.subr.bf16.mxu0 %v15527_v5  ;;  %v17962_v5 = vpop.f32.mrf.mxu0  ;;  %v15537_v35 = vld [vmem:[#allocation6 + $0x1080] ss:$16 sps:$4 sm:$0xff]  }
 0x331   :  { %7494 = vmatmul.mubr.bf16.gmra.mxu1 %v20240_v34 }
 0x332   :  { %7503 = vmatprep.mubr.bf16.mxu1 %v20241_v63  ;;  %7676 = vmatpush1.bf16.msra.mxu1 %v15522_v7  ;;  %v15542_v7 = vld [vmem:[#allocation6 + $0xe04] ss:$16 sps:$4 sm:$0xff]   ;;  %v17967_v55 = vpop.f32.mrf.mxu0 }
 0x333   :  { %7783 = vmatpush1.bf16.msra.mxu0 %v15525_v62  ;;  %7677 = vmatprep.subr.bf16.mxu1 %v15530_v33  ;;  %v20242_v62 = vld [vmem:[#allocation73_spill] sm:$0xff]  ;;  %v20243_v33 = vld [vmem:[#allocation76_spill] sm:$0xff]  ;;  %20244 = vst [vmem:[#allocation88_spill] sm:$0xff] %v17967_v55 }
 0x334   :  { %7784 = vmatprep.subr.bf16.mxu0 %v15533_v26  ;;  %v15540_v26 = vld [vmem:[#allocation6 + $0xe00] ss:$16 sps:$4 sm:$0xff]   ;;  %v15557_v55 = vld [vmem:[#allocation6 + $0x1024] ss:$16 sps:$4 sm:$0xff]  }
 0x336   :  { %7597 = vmatmul.mubr.bf16.gmra.mxu0 %v17425_v18  ;;  %7678 = vmatpush1.bf16.msra.mxu1 %v15528_v14  ;;  %v15543_v14 = vld [vmem:[#allocation6 + $0x1060] ss:$16 sps:$4 sm:$0xff]   ;;  %v15548_v18 = vld [vmem:[#allocation6 + $0xfe4] ss:$16 sps:$4 sm:$0xff]  }
 0x337   :  { %7606 = vmatprep.mubr.bf16.mxu0 %v17446_v17  ;;  %7785 = vmatpush1.bf16.msra.mxu0 %v15531_v28  ;;  %v15551_v17 = vld [vmem:[#allocation6 + $0x1044] ss:$16 sps:$4 sm:$0xff]   ;;  %v15549_v28 = vld [vmem:[#allocation6 + $0x1040] ss:$16 sps:$4 sm:$0xff]  }
 0x338   :  { %7679 = vmatprep.subr.bf16.mxu1 %v15536_v30  ;;  %7786 = vmatprep.subr.bf16.mxu0 %v15539_v32  ;;  %v15546_v30 = vld [vmem:[#allocation6 + $0xfe0] ss:$16 sps:$4 sm:$0xff]   ;;  %v17970_v32 = vpop.f32.mrf.mxu0 }
 0x339   :  { %7504 = vmatmul.mubr.bf16.gmra.mxu1 %v20242_v62 }
 0x33a   :  { %7513 = vmatprep.mubr.bf16.mxu1 %v20243_v33  ;;  %7680 = vmatpush1.bf16.msra.mxu1 %v15534_v40  ;;  %v15554_v40 = vld [vmem:[#allocation6 + $0xfc4] ss:$16 sps:$4 sm:$0xff]  }
 0x33b   :  { %7787 = vmatpush1.bf16.msra.mxu0 %v15537_v35  ;;  %7681 = vmatprep.subr.bf16.mxu1 %v15542_v7  ;;  %v17975_v35 = vpop.f32.mrf.mxu0  ;;  %v15555_v7 = vld [vmem:[#allocation6 + $0x1020] ss:$16 sps:$4 sm:$0xff]  }
 0x33c   :  { %7788 = vmatprep.subr.bf16.mxu0 %v15545_v45  ;;  %v15552_v45 = vld [vmem:[#allocation6 + $0xfc0] ss:$16 sps:$4 sm:$0xff]  }
 0x33e   :  { %7607 = vmatmul.mubr.bf16.gmra.mxu0 %v17444_v57  ;;  %7682 = vmatpush1.bf16.msra.mxu1 %v15540_v26  ;;  %v15560_v26 = vld [vmem:[#allocation6 + $0xfa4] ss:$16 sps:$4 sm:$0xff]  }
 0x33f   :  { %7616 = vmatprep.mubr.bf16.mxu0 %v17464_v24  ;;  %7789 = vmatpush1.bf16.msra.mxu0 %v15543_v14  ;;  %v15563_v24 = vld [vmem:[#allocation6 + $0x1004] ss:$16 sps:$4 sm:$0xff]   ;;  %v15561_v14 = vld [vmem:[#allocation6 + $0x1000] ss:$16 sps:$4 sm:$0xff]  }
 0x340   :  { %7683 = vmatprep.subr.bf16.mxu1 %v15548_v18  ;;  %7790 = vmatprep.subr.bf16.mxu0 %v15551_v17  ;;  %v15558_v18 = vld [vmem:[#allocation6 + $0xfa0] ss:$16 sps:$4 sm:$0xff]   ;;  %v17978_v17 = vpop.f32.mrf.mxu0  ;;  %v15569_v57 = vld [vmem:[#allocation6 + $0x11e4] ss:$16 sps:$4 sm:$0xff]  }
 0x341   :  { %7514 = vmatmul.mubr.bf16.gmra.mxu1 %v17820_v41 }
 0x342   :  { %7523 = vmatprep.mubr.bf16.mxu1 %v17834_v50  ;;  %7684 = vmatpush2.bf16.msra.mxu1 %v15546_v30  ;;  %v15566_v30 = vld [vmem:[#allocation6 + $0xf84] ss:$16 sps:$4 sm:$0xff]  }
 0x343   :  { %7791 = vmatpush1.bf16.msra.mxu0 %v15549_v28  ;;  %7685 = vmatprep.subr.bf16.mxu1 %v15554_v40  ;;  %v17983_v28 = vpop.f32.mrf.mxu0  ;;  %v15567_v40 = vld [vmem:[#allocation6 + $0x11e0] ss:$16 sps:$4 sm:$0xff]  }
 0x344   :  { %7792 = vmatprep.subr.bf16.mxu0 %v15557_v55  ;;  %v15564_v55 = vld [vmem:[#allocation6 + $0xf80] ss:$16 sps:$4 sm:$0xff]   ;;  %20245 = vst [vmem:[#allocation89_spill] sm:$0xff] %v17983_v28  ;;  %v15587_v28 = vld [vmem:[#allocation6 + $0x1184] ss:$16 sps:$4 sm:$0xff]  }
 0x346   :  { %7617 = vmatmul.mubr.bf16.gmra.mxu0 %v17458_v22  ;;  %7686 = vmatpush2.bf16.msra.mxu1 %v15552_v45  ;;  %v15572_v45 = vld [vmem:[#allocation6 + $0xf64] ss:$16 sps:$4 sm:$0xff]  }
 0x347   :  { %7626 = vmatprep.mubr.bf16.mxu0 %v17482_v52  ;;  %7793 = vmatpush1.bf16.msra.mxu0 %v15555_v7  ;;  %v15575_v52 = vld [vmem:[#allocation6 + $0x11c4] ss:$16 sps:$4 sm:$0xff]   ;;  %v19991_v7 = vrot.slane %v17872_v20, 4  ;;  %v15582_v20 = vld [vmem:[#allocation6 + $0xf20] ss:$16 sps:$4 sm:$0xff]  }
 0x348   :  { %7687 = vmatprep.subr.bf16.mxu1 %v15560_v26  ;;  %7794 = vmatprep.subr.bf16.mxu0 %v15563_v24  ;;  %v15570_v24 = vld [vmem:[#allocation6 + $0xf60] ss:$16 sps:$4 sm:$0xff]   ;;  %v17987_v26 = vpop.f32.mrf.mxu0  ;;  %v15578_v22 = vld [vmem:[#allocation6 + $0xf44] ss:$16 sps:$4 sm:$0xff]  }
 0x349   :  { %7524 = vmatmul.mubr.bf16.gmra.mxu1 %v17842_v8 }
 0x34a   :  { %7533 = vmatprep.mubr.bf16.mxu1 %v17858_v25  ;;  %7688 = vmatpush2.bf16.msra.mxu1 %v15558_v18  ;;  %v15573_v18 = vld [vmem:[#allocation6 + $0x11c0] ss:$16 sps:$4 sm:$0xff]  }
 0x34b   :  { %7795 = vmatpush1.bf16.msra.mxu0 %v15561_v14  ;;  %7689 = vmatprep.subr.bf16.mxu1 %v15566_v30  ;;  %v15581_v14 = vld [vmem:[#allocation6 + $0x11a4] ss:$16 sps:$4 sm:$0xff]  }
 0x34c   :  { %7796 = vmatprep.subr.bf16.mxu0 %v15569_v57  ;;  %v20246_v57 = vrot.slane %v17847_v2, 4 }
 0x34e   :  { %7627 = vmatmul.mubr.bf16.gmra.mxu0 %v17477_v1  ;;  %7690 = vmatpush2.bf16.msra.mxu1 %v15564_v55  ;;  %v17996_v30 = vsel %vm2722_vm1, %v20246_v57, %v19991_v7  ;;  %v15576_v55 = vld [vmem:[#allocation6 + $0xf40] ss:$16 sps:$4 sm:$0xff]   ;;  %v15584_v1 = vld [vmem:[#allocation6 + $0xf24] ss:$16 sps:$4 sm:$0xff]  }
 0x34f   :  { %7636 = vmatprep.mubr.bf16.mxu0 %v17503_v9  ;;  %7797 = vmatpush2.bf16.msra.mxu0 %v15567_v40  ;;  %20247 = vst [vmem:[#allocation90_spill] sm:$0xff] %v17996_v30  ;;  %v17999_v9 = vpop.f32.mrf.mxu0  ;;  %v15579_v40 = vld [vmem:[#allocation6 + $0x11a0] ss:$16 sps:$4 sm:$0xff]   ;;  %v15590_v7 = vld [vmem:[#allocation6 + $0xf04] ss:$16 sps:$4 sm:$0xff]  }
 0x350   :  { %7691 = vmatprep.subr.bf16.mxu1 %v15572_v45  ;;  %7798 = vmatprep.subr.bf16.mxu0 %v15575_v52  ;;  %v20248_v52 = vld [vmem:[#allocation40_spill] sm:$0xff] }
 0x351   :  { %7534 = vmatmul.mubr.bf16.gmra.mxu1 %v17866_v39  ;;  %v20000_v45 = vrot.slane %v20248_v52, 4  ;;  %v18003_v57 = vpop.f32.mrf.mxu0  ;;  %v20252_v39 = vld [vmem:[#allocation31_spill] sm:$0xff] }
 0x352   :  { %7543 = vmatprep.mubr.bf16.mxu1 %v17996_v30  ;;  %7692 = vmatpush2.bf16.msra.mxu1 %v15570_v24  ;;  %v15585_v24 = vld [vmem:[#allocation6 + $0x1180] ss:$16 sps:$4 sm:$0xff]  }
 0x353   :  { %7799 = vmatpush2.bf16.msra.mxu0 %v15573_v18  ;;  %7693 = vmatprep.subr.bf16.mxu1 %v15578_v22  ;;  %v20249_v22 = vrot.slane %v17518_v21, 4  ;;  %v15591_v30 = vld [vmem:[#allocation6 + $0x1160] ss:$16 sps:$4 sm:$0xff]  }
 0x354   :  { %7800 = vmatprep.subr.bf16.mxu0 %v15581_v14  ;;  %v15593_v14 = vld [vmem:[#allocation6 + $0x1164] ss:$16 sps:$4 sm:$0xff]  }
 0x355   :  { %v18011_v18 = vsel %vm2722_vm1, %v20249_v22, %v20000_v45  ;;  %v15596_v22 = vld [vmem:[#allocation6 + $0x1144] ss:$16 sps:$4 sm:$0xff]  }
 0x356   :  { %7637 = vmatmul.mubr.bf16.gmra.mxu0 %v17501_v56  ;;  %7694 = vmatpush2.bf16.msra.mxu1 %v15576_v55  ;;  %20250 = vst [vmem:[#allocation91_spill] sm:$0xff] %v18011_v18  ;;  %v3494_v56 = vld [vmem:[#allocation7] ss:$2 sm:$0xf] }
 0x357   :  { %7646 = vmatprep.mubr.bf16.mxu0 %v17518_v21  ;;  %7801 = vmatpush2.bf16.msra.mxu0 %v15579_v40  ;;  %v15588_v55 = vld [vmem:[#allocation6 + $0xf00] ss:$16 sps:$4 sm:$0xff]   ;;  %v18015_v40 = vpop.f32.mrf.mxu0  ;;  %v18018_v21 = vrot.slane %v3494_v56, %v20252_v39 }
 0x358   :  { %7695 = vmatprep.subr.bf16.mxu1 %v15584_v1  ;;  %7802 = vmatprep.subr.bf16.mxu0 %v15587_v28  ;;  %20251 = vst [vmem:[#allocation92_spill] sm:$0xff] %v18015_v40  ;;  %v15599_v1 = vld [vmem:[#allocation6 + $0x12e4] ss:$16 sps:$4 sm:$0xff]   ;;  %v20253_v28 = vld [vmem:[#allocation32_spill] sm:$0xff] }
 0x359   :  { %7544 = vmatmul.mubr.bf16.gmra.mxu1 %v18011_v18  ;;  %v18021_v45 = vrot.slane %v3494_v56, %v20253_v28  ;;  %v6911_v39 = vadd.f32 %v17880_v29, %v18018_v21  ;;  %v15603_v28 = vld [vmem:[#allocation6 + $0x12c0] ss:$16 sps:$4 sm:$0xff]   ;;  %v6915_v29 = vadd.f32 %v17890_v61, %v18018_v21  ;;  %v15638_v61 = vld [vmem:[#allocation6 + $0x14e4] ss:$16 sps:$4 sm:$0xff]  }
 0x35a   :  { %7696 = vmatpush2.bf16.msra.mxu1 %v15582_v20  ;;  %7699 = vmatprep.mubr.bf16.mxu1 %v17658_v54  ;;  %v15597_v20 = vld [vmem:[#allocation6 + $0x12e0] ss:$16 sps:$4 sm:$0xff]   ;;  %v18024_v54 = vpop.f32.mrf.mxu0 }
 0x35b   :  { %7803 = vmatpush2.bf16.msra.mxu0 %v15585_v24  ;;  %7697 = vmatprep.subr.bf16.mxu1 %v15590_v7  ;;  %v15594_v7 = vld [vmem:[#allocation6 + $0x1140] ss:$16 sps:$4 sm:$0xff]   ;;  %v15605_v24 = vld [vmem:[#allocation6 + $0x12c4] ss:$16 sps:$4 sm:$0xff]   ;;  %v6913_v56 = vadd.f32 %v17887_v0, %v18021_v45 }
 0x35c   :  { %7804 = vmatprep.subr.bf16.mxu0 %v15593_v14  ;;  %v15602_v14 = vld [vmem:[#allocation6 + $0x1124] ss:$16 sps:$4 sm:$0xff]  }
 0x35e   :  { %7647 = vmatmul.mubr.bf16.gmra.mxu0 %v17512_v3  ;;  %7698 = vmatpush2.bf16.msra.mxu1 %v15588_v55 }
 0x35f   :  { %7656 = vmatprep.mubr.bf16.mxu0 %v20248_v52  ;;  %7805 = vmatpush2.bf16.msra.mxu0 %v15591_v30  ;;  %v18033_v30 = vpop.f32.mrf.mxu0  ;;  %v15600_v52 = vld [vmem:[#allocation6 + $0x1120] ss:$16 sps:$4 sm:$0xff]  }
 0x360   :  { %7806 = vmatprep.subr.bf16.mxu0 %v15596_v22  ;;  %7893 = vmatprep.subr.bf16.mxu1 %v15599_v1  ;;  %v15608_v1 = vld [vmem:[#allocation6 + $0x1104] ss:$16 sps:$4 sm:$0xff]  }
 0x361   :  { %v7023_v40 = vpop.f32.mrf.mxu1  ;;  %7700 = vmatmul.mubr.bf16.vlgmr.msra.gmra.mxu1 %v17680_v16  ;;  %v15611_v16 = vld [vmem:[#allocation6 + $0x12a4] ss:$16 sps:$4 sm:$0xff]  }
 0x362   :  { %v7024_v55 = vadd.f32 %v7023_v40, %v6911_v39  ;;  %7709 = vmatprep.mubr.bf16.mxu1 %v17689_v43  ;;  %7894 = vmatpush1.bf16.msra.mxu1 %v15597_v20  ;;  %v15609_v39 = vld [vmem:[#allocation6 + $0x12a0] ss:$16 sps:$4 sm:$0xff]   ;;  %v18038_v40 = vpop.f32.mrf.mxu0 }
 0x363   :  { %7807 = vmatpush2.bf16.msra.mxu0 %v15594_v7  ;;  %v7025_v3 = vpop.f32.mrf.mxu1  ;;  %7895 = vmatprep.subr.bf16.mxu1 %v15605_v24  ;;  %v15606_v7 = vld [vmem:[#allocation6 + $0x1100] ss:$16 sps:$4 sm:$0xff]   ;;  %v15614_v24 = vld [vmem:[#allocation6 + $0x1284] ss:$16 sps:$4 sm:$0xff]  }
 0x364   :  { %v7026_v22 = vadd.f32 %v7025_v3, %v6913_v56  ;;  %7808 = vmatprep.subr.bf16.mxu0 %v15602_v14  ;;  %v6921_v3 = vadd.f32 %v17898_v23, %v18018_v21  ;;  %v18047_v56 = vpop.f32.mrf.mxu0  ;;  %v15617_v23 = vld [vmem:[#allocation6 + $0x1264] ss:$16 sps:$4 sm:$0xff]  }
 0x365   :  { %v7027_v18 = vpop.f32.mrf.mxu1 }
 0x366   :  { %v7028_v0 = vadd.f32 %v7027_v18, %v6915_v29  ;;  %7657 = vmatmul.mubr.bf16.gmra.mxu0 %v17530_v58  ;;  %7896 = vmatpush1.bf16.msra.mxu1 %v15603_v28  ;;  %v6923_v18 = vadd.f32 %v17903_v37, %v18021_v45  ;;  %v15644_v37 = vld [vmem:[#allocation6 + $0x14c4] ss:$16 sps:$4 sm:$0xff]  }
 0x367   :  { %7809 = vmatpush2.bf16.msra.mxu0 %v15600_v52  ;;  %7812 = vmatprep.mubr.bf16.mxu0 %v20236_v13  ;;  %v7029_v20 = vpop.f32.mrf.mxu1  ;;  %v15612_v52 = vld [vmem:[#allocation6 + $0x1280] ss:$16 sps:$4 sm:$0xff]  }
 0x368   :  { %7810 = vmatprep.subr.bf16.mxu0 %v15608_v1  ;;  %7897 = vmatprep.subr.bf16.mxu1 %v15611_v16  ;;  %v6925_v16 = vadd.f32 %v17906_v51, %v18018_v21  ;;  %v15636_v13 = vld [vmem:[#allocation6 + $0x14e0] ss:$16 sps:$4 sm:$0xff]   ;;  %v15620_v51 = vld [vmem:[#allocation6 + $0x1244] ss:$16 sps:$4 sm:$0xff]  }
 0x369   :  { %v7033_v14 = vpop.f32.mrf.mxu1  ;;  %7710 = vmatmul.mubr.bf16.gmra.mxu1 %v17709_v48 }
 0x36a   :  { %v7034_v28 = vadd.f32 %v7033_v14, %v6921_v3  ;;  %7719 = vmatprep.mubr.bf16.mxu1 %v17718_v6  ;;  %7898 = vmatpush1.bf16.msra.mxu1 %v15609_v39  ;;  %v15615_v39 = vld [vmem:[#allocation6 + $0x1260] ss:$16 sps:$4 sm:$0xff]  }
 0x36b   :  { %7811 = vmatpush2.bf16.msra.mxu0 %v15606_v7  ;;  %v7035_v29 = vpop.f32.mrf.mxu1  ;;  %7899 = vmatprep.subr.bf16.mxu1 %v15614_v24 }
 0x36c   :  { %v7036_v1 = vadd.f32 %v7035_v29, %v6923_v18  ;;  %8006 = vmatprep.subr.bf16.mxu0 %v15638_v61  ;;  %v6917_v61 = vadd.f32 %v17895_v53, %v18021_v45  ;;  %v6931_v18 = vadd.f32 %v17914_v49, %v18018_v21  ;;  %v15618_v53 = vld [vmem:[#allocation6 + $0x1240] ss:$16 sps:$4 sm:$0xff]  }
 0x36d   :  { %v7037_v43 = vpop.f32.mrf.mxu1  ;;  %v7136_v48 = vpop.f32.mrf.mxu0 }
 0x36e   :  { %v18051_v3 = vadd.f32 %v7037_v43, %v6925_v16  ;;  %v18053_v14 = vadd.f32 %v7136_v48, %v7024_v55  ;;  %7813 = vmatmul.mubr.bf16.vlgmr.msra.gmra.mxu0 %v20237_v59  ;;  %7900 = vmatpush1.bf16.msra.mxu1 %v15612_v52  ;;  %v15642_v48 = vld [vmem:[#allocation6 + $0x14c0] ss:$16 sps:$4 sm:$0xff]   ;;  %v6933_v55 = vadd.f32 %v17919_v38, %v18021_v45 }
 0x36f   :  { %7822 = vmatprep.mubr.bf16.mxu0 %v20238_v27  ;;  %v7039_v7 = vpop.f32.mrf.mxu1  ;;  %v7138_v24 = vpop.f32.mrf.mxu0  ;;  %7901 = vmatprep.subr.bf16.mxu1 %v15617_v23  ;;  %v15650_v23 = vld [vmem:[#allocation6 + $0x14a4] ss:$16 sps:$4 sm:$0xff]   ;;  %v7030_v16 = vadd.f32 %v7029_v20, %v6917_v61  ;;  %v6935_v38 = vadd.f32 %v17922_v11, %v18018_v21 }
 0x370   :  { %v18061_v43 = vadd.f32 %v7138_v24, %v7026_v22  ;;  %8007 = vmatpush1.bf16.msra.mxu0 %v15636_v13  ;;  %v15623_v22 = vld [vmem:[#allocation6 + $0x1224] ss:$16 sps:$4 sm:$0xff]  }
 0x371   :  { %v7043_v52 = vpop.f32.mrf.mxu1  ;;  %v7140_v29 = vpop.f32.mrf.mxu0  ;;  %7720 = vmatmul.mubr.bf16.gmra.mxu1 %v17738_v15  ;;  %8008 = vmatprep.subr.bf16.mxu0 %v15644_v37  ;;  %v15648_v37 = vld [vmem:[#allocation6 + $0x14a0] ss:$16 sps:$4 sm:$0xff]  }
 0x372   :  { %v7044_v27 = vadd.f32 %v7043_v52, %v6931_v18  ;;  %v18066_v59 = vadd.f32 %v7140_v29, %v7028_v0  ;;  %7729 = vmatprep.mubr.bf16.mxu1 %v17747_v46  ;;  %7902 = vmatpush1.bf16.msra.mxu1 %v15615_v39  ;;  %v15656_v0 = vld [vmem:[#allocation6 + $0x1484] ss:$16 sps:$4 sm:$0xff]   ;;  %v6941_v29 = vadd.f32 %v17938_v42, %v18018_v21  ;;  %v15624_v42 = vld [vmem:[#allocation6 + $0x1200] ss:$16 sps:$4 sm:$0xff]  }
 0x373   :  { %v7045_v49 = vpop.f32.mrf.mxu1  ;;  %v7142_v13 = vpop.f32.mrf.mxu0  ;;  %7903 = vmatprep.subr.bf16.mxu1 %v15620_v51  ;;  %v15621_v51 = vld [vmem:[#allocation6 + $0x1220] ss:$16 sps:$4 sm:$0xff]   ;;  %v15626_v52 = vld [vmem:[#allocation6 + $0x1204] ss:$16 sps:$4 sm:$0xff]  }
 0x374   :  { %v7046_v24 = vadd.f32 %v7045_v49, %v6933_v55  ;;  %v18071_v6 = vadd.f32 %v7142_v13, %v7030_v16  ;;  %8009 = vmatpush1.bf16.msra.mxu0 %v15642_v48  ;;  %v6927_v48 = vadd.f32 %v17911_v12, %v18021_v45  ;;  %v6943_v16 = vadd.f32 %v17943_v44, %v18021_v45  ;;  %v15662_v13 = vld [vmem:[#allocation6 + $0x1464] ss:$16 sps:$4 sm:$0xff]  }
 0x375   :  { %v7047_v20 = vpop.f32.mrf.mxu1  ;;  %v7146_v61 = vpop.f32.mrf.mxu0  ;;  %8010 = vmatprep.subr.bf16.mxu0 %v15650_v23  ;;  %v6945_v44 = vadd.f32 %v17946_v60, %v18018_v21 }
 0x376   :  { %v18073_v18 = vadd.f32 %v7047_v20, %v6935_v38  ;;  %v18075_v39 = vadd.f32 %v7146_v61, %v7034_v28  ;;  %7823 = vmatmul.mubr.bf16.gmra.mxu0 %v20240_v34  ;;  %7904 = vmatpush1.bf16.msra.mxu1 %v15618_v53  ;;  %v15654_v28 = vld [vmem:[#allocation6 + $0x1480] ss:$16 sps:$4 sm:$0xff]   ;;  %v15629_v20 = vld [vmem:[#allocation6 + $0x13e4] ss:$16 sps:$4 sm:$0xff]  }
 0x377   :  { %7832 = vmatprep.mubr.bf16.mxu0 %v20241_v63  ;;  %v7049_v11 = vpop.f32.mrf.mxu1  ;;  %v7148_v55 = vpop.f32.mrf.mxu0  ;;  %7905 = vmatprep.subr.bf16.mxu1 %v15623_v22  ;;  %v7040_v22 = vadd.f32 %v7039_v7, %v6927_v48  ;;  %v15660_v7 = vld [vmem:[#allocation6 + $0x1460] ss:$16 sps:$4 sm:$0xff]  }
 0x378   :  { %v18083_v23 = vadd.f32 %v7148_v55, %v7036_v1  ;;  %8011 = vmatpush1.bf16.msra.mxu0 %v15648_v37 }
 0x379   :  { %v7053_v53 = vpop.f32.mrf.mxu1  ;;  %v7150_v49 = vpop.f32.mrf.mxu0  ;;  %7730 = vmatmul.mubr.bf16.gmra.mxu1 %v17767_v19  ;;  %8012 = vmatprep.subr.bf16.mxu0 %v15656_v0 }
 0x37a   :  { %v7054_v38 = vadd.f32 %v7053_v53, %v6941_v29  ;;  %v18089_v12 = vadd.f32 %v7150_v49, %v18051_v3  ;;  %7739 = vmatprep.mubr.bf16.mxu1 %v17776_v10  ;;  %7906 = vmatpush1.bf16.msra.mxu1 %v15621_v51  ;;  %v15668_v3 = vld [vmem:[#allocation6 + $0x1444] ss:$16 sps:$4 sm:$0xff]   ;;  %v6951_v49 = vadd.f32 %v17954_v4, %v18018_v21  ;;  %v15630_v4 = vld [vmem:[#allocation6 + $0x13c0] ss:$16 sps:$4 sm:$0xff]  }
 0x37b   :  { %v7055_v1 = vpop.f32.mrf.mxu1  ;;  %v7152_v37 = vpop.f32.mrf.mxu0  ;;  %7907 = vmatprep.subr.bf16.mxu1 %v15626_v52  ;;  %v15627_v52 = vld [vmem:[#allocation6 + $0x13e0] ss:$16 sps:$4 sm:$0xff]   ;;  %v15632_v53 = vld [vmem:[#allocation6 + $0x13c4] ss:$16 sps:$4 sm:$0xff]  }
 0x37c   :  { %v7056_v61 = vadd.f32 %v7055_v1, %v6943_v16  ;;  %v18094_v55 = vadd.f32 %v7152_v37, %v7040_v22  ;;  %8013 = vmatpush1.bf16.msra.mxu0 %v15654_v28  ;;  %v6937_v28 = vadd.f32 %v17928_v47, %v18021_v45  ;;  %v6953_v22 = vadd.f32 %v17959_v36, %v18021_v45  ;;  %v15674_v37 = vld [vmem:[#allocation6 + $0x1424] ss:$16 sps:$4 sm:$0xff]  }
 0x37d   :  { %v7057_v0 = vpop.f32.mrf.mxu1  ;;  %v7156_v48 = vpop.f32.mrf.mxu0  ;;  %8014 = vmatprep.subr.bf16.mxu0 %v15662_v13  ;;  %v6955_v36 = vadd.f32 %v17962_v5, %v18018_v21 }
 0x37e   :  { %v18096_v29 = vadd.f32 %v7057_v0, %v6945_v44  ;;  %v18098_v51 = vadd.f32 %v7156_v48, %v7044_v27  ;;  %7833 = vmatmul.mubr.bf16.gmra.mxu0 %v20242_v62  ;;  %7908 = vmatpush1.bf16.msra.mxu1 %v15624_v42  ;;  %v15666_v27 = vld [vmem:[#allocation6 + $0x1440] ss:$16 sps:$4 sm:$0xff]   ;;  %v15635_v48 = vld [vmem:[#allocation6 + $0x13a4] ss:$16 sps:$4 sm:$0xff]  }
 0x37f   :  { %7842 = vmatprep.mubr.bf16.mxu0 %v20243_v33  ;;  %v7059_v60 = vpop.f32.mrf.mxu1  ;;  %v7158_v16 = vpop.f32.mrf.mxu0  ;;  %7909 = vmatprep.subr.bf16.mxu1 %v15629_v20  ;;  %v7050_v20 = vadd.f32 %v7049_v11, %v6937_v28  ;;  %v20254_v0 = vld [vmem:[#allocation75_spill] sm:$0xff] }
 0x380   :  { %v18106_v13 = vadd.f32 %v7158_v16, %v7046_v24  ;;  %8015 = vmatpush1.bf16.msra.mxu0 %v15660_v7  ;;  %v15672_v11 = vld [vmem:[#allocation6 + $0x1420] ss:$16 sps:$4 sm:$0xff]  }
 0x381   :  { %v7063_v42 = vpop.f32.mrf.mxu1  ;;  %v7160_v1 = vpop.f32.mrf.mxu0  ;;  %7740 = vmatmul.mubr.bf16.gmra.mxu1 %v17796_v31  ;;  %8016 = vmatprep.subr.bf16.mxu0 %v15668_v3 }
 0x382   :  { %v7064_v44 = vadd.f32 %v7063_v42, %v6951_v49  ;;  %v18112_v47 = vadd.f32 %v7160_v1, %v18073_v18  ;;  %7749 = vmatprep.mubr.bf16.mxu1 %v20254_v0  ;;  %7910 = vmatpush2.bf16.msra.mxu1 %v15627_v52  ;;  %v15680_v18 = vld [vmem:[#allocation6 + $0x1404] ss:$16 sps:$4 sm:$0xff]   ;;  %v15633_v52 = vld [vmem:[#allocation6 + $0x13a0] ss:$16 sps:$4 sm:$0xff]  }
 0x383   :  { %v7065_v24 = vpop.f32.mrf.mxu1  ;;  %v7162_v7 = vpop.f32.mrf.mxu0  ;;  %7911 = vmatprep.subr.bf16.mxu1 %v15632_v53 }
 0x384   :  { %v7066_v16 = vadd.f32 %v7065_v24, %v6953_v22  ;;  %v18117_v33 = vadd.f32 %v7162_v7, %v7050_v20  ;;  %8017 = vmatpush1.bf16.msra.mxu0 %v15666_v27  ;;  %v15641_v22 = vld [vmem:[#allocation6 + $0x1384] ss:$16 sps:$4 sm:$0xff]  }
 0x385   :  { %v7067_v3 = vpop.f32.mrf.mxu1  ;;  %v7166_v28 = vpop.f32.mrf.mxu0  ;;  %8018 = vmatprep.subr.bf16.mxu0 %v15674_v37  ;;  %v20255_v27 = vld [vmem:[#allocation87_spill] sm:$0xff]  ;;  %v6961_v37 = vadd.f32 %v17970_v32, %v18018_v21 }
 0x386   :  { %v7068_v49 = vadd.f32 %v7067_v3, %v6955_v36  ;;  %v18119_v42 = vadd.f32 %v7166_v28, %v7054_v38  ;;  %7843 = vmatmul.mubr.bf16.gmra.mxu0 %v17820_v41  ;;  %7912 = vmatpush2.bf16.msra.mxu1 %v15630_v4  ;;  %v6947_v1 = vadd.f32 %v20255_v27, %v18021_v45  ;;  %v15678_v38 = vld [vmem:[#allocation6 + $0x1400] ss:$16 sps:$4 sm:$0xff]   ;;  %v20256_v36 = vld [vmem:[#allocation78_spill] sm:$0xff] }
 0x387   :  { %7852 = vmatprep.mubr.bf16.mxu0 %v17834_v50  ;;  %v7069_v53 = vpop.f32.mrf.mxu1  ;;  %v7168_v5 = vpop.f32.mrf.mxu0  ;;  %7913 = vmatprep.subr.bf16.mxu1 %v15635_v48  ;;  %v6963_v4 = vadd.f32 %v17975_v35, %v18021_v45  ;;  %v15686_v48 = vld [vmem:[#allocation6 + $0x2ec] ss:$16 sps:$4 sm:$0xff]   ;;  %v15639_v32 = vld [vmem:[#allocation6 + $0x1380] ss:$16 sps:$4 sm:$0xff]   ;;  %v6965_v35 = vadd.f32 %v17978_v17, %v18018_v21 }
 0x388   :  { %v18127_v20 = vadd.f32 %v7168_v5, %v7056_v61  ;;  %8019 = vmatpush1.bf16.msra.mxu0 %v15672_v11  ;;  %v7060_v3 = vadd.f32 %v7059_v60, %v6947_v1  ;;  %v20257_v50 = vld [vmem:[#allocation86_spill] sm:$0xff]  ;;  %v15647_v5 = vld [vmem:[#allocation6 + $0x1364] ss:$16 sps:$4 sm:$0xff]  }
 0x389   :  { %v7073_v24 = vpop.f32.mrf.mxu1  ;;  %v7170_v7 = vpop.f32.mrf.mxu0  ;;  %7750 = vmatmul.mubr.bf16.gmra.mxu1 %v20256_v36  ;;  %8020 = vmatprep.subr.bf16.mxu0 %v15680_v18  ;;  %v20258_v1 = vld [vmem:[#allocation29_spill] sm:$0xff] }
 0x38a   :  { %v7074_v28 = vadd.f32 %v7073_v24, %v6961_v37  ;;  %v18133_v27 = vadd.f32 %v7170_v7, %v18096_v29  ;;  %7759 = vmatprep.mubr.bf16.mxu1 %v20257_v50  ;;  %7914 = vmatpush2.bf16.msra.mxu1 %v15633_v52  ;;  %v2813_v29 = vrot.slane %v20258_v1, 4  ;;  %v15645_v52 = vld [vmem:[#allocation6 + $0x1360] ss:$16 sps:$4 sm:$0xff]  }
 0x38b   :  { %v7075_v61 = vpop.f32.mrf.mxu1  ;;  %v7172_v11 = vpop.f32.mrf.mxu0  ;;  %7915 = vmatprep.subr.bf16.mxu1 %v15641_v22 }
 0x38c   :  { %v7076_v41 = vadd.f32 %v7075_v61, %v6963_v4  ;;  %v18138_v62 = vadd.f32 %v7172_v11, %v7060_v3  ;;  %8021 = vmatpush1.bf16.msra.mxu0 %v15678_v38  ;;  %v15653_v4 = vld [vmem:[#allocation6 + $0x1344] ss:$16 sps:$4 sm:$0xff]   ;;  %v20259_v38 = vld [vmem:[#allocation88_spill] sm:$0xff]  ;;  %v6971_v3 = vadd.f32 %v17987_v26, %v18018_v21  ;;  %v20260_v11 = vrot.slane %v17530_v58, 4  ;;  %v15651_v26 = vld [vmem:[#allocation6 + $0x1340] ss:$16 sps:$4 sm:$0xff]  }
 0x38d   :  { %v7077_v60 = vpop.f32.mrf.mxu1  ;;  %v7176_v18 = vpop.f32.mrf.mxu0  ;;  %8232 = vmatprep.subr.bf16.mxu0 %v15686_v48  ;;  %v6957_v7 = vadd.f32 %v20259_v38, %v18021_v45  ;;  %v6975_v38 = vadd.f32 %v18003_v57, %v18018_v21  ;;  %v20264_v57 = vld [vmem:[#allocation89_spill] sm:$0xff] }
 0x38e   :  { %v7078_v37 = vadd.f32 %v7077_v60, %v6965_v35  ;;  %v18141_v24 = vadd.f32 %v7176_v18, %v7064_v44  ;;  %7853 = vmatmul.mubr.bf16.gmra.mxu0 %v17842_v8  ;;  %7916 = vmatpush2.bf16.msra.mxu1 %v15639_v32  ;;  %v6973_v44 = vadd.f32 %v17999_v9, %v18021_v45  ;;  %v15659_v9 = vld [vmem:[#allocation6 + $0x1324] ss:$16 sps:$4 sm:$0xff]  }
 0x38f   :  { %7862 = vmatprep.mubr.bf16.mxu0 %v17858_v25  ;;  %v7079_v22 = vpop.f32.mrf.mxu1  ;;  %v7178_v17 = vpop.f32.mrf.mxu0  ;;  %7917 = vmatprep.subr.bf16.mxu1 %v15647_v5  ;;  %v18157_v5 = vsel %vm2722_vm1, %v20260_v11, %v2813_v29  ;;  %v7070_v35 = vadd.f32 %v7069_v53, %v6957_v7 }
 0x390   :  { %v18149_v48 = vadd.f32 %v7178_v17, %v7066_v16  ;;  %20261 = vst [vmem:[#allocation87_spill] sm:$0xff] %v18157_v5 }
 0x391   :  { %v7083_v61 = vpop.f32.mrf.mxu1  ;;  %v7180_v32 = vpop.f32.mrf.mxu0  ;;  %7760 = vmatmul.mubr.bf16.gmra.mxu1 %v17847_v2 }
 0x392   :  { %v7084_v60 = vadd.f32 %v7083_v61, %v6971_v3  ;;  %v18159_v18 = vadd.f32 %v7180_v32, %v7068_v49  ;;  %7769 = vmatprep.mubr.bf16.mxu1 %v18157_v5  ;;  %7918 = vmatpush2.bf16.msra.mxu1 %v15645_v52  ;;  %v20262_v49 = vld [vmem:[#allocation83_spill] sm:$0xff]  ;;  %v20263_v3 = vld [vmem:[#allocation90_spill] sm:$0xff] }
 0x393   :  { %v7085_v16 = vpop.f32.mrf.mxu1  ;;  %v7182_v17 = vpop.f32.mrf.mxu0  ;;  %7919 = vmatprep.subr.bf16.mxu1 %v15653_v4  ;;  %v15657_v52 = vld [vmem:[#allocation6 + $0x1320] ss:$16 sps:$4 sm:$0xff]   ;;  %v15665_v32 = vld [vmem:[#allocation6 + $0x1304] ss:$16 sps:$4 sm:$0xff]  }
 0x394   :  { %v7086_v50 = vadd.f32 %v7085_v16, %v6973_v44  ;;  %v18164_v25 = vadd.f32 %v7182_v17, %v7070_v35  ;;  %v6967_v44 = vadd.f32 %v20264_v57, %v18021_v45  ;;  %v6981_v35 = vadd.f32 %v18024_v54, %v18018_v21  ;;  %v15663_v57 = vld [vmem:[#allocation6 + $0x1300] ss:$16 sps:$4 sm:$0xff]  }
 0x395   :  { %v7087_v29 = vpop.f32.mrf.mxu1  ;;  %v7186_v11 = vpop.f32.mrf.mxu0 }
 0x396   :  { %v7088_v53 = vadd.f32 %v7087_v29, %v6975_v38  ;;  %v18166_v7 = vadd.f32 %v7186_v11, %v7074_v28  ;;  %7863 = vmatmul.mubr.bf16.gmra.mxu0 %v20262_v49  ;;  %7920 = vmatpush2.bf16.msra.mxu1 %v15651_v26  ;;  %v6983_v28 = vadd.f32 %v18033_v30, %v18021_v45  ;;  %v20265_v38 = vld [vmem:[#allocation84_spill] sm:$0xff] }
 0x397   :  { %7872 = vmatprep.mubr.bf16.mxu0 %v20263_v3  ;;  %v7089_v61 = vpop.f32.mrf.mxu1  ;;  %v7188_v4 = vpop.f32.mrf.mxu0  ;;  %7921 = vmatprep.subr.bf16.mxu1 %v15659_v9  ;;  %v7080_v29 = vadd.f32 %v7079_v22, %v6967_v44  ;;  %v20266_v9 = vld [vmem:[#allocation55_spill] sm:$0xff]  ;;  %v20267_v3 = vld [vmem:[#allocation85_spill] sm:$0xff]  ;;  %v6985_v30 = vadd.f32 %v18038_v40, %v18018_v21 }
 0x398   :  { %v18174_v16 = vadd.f32 %v7188_v4, %v7076_v41  ;;  %v2817_v49 = vrot.slane %v20267_v3, 4  ;;  %v15671_v4 = vld [vmem:[#allocation6 + $0xec] ss:$16 sps:$4 sm:$0xff]  }
 0x399   :  { %v7093_v17 = vpop.f32.mrf.mxu1  ;;  %v7190_v26 = vpop.f32.mrf.mxu0  ;;  %7770 = vmatmul.mubr.bf16.gmra.mxu1 %v20265_v38 }
 0x39a   :  { %v7094_v11 = vadd.f32 %v7093_v17, %v6981_v35  ;;  %v18179_v5 = vadd.f32 %v7190_v26, %v7078_v37  ;;  %7922 = vmatpush2.bf16.msra.mxu1 %v15657_v52  ;;  %7925 = vmatprep.mubr.bf16.mxu1 %v20266_v9  ;;  %v20268_v52 = vld [vmem:[#allocation91_spill] sm:$0xff]  ;;  %v20269_v17 = vrot.slane %v20265_v38, 4 }
 0x39b   :  { %v7095_v54 = vpop.f32.mrf.mxu1  ;;  %v7192_v41 = vpop.f32.mrf.mxu0  ;;  %7923 = vmatprep.subr.bf16.mxu1 %v15665_v32  ;;  %v15669_v32 = vld [vmem:[#allocation6 + $0xe8] ss:$16 sps:$4 sm:$0xff]  }
 0x39c   :  { %v7096_v8 = vadd.f32 %v7095_v54, %v6983_v28  ;;  %v18185_v63 = vadd.f32 %v7192_v41, %v7080_v29  ;;  %v18193_v26 = vsel %vm2722_vm1, %v20269_v17, %v2817_v49  ;;  %v15677_v28 = vld [vmem:[#allocation6 + $0xcc] ss:$16 sps:$4 sm:$0xff]  }
 0x39d   :  { %v7097_v22 = vpop.f32.mrf.mxu1  ;;  %v7196_v44 = vpop.f32.mrf.mxu0  ;;  %20270 = vst [vmem:[#allocation88_spill] sm:$0xff] %v18193_v26  ;;  %v20271_v29 = vld [vmem:[#allocation92_spill] sm:$0xff] }
 0x39e   :  { %v7098_v37 = vadd.f32 %v7097_v22, %v6985_v30  ;;  %v18187_v35 = vadd.f32 %v7196_v44, %v7084_v60  ;;  %7873 = vmatmul.mubr.bf16.gmra.mxu0 %v20268_v52  ;;  %7924 = vmatpush2.bf16.msra.mxu1 %v15663_v57  ;;  %v6977_v54 = vadd.f32 %v20271_v29, %v18021_v45  ;;  %v20272_v22 = vld [vmem:[#allocation54_spill] sm:$0xff]  ;;  %v20273_v44 = vld [vmem:[#allocation41_spill] sm:$0xff] }
 0x39f   :  { %7882 = vmatprep.mubr.bf16.mxu0 %v18193_v26  ;;  %v7099_v21 = vpop.f32.mrf.mxu1  ;;  %v7198_v40 = vpop.f32.mrf.mxu0  ;;  %8119 = vmatprep.subr.bf16.mxu1 %v15671_v4  ;;  %v2815_v49 = vrot.slane %v20273_v44, 4  ;;  %v20274_v52 = vld [vmem:[#allocation57_spill] sm:$0xff]  ;;  %v15675_v4 = vld [vmem:[#allocation6 + $0xc8] ss:$16 sps:$4 sm:$0xff]  }
 0x3a0   :  { %v18198_v60 = vadd.f32 %v7198_v40, %v7086_v50  ;;  %v7090_v17 = vadd.f32 %v7089_v61, %v6977_v54  ;;  %v15683_v50 = vld [vmem:[#allocation6 + $0xac] ss:$16 sps:$4 sm:$0xff]  }
 0x3a1   :  { %v7200_v41 = vpop.f32.mrf.mxu0  ;;  %v7249_v30 = vpop.f32.mrf.mxu1  ;;  %7926 = vmatmul.mubr.bf16.vlgmr.msra.gmra.mxu1 %v20272_v22  ;;  %v20275_v22 = vld [vmem:[#allocation40_spill] sm:$0xff] }
 0x3a2   :  { %v18202_v57 = vadd.f32 %v7200_v41, %v7088_v53  ;;  %v7250_v26 = vadd.f32 %v7249_v30, %v18053_v14  ;;  %7935 = vmatprep.mubr.bf16.mxu1 %v20274_v52  ;;  %8120 = vmatpush1.bf16.msra.mxu1 %v15669_v32  ;;  %v20276_v61 = vrot.slane %v20275_v22, 4  ;;  %v20278_v41 = vmov 0  }
 0x3a3   :  { %v7202_v34 = vpop.f32.mrf.mxu0  ;;  %v7251_v0 = vpop.f32.mrf.mxu1  ;;  %8121 = vmatprep.subr.bf16.mxu1 %v15677_v28  ;;  %v15681_v28 = vld [vmem:[#allocation6 + $0xa8] ss:$16 sps:$4 sm:$0xff]  }
 0x3a4   :  { %v18206_v40 = vadd.f32 %v7202_v34, %v7090_v17  ;;  %v7252_v29 = vadd.f32 %v7251_v0, %v18061_v43  ;;  %v18212_v53 = vsel %vm2722_vm1, %v20276_v61, %v2815_v49  ;;  %v15689_v43 = vld [vmem:[#allocation6 + $0x8c] ss:$16 sps:$4 sm:$0xff]   ;;  %v6987_v0 = vadd.f32 %v18047_v56, %v18021_v45  ;;  %v15687_v61 = vld [vmem:[#allocation6 + $0x88] ss:$16 sps:$4 sm:$0xff]  }
 0x3a5   :  { %v7206_v10 = vpop.f32.mrf.mxu0  ;;  %v7253_v46 = vpop.f32.mrf.mxu1  ;;  %20277 = vst [vmem:[#allocation89_spill] sm:$0xff] %v18212_v53  ;;  %v15684_v45 = vld [vmem:[#allocation6 + $0x2e8] ss:$16 sps:$4 sm:$0xff]  }
 0x3a6   :  { %v18214_v14 = vadd.f32 %v7206_v10, %v7094_v11  ;;  %v7254_v32 = vadd.f32 %v7253_v46, %v18066_v59  ;;  %7883 = vmatmul.mubr.bf16.gmra.mxu0 %v18212_v53  ;;  %8122 = vmatpush1.bf16.msra.mxu1 %v15675_v4  ;;  %v20279_v46 = vld [vmem:[#allocation56_spill] sm:$0xff]  ;;  %v7100_v59 = vadd.f32 %v7099_v21, %v6987_v0  ;;  %v20281_v0 = vld [vmem:[#allocation62_spill] sm:$0xff] }
 0x3a7   :  { %v7208_v54 = vpop.f32.mrf.mxu0  ;;  %v7255_v34 = vpop.f32.mrf.mxu1  ;;  %8123 = vmatprep.subr.bf16.mxu1 %v15683_v50  ;;  %8038 = vmatprep.mubr.bf16.mxu0 %v20278_v41  ;;  %v20280_v50 = vld [vmem:[#allocation33_spill] sm:$0xff] }
 0x3a8   :  { %v18221_v30 = vadd.f32 %v7208_v54, %v7096_v8  ;;  %v7256_v10 = vadd.f32 %v7255_v34, %v18071_v6  ;;  %v15695_v8 = vld [vmem:[#allocation6 + $0x6c] ss:$16 sps:$4 sm:$0xff]  }
 0x3a9   :  { %v7210_v11 = vpop.f32.mrf.mxu0  ;;  %v7259_v49 = vpop.f32.mrf.mxu1  ;;  %7936 = vmatmul.mubr.bf16.gmra.mxu1 %v20279_v46  ;;  %v15692_v54 = vld [vmem:[#allocation6 + $0x2cc] ss:$16 sps:$4 sm:$0xff]  }
 0x3aa   :  { %v18225_v17 = vadd.f32 %v7210_v11, %v7098_v37  ;;  %v7260_v4 = vadd.f32 %v7259_v49, %v18075_v39  ;;  %7945 = vmatprep.mubr.bf16.mxu1 %v20280_v50  ;;  %8124 = vmatpush1.bf16.msra.mxu1 %v15681_v28  ;;  %v15693_v39 = vld [vmem:[#allocation6 + $0x68] ss:$16 sps:$4 sm:$0xff]  }
 0x3ab   :  { %v7212_v53 = vpop.f32.mrf.mxu0  ;;  %v7261_v52 = vpop.f32.mrf.mxu1  ;;  %8125 = vmatprep.subr.bf16.mxu1 %v15689_v43  ;;  %v15690_v49 = vld [vmem:[#allocation6 + $0x2c8] ss:$16 sps:$4 sm:$0xff]   ;;  %v15701_v43 = vld [vmem:[#allocation6 + $0x4c] ss:$16 sps:$4 sm:$0xff]  }
 0x3ac   :  { %v18229_v56 = vadd.f32 %v7212_v53, %v7100_v59  ;;  %v7262_v6 = vadd.f32 %v7261_v52, %v18083_v23  ;;  %v15698_v23 = vld [vmem:[#allocation6 + $0x2ac] ss:$16 sps:$4 sm:$0xff]  }
 0x3ad   :  { %v7263_v34 = vpop.f32.mrf.mxu1 }
 0x3ae   :  { %v7264_v37 = vadd.f32 %v7263_v34, %v18089_v12  ;;  %v7362_v21 = vpop.f32.mrf.mxu0  ;;  %8039 = vmatmul.mubr.bf16.vlgmr.msra.gmra.mxu0 %v20281_v0  ;;  %8126 = vmatpush1.bf16.msra.mxu1 %v15687_v61  ;;  %v20282_v34 = vld [vmem:[#allocation26_spill] sm:$0xff] }
 0x3af   :  { %v18234_v28 = vadd.f32 %v7362_v21, %v7250_v26  ;;  %8233 = vmatpush1.bf16.msra.mxu0 %v15684_v45  ;;  %v7265_v11 = vpop.f32.mrf.mxu1  ;;  %8127 = vmatprep.subr.bf16.mxu1 %v15695_v8  ;;  %v20283_v45 = vld [vmem:[#allocation34_spill] sm:$0xff] }
 0x3b0   :  { %v7266_v53 = vadd.f32 %v7265_v11, %v18094_v55  ;;  %v7364_v59 = vpop.f32.mrf.mxu0  ;;  %8234 = vmatprep.subr.bf16.mxu0 %v15692_v54  ;;  %8048 = vmatprep.mubr.bf16.mxu0 %v20278_v41  ;;  %v15699_v8 = vld [vmem:[#allocation6 + $0x48] ss:$16 sps:$4 sm:$0xff]   ;;  %v15707_v11 = vld [vmem:[#allocation6 + $0x2c] ss:$16 sps:$4 sm:$0xff]  }
 0x3b1   :  { %v18238_v12 = vadd.f32 %v7364_v59, %v7252_v29  ;;  %v7269_v52 = vpop.f32.mrf.mxu1  ;;  %7946 = vmatmul.mubr.bf16.gmra.mxu1 %v20282_v34  ;;  %v15696_v54 = vld [vmem:[#allocation6 + $0x2a8] ss:$16 sps:$4 sm:$0xff]   ;;  %v15704_v0 = vld [vmem:[#allocation6 + $0x28c] ss:$16 sps:$4 sm:$0xff]  }
 0x3b2   :  { %v7270_v26 = vadd.f32 %v7269_v52, %v18098_v51  ;;  %v7366_v61 = vpop.f32.mrf.mxu0  ;;  %7955 = vmatprep.mubr.bf16.mxu1 %v20283_v45  ;;  %8128 = vmatpush1.bf16.msra.mxu1 %v15693_v39 }
 0x3b3   :  { %v18243_v21 = vadd.f32 %v7366_v61, %v7254_v32  ;;  %8235 = vmatpush1.bf16.msra.mxu0 %v15690_v49  ;;  %v7271_v55 = vpop.f32.mrf.mxu1  ;;  %8129 = vmatprep.subr.bf16.mxu1 %v15701_v43  ;;  %v15705_v32 = vld [vmem:[#allocation6 + $0x28] ss:$16 sps:$4 sm:$0xff]  }
 0x3b4   :  { %v7272_v29 = vadd.f32 %v7271_v55, %v18106_v13  ;;  %v7368_v59 = vpop.f32.mrf.mxu0  ;;  %8236 = vmatprep.subr.bf16.mxu0 %v15698_v23  ;;  %v15702_v43 = vld [vmem:[#allocation6 + $0x288] ss:$16 sps:$4 sm:$0xff]   ;;  %v15713_v13 = vld [vmem:[#allocation6 + $0xc] ss:$16 sps:$4 sm:$0xff]  }
 0x3b5   :  { %v18246_v34 = vadd.f32 %v7368_v59, %v7256_v10  ;;  %v7273_v51 = vpop.f32.mrf.mxu1  ;;  %v15710_v10 = vld [vmem:[#allocation6 + $0x26c] ss:$16 sps:$4 sm:$0xff]   ;;  %v20284_v59 = vld [vmem:[#allocation25_spill] sm:$0xff] }
 0x3b6   :  { %v7274_v52 = vadd.f32 %v7273_v51, %v18112_v47  ;;  %v7372_v45 = vpop.f32.mrf.mxu0  ;;  %8049 = vmatmul.mubr.bf16.gmra.mxu0 %v17738_v15  ;;  %8130 = vmatpush1.bf16.msra.mxu1 %v15699_v8  ;;  %v20285_v8 = vld [vmem:[#allocation27_spill] sm:$0xff]  ;;  %v15719_v51 = vld [vmem:[#allocation6 + $0x1ec] ss:$16 sps:$4 sm:$0xff]  }
 0x3b7   :  { %v18250_v39 = vadd.f32 %v7372_v45, %v7260_v4  ;;  %8237 = vmatpush1.bf16.msra.mxu0 %v15696_v54  ;;  %v7275_v49 = vpop.f32.mrf.mxu1  ;;  %8131 = vmatprep.subr.bf16.mxu1 %v15707_v11  ;;  %v15711_v54 = vld [vmem:[#allocation6 + $0x8] ss:$16 sps:$4 sm:$0xff]  }
 0x3b8   :  { %v7276_v23 = vadd.f32 %v7275_v49, %v18117_v33  ;;  %v7374_v61 = vpop.f32.mrf.mxu0  ;;  %8238 = vmatprep.subr.bf16.mxu0 %v15704_v0  ;;  %8058 = vmatprep.mubr.bf16.mxu0 %v20278_v41  ;;  %v15708_v0 = vld [vmem:[#allocation6 + $0x268] ss:$16 sps:$4 sm:$0xff]  }
 0x3b9   :  { %v18254_v47 = vadd.f32 %v7374_v61, %v7262_v6  ;;  %v7279_v55 = vpop.f32.mrf.mxu1  ;;  %7956 = vmatmul.mubr.bf16.gmra.mxu1 %v20284_v59  ;;  %v15716_v61 = vld [vmem:[#allocation6 + $0x24c] ss:$16 sps:$4 sm:$0xff]  }
 0x3ba   :  { %v7280_v4 = vadd.f32 %v7279_v55, %v18119_v42  ;;  %v7376_v45 = vpop.f32.mrf.mxu0  ;;  %7965 = vmatprep.mubr.bf16.mxu1 %v20285_v8  ;;  %8132 = vmatpush1.bf16.msra.mxu1 %v15705_v32 }
 0x3bb   :  { %v18259_v11 = vadd.f32 %v7376_v45, %v7264_v37  ;;  %8239 = vmatpush1.bf16.msra.mxu0 %v15702_v43  ;;  %v7281_v33 = vpop.f32.mrf.mxu1  ;;  %8133 = vmatprep.subr.bf16.mxu1 %v15713_v13  ;;  %v15717_v37 = vld [vmem:[#allocation6 + $0x1e8] ss:$16 sps:$4 sm:$0xff]  }
 0x3bc   :  { %v7282_v6 = vadd.f32 %v7281_v33, %v18127_v20  ;;  %v7378_v49 = vpop.f32.mrf.mxu0  ;;  %8240 = vmatprep.subr.bf16.mxu0 %v15710_v10  ;;  %v15714_v13 = vld [vmem:[#allocation6 + $0x248] ss:$16 sps:$4 sm:$0xff]   ;;  %v15725_v20 = vld [vmem:[#allocation6 + $0x1cc] ss:$16 sps:$4 sm:$0xff]  }
 0x3bd   :  { %v18262_v59 = vadd.f32 %v7378_v49, %v7266_v53  ;;  %v7283_v42 = vpop.f32.mrf.mxu1  ;;  %v15722_v53 = vld [vmem:[#allocation6 + $0x22c] ss:$16 sps:$4 sm:$0xff]  }
 0x3be   :  { %v7284_v55 = vadd.f32 %v7283_v42, %v18133_v27  ;;  %v7382_v8 = vpop.f32.mrf.mxu0  ;;  %8059 = vmatmul.mubr.bf16.gmra.mxu0 %v17767_v19  ;;  %8134 = vmatpush1.bf16.msra.mxu1 %v15711_v54  ;;  %v20286_v49 = vld [vmem:[#allocation36_spill] sm:$0xff] }
 0x3bf   :  { %v18266_v32 = vadd.f32 %v7382_v8, %v7270_v26  ;;  %8241 = vmatpush1.bf16.msra.mxu0 %v15708_v0  ;;  %v7285_v43 = vpop.f32.mrf.mxu1  ;;  %8135 = vmatprep.subr.bf16.mxu1 %v15719_v51  ;;  %v20287_v54 = vld [vmem:[#allocation28_spill] sm:$0xff] }
 0x3c0   :  { %v7286_v10 = vadd.f32 %v7285_v43, %v18138_v62  ;;  %v7384_v45 = vpop.f32.mrf.mxu0  ;;  %8242 = vmatprep.subr.bf16.mxu0 %v15716_v61  ;;  %8068 = vmatprep.mubr.bf16.mxu0 %v20278_v41  ;;  %v15723_v0 = vld [vmem:[#allocation6 + $0x1c8] ss:$16 sps:$4 sm:$0xff]   ;;  %v15731_v42 = vld [vmem:[#allocation6 + $0x1ac] ss:$16 sps:$4 sm:$0xff]  }
 0x3c1   :  { %v18270_v27 = vadd.f32 %v7384_v45, %v7272_v29  ;;  %v7289_v33 = vpop.f32.mrf.mxu1  ;;  %7966 = vmatmul.mubr.bf16.gmra.mxu1 %v20286_v49  ;;  %v15720_v61 = vld [vmem:[#allocation6 + $0x228] ss:$16 sps:$4 sm:$0xff]   ;;  %v15728_v45 = vld [vmem:[#allocation6 + $0x20c] ss:$16 sps:$4 sm:$0xff]  }
 0x3c2   :  { %v7290_v26 = vadd.f32 %v7289_v33, %v18141_v24  ;;  %v7386_v8 = vpop.f32.mrf.mxu0  ;;  %7975 = vmatprep.mubr.bf16.mxu1 %v20287_v54  ;;  %8136 = vmatpush2.bf16.msra.mxu1 %v15717_v37 }
 0x3c3   :  { %v18275_v51 = vadd.f32 %v7386_v8, %v7274_v52  ;;  %8243 = vmatpush1.bf16.msra.mxu0 %v15714_v13  ;;  %v7291_v62 = vpop.f32.mrf.mxu1  ;;  %8137 = vmatprep.subr.bf16.mxu1 %v15725_v20  ;;  %v15729_v52 = vld [vmem:[#allocation6 + $0x1a8] ss:$16 sps:$4 sm:$0xff]  }
 0x3c4   :  { %v7292_v29 = vadd.f32 %v7291_v62, %v18149_v48  ;;  %v7388_v43 = vpop.f32.mrf.mxu0  ;;  %8244 = vmatprep.subr.bf16.mxu0 %v15722_v53  ;;  %v15726_v20 = vld [vmem:[#allocation6 + $0x208] ss:$16 sps:$4 sm:$0xff]   ;;  %v15737_v48 = vld [vmem:[#allocation6 + $0x18c] ss:$16 sps:$4 sm:$0xff]  }
 0x3c5   :  { %v18278_v49 = vadd.f32 %v7388_v43, %v7276_v23  ;;  %v7293_v24 = vpop.f32.mrf.mxu1  ;;  %v15734_v23 = vld [vmem:[#allocation6 + $0x3ec] ss:$16 sps:$4 sm:$0xff]   ;;  %v20288_v43 = vld [vmem:[#allocation37_spill] sm:$0xff] }
 0x3c6   :  { %v7294_v33 = vadd.f32 %v7293_v24, %v18159_v18  ;;  %v7392_v54 = vpop.f32.mrf.mxu0  ;;  %8069 = vmatmul.mubr.bf16.gmra.mxu0 %v17796_v31  ;;  %8138 = vmatpush2.bf16.msra.mxu1 %v15723_v0  ;;  %v15735_v0 = vld [vmem:[#allocation6 + $0x188] ss:$16 sps:$4 sm:$0xff]  }
 0x3c7   :  { %v18282_v37 = vadd.f32 %v7392_v54, %v7280_v4  ;;  %8245 = vmatpush1.bf16.msra.mxu0 %v15720_v61  ;;  %v7295_v13 = vpop.f32.mrf.mxu1  ;;  %8139 = vmatprep.subr.bf16.mxu1 %v15731_v42  ;;  %v15732_v42 = vld [vmem:[#allocation6 + $0x3e8] ss:$16 sps:$4 sm:$0xff]  }
 0x3c8   :  { %v7296_v53 = vadd.f32 %v7295_v13, %v18164_v25  ;;  %v7394_v8 = vpop.f32.mrf.mxu0  ;;  %8246 = vmatprep.subr.bf16.mxu0 %v15728_v45  ;;  %8078 = vmatprep.mubr.bf16.mxu0 %v20278_v41  ;;  %v15743_v45 = vld [vmem:[#allocation6 + $0x16c] ss:$16 sps:$4 sm:$0xff]  }
 0x3c9   :  { %v18286_v18 = vadd.f32 %v7394_v8, %v7282_v6  ;;  %v7299_v62 = vpop.f32.mrf.mxu1  ;;  %7976 = vmatmul.mubr.bf16.gmra.mxu1 %v20288_v43  ;;  %v15740_v13 = vld [vmem:[#allocation6 + $0x3cc] ss:$16 sps:$4 sm:$0xff]  }
 0x3ca   :  { %v7300_v4 = vadd.f32 %v7299_v62, %v18166_v7  ;;  %v7396_v54 = vpop.f32.mrf.mxu0  ;;  %7985 = vmatprep.mubr.bf16.mxu1 %v20275_v22  ;;  %8140 = vmatpush2.bf16.msra.mxu1 %v15729_v52 }
 0x3cb   :  { %v18291_v61 = vadd.f32 %v7396_v54, %v7284_v55  ;;  %8247 = vmatpush1.bf16.msra.mxu0 %v15726_v20  ;;  %v7301_v25 = vpop.f32.mrf.mxu1  ;;  %8141 = vmatprep.subr.bf16.mxu1 %v15737_v48  ;;  %v15741_v55 = vld [vmem:[#allocation6 + $0x168] ss:$16 sps:$4 sm:$0xff]  }
 0x3cc   :  { %v7302_v6 = vadd.f32 %v7301_v25, %v18174_v16  ;;  %v7398_v24 = vpop.f32.mrf.mxu0  ;;  %8248 = vmatprep.subr.bf16.mxu0 %v15734_v23  ;;  %v15738_v48 = vld [vmem:[#allocation6 + $0x3c8] ss:$16 sps:$4 sm:$0xff]   ;;  %v15749_v16 = vld [vmem:[#allocation6 + $0x14c] ss:$16 sps:$4 sm:$0xff]  }
 0x3cd   :  { %v18294_v8 = vadd.f32 %v7398_v24, %v7286_v10  ;;  %v7303_v7 = vpop.f32.mrf.mxu1  ;;  %v15746_v10 = vld [vmem:[#allocation6 + $0x3ac] ss:$16 sps:$4 sm:$0xff]  }
 0x3ce   :  { %v7304_v62 = vadd.f32 %v7303_v7, %v18179_v5  ;;  %v7402_v22 = vpop.f32.mrf.mxu0  ;;  %8079 = vmatmul.mubr.bf16.gmra.mxu0 %v20256_v36  ;;  %8142 = vmatpush2.bf16.msra.mxu1 %v15735_v0  ;;  %v15747_v0 = vld [vmem:[#allocation6 + $0x148] ss:$16 sps:$4 sm:$0xff]   ;;  %v15755_v24 = vld [vmem:[#allocation6 + $0x12c] ss:$16 sps:$4 sm:$0xff]  }
 0x3cf   :  { %v18298_v52 = vadd.f32 %v7402_v22, %v7290_v26  ;;  %8249 = vmatpush2.bf16.msra.mxu0 %v15732_v42  ;;  %v7305_v20 = vpop.f32.mrf.mxu1  ;;  %8143 = vmatprep.subr.bf16.mxu1 %v15743_v45  ;;  %v15744_v45 = vld [vmem:[#allocation6 + $0x3a8] ss:$16 sps:$4 sm:$0xff]   ;;  %v15752_v7 = vld [vmem:[#allocation6 + $0x38c] ss:$16 sps:$4 sm:$0xff]  }
 0x3d0   :  { %v7306_v23 = vadd.f32 %v7305_v20, %v18185_v63  ;;  %v7404_v54 = vpop.f32.mrf.mxu0  ;;  %8250 = vmatprep.subr.bf16.mxu0 %v15740_v13  ;;  %8088 = vmatprep.mubr.bf16.mxu0 %v20278_v41 }
 0x3d1   :  { %v18302_v5 = vadd.f32 %v7404_v54, %v7292_v29  ;;  %v7309_v25 = vpop.f32.mrf.mxu1  ;;  %7986 = vmatmul.mubr.bf16.gmra.mxu1 %v17530_v58  ;;  %v20300_v58 = vld [vmem:[#allocation54_spill] sm:$0xff] }
 0x3d2   :  { %v7310_v22 = vadd.f32 %v7309_v25, %v18187_v35  ;;  %v7406_v26 = vpop.f32.mrf.mxu0  ;;  %7995 = vmatprep.mubr.bf16.mxu1 %v20273_v44  ;;  %8144 = vmatpush2.bf16.msra.mxu1 %v15741_v55 }
 0x3d3   :  { %v18307_v42 = vadd.f32 %v7406_v26, %v7294_v33  ;;  %8251 = vmatpush2.bf16.msra.mxu0 %v15738_v48  ;;  %v7311_v63 = vpop.f32.mrf.mxu1  ;;  %8145 = vmatprep.subr.bf16.mxu1 %v15749_v16  ;;  %v15753_v33 = vld [vmem:[#allocation6 + $0x128] ss:$16 sps:$4 sm:$0xff]  }
 0x3d4   :  { %v7312_v29 = vadd.f32 %v7311_v63, %v18198_v60  ;;  %v7408_v13 = vpop.f32.mrf.mxu0  ;;  %8252 = vmatprep.subr.bf16.mxu0 %v15746_v10  ;;  %v15750_v16 = vld [vmem:[#allocation6 + $0x388] ss:$16 sps:$4 sm:$0xff]   ;;  %v15761_v60 = vld [vmem:[#allocation6 + $0x10c] ss:$16 sps:$4 sm:$0xff]  }
 0x3d5   :  { %v18310_v20 = vadd.f32 %v7408_v13, %v7296_v53  ;;  %v7313_v35 = vpop.f32.mrf.mxu1  ;;  %v15758_v53 = vld [vmem:[#allocation6 + $0x36c] ss:$16 sps:$4 sm:$0xff]  }
 0x3d6   :  { %v7314_v54 = vadd.f32 %v7313_v35, %v18202_v57  ;;  %v7412_v25 = vpop.f32.mrf.mxu0  ;;  %8089 = vmatmul.mubr.bf16.gmra.mxu0 %v17847_v2  ;;  %8146 = vmatpush2.bf16.msra.mxu1 %v15747_v0  ;;  %v15767_v35 = vld [vmem:[#allocation6 + $0x4ec] ss:$16 sps:$4 sm:$0xff]  }
 0x3d7   :  { %v18314_v55 = vadd.f32 %v7412_v25, %v7300_v4  ;;  %8253 = vmatpush2.bf16.msra.mxu0 %v15744_v45  ;;  %v7315_v48 = vpop.f32.mrf.mxu1  ;;  %8147 = vmatprep.subr.bf16.mxu1 %v15755_v24  ;;  %v20289_v45 = vld [vmem:[#allocation49_spill] sm:$0xff]  ;;  %v15759_v24 = vld [vmem:[#allocation6 + $0x108] ss:$16 sps:$4 sm:$0xff]  }
 0x3d8   :  { %v7316_v10 = vadd.f32 %v7315_v48, %v18206_v40  ;;  %v7414_v26 = vpop.f32.mrf.mxu0  ;;  %8254 = vmatprep.subr.bf16.mxu0 %v15752_v7  ;;  %8098 = vmatprep.mubr.bf16.mxu0 %v20278_v41  ;;  %v15756_v7 = vld [vmem:[#allocation6 + $0x368] ss:$16 sps:$4 sm:$0xff]   ;;  %v15764_v48 = vld [vmem:[#allocation6 + $0x34c] ss:$16 sps:$4 sm:$0xff]  }
 0x3d9   :  { %v18318_v57 = vadd.f32 %v7414_v26, %v7302_v6  ;;  %v7319_v63 = vpop.f32.mrf.mxu1  ;;  %7996 = vmatmul.mubr.bf16.gmra.mxu1 %v20258_v1 }
 0x3da   :  { %v7320_v4 = vadd.f32 %v7319_v63, %v18214_v14  ;;  %v7416_v0 = vpop.f32.mrf.mxu0  ;;  %8148 = vmatpush2.bf16.msra.mxu1 %v15753_v33  ;;  %8151 = vmatprep.mubr.bf16.mxu1 %v20289_v45 }
 0x3db   :  { %v18323_v13 = vadd.f32 %v7416_v0, %v7304_v62  ;;  %8255 = vmatpush2.bf16.msra.mxu0 %v15750_v16  ;;  %v7321_v40 = vpop.f32.mrf.mxu1  ;;  %8149 = vmatprep.subr.bf16.mxu1 %v15761_v60  ;;  %v15765_v62 = vld [vmem:[#allocation6 + $0x4e8] ss:$16 sps:$4 sm:$0xff]  }
 0x3dc   :  { %v7322_v6 = vadd.f32 %v7321_v40, %v18221_v30  ;;  %v7418_v25 = vpop.f32.mrf.mxu0  ;;  %8256 = vmatprep.subr.bf16.mxu0 %v15758_v53  ;;  %v15762_v0 = vld [vmem:[#allocation6 + $0x348] ss:$16 sps:$4 sm:$0xff]   ;;  %v15773_v30 = vld [vmem:[#allocation6 + $0x4cc] ss:$16 sps:$4 sm:$0xff]  }
 0x3dd   :  { %v18326_v26 = vadd.f32 %v7418_v25, %v7306_v23  ;;  %v7323_v14 = vpop.f32.mrf.mxu1  ;;  %v15770_v23 = vld [vmem:[#allocation6 + $0x32c] ss:$16 sps:$4 sm:$0xff]  }
 0x3de   :  { %v7324_v33 = vadd.f32 %v7323_v14, %v18225_v17  ;;  %v7422_v63 = vpop.f32.mrf.mxu0  ;;  %8099 = vmatmul.mubr.bf16.gmra.mxu0 %v20265_v38  ;;  %8150 = vmatpush2.bf16.msra.mxu1 %v15759_v24  ;;  %v20290_v25 = vld [vmem:[#allocation48_spill] sm:$0xff] }
 0x3df   :  { %v18330_v16 = vadd.f32 %v7422_v63, %v7310_v22  ;;  %8257 = vmatpush2.bf16.msra.mxu0 %v15756_v7  ;;  %v7325_v60 = vpop.f32.mrf.mxu1  ;;  %8345 = vmatprep.subr.bf16.mxu1 %v15767_v35  ;;  %v20291_v7 = vld [vmem:[#allocation51_spill] sm:$0xff]  ;;  %v15771_v35 = vld [vmem:[#allocation6 + $0x4c8] ss:$16 sps:$4 sm:$0xff]  }
 0x3e0   :  { %v7326_v53 = vadd.f32 %v7325_v60, %v18229_v56  ;;  %v7424_v45 = vpop.f32.mrf.mxu0  ;;  %8258 = vmatprep.subr.bf16.mxu0 %v15764_v48  ;;  %8108 = vmatprep.mubr.bf16.mxu0 %v20278_v41  ;;  %v15768_v48 = vld [vmem:[#allocation6 + $0x328] ss:$16 sps:$4 sm:$0xff]   ;;  %v15776_v60 = vld [vmem:[#allocation6 + $0x30c] ss:$16 sps:$4 sm:$0xff]  }
 0x3e1   :  { %v18334_v17 = vadd.f32 %v7424_v45, %v7312_v29  ;;  %v7475_v40 = vpop.f32.mrf.mxu1  ;;  %8152 = vmatmul.mubr.bf16.vlgmr.msra.gmra.mxu1 %v20290_v25  ;;  %v15779_v45 = vld [vmem:[#allocation6 + $0x4ac] ss:$16 sps:$4 sm:$0xff]  }
 0x3e2   :  { %v7426_v24 = vpop.f32.mrf.mxu0  ;;  %v7476_v22 = vadd.f32 %v7475_v40, %v18234_v28  ;;  %8161 = vmatprep.mubr.bf16.mxu1 %v20291_v7  ;;  %8346 = vmatpush1.bf16.msra.mxu1 %v15765_v62 }
 0x3e3   :  { %v18339_v14 = vadd.f32 %v7426_v24, %v7314_v54  ;;  %8259 = vmatpush2.bf16.msra.mxu0 %v15762_v0  ;;  %v7477_v56 = vpop.f32.mrf.mxu1  ;;  %8347 = vmatprep.subr.bf16.mxu1 %v15773_v30  ;;  %v15777_v54 = vld [vmem:[#allocation6 + $0x4a8] ss:$16 sps:$4 sm:$0xff]   ;;  %v20292_v0 = vld [vmem:[#allocation35_spill] sm:$0xff] }
 0x3e4   :  { %v7428_v63 = vpop.f32.mrf.mxu0  ;;  %v7478_v29 = vadd.f32 %v7477_v56, %v18238_v12  ;;  %8260 = vmatprep.subr.bf16.mxu0 %v15770_v23  ;;  %v15774_v12 = vld [vmem:[#allocation6 + $0x308] ss:$16 sps:$4 sm:$0xff]   ;;  %v15785_v23 = vld [vmem:[#allocation6 + $0x48c] ss:$16 sps:$4 sm:$0xff]  }
 0x3e5   :  { %v18342_v25 = vadd.f32 %v7428_v63, %v7316_v10  ;;  %v7479_v1 = vpop.f32.mrf.mxu1  ;;  %v15782_v56 = vld [vmem:[#allocation6 + $0x6ec] ss:$16 sps:$4 sm:$0xff]  }
 0x3e6   :  { %v7432_v28 = vpop.f32.mrf.mxu0  ;;  %v7480_v40 = vadd.f32 %v7479_v1, %v18243_v21  ;;  %8109 = vmatmul.mubr.bf16.gmra.mxu0 %v20267_v3  ;;  %8348 = vmatpush1.bf16.msra.mxu1 %v15771_v35  ;;  %v20293_v21 = vld [vmem:[#allocation50_spill] sm:$0xff] }
 0x3e7   :  { %v18346_v62 = vadd.f32 %v7432_v28, %v7320_v4  ;;  %8261 = vmatpush2.bf16.msra.mxu0 %v15768_v48  ;;  %8264 = vmatprep.mubr.bf16.mxu0 %v20292_v0  ;;  %v7481_v30 = vpop.f32.mrf.mxu1  ;;  %v20294_v48 = vld [vmem:[#allocation53_spill] sm:$0xff]  ;;  %v15783_v28 = vld [vmem:[#allocation6 + $0x488] ss:$16 sps:$4 sm:$0xff]  }
 0x3e8   :  { %v7434_v24 = vpop.f32.mrf.mxu0  ;;  %v7482_v10 = vadd.f32 %v7481_v30, %v18246_v34  ;;  %8262 = vmatprep.subr.bf16.mxu0 %v15776_v60  ;;  %8349 = vmatprep.subr.bf16.mxu1 %v15779_v45  ;;  %v15780_v34 = vld [vmem:[#allocation6 + $0x6e8] ss:$16 sps:$4 sm:$0xff]   ;;  %v15788_v45 = vld [vmem:[#allocation6 + $0x6cc] ss:$16 sps:$4 sm:$0xff]  }
 0x3e9   :  { %v18350_v63 = vadd.f32 %v7434_v24, %v7322_v6  ;;  %v7485_v1 = vpop.f32.mrf.mxu1  ;;  %8162 = vmatmul.mubr.bf16.gmra.mxu1 %v20293_v21  ;;  %v15791_v30 = vld [vmem:[#allocation6 + $0x46c] ss:$16 sps:$4 sm:$0xff]  }
 0x3ea   :  { %v7436_v35 = vpop.f32.mrf.mxu0  ;;  %v7486_v4 = vadd.f32 %v7485_v1, %v18250_v39  ;;  %8171 = vmatprep.mubr.bf16.mxu1 %v20294_v48  ;;  %8350 = vmatpush1.bf16.msra.mxu1 %v15777_v54  ;;  %v20295_v54 = vld [vmem:[#allocation42_spill] sm:$0xff] }
 0x3eb   :  { %v18355_v0 = vadd.f32 %v7436_v35, %v7324_v33  ;;  %8263 = vmatpush2.bf16.msra.mxu0 %v15774_v12  ;;  %v7487_v3 = vpop.f32.mrf.mxu1  ;;  %8351 = vmatprep.subr.bf16.mxu1 %v15785_v23  ;;  %v15789_v33 = vld [vmem:[#allocation6 + $0x468] ss:$16 sps:$4 sm:$0xff]   ;;  %v20296_v23 = vld [vmem:[#allocation43_spill] sm:$0xff] }
 0x3ec   :  { %v7438_v60 = vpop.f32.mrf.mxu0  ;;  %v7488_v6 = vadd.f32 %v7487_v3, %v18254_v47  ;;  %8458 = vmatprep.subr.bf16.mxu0 %v15782_v56  ;;  %v15786_v3 = vld [vmem:[#allocation6 + $0x6c8] ss:$16 sps:$4 sm:$0xff]   ;;  %v15797_v47 = vld [vmem:[#allocation6 + $0x44c] ss:$16 sps:$4 sm:$0xff]  }
 0x3ed   :  { %v18358_v24 = vadd.f32 %v7438_v60, %v7326_v53  ;;  %v7489_v44 = vpop.f32.mrf.mxu1  ;;  %v15794_v60 = vld [vmem:[#allocation6 + $0x6ac] ss:$16 sps:$4 sm:$0xff]  }
 0x3ee   :  { %v7490_v39 = vadd.f32 %v7489_v44, %v18259_v11  ;;  %v7588_v1 = vpop.f32.mrf.mxu0  ;;  %8265 = vmatmul.mubr.bf16.vlgmr.msra.gmra.mxu0 %v20295_v54  ;;  %8352 = vmatpush1.bf16.msra.mxu1 %v15783_v28  ;;  %v20297_v54 = vld [vmem:[#allocation52_spill] sm:$0xff] }
 0x3ef   :  { %v18362_v12 = vadd.f32 %v7588_v1, %v7476_v22  ;;  %8459 = vmatpush1.bf16.msra.mxu0 %v15780_v34  ;;  %8274 = vmatprep.mubr.bf16.mxu0 %v20296_v23  ;;  %v7491_v35 = vpop.f32.mrf.mxu1  ;;  %v15795_v34 = vld [vmem:[#allocation6 + $0x448] ss:$16 sps:$4 sm:$0xff]  }
 0x3f0   :  { %v7492_v56 = vadd.f32 %v7491_v35, %v18262_v59  ;;  %v7590_v53 = vpop.f32.mrf.mxu0  ;;  %8460 = vmatprep.subr.bf16.mxu0 %v15788_v45  ;;  %8353 = vmatprep.subr.bf16.mxu1 %v15791_v30  ;;  %v15792_v35 = vld [vmem:[#allocation6 + $0x6a8] ss:$16 sps:$4 sm:$0xff]   ;;  %v15800_v30 = vld [vmem:[#allocation6 + $0x68c] ss:$16 sps:$4 sm:$0xff]  }
 0x3f1   :  { %v18366_v44 = vadd.f32 %v7590_v53, %v7478_v29  ;;  %v7495_v11 = vpop.f32.mrf.mxu1  ;;  %8172 = vmatmul.mubr.bf16.gmra.mxu1 %v20297_v54  ;;  %v15803_v53 = vld [vmem:[#allocation6 + $0x42c] ss:$16 sps:$4 sm:$0xff]  }
 0x3f2   :  { %v7496_v22 = vadd.f32 %v7495_v11, %v18266_v32  ;;  %v7592_v28 = vpop.f32.mrf.mxu0  ;;  %8181 = vmatprep.mubr.bf16.mxu1 %v20266_v9  ;;  %8354 = vmatpush1.bf16.msra.mxu1 %v15789_v33  ;;  %v20298_v33 = vld [vmem:[#allocation44_spill] sm:$0xff] }
 0x3f3   :  { %v18371_v1 = vadd.f32 %v7592_v28, %v7480_v40  ;;  %8461 = vmatpush1.bf16.msra.mxu0 %v15786_v3  ;;  %v7497_v59 = vpop.f32.mrf.mxu1  ;;  %8355 = vmatprep.subr.bf16.mxu1 %v15797_v47  ;;  %v15801_v40 = vld [vmem:[#allocation6 + $0x428] ss:$16 sps:$4 sm:$0xff]   ;;  %v20299_v47 = vld [vmem:[#allocation45_spill] sm:$0xff] }
 0x3f4   :  { %v7498_v45 = vadd.f32 %v7497_v59, %v18270_v27  ;;  %v7594_v29 = vpop.f32.mrf.mxu0  ;;  %8462 = vmatprep.subr.bf16.mxu0 %v15794_v60  ;;  %v15798_v28 = vld [vmem:[#allocation6 + $0x688] ss:$16 sps:$4 sm:$0xff]   ;;  %v15809_v60 = vld [vmem:[#allocation6 + $0x40c] ss:$16 sps:$4 sm:$0xff]  }
 0x3f5   :  { %v18374_v41 = vadd.f32 %v7594_v29, %v7482_v10  ;;  %v7499_v32 = vpop.f32.mrf.mxu1  ;;  %v15806_v29 = vld [vmem:[#allocation6 + $0x66c] ss:$16 sps:$4 sm:$0xff]  }
 0x3f6   :  { %v7500_v11 = vadd.f32 %v7499_v32, %v18275_v51  ;;  %v7598_v38 = vpop.f32.mrf.mxu0  ;;  %8275 = vmatmul.mubr.bf16.gmra.mxu0 %v20298_v33  ;;  %8356 = vmatpush1.bf16.msra.mxu1 %v15795_v34  ;;  %v20301_v34 = vld [vmem:[#allocation57_spill] sm:$0xff] }
 0x3f7   :  { %v18378_v3 = vadd.f32 %v7598_v38, %v7486_v4  ;;  %8463 = vmatpush1.bf16.msra.mxu0 %v15792_v35  ;;  %8284 = vmatprep.mubr.bf16.mxu0 %v20299_v47  ;;  %v7501_v27 = vpop.f32.mrf.mxu1  ;;  %v15807_v35 = vld [vmem:[#allocation6 + $0x408] ss:$16 sps:$4 sm:$0xff]  }
 0x3f8   :  { %v7502_v59 = vadd.f32 %v7501_v27, %v18278_v49  ;;  %v7600_v10 = vpop.f32.mrf.mxu0  ;;  %8464 = vmatprep.subr.bf16.mxu0 %v15800_v30  ;;  %8357 = vmatprep.subr.bf16.mxu1 %v15803_v53  ;;  %v15804_v27 = vld [vmem:[#allocation6 + $0x668] ss:$16 sps:$4 sm:$0xff]   ;;  %v15812_v53 = vld [vmem:[#allocation6 + $0x64c] ss:$16 sps:$4 sm:$0xff]  }
 0x3f9   :  { %v18382_v51 = vadd.f32 %v7600_v10, %v7488_v6  ;;  %v7505_v32 = vpop.f32.mrf.mxu1  ;;  %8182 = vmatmul.mubr.bf16.gmra.mxu1 %v20300_v58  ;;  %v15815_v10 = vld [vmem:[#allocation6 + $0x5ec] ss:$16 sps:$4 sm:$0xff]  }
 0x3fa   :  { %v7506_v38 = vadd.f32 %v7505_v32, %v18282_v37  ;;  %v7602_v4 = vpop.f32.mrf.mxu0  ;;  %8191 = vmatprep.mubr.bf16.mxu1 %v20301_v34  ;;  %8358 = vmatpush1.bf16.msra.mxu1 %v15801_v40  ;;  %v20302_v40 = vld [vmem:[#allocation58_spill] sm:$0xff] }
 0x3fb   :  { %v18387_v2 = vadd.f32 %v7602_v4, %v7490_v39  ;;  %8465 = vmatpush1.bf16.msra.mxu0 %v15798_v28  ;;  %v7507_v49 = vpop.f32.mrf.mxu1  ;;  %8359 = vmatprep.subr.bf16.mxu1 %v15809_v60  ;;  %v15813_v39 = vld [vmem:[#allocation6 + $0x5e8] ss:$16 sps:$4 sm:$0xff]   ;;  %v20303_v60 = vld [vmem:[#allocation59_spill] sm:$0xff] }
 0x3fc   :  { %v7508_v30 = vadd.f32 %v7507_v49, %v18286_v18  ;;  %v7604_v6 = vpop.f32.mrf.mxu0  ;;  %8466 = vmatprep.subr.bf16.mxu0 %v15806_v29  ;;  %v15810_v4 = vld [vmem:[#allocation6 + $0x648] ss:$16 sps:$4 sm:$0xff]   ;;  %v15821_v29 = vld [vmem:[#allocation6 + $0x5cc] ss:$16 sps:$4 sm:$0xff]  }
 0x3fd   :  { %v18390_v43 = vadd.f32 %v7604_v6, %v7492_v56  ;;  %v7509_v37 = vpop.f32.mrf.mxu1  ;;  %v15818_v6 = vld [vmem:[#allocation6 + $0x62c] ss:$16 sps:$4 sm:$0xff]  }
 0x3fe   :  { %v7510_v32 = vadd.f32 %v7509_v37, %v18291_v61  ;;  %v7608_v47 = vpop.f32.mrf.mxu0  ;;  %8285 = vmatmul.mubr.bf16.gmra.mxu0 %v20302_v40  ;;  %8360 = vmatpush1.bf16.msra.mxu1 %v15807_v35  ;;  %v15819_v35 = vld [vmem:[#allocation6 + $0x5c8] ss:$16 sps:$4 sm:$0xff]  }
 0x3ff   :  { %v18394_v28 = vadd.f32 %v7608_v47, %v7496_v22  ;;  %8467 = vmatpush1.bf16.msra.mxu0 %v15804_v27  ;;  %8294 = vmatprep.mubr.bf16.mxu0 %v20303_v60  ;;  %v7511_v18 = vpop.f32.mrf.mxu1 }
 0x400   :  { %v7512_v49 = vadd.f32 %v7511_v18, %v18294_v8  ;;  %v7610_v56 = vpop.f32.mrf.mxu0  ;;  %8468 = vmatprep.subr.bf16.mxu0 %v15812_v53  ;;  %8361 = vmatprep.subr.bf16.mxu1 %v15815_v10  ;;  %v15816_v18 = vld [vmem:[#allocation6 + $0x628] ss:$16 sps:$4 sm:$0xff]   ;;  %v15824_v10 = vld [vmem:[#allocation6 + $0x60c] ss:$16 sps:$4 sm:$0xff]  }
 0x401   :  { %v18398_v61 = vadd.f32 %v7610_v56, %v7498_v45  ;;  %v7515_v37 = vpop.f32.mrf.mxu1  ;;  %8192 = vmatmul.mubr.bf16.gmra.mxu1 %v20279_v46  ;;  %v15827_v56 = vld [vmem:[#allocation6 + $0x5ac] ss:$16 sps:$4 sm:$0xff]  }
 0x402   :  { %v7516_v22 = vadd.f32 %v7515_v37, %v18298_v52  ;;  %v7612_v47 = vpop.f32.mrf.mxu0  ;;  %8201 = vmatprep.mubr.bf16.mxu1 %v20280_v50  ;;  %8362 = vmatpush2.bf16.msra.mxu1 %v15813_v39  ;;  %v20304_v39 = vld [vmem:[#allocation62_spill] sm:$0xff] }
 0x403   :  { %v18403_v27 = vadd.f32 %v7612_v47, %v7500_v11  ;;  %8469 = vmatpush1.bf16.msra.mxu0 %v15810_v4  ;;  %v7517_v8 = vpop.f32.mrf.mxu1  ;;  %8363 = vmatprep.subr.bf16.mxu1 %v15821_v29  ;;  %v15825_v11 = vld [vmem:[#allocation6 + $0x5a8] ss:$16 sps:$4 sm:$0xff]   ;;  %v20305_v29 = vld [vmem:[#allocation63_spill] sm:$0xff] }
 0x404   :  { %v7518_v53 = vadd.f32 %v7517_v8, %v18302_v5  ;;  %v7614_v45 = vpop.f32.mrf.mxu0  ;;  %8470 = vmatprep.subr.bf16.mxu0 %v15818_v6  ;;  %v15822_v47 = vld [vmem:[#allocation6 + $0x608] ss:$16 sps:$4 sm:$0xff]   ;;  %v15833_v6 = vld [vmem:[#allocation6 + $0x58c] ss:$16 sps:$4 sm:$0xff]  }
 0x405   :  { %v18406_v60 = vadd.f32 %v7614_v45, %v7502_v59  ;;  %v7519_v52 = vpop.f32.mrf.mxu1  ;;  %v15830_v45 = vld [vmem:[#allocation6 + $0x7ec] ss:$16 sps:$4 sm:$0xff]  }
 0x406   :  { %v7520_v37 = vadd.f32 %v7519_v52, %v18307_v42  ;;  %v7618_v40 = vpop.f32.mrf.mxu0  ;;  %8295 = vmatmul.mubr.bf16.gmra.mxu0 %v20304_v39  ;;  %8364 = vmatpush2.bf16.msra.mxu1 %v15819_v35  ;;  %v20306_v39 = vld [vmem:[#allocation26_spill] sm:$0xff] }
 0x407   :  { %v18410_v4 = vadd.f32 %v7618_v40, %v7506_v38  ;;  %8471 = vmatpush1.bf16.msra.mxu0 %v15816_v18  ;;  %8304 = vmatprep.mubr.bf16.mxu0 %v20305_v29  ;;  %v7521_v5 = vpop.f32.mrf.mxu1  ;;  %v20307_v35 = vld [vmem:[#allocation34_spill] sm:$0xff] }
 0x408   :  { %v7522_v8 = vadd.f32 %v7521_v5, %v18310_v20  ;;  %v7620_v59 = vpop.f32.mrf.mxu0  ;;  %8472 = vmatprep.subr.bf16.mxu0 %v15824_v10  ;;  %8365 = vmatprep.subr.bf16.mxu1 %v15827_v56  ;;  %v15831_v18 = vld [vmem:[#allocation6 + $0x588] ss:$16 sps:$4 sm:$0xff]   ;;  %v15836_v56 = vld [vmem:[#allocation6 + $0x7cc] ss:$16 sps:$4 sm:$0xff]  }
 0x409   :  { %v18414_v42 = vadd.f32 %v7620_v59, %v7508_v30  ;;  %v7525_v52 = vpop.f32.mrf.mxu1  ;;  %8202 = vmatmul.mubr.bf16.gmra.mxu1 %v20306_v39  ;;  %v15828_v5 = vld [vmem:[#allocation6 + $0x7e8] ss:$16 sps:$4 sm:$0xff]   ;;  %v15839_v59 = vld [vmem:[#allocation6 + $0x56c] ss:$16 sps:$4 sm:$0xff]  }
 0x40a   :  { %v7526_v38 = vadd.f32 %v7525_v52, %v18314_v55  ;;  %v7622_v40 = vpop.f32.mrf.mxu0  ;;  %8211 = vmatprep.mubr.bf16.mxu1 %v20307_v35  ;;  %8366 = vmatpush2.bf16.msra.mxu1 %v15825_v11 }
 0x40b   :  { %v18419_v29 = vadd.f32 %v7622_v40, %v7510_v32  ;;  %8473 = vmatpush1.bf16.msra.mxu0 %v15822_v47  ;;  %v7527_v20 = vpop.f32.mrf.mxu1  ;;  %8367 = vmatprep.subr.bf16.mxu1 %v15833_v6  ;;  %v15837_v32 = vld [vmem:[#allocation6 + $0x568] ss:$16 sps:$4 sm:$0xff]   ;;  %v20308_v47 = vld [vmem:[#allocation67_spill] sm:$0xff] }
 0x40c   :  { %v7528_v10 = vadd.f32 %v7527_v20, %v18318_v57  ;;  %v7624_v30 = vpop.f32.mrf.mxu0  ;;  %8474 = vmatprep.subr.bf16.mxu0 %v15830_v45  ;;  %v15834_v6 = vld [vmem:[#allocation6 + $0x7c8] ss:$16 sps:$4 sm:$0xff]   ;;  %v15845_v45 = vld [vmem:[#allocation6 + $0x54c] ss:$16 sps:$4 sm:$0xff]  }
 0x40d   :  { %v18422_v33 = vadd.f32 %v7624_v30, %v7512_v49  ;;  %v7529_v55 = vpop.f32.mrf.mxu1  ;;  %v15842_v20 = vld [vmem:[#allocation6 + $0x7ac] ss:$16 sps:$4 sm:$0xff]  }
 0x40e   :  { %v7530_v52 = vadd.f32 %v7529_v55, %v18323_v13  ;;  %v7628_v23 = vpop.f32.mrf.mxu0  ;;  %8305 = vmatmul.mubr.bf16.gmra.mxu0 %v17738_v15  ;;  %8368 = vmatpush2.bf16.msra.mxu1 %v15831_v18  ;;  %v20309_v55 = vld [vmem:[#allocation25_spill] sm:$0xff]  ;;  %v20310_v18 = vld [vmem:[#allocation27_spill] sm:$0xff] }
 0x40f   :  { %v18426_v11 = vadd.f32 %v7628_v23, %v7516_v22  ;;  %8475 = vmatpush2.bf16.msra.mxu0 %v15828_v5  ;;  %8314 = vmatprep.mubr.bf16.mxu0 %v20308_v47  ;;  %v7531_v57 = vpop.f32.mrf.mxu1  ;;  %v15843_v5 = vld [vmem:[#allocation6 + $0x548] ss:$16 sps:$4 sm:$0xff]  }
 0x410   :  { %v7532_v40 = vadd.f32 %v7531_v57, %v18326_v26  ;;  %v7630_v49 = vpop.f32.mrf.mxu0  ;;  %8476 = vmatprep.subr.bf16.mxu0 %v15836_v56  ;;  %8369 = vmatprep.subr.bf16.mxu1 %v15839_v59  ;;  %v15840_v57 = vld [vmem:[#allocation6 + $0x7a8] ss:$16 sps:$4 sm:$0xff]   ;;  %v15848_v59 = vld [vmem:[#allocation6 + $0x78c] ss:$16 sps:$4 sm:$0xff]  }
 0x411   :  { %v18430_v13 = vadd.f32 %v7630_v49, %v7518_v53  ;;  %v7535_v30 = vpop.f32.mrf.mxu1  ;;  %8212 = vmatmul.mubr.bf16.gmra.mxu1 %v20309_v55  ;;  %v15851_v49 = vld [vmem:[#allocation6 + $0x52c] ss:$16 sps:$4 sm:$0xff]  }
 0x412   :  { %v7536_v23 = vadd.f32 %v7535_v30, %v18330_v16  ;;  %v7632_v22 = vpop.f32.mrf.mxu0  ;;  %8221 = vmatprep.mubr.bf16.mxu1 %v20310_v18  ;;  %8370 = vmatpush2.bf16.msra.mxu1 %v15837_v32 }
 0x413   :  { %v18435_v47 = vadd.f32 %v7632_v22, %v7520_v37  ;;  %8477 = vmatpush2.bf16.msra.mxu0 %v15834_v6  ;;  %v7537_v26 = vpop.f32.mrf.mxu1  ;;  %8371 = vmatprep.subr.bf16.mxu1 %v15845_v45  ;;  %v15849_v37 = vld [vmem:[#allocation6 + $0x528] ss:$16 sps:$4 sm:$0xff]   ;;  %v20311_v6 = vld [vmem:[#allocation71_spill] sm:$0xff] }
 0x414   :  { %v7538_v56 = vadd.f32 %v7537_v26, %v18334_v17  ;;  %v7634_v53 = vpop.f32.mrf.mxu0  ;;  %8478 = vmatprep.subr.bf16.mxu0 %v15842_v20  ;;  %v15846_v45 = vld [vmem:[#allocation6 + $0x788] ss:$16 sps:$4 sm:$0xff]   ;;  %v15857_v20 = vld [vmem:[#allocation6 + $0x50c] ss:$16 sps:$4 sm:$0xff]  }
 0x415   :  { %v18438_v15 = vadd.f32 %v7634_v53, %v7522_v8  ;;  %v7539_v16 = vpop.f32.mrf.mxu1  ;;  %v15854_v26 = vld [vmem:[#allocation6 + $0x76c] ss:$16 sps:$4 sm:$0xff]  }
 0x416   :  { %v7540_v30 = vadd.f32 %v7539_v16, %v18339_v14  ;;  %v7638_v18 = vpop.f32.mrf.mxu0  ;;  %8315 = vmatmul.mubr.bf16.gmra.mxu0 %v17767_v19  ;;  %8372 = vmatpush2.bf16.msra.mxu1 %v15843_v5  ;;  %v20312_v16 = vld [vmem:[#allocation36_spill] sm:$0xff]  ;;  %v20313_v5 = vld [vmem:[#allocation46_spill] sm:$0xff] }
 0x417   :  { %v18442_v32 = vadd.f32 %v7638_v18, %v7526_v38  ;;  %8479 = vmatpush2.bf16.msra.mxu0 %v15840_v57  ;;  %8324 = vmatprep.mubr.bf16.mxu0 %v20311_v6  ;;  %v7541_v17 = vpop.f32.mrf.mxu1  ;;  %v15855_v57 = vld [vmem:[#allocation6 + $0x508] ss:$16 sps:$4 sm:$0xff]  }
 0x418   :  { %v7542_v22 = vadd.f32 %v7541_v17, %v18342_v25  ;;  %v7640_v8 = vpop.f32.mrf.mxu0  ;;  %8480 = vmatprep.subr.bf16.mxu0 %v15848_v59  ;;  %8373 = vmatprep.subr.bf16.mxu1 %v15851_v49  ;;  %v15852_v17 = vld [vmem:[#allocation6 + $0x768] ss:$16 sps:$4 sm:$0xff]   ;;  %v15860_v49 = vld [vmem:[#allocation6 + $0x74c] ss:$16 sps:$4 sm:$0xff]  }
 0x419   :  { %v18446_v14 = vadd.f32 %v7640_v8, %v7528_v10  ;;  %v7545_v53 = vpop.f32.mrf.mxu1  ;;  %8222 = vmatmul.mubr.bf16.gmra.mxu1 %v20312_v16  ;;  %v15863_v8 = vld [vmem:[#allocation6 + $0x8ec] ss:$16 sps:$4 sm:$0xff]  }
 0x41a   :  { %v7546_v38 = vadd.f32 %v7545_v53, %v18346_v62  ;;  %v7642_v18 = vpop.f32.mrf.mxu0  ;;  %8374 = vmatpush2.bf16.msra.mxu1 %v15849_v37  ;;  %8377 = vmatprep.mubr.bf16.mxu1 %v20313_v5 }
 0x41b   :  { %v18451_v6 = vadd.f32 %v7642_v18, %v7530_v52  ;;  %8481 = vmatpush2.bf16.msra.mxu0 %v15846_v45  ;;  %v7547_v25 = vpop.f32.mrf.mxu1  ;;  %8375 = vmatprep.subr.bf16.mxu1 %v15857_v20  ;;  %v15861_v52 = vld [vmem:[#allocation6 + $0x8e8] ss:$16 sps:$4 sm:$0xff]   ;;  %v20314_v20 = vld [vmem:[#allocation75_spill] sm:$0xff] }
 0x41c   :  { %v7548_v59 = vadd.f32 %v7547_v25, %v18350_v63  ;;  %v7644_v10 = vpop.f32.mrf.mxu0  ;;  %8482 = vmatprep.subr.bf16.mxu0 %v15854_v26  ;;  %v15858_v18 = vld [vmem:[#allocation6 + $0x748] ss:$16 sps:$4 sm:$0xff]   ;;  %v15869_v26 = vld [vmem:[#allocation6 + $0x8cc] ss:$16 sps:$4 sm:$0xff]  }
 0x41d   :  { %v18454_v19 = vadd.f32 %v7644_v10, %v7532_v40  ;;  %v7549_v62 = vpop.f32.mrf.mxu1  ;;  %v15866_v25 = vld [vmem:[#allocation6 + $0x72c] ss:$16 sps:$4 sm:$0xff]  }
 0x41e   :  { %v7550_v37 = vadd.f32 %v7549_v62, %v18355_v0  ;;  %v7648_v53 = vpop.f32.mrf.mxu0  ;;  %8325 = vmatmul.mubr.bf16.gmra.mxu0 %v17796_v31  ;;  %8376 = vmatpush2.bf16.msra.mxu1 %v15855_v57  ;;  %v20315_v62 = vld [vmem:[#allocation47_spill] sm:$0xff] }
 0x41f   :  { %v18458_v45 = vadd.f32 %v7648_v53, %v7536_v23  ;;  %8483 = vmatpush2.bf16.msra.mxu0 %v15852_v17  ;;  %8334 = vmatprep.mubr.bf16.mxu0 %v20314_v20  ;;  %v7551_v63 = vpop.f32.mrf.mxu1  ;;  %v20316_v17 = vld [vmem:[#allocation60_spill] sm:$0xff] }
 0x420   :  { %v7552_v5 = vadd.f32 %v7551_v63, %v18358_v24  ;;  %v7650_v40 = vpop.f32.mrf.mxu0  ;;  %8484 = vmatprep.subr.bf16.mxu0 %v15860_v49  ;;  %8571 = vmatprep.subr.bf16.mxu1 %v15863_v8  ;;  %v15867_v53 = vld [vmem:[#allocation6 + $0x8c8] ss:$16 sps:$4 sm:$0xff]   ;;  %v15872_v8 = vld [vmem:[#allocation6 + $0x70c] ss:$16 sps:$4 sm:$0xff]  }
 0x421   :  { %v18462_v0 = vadd.f32 %v7650_v40, %v7538_v56  ;;  %v7701_v10 = vpop.f32.mrf.mxu1  ;;  %8378 = vmatmul.mubr.bf16.vlgmr.msra.gmra.mxu1 %v20315_v62  ;;  %v15864_v63 = vld [vmem:[#allocation6 + $0x728] ss:$16 sps:$4 sm:$0xff]   ;;  %v15875_v40 = vld [vmem:[#allocation6 + $0x8ac] ss:$16 sps:$4 sm:$0xff]  }
 0x422   :  { %v7652_v57 = vpop.f32.mrf.mxu0  ;;  %v7702_v23 = vadd.f32 %v7701_v10, %v18362_v12  ;;  %8387 = vmatprep.mubr.bf16.mxu1 %v20316_v17  ;;  %8572 = vmatpush1.bf16.msra.mxu1 %v15861_v52 }
 0x423   :  { %v18467_v20 = vadd.f32 %v7652_v57, %v7540_v30  ;;  %8485 = vmatpush2.bf16.msra.mxu0 %v15858_v18  ;;  %v7703_v24 = vpop.f32.mrf.mxu1  ;;  %8573 = vmatprep.subr.bf16.mxu1 %v15869_v26  ;;  %v15873_v30 = vld [vmem:[#allocation6 + $0x8a8] ss:$16 sps:$4 sm:$0xff]   ;;  %v15881_v26 = vld [vmem:[#allocation6 + $0x88c] ss:$16 sps:$4 sm:$0xff]  }
 0x424   :  { %v7654_v49 = vpop.f32.mrf.mxu0  ;;  %v7704_v56 = vadd.f32 %v7703_v24, %v18366_v44  ;;  %8486 = vmatprep.subr.bf16.mxu0 %v15866_v25  ;;  %v15870_v44 = vld [vmem:[#allocation6 + $0x708] ss:$16 sps:$4 sm:$0xff]   ;;  %v15878_v57 = vld [vmem:[#allocation6 + $0xaec] ss:$16 sps:$4 sm:$0xff]  }
 0x425   :  { %v18470_v62 = vadd.f32 %v7654_v49, %v7542_v22  ;;  %v7705_v31 = vpop.f32.mrf.mxu1 }
 0x426   :  { %v7658_v12 = vpop.f32.mrf.mxu0  ;;  %v7706_v10 = vadd.f32 %v7705_v31, %v18371_v1  ;;  %8335 = vmatmul.mubr.bf16.gmra.mxu0 %v20256_v36  ;;  %8574 = vmatpush1.bf16.msra.mxu1 %v15867_v53  ;;  %v20317_v1 = vld [vmem:[#allocation61_spill] sm:$0xff] }
 0x427   :  { %v18474_v52 = vadd.f32 %v7658_v12, %v7546_v38  ;;  %8487 = vmatpush2.bf16.msra.mxu0 %v15864_v63  ;;  %8490 = vmatprep.mubr.bf16.mxu0 %v20291_v7  ;;  %v7707_v18 = vpop.f32.mrf.mxu1  ;;  %v20318_v63 = vld [vmem:[#allocation64_spill] sm:$0xff] }
 0x428   :  { %v7660_v25 = vpop.f32.mrf.mxu0  ;;  %v7708_v22 = vadd.f32 %v7707_v18, %v18374_v41  ;;  %8488 = vmatprep.subr.bf16.mxu0 %v15872_v8  ;;  %8575 = vmatprep.subr.bf16.mxu1 %v15875_v40  ;;  %v15879_v7 = vld [vmem:[#allocation6 + $0x888] ss:$16 sps:$4 sm:$0xff]   ;;  %v15884_v40 = vld [vmem:[#allocation6 + $0xacc] ss:$16 sps:$4 sm:$0xff]  }
 0x429   :  { %v18478_v24 = vadd.f32 %v7660_v25, %v7548_v59  ;;  %v7711_v31 = vpop.f32.mrf.mxu1  ;;  %8388 = vmatmul.mubr.bf16.gmra.mxu1 %v20317_v1  ;;  %v15876_v41 = vld [vmem:[#allocation6 + $0xae8] ss:$16 sps:$4 sm:$0xff]   ;;  %v15887_v18 = vld [vmem:[#allocation6 + $0x86c] ss:$16 sps:$4 sm:$0xff]  }
 0x42a   :  { %v7662_v53 = vpop.f32.mrf.mxu0  ;;  %v7712_v38 = vadd.f32 %v7711_v31, %v18378_v3  ;;  %8397 = vmatprep.mubr.bf16.mxu1 %v20318_v63  ;;  %8576 = vmatpush1.bf16.msra.mxu1 %v15873_v30 }
 0x42b   :  { %v18483_v49 = vadd.f32 %v7662_v53, %v7550_v37  ;;  %8489 = vmatpush2.bf16.msra.mxu0 %v15870_v44  ;;  %v7713_v12 = vpop.f32.mrf.mxu1  ;;  %8577 = vmatprep.subr.bf16.mxu1 %v15881_v26  ;;  %v15885_v37 = vld [vmem:[#allocation6 + $0x868] ss:$16 sps:$4 sm:$0xff]   ;;  %v15893_v26 = vld [vmem:[#allocation6 + $0x84c] ss:$16 sps:$4 sm:$0xff]  }
 0x42c   :  { %v7664_v8 = vpop.f32.mrf.mxu0  ;;  %v7714_v59 = vadd.f32 %v7713_v12, %v18382_v51  ;;  %8684 = vmatprep.subr.bf16.mxu0 %v15878_v57  ;;  %v15882_v51 = vld [vmem:[#allocation6 + $0xac8] ss:$16 sps:$4 sm:$0xff]   ;;  %v15890_v53 = vld [vmem:[#allocation6 + $0xaac] ss:$16 sps:$4 sm:$0xff]  }
 0x42d   :  { %v18486_v25 = vadd.f32 %v7664_v8, %v7552_v5  ;;  %v7715_v36 = vpop.f32.mrf.mxu1  ;;  %v20320_v12 = vld [vmem:[#allocation68_spill] sm:$0xff] }
 0x42e   :  { %v7716_v3 = vadd.f32 %v7715_v36, %v18387_v2  ;;  %v7814_v31 = vpop.f32.mrf.mxu0  ;;  %8491 = vmatmul.mubr.bf16.vlgmr.msra.gmra.mxu0 %v20293_v21  ;;  %8578 = vmatpush1.bf16.msra.mxu1 %v15879_v7  ;;  %v20319_v21 = vld [vmem:[#allocation65_spill] sm:$0xff] }
 0x42f   :  { %v18490_v30 = vadd.f32 %v7814_v31, %v7702_v23  ;;  %8685 = vmatpush1.bf16.msra.mxu0 %v15876_v41  ;;  %8500 = vmatprep.mubr.bf16.mxu0 %v20294_v48  ;;  %v7717_v44 = vpop.f32.mrf.mxu1  ;;  %v15891_v41 = vld [vmem:[#allocation6 + $0x848] ss:$16 sps:$4 sm:$0xff]  }
 0x430   :  { %v7718_v57 = vadd.f32 %v7717_v44, %v18390_v43  ;;  %v7816_v5 = vpop.f32.mrf.mxu0  ;;  %8686 = vmatprep.subr.bf16.mxu0 %v15884_v40  ;;  %8579 = vmatprep.subr.bf16.mxu1 %v15887_v18  ;;  %v15888_v31 = vld [vmem:[#allocation6 + $0xaa8] ss:$16 sps:$4 sm:$0xff]   ;;  %v15896_v18 = vld [vmem:[#allocation6 + $0xa8c] ss:$16 sps:$4 sm:$0xff]  }
 0x431   :  { %v18494_v2 = vadd.f32 %v7816_v5, %v7704_v56  ;;  %v7721_v36 = vpop.f32.mrf.mxu1  ;;  %8398 = vmatmul.mubr.bf16.gmra.mxu1 %v20319_v21  ;;  %v15899_v44 = vld [vmem:[#allocation6 + $0x82c] ss:$16 sps:$4 sm:$0xff]  }
 0x432   :  { %v7722_v23 = vadd.f32 %v7721_v36, %v18394_v28  ;;  %v7818_v7 = vpop.f32.mrf.mxu0  ;;  %8407 = vmatprep.mubr.bf16.mxu1 %v20320_v12  ;;  %8580 = vmatpush1.bf16.msra.mxu1 %v15885_v37 }
 0x433   :  { %v18499_v8 = vadd.f32 %v7818_v7, %v7706_v10  ;;  %8687 = vmatpush1.bf16.msra.mxu0 %v15882_v51  ;;  %v7723_v43 = vpop.f32.mrf.mxu1  ;;  %8581 = vmatprep.subr.bf16.mxu1 %v15893_v26  ;;  %v15897_v10 = vld [vmem:[#allocation6 + $0x828] ss:$16 sps:$4 sm:$0xff]   ;;  %v15905_v26 = vld [vmem:[#allocation6 + $0x80c] ss:$16 sps:$4 sm:$0xff]  }
 0x434   :  { %v7724_v40 = vadd.f32 %v7723_v43, %v18398_v61  ;;  %v7820_v56 = vpop.f32.mrf.mxu0  ;;  %8688 = vmatprep.subr.bf16.mxu0 %v15890_v53  ;;  %v15894_v51 = vld [vmem:[#allocation6 + $0xa88] ss:$16 sps:$4 sm:$0xff]   ;;  %v15902_v7 = vld [vmem:[#allocation6 + $0xa6c] ss:$16 sps:$4 sm:$0xff]  }
 0x435   :  { %v18502_v5 = vadd.f32 %v7820_v56, %v7708_v22  ;;  %v7725_v28 = vpop.f32.mrf.mxu1  ;;  %v20321_v56 = vld [vmem:[#allocation69_spill] sm:$0xff] }
 0x436   :  { %v7726_v36 = vadd.f32 %v7725_v28, %v18403_v27  ;;  %v7824_v48 = vpop.f32.mrf.mxu0  ;;  %8501 = vmatmul.mubr.bf16.gmra.mxu0 %v20297_v54  ;;  %8582 = vmatpush1.bf16.msra.mxu1 %v15891_v41  ;;  %v20322_v41 = vld [vmem:[#allocation72_spill] sm:$0xff] }
 0x437   :  { %v18506_v37 = vadd.f32 %v7824_v48, %v7712_v38  ;;  %8689 = vmatpush1.bf16.msra.mxu0 %v15888_v31  ;;  %8510 = vmatprep.mubr.bf16.mxu0 %v20266_v9  ;;  %v7727_v61 = vpop.f32.mrf.mxu1  ;;  %v15903_v31 = vld [vmem:[#allocation6 + $0x808] ss:$16 sps:$4 sm:$0xff]  }
 0x438   :  { %v7728_v53 = vadd.f32 %v7727_v61, %v18406_v60  ;;  %v7826_v22 = vpop.f32.mrf.mxu0  ;;  %8690 = vmatprep.subr.bf16.mxu0 %v15896_v18  ;;  %8583 = vmatprep.subr.bf16.mxu1 %v15899_v44  ;;  %v15900_v61 = vld [vmem:[#allocation6 + $0xa68] ss:$16 sps:$4 sm:$0xff]   ;;  %v15908_v44 = vld [vmem:[#allocation6 + $0xa4c] ss:$16 sps:$4 sm:$0xff]  }
 0x439   :  { %v18510_v27 = vadd.f32 %v7826_v22, %v7714_v59  ;;  %v7731_v43 = vpop.f32.mrf.mxu1  ;;  %8408 = vmatmul.mubr.bf16.gmra.mxu1 %v20321_v56  ;;  %v15911_v22 = vld [vmem:[#allocation6 + $0x9ec] ss:$16 sps:$4 sm:$0xff]  }
 0x43a   :  { %v7732_v48 = vadd.f32 %v7731_v43, %v18410_v4  ;;  %v7828_v38 = vpop.f32.mrf.mxu0  ;;  %8417 = vmatprep.mubr.bf16.mxu1 %v20322_v41  ;;  %8584 = vmatpush1.bf16.msra.mxu1 %v15897_v10 }
 0x43b   :  { %v18515_v28 = vadd.f32 %v7828_v38, %v7716_v3  ;;  %8691 = vmatpush1.bf16.msra.mxu0 %v15894_v51  ;;  %v7733_v60 = vpop.f32.mrf.mxu1  ;;  %8585 = vmatprep.subr.bf16.mxu1 %v15905_v26  ;;  %v15909_v3 = vld [vmem:[#allocation6 + $0x9e8] ss:$16 sps:$4 sm:$0xff]   ;;  %v15917_v26 = vld [vmem:[#allocation6 + $0x9cc] ss:$16 sps:$4 sm:$0xff]  }
 0x43c   :  { %v7734_v18 = vadd.f32 %v7733_v60, %v18414_v42  ;;  %v7830_v59 = vpop.f32.mrf.mxu0  ;;  %8692 = vmatprep.subr.bf16.mxu0 %v15902_v7  ;;  %v15906_v51 = vld [vmem:[#allocation6 + $0xa48] ss:$16 sps:$4 sm:$0xff]   ;;  %v15914_v38 = vld [vmem:[#allocation6 + $0xa2c] ss:$16 sps:$4 sm:$0xff]  }
 0x43d   :  { %v18518_v9 = vadd.f32 %v7830_v59, %v7718_v57  ;;  %v7735_v4 = vpop.f32.mrf.mxu1  ;;  %v20323_v59 = vld [vmem:[#allocation73_spill] sm:$0xff] }
 0x43e   :  { %v7736_v43 = vadd.f32 %v7735_v4, %v18419_v29  ;;  %v7834_v54 = vpop.f32.mrf.mxu0  ;;  %8511 = vmatmul.mubr.bf16.gmra.mxu0 %v20300_v58  ;;  %8586 = vmatpush1.bf16.msra.mxu1 %v15903_v31  ;;  %v20324_v31 = vld [vmem:[#allocation76_spill] sm:$0xff] }
 0x43f   :  { %v18522_v10 = vadd.f32 %v7834_v54, %v7722_v23  ;;  %8693 = vmatpush1.bf16.msra.mxu0 %v15900_v61  ;;  %8520 = vmatprep.mubr.bf16.mxu0 %v20301_v34  ;;  %v7737_v42 = vpop.f32.mrf.mxu1  ;;  %v15915_v61 = vld [vmem:[#allocation6 + $0x9c8] ss:$16 sps:$4 sm:$0xff]  }
 0x440   :  { %v7738_v7 = vadd.f32 %v7737_v42, %v18422_v33  ;;  %v7836_v57 = vpop.f32.mrf.mxu0  ;;  %8694 = vmatprep.subr.bf16.mxu0 %v15908_v44  ;;  %8587 = vmatprep.subr.bf16.mxu1 %v15911_v22  ;;  %v15912_v42 = vld [vmem:[#allocation6 + $0xa28] ss:$16 sps:$4 sm:$0xff]   ;;  %v15920_v22 = vld [vmem:[#allocation6 + $0xa0c] ss:$16 sps:$4 sm:$0xff]  }
 0x441   :  { %v18526_v29 = vadd.f32 %v7836_v57, %v7724_v40  ;;  %v7741_v60 = vpop.f32.mrf.mxu1  ;;  %8418 = vmatmul.mubr.bf16.gmra.mxu1 %v20323_v59  ;;  %v15923_v57 = vld [vmem:[#allocation6 + $0x9ac] ss:$16 sps:$4 sm:$0xff]  }
 0x442   :  { %v7742_v54 = vadd.f32 %v7741_v60, %v18426_v11  ;;  %v7838_v23 = vpop.f32.mrf.mxu0  ;;  %8427 = vmatprep.mubr.bf16.mxu1 %v20324_v31  ;;  %8588 = vmatpush2.bf16.msra.mxu1 %v15909_v3 }
 0x443   :  { %v18531_v4 = vadd.f32 %v7838_v23, %v7726_v36  ;;  %8695 = vmatpush1.bf16.msra.mxu0 %v15906_v51  ;;  %v7743_v33 = vpop.f32.mrf.mxu1  ;;  %8589 = vmatprep.subr.bf16.mxu1 %v15917_v26  ;;  %v15921_v36 = vld [vmem:[#allocation6 + $0x9a8] ss:$16 sps:$4 sm:$0xff]   ;;  %v15929_v26 = vld [vmem:[#allocation6 + $0x98c] ss:$16 sps:$4 sm:$0xff]  }
 0x444   :  { %v7744_v44 = vadd.f32 %v7743_v33, %v18430_v13  ;;  %v7840_v40 = vpop.f32.mrf.mxu0  ;;  %8696 = vmatprep.subr.bf16.mxu0 %v15914_v38  ;;  %v15918_v51 = vld [vmem:[#allocation6 + $0xa08] ss:$16 sps:$4 sm:$0xff]   ;;  %v15926_v23 = vld [vmem:[#allocation6 + $0xbec] ss:$16 sps:$4 sm:$0xff]  }
 0x445   :  { %v18534_v34 = vadd.f32 %v7840_v40, %v7728_v53  ;;  %v7745_v11 = vpop.f32.mrf.mxu1  ;;  %v20325_v40 = vld [vmem:[#allocation77_spill] sm:$0xff] }
 0x446   :  { %v7746_v60 = vadd.f32 %v7745_v11, %v18435_v47  ;;  %v7844_v58 = vpop.f32.mrf.mxu0  ;;  %8521 = vmatmul.mubr.bf16.gmra.mxu0 %v20279_v46  ;;  %8590 = vmatpush2.bf16.msra.mxu1 %v15915_v61  ;;  %v20326_v61 = vld [vmem:[#allocation79_spill] sm:$0xff] }
 0x447   :  { %v18538_v3 = vadd.f32 %v7844_v58, %v7732_v48  ;;  %8697 = vmatpush1.bf16.msra.mxu0 %v15912_v42  ;;  %8530 = vmatprep.mubr.bf16.mxu0 %v20280_v50  ;;  %v7747_v13 = vpop.f32.mrf.mxu1  ;;  %v15927_v42 = vld [vmem:[#allocation6 + $0x988] ss:$16 sps:$4 sm:$0xff]  }
 0x448   :  { %v7748_v38 = vadd.f32 %v7747_v13, %v18438_v15  ;;  %v7846_v53 = vpop.f32.mrf.mxu0  ;;  %8698 = vmatprep.subr.bf16.mxu0 %v15920_v22  ;;  %8591 = vmatprep.subr.bf16.mxu1 %v15923_v57  ;;  %v15924_v13 = vld [vmem:[#allocation6 + $0xbe8] ss:$16 sps:$4 sm:$0xff]   ;;  %v15932_v57 = vld [vmem:[#allocation6 + $0xbcc] ss:$16 sps:$4 sm:$0xff]  }
 0x449   :  { %v18542_v47 = vadd.f32 %v7846_v53, %v7734_v18  ;;  %v7751_v33 = vpop.f32.mrf.mxu1  ;;  %8428 = vmatmul.mubr.bf16.gmra.mxu1 %v20325_v40  ;;  %v15935_v53 = vld [vmem:[#allocation6 + $0x96c] ss:$16 sps:$4 sm:$0xff]  }
 0x44a   :  { %v7752_v58 = vadd.f32 %v7751_v33, %v18442_v32  ;;  %v7848_v48 = vpop.f32.mrf.mxu0  ;;  %8437 = vmatprep.mubr.bf16.mxu1 %v20326_v61  ;;  %8592 = vmatpush2.bf16.msra.mxu1 %v15921_v36 }
 0x44b   :  { %v18547_v11 = vadd.f32 %v7848_v48, %v7736_v43  ;;  %8699 = vmatpush1.bf16.msra.mxu0 %v15918_v51  ;;  %v7753_v15 = vpop.f32.mrf.mxu1  ;;  %8593 = vmatprep.subr.bf16.mxu1 %v15929_v26  ;;  %v15933_v43 = vld [vmem:[#allocation6 + $0x968] ss:$16 sps:$4 sm:$0xff]   ;;  %v15941_v26 = vld [vmem:[#allocation6 + $0x94c] ss:$16 sps:$4 sm:$0xff]  }
 0x44c   :  { %v7754_v22 = vadd.f32 %v7753_v15, %v18446_v14  ;;  %v7850_v18 = vpop.f32.mrf.mxu0  ;;  %8700 = vmatprep.subr.bf16.mxu0 %v15926_v23  ;;  %v15930_v51 = vld [vmem:[#allocation6 + $0xbc8] ss:$16 sps:$4 sm:$0xff]   ;;  %v15938_v48 = vld [vmem:[#allocation6 + $0xbac] ss:$16 sps:$4 sm:$0xff]  }
 0x44d   :  { %v18550_v50 = vadd.f32 %v7850_v18, %v7738_v7  ;;  %v7755_v32 = vpop.f32.mrf.mxu1  ;;  %v20327_v18 = vld [vmem:[#allocation80_spill] sm:$0xff] }
 0x44e   :  { %v7756_v33 = vadd.f32 %v7755_v32, %v18451_v6  ;;  %v7854_v46 = vpop.f32.mrf.mxu0  ;;  %8531 = vmatmul.mubr.bf16.gmra.mxu0 %v20306_v39  ;;  %8594 = vmatpush2.bf16.msra.mxu1 %v15927_v42  ;;  %v20328_v42 = vld [vmem:[#allocation82_spill] sm:$0xff] }
 0x44f   :  { %v18554_v36 = vadd.f32 %v7854_v46, %v7742_v54  ;;  %8701 = vmatpush2.bf16.msra.mxu0 %v15924_v13  ;;  %8540 = vmatprep.mubr.bf16.mxu0 %v20307_v35  ;;  %v7757_v14 = vpop.f32.mrf.mxu1  ;;  %v15939_v13 = vld [vmem:[#allocation6 + $0x948] ss:$16 sps:$4 sm:$0xff]  }
 0x450   :  { %v7758_v23 = vadd.f32 %v7757_v14, %v18454_v19  ;;  %v7856_v7 = vpop.f32.mrf.mxu0  ;;  %8702 = vmatprep.subr.bf16.mxu0 %v15932_v57  ;;  %8595 = vmatprep.subr.bf16.mxu1 %v15935_v53  ;;  %v15936_v14 = vld [vmem:[#allocation6 + $0xba8] ss:$16 sps:$4 sm:$0xff]   ;;  %v15944_v53 = vld [vmem:[#allocation6 + $0xb8c] ss:$16 sps:$4 sm:$0xff]  }
 0x451   :  { %v18558_v6 = vadd.f32 %v7856_v7, %v7744_v44  ;;  %v7761_v15 = vpop.f32.mrf.mxu1  ;;  %8438 = vmatmul.mubr.bf16.gmra.mxu1 %v20327_v18  ;;  %v15947_v7 = vld [vmem:[#allocation6 + $0x92c] ss:$16 sps:$4 sm:$0xff]  }
 0x452   :  { %v7762_v46 = vadd.f32 %v7761_v15, %v18458_v45  ;;  %v7858_v54 = vpop.f32.mrf.mxu0  ;;  %8447 = vmatprep.mubr.bf16.mxu1 %v20328_v42  ;;  %8596 = vmatpush2.bf16.msra.mxu1 %v15933_v43 }
 0x453   :  { %v18563_v32 = vadd.f32 %v7858_v54, %v7746_v60  ;;  %8703 = vmatpush2.bf16.msra.mxu0 %v15930_v51  ;;  %v7763_v19 = vpop.f32.mrf.mxu1  ;;  %8597 = vmatprep.subr.bf16.mxu1 %v15941_v26  ;;  %v15945_v60 = vld [vmem:[#allocation6 + $0x928] ss:$16 sps:$4 sm:$0xff]   ;;  %v20329_v51 = vld [vmem:[#allocation27_spill] sm:$0xff] }
 0x454   :  { %v7764_v57 = vadd.f32 %v7763_v19, %v18462_v0  ;;  %v7860_v44 = vpop.f32.mrf.mxu0  ;;  %8704 = vmatprep.subr.bf16.mxu0 %v15938_v48  ;;  %v15942_v26 = vld [vmem:[#allocation6 + $0xb88] ss:$16 sps:$4 sm:$0xff]   ;;  %v15953_v48 = vld [vmem:[#allocation6 + $0x90c] ss:$16 sps:$4 sm:$0xff]  }
 0x455   :  { %v18566_v35 = vadd.f32 %v7860_v44, %v7748_v38  ;;  %v7765_v45 = vpop.f32.mrf.mxu1  ;;  %v15950_v19 = vld [vmem:[#allocation6 + $0xb6c] ss:$16 sps:$4 sm:$0xff]  }
 0x456   :  { %v7766_v15 = vadd.f32 %v7765_v45, %v18467_v20  ;;  %v7864_v39 = vpop.f32.mrf.mxu0  ;;  %8541 = vmatmul.mubr.bf16.gmra.mxu0 %v20309_v55  ;;  %8598 = vmatpush2.bf16.msra.mxu1 %v15939_v13  ;;  %v20330_v45 = vld [vmem:[#allocation83_spill] sm:$0xff] }
 0x457   :  { %v18570_v43 = vadd.f32 %v7864_v39, %v7752_v58  ;;  %8705 = vmatpush2.bf16.msra.mxu0 %v15936_v14  ;;  %8550 = vmatprep.mubr.bf16.mxu0 %v20329_v51  ;;  %v7767_v0 = vpop.f32.mrf.mxu1  ;;  %v20331_v13 = vld [vmem:[#allocation43_spill] sm:$0xff]  ;;  %v15951_v14 = vld [vmem:[#allocation6 + $0x908] ss:$16 sps:$4 sm:$0xff]  }
 0x458   :  { %v7768_v54 = vadd.f32 %v7767_v0, %v18470_v62  ;;  %v7866_v38 = vpop.f32.mrf.mxu0  ;;  %8706 = vmatprep.subr.bf16.mxu0 %v15944_v53  ;;  %8599 = vmatprep.subr.bf16.mxu1 %v15947_v7  ;;  %v15948_v0 = vld [vmem:[#allocation6 + $0xb68] ss:$16 sps:$4 sm:$0xff]   ;;  %v15956_v7 = vld [vmem:[#allocation6 + $0xb4c] ss:$16 sps:$4 sm:$0xff]  }
 0x459   :  { %v18574_v20 = vadd.f32 %v7866_v38, %v7754_v22  ;;  %v7771_v44 = vpop.f32.mrf.mxu1  ;;  %8448 = vmatmul.mubr.bf16.gmra.mxu1 %v20330_v45  ;;  %v15959_v38 = vld [vmem:[#allocation6 + $0xcec] ss:$16 sps:$4 sm:$0xff]  }
 0x45a   :  { %v7772_v39 = vadd.f32 %v7771_v44, %v18474_v52  ;;  %v7868_v58 = vpop.f32.mrf.mxu0  ;;  %8600 = vmatpush2.bf16.msra.mxu1 %v15945_v60  ;;  %8603 = vmatprep.mubr.bf16.mxu1 %v20331_v13 }
 0x45b   :  { %v18579_v51 = vadd.f32 %v7868_v58, %v7756_v33  ;;  %8707 = vmatpush2.bf16.msra.mxu0 %v15942_v26  ;;  %v7773_v62 = vpop.f32.mrf.mxu1  ;;  %8601 = vmatprep.subr.bf16.mxu1 %v15953_v48  ;;  %v15957_v33 = vld [vmem:[#allocation6 + $0xce8] ss:$16 sps:$4 sm:$0xff]  }
 0x45c   :  { %v7774_v53 = vadd.f32 %v7773_v62, %v18478_v24  ;;  %v7870_v22 = vpop.f32.mrf.mxu0  ;;  %8708 = vmatprep.subr.bf16.mxu0 %v15950_v19  ;;  %v20332_v48 = vld [vmem:[#allocation28_spill] sm:$0xff] }
 0x45d   :  { %v18582_v55 = vadd.f32 %v7870_v22, %v7758_v23  ;;  %v7775_v52 = vpop.f32.mrf.mxu1  ;;  %v15954_v58 = vld [vmem:[#allocation6 + $0xb48] ss:$16 sps:$4 sm:$0xff]   ;;  %v15965_v19 = vld [vmem:[#allocation6 + $0xccc] ss:$16 sps:$4 sm:$0xff]  }
 0x45e   :  { %v7776_v60 = vadd.f32 %v7775_v52, %v18483_v49  ;;  %v7874_v44 = vpop.f32.mrf.mxu0  ;;  %8551 = vmatmul.mubr.bf16.gmra.mxu0 %v20312_v16  ;;  %8602 = vmatpush2.bf16.msra.mxu1 %v15951_v14  ;;  %v15962_v62 = vld [vmem:[#allocation6 + $0xb2c] ss:$16 sps:$4 sm:$0xff]  }
 0x45f   :  { %v18586_v26 = vadd.f32 %v7874_v44, %v7762_v46  ;;  %8709 = vmatpush2.bf16.msra.mxu0 %v15948_v0  ;;  %8560 = vmatprep.mubr.bf16.mxu0 %v20332_v48  ;;  %v7777_v24 = vpop.f32.mrf.mxu1  ;;  %v20333_v52 = vld [vmem:[#allocation44_spill] sm:$0xff]  ;;  %v20334_v0 = vld [vmem:[#allocation45_spill] sm:$0xff] }
 0x460   :  { %v7778_v13 = vadd.f32 %v7777_v24, %v18486_v25  ;;  %v7876_v23 = vpop.f32.mrf.mxu0  ;;  %8710 = vmatprep.subr.bf16.mxu0 %v15956_v7  ;;  %8797 = vmatprep.subr.bf16.mxu1 %v15959_v38  ;;  %v15963_v44 = vld [vmem:[#allocation6 + $0xcc8] ss:$16 sps:$4 sm:$0xff]   ;;  %v15968_v38 = vld [vmem:[#allocation6 + $0xb0c] ss:$16 sps:$4 sm:$0xff]  }
 0x461   :  { %v18590_v49 = vadd.f32 %v7876_v23, %v7764_v57  ;;  %v7927_v22 = vpop.f32.mrf.mxu1  ;;  %8604 = vmatmul.mubr.bf16.vlgmr.msra.gmra.mxu1 %v20333_v52  ;;  %v15960_v24 = vld [vmem:[#allocation6 + $0xb28] ss:$16 sps:$4 sm:$0xff]   ;;  %v15971_v23 = vld [vmem:[#allocation6 + $0xcac] ss:$16 sps:$4 sm:$0xff]  }
 0x462   :  { %v7878_v14 = vpop.f32.mrf.mxu0  ;;  %v7928_v46 = vadd.f32 %v7927_v22, %v18490_v30  ;;  %8613 = vmatprep.mubr.bf16.mxu1 %v20334_v0  ;;  %8798 = vmatpush1.bf16.msra.mxu1 %v15957_v33  ;;  %v20335_v33 = vld [vmem:[#allocation37_spill] sm:$0xff] }
 0x463   :  { %v18595_v48 = vadd.f32 %v7878_v14, %v7766_v15  ;;  %8711 = vmatpush2.bf16.msra.mxu0 %v15954_v58  ;;  %v7929_v25 = vpop.f32.mrf.mxu1  ;;  %8799 = vmatprep.subr.bf16.mxu1 %v15965_v19  ;;  %v15969_v15 = vld [vmem:[#allocation6 + $0xca8] ss:$16 sps:$4 sm:$0xff]  }
 0x464   :  { %v7880_v7 = vpop.f32.mrf.mxu0  ;;  %v7930_v57 = vadd.f32 %v7929_v25, %v18494_v2  ;;  %8712 = vmatprep.subr.bf16.mxu0 %v15962_v62  ;;  %v15966_v2 = vld [vmem:[#allocation6 + $0xb08] ss:$16 sps:$4 sm:$0xff]   ;;  %v15977_v62 = vld [vmem:[#allocation6 + $0xc8c] ss:$16 sps:$4 sm:$0xff]  }
 0x465   :  { %v18598_v52 = vadd.f32 %v7880_v7, %v7768_v54  ;;  %v7931_v16 = vpop.f32.mrf.mxu1  ;;  %v15974_v25 = vld [vmem:[#allocation6 + $0xeec] ss:$16 sps:$4 sm:$0xff]   ;;  %v15975_v7 = vld [vmem:[#allocation6 + $0xc88] ss:$16 sps:$4 sm:$0xff]  }
 0x466   :  { %v7884_v30 = vpop.f32.mrf.mxu0  ;;  %v7932_v22 = vadd.f32 %v7931_v16, %v18499_v8  ;;  %8561 = vmatmul.mubr.bf16.gmra.mxu0 %v20335_v33  ;;  %8800 = vmatpush1.bf16.msra.mxu1 %v15963_v44  ;;  %v20336_v44 = vld [vmem:[#allocation58_spill] sm:$0xff] }
 0x467   :  { %v18602_v58 = vadd.f32 %v7884_v30, %v7772_v39  ;;  %8713 = vmatpush2.bf16.msra.mxu0 %v15960_v24  ;;  %8716 = vmatprep.mubr.bf16.mxu0 %v20316_v17  ;;  %v7933_v19 = vpop.f32.mrf.mxu1  ;;  %v20337_v17 = vld [vmem:[#allocation59_spill] sm:$0xff] }
 0x468   :  { %v7886_v14 = vpop.f32.mrf.mxu0  ;;  %v18606_v54 = vadd.f32 %v7933_v19, %v18502_v5  ;;  %8714 = vmatprep.subr.bf16.mxu0 %v15968_v38  ;;  %8801 = vmatprep.subr.bf16.mxu1 %v15971_v23  ;;  %v15972_v38 = vld [vmem:[#allocation6 + $0xee8] ss:$16 sps:$4 sm:$0xff]   ;;  %v15980_v19 = vld [vmem:[#allocation6 + $0xecc] ss:$16 sps:$4 sm:$0xff]  }
 0x469   :  { %v18608_v16 = vadd.f32 %v7886_v14, %v7774_v53  ;;  %v7937_v8 = vpop.f32.mrf.mxu1  ;;  %8614 = vmatmul.mubr.bf16.gmra.mxu1 %v20336_v44  ;;  %v15983_v14 = vld [vmem:[#allocation6 + $0xc6c] ss:$16 sps:$4 sm:$0xff]  }
 0x46a   :  { %v7888_v39 = vpop.f32.mrf.mxu0  ;;  %v18612_v24 = vadd.f32 %v7937_v8, %v18506_v37  ;;  %8623 = vmatprep.mubr.bf16.mxu1 %v20337_v17  ;;  %8802 = vmatpush1.bf16.msra.mxu1 %v15969_v15  ;;  %v20340_v17 = vld [vmem:[#allocation31_spill] sm:$0xff] }
 0x46b   :  { %v18615_v30 = vadd.f32 %v7888_v39, %v7776_v60  ;;  %8715 = vmatpush2.bf16.msra.mxu0 %v15966_v2  ;;  %v7939_v5 = vpop.f32.mrf.mxu1  ;;  %8803 = vmatprep.subr.bf16.mxu1 %v15977_v62  ;;  %v15981_v60 = vld [vmem:[#allocation6 + $0xc68] ss:$16 sps:$4 sm:$0xff]   ;;  %v9427_v39 = vld [vmem:[#allocation7 + $0x1] ss:$2 sm:$0xf] }
 0x46c   :  { %v7890_v23 = vpop.f32.mrf.mxu0  ;;  %v18618_v53 = vadd.f32 %v7939_v5, %v18510_v27  ;;  %8910 = vmatprep.subr.bf16.mxu0 %v15974_v25  ;;  %v15978_v62 = vld [vmem:[#allocation6 + $0xec8] ss:$16 sps:$4 sm:$0xff]   ;;  %v15989_v25 = vld [vmem:[#allocation6 + $0xc4c] ss:$16 sps:$4 sm:$0xff]  }
 0x46d   :  { %v18620_v33 = vadd.f32 %v7890_v23, %v7778_v13  ;;  %v7941_v37 = vpop.f32.mrf.mxu1 }
 0x46e   :  { %v18623_v8 = vadd.f32 %v7941_v37, %v18515_v28  ;;  %v8040_v15 = vpop.f32.mrf.mxu0  ;;  %8717 = vmatmul.mubr.bf16.vlgmr.msra.gmra.mxu0 %v20317_v1  ;;  %8804 = vmatpush1.bf16.msra.mxu1 %v15975_v7  ;;  %v15986_v28 = vld [vmem:[#allocation6 + $0xeac] ss:$16 sps:$4 sm:$0xff]  }
 0x46f   :  { %v8041_v2 = vadd.f32 %v8040_v15, %v7928_v46  ;;  %8911 = vmatpush1.bf16.msra.mxu0 %v15972_v38  ;;  %8726 = vmatprep.mubr.bf16.mxu0 %v20318_v63  ;;  %v7943_v27 = vpop.f32.mrf.mxu1  ;;  %v20338_v1 = vld [vmem:[#allocation62_spill] sm:$0xff]  ;;  %v20339_v38 = vld [vmem:[#allocation63_spill] sm:$0xff] }
 0x470   :  { %v18628_v13 = vadd.f32 %v7943_v27, %v18518_v9  ;;  %v8042_v5 = vpop.f32.mrf.mxu0  ;;  %8912 = vmatprep.subr.bf16.mxu0 %v15980_v19  ;;  %8805 = vmatprep.subr.bf16.mxu1 %v15983_v14  ;;  %v15987_v15 = vld [vmem:[#allocation6 + $0xc48] ss:$16 sps:$4 sm:$0xff]   ;;  %v18636_v9 = vrot.slane %v9427_v39, %v20340_v17 }
 0x471   :  { %v8043_v23 = vadd.f32 %v8042_v5, %v7930_v57  ;;  %v7947_v37 = vpop.f32.mrf.mxu1  ;;  %8624 = vmatmul.mubr.bf16.gmra.mxu1 %v20338_v1  ;;  %v9362_v63 = vmax.f32 %v8041_v2, 0.0  ;;  %v15984_v14 = vld [vmem:[#allocation6 + $0xea8] ss:$16 sps:$4 sm:$0xff]  }
 0x472   :  { %v18632_v46 = vadd.f32 %v7947_v37, %v18522_v10  ;;  %v8044_v7 = vpop.f32.mrf.mxu0  ;;  %8633 = vmatprep.mubr.bf16.mxu1 %v20339_v38  ;;  %8806 = vmatpush1.bf16.msra.mxu1 %v15981_v60  ;;  %v15992_v10 = vld [vmem:[#allocation6 + $0xe8c] ss:$16 sps:$4 sm:$0xff]  }
 0x473   :  { %v8045_v27 = vadd.f32 %v8044_v7, %v7932_v22  ;;  %8913 = vmatpush1.bf16.msra.mxu0 %v15978_v62  ;;  %v7949_v19 = vpop.f32.mrf.mxu1  ;;  %8807 = vmatprep.subr.bf16.mxu1 %v15989_v25  ;;  %v15995_v37 = vld [vmem:[#allocation6 + $0xc2c] ss:$16 sps:$4 sm:$0xff]   ;;  %v9363_v1 = vmax.f32 %v8043_v23, 0.0  ;;  %v18650_v25 = vadd.f32 %v18636_v9, %v9362_v63 }
 0x474   :  { %v18639_v57 = vadd.f32 %v7949_v19, %v18526_v29  ;;  %v8046_v5 = vpop.f32.mrf.mxu0  ;;  %8914 = vmatprep.subr.bf16.mxu0 %v15986_v28  ;;  %v20341_v38 = vld [vmem:[#allocation32_spill] sm:$0xff] }
 0x475   :  { %v18642_v60 = vrot.slane %v9427_v39, %v20341_v38  ;;  %v9366_v2 = vmax.f32 %v8045_v27, 0.0  ;;  %v8047_v17 = vadd.f32 %v8046_v5, %v18606_v54  ;;  %v7951_v44 = vpop.f32.mrf.mxu1  ;;  %v15993_v29 = vld [vmem:[#allocation6 + $0xc28] ss:$16 sps:$4 sm:$0xff]   ;;  %20342 = vst [vmem:[#allocation92_spill] sm:$0xff] %v18650_v25  ;;  %v15998_v63 = vld [vmem:[#allocation6 + $0xe6c] ss:$16 sps:$4 sm:$0xff]  }
 0x476   :  { %v18646_v22 = vadd.f32 %v7951_v44, %v18531_v4  ;;  %v8050_v62 = vpop.f32.mrf.mxu0  ;;  %8727 = vmatmul.mubr.bf16.gmra.mxu0 %v20319_v21  ;;  %8808 = vmatpush1.bf16.msra.mxu1 %v15987_v15  ;;  %v15990_v4 = vld [vmem:[#allocation6 + $0xe88] ss:$16 sps:$4 sm:$0xff]   ;;  %v16001_v44 = vld [vmem:[#allocation6 + $0xc0c] ss:$16 sps:$4 sm:$0xff]  }
 0x477   :  { %v18653_v28 = vadd.f32 %v18636_v9, %v9366_v2  ;;  %v9367_v39 = vmax.f32 %v8047_v17, 0.0  ;;  %v8051_v23 = vadd.f32 %v8050_v62, %v18612_v24  ;;  %8915 = vmatpush1.bf16.msra.mxu0 %v15984_v14  ;;  %8736 = vmatprep.mubr.bf16.mxu0 %v20320_v12  ;;  %v7953_v54 = vpop.f32.mrf.mxu1  ;;  %v18661_v27 = vadd.f32 %v18642_v60, %v9363_v1  ;;  %v20346_v5 = vld [vmem:[#allocation66_spill] sm:$0xff] }
 0x478   :  { %v18658_v7 = vadd.f32 %v7953_v54, %v18534_v34  ;;  %v8052_v15 = vpop.f32.mrf.mxu0  ;;  %8916 = vmatprep.subr.bf16.mxu0 %v15992_v10  ;;  %8809 = vmatprep.subr.bf16.mxu1 %v15995_v37  ;;  %v20347_v37 = vld [vmem:[#allocation67_spill] sm:$0xff]  ;;  %v15999_v1 = vld [vmem:[#allocation6 + $0xc08] ss:$16 sps:$4 sm:$0xff]   ;;  %v16007_v17 = vld [vmem:[#allocation6 + $0xdec] ss:$16 sps:$4 sm:$0xff]  }
 0x479   :  { %20343 = vst [vmem:[#allocation49_spill] sm:$0xff] %v18653_v28  ;;  %20344 = vst [vmem:[#allocation48_spill] sm:$0xff] %v18661_v27  ;;  %v18666_v24 = vadd.f32 %v18642_v60, %v9367_v39  ;;  %v8053_v19 = vadd.f32 %v8052_v15, %v18618_v53  ;;  %v7957_v14 = vpop.f32.mrf.mxu1  ;;  %8634 = vmatmul.mubr.bf16.gmra.mxu1 %v20346_v5  ;;  %v9370_v2 = vmax.f32 %v8051_v23, 0.0  ;;  %v15996_v39 = vld [vmem:[#allocation6 + $0xe68] ss:$16 sps:$4 sm:$0xff]  }
 0x47a   :  { %v18671_v34 = vadd.f32 %v7957_v14, %v18538_v3  ;;  %v8054_v10 = vpop.f32.mrf.mxu0  ;;  %8643 = vmatprep.mubr.bf16.mxu1 %v20347_v37  ;;  %8810 = vmatpush1.bf16.msra.mxu1 %v15993_v29  ;;  %v16004_v14 = vld [vmem:[#allocation6 + $0xe4c] ss:$16 sps:$4 sm:$0xff]  }
 0x47b   :  { %20345 = vst [vmem:[#allocation51_spill] sm:$0xff] %v18666_v24  ;;  %v8055_v62 = vadd.f32 %v8054_v10, %v18623_v8  ;;  %8917 = vmatpush1.bf16.msra.mxu0 %v15990_v4  ;;  %v7959_v54 = vpop.f32.mrf.mxu1  ;;  %8811 = vmatprep.subr.bf16.mxu1 %v16001_v44  ;;  %v9371_v38 = vmax.f32 %v8053_v19, 0.0  ;;  %v16005_v44 = vld [vmem:[#allocation6 + $0xde8] ss:$16 sps:$4 sm:$0xff]  }
 0x47c   :  { %v18678_v15 = vadd.f32 %v7959_v54, %v18542_v47  ;;  %v8056_v3 = vpop.f32.mrf.mxu0  ;;  %8918 = vmatprep.subr.bf16.mxu0 %v15998_v63  ;;  %v18686_v47 = vadd.f32 %v18636_v9, %v9370_v2  ;;  %v16010_v2 = vld [vmem:[#allocation6 + $0xe2c] ss:$16 sps:$4 sm:$0xff]  }
 0x47d   :  { %v9374_v29 = vmax.f32 %v8055_v62, 0.0  ;;  %v8057_v23 = vadd.f32 %v8056_v3, %v18628_v13  ;;  %v7961_v25 = vpop.f32.mrf.mxu1  ;;  %v18697_v54 = vadd.f32 %v18642_v60, %v9371_v38  ;;  %v16011_v38 = vld [vmem:[#allocation6 + $0xdc8] ss:$16 sps:$4 sm:$0xff]   ;;  %v16019_v3 = vld [vmem:[#allocation6 + $0xdac] ss:$16 sps:$4 sm:$0xff]  }
 0x47e   :  { %v18682_v8 = vadd.f32 %v7961_v25, %v18547_v11  ;;  %v8060_v4 = vpop.f32.mrf.mxu0  ;;  %8737 = vmatmul.mubr.bf16.gmra.mxu0 %v20321_v56  ;;  %8812 = vmatpush1.bf16.msra.mxu1 %v15999_v1  ;;  %20348 = vst [vmem:[#allocation35_spill] sm:$0xff] %v18686_v47  ;;  %v16002_v11 = vld [vmem:[#allocation6 + $0xe48] ss:$16 sps:$4 sm:$0xff]   ;;  %v16013_v25 = vld [vmem:[#allocation6 + $0xdcc] ss:$16 sps:$4 sm:$0xff]  }
 0x47f   :  { %v18689_v63 = vadd.f32 %v18636_v9, %v9374_v29  ;;  %v9375_v10 = vmax.f32 %v8057_v23, 0.0  ;;  %v8061_v19 = vadd.f32 %v8060_v4, %v18632_v46  ;;  %8919 = vmatpush1.bf16.msra.mxu0 %v15996_v39  ;;  %8746 = vmatprep.mubr.bf16.mxu0 %v20322_v41  ;;  %v7963_v13 = vpop.f32.mrf.mxu1  ;;  %20350 = vst [vmem:[#allocation42_spill] sm:$0xff] %v18697_v54  ;;  %v20352_v23 = vld [vmem:[#allocation70_spill] sm:$0xff] }
 0x480   :  { %v18694_v62 = vadd.f32 %v7963_v13, %v18550_v50  ;;  %v8062_v1 = vpop.f32.mrf.mxu0  ;;  %8920 = vmatprep.subr.bf16.mxu0 %v16004_v14  ;;  %8813 = vmatprep.subr.bf16.mxu1 %v16007_v17  ;;  %v20353_v17 = vld [vmem:[#allocation71_spill] sm:$0xff] }
 0x481   :  { %20349 = vst [vmem:[#allocation50_spill] sm:$0xff] %v18689_v63  ;;  %v18702_v46 = vadd.f32 %v18642_v60, %v9375_v10  ;;  %v8063_v39 = vadd.f32 %v8062_v1, %v18639_v57  ;;  %v7967_v29 = vpop.f32.mrf.mxu1  ;;  %8644 = vmatmul.mubr.bf16.gmra.mxu1 %v20352_v23  ;;  %v9378_v4 = vmax.f32 %v8061_v19, 0.0  ;;  %v16008_v10 = vld [vmem:[#allocation6 + $0xe28] ss:$16 sps:$4 sm:$0xff]  }
 0x482   :  { %v18707_v50 = vadd.f32 %v7967_v29, %v18554_v36  ;;  %v8064_v14 = vpop.f32.mrf.mxu0  ;;  %8653 = vmatprep.mubr.bf16.mxu1 %v20353_v17  ;;  %8814 = vmatpush2.bf16.msra.mxu1 %v16005_v44  ;;  %v16016_v29 = vld [vmem:[#allocation6 + $0xe0c] ss:$16 sps:$4 sm:$0xff]  }
 0x483   :  { %20351 = vst [vmem:[#allocation46_spill] sm:$0xff] %v18702_v46  ;;  %v8065_v13 = vadd.f32 %v8064_v14, %v18646_v22  ;;  %8921 = vmatpush1.bf16.msra.mxu0 %v16002_v11  ;;  %v7969_v53 = vpop.f32.mrf.mxu1  ;;  %8815 = vmatprep.subr.bf16.mxu1 %v16013_v25  ;;  %v9379_v28 = vmax.f32 %v8063_v39, 0.0  ;;  %v16017_v25 = vld [vmem:[#allocation6 + $0xda8] ss:$16 sps:$4 sm:$0xff]  }
 0x484   :  { %v18714_v1 = vadd.f32 %v7969_v53, %v18558_v6  ;;  %v8066_v36 = vpop.f32.mrf.mxu0  ;;  %8922 = vmatprep.subr.bf16.mxu0 %v16010_v2  ;;  %v18722_v6 = vadd.f32 %v18636_v9, %v9378_v4  ;;  %v16022_v4 = vld [vmem:[#allocation6 + $0xfec] ss:$16 sps:$4 sm:$0xff]  }
 0x485   :  { %v9382_v44 = vmax.f32 %v8065_v13, 0.0  ;;  %v8067_v19 = vadd.f32 %v8066_v36, %v18658_v7  ;;  %v7971_v27 = vpop.f32.mrf.mxu1  ;;  %v18733_v13 = vadd.f32 %v18642_v60, %v9379_v28  ;;  %v16023_v28 = vld [vmem:[#allocation6 + $0xd88] ss:$16 sps:$4 sm:$0xff]   ;;  %v16031_v36 = vld [vmem:[#allocation6 + $0xd6c] ss:$16 sps:$4 sm:$0xff]  }
 0x486   :  { %v18718_v22 = vadd.f32 %v7971_v27, %v18563_v32  ;;  %v8070_v11 = vpop.f32.mrf.mxu0  ;;  %8747 = vmatmul.mubr.bf16.gmra.mxu0 %v20323_v59  ;;  %8816 = vmatpush2.bf16.msra.mxu1 %v16011_v38  ;;  %20354 = vst [vmem:[#allocation47_spill] sm:$0xff] %v18722_v6  ;;  %v16014_v32 = vld [vmem:[#allocation6 + $0xe08] ss:$16 sps:$4 sm:$0xff]   ;;  %v16025_v27 = vld [vmem:[#allocation6 + $0xd8c] ss:$16 sps:$4 sm:$0xff]  }
 0x487   :  { %v18725_v53 = vadd.f32 %v18636_v9, %v9382_v44  ;;  %v9383_v2 = vmax.f32 %v8067_v19, 0.0  ;;  %v8071_v39 = vadd.f32 %v8070_v11, %v18671_v34  ;;  %8923 = vmatpush1.bf16.msra.mxu0 %v16008_v10  ;;  %8756 = vmatprep.mubr.bf16.mxu0 %v20324_v31  ;;  %v7973_v7 = vpop.f32.mrf.mxu1  ;;  %20356 = vst [vmem:[#allocation61_spill] sm:$0xff] %v18733_v13  ;;  %v20358_v19 = vld [vmem:[#allocation74_spill] sm:$0xff] }
 0x488   :  { %v18730_v14 = vadd.f32 %v7973_v7, %v18566_v35  ;;  %v8072_v38 = vpop.f32.mrf.mxu0  ;;  %8924 = vmatprep.subr.bf16.mxu0 %v16016_v29  ;;  %8817 = vmatprep.subr.bf16.mxu1 %v16019_v3  ;;  %v20359_v3 = vld [vmem:[#allocation75_spill] sm:$0xff]  ;;  %v16068_v13 = vld [vmem:[#allocation6 + $0x12e8] ss:$16 sps:$4 sm:$0xff]  }
 0x489   :  { %20355 = vst [vmem:[#allocation60_spill] sm:$0xff] %v18725_v53  ;;  %v18738_v34 = vadd.f32 %v18642_v60, %v9383_v2  ;;  %v8073_v10 = vadd.f32 %v8072_v38, %v18678_v15  ;;  %v7977_v44 = vpop.f32.mrf.mxu1  ;;  %8654 = vmatmul.mubr.bf16.gmra.mxu1 %v20358_v19  ;;  %v9386_v11 = vmax.f32 %v8071_v39, 0.0  ;;  %v16020_v2 = vld [vmem:[#allocation6 + $0xfe8] ss:$16 sps:$4 sm:$0xff]  }
 0x48a   :  { %v18743_v35 = vadd.f32 %v7977_v44, %v18570_v43  ;;  %v8074_v29 = vpop.f32.mrf.mxu0  ;;  %8663 = vmatprep.mubr.bf16.mxu1 %v20359_v3  ;;  %8818 = vmatpush2.bf16.msra.mxu1 %v16017_v25  ;;  %v16028_v44 = vld [vmem:[#allocation6 + $0xfcc] ss:$16 sps:$4 sm:$0xff]  }
 0x48b   :  { %20357 = vst [vmem:[#allocation65_spill] sm:$0xff] %v18738_v34  ;;  %v8075_v7 = vadd.f32 %v8074_v29, %v18682_v8  ;;  %8925 = vmatpush1.bf16.msra.mxu0 %v16014_v32  ;;  %v7979_v57 = vpop.f32.mrf.mxu1  ;;  %8819 = vmatprep.subr.bf16.mxu1 %v16025_v27  ;;  %v9387_v24 = vmax.f32 %v8073_v10, 0.0  ;;  %v16029_v27 = vld [vmem:[#allocation6 + $0xd68] ss:$16 sps:$4 sm:$0xff]   ;;  %v16076_v34 = vld [vmem:[#allocation6 + $0x12cc] ss:$16 sps:$4 sm:$0xff]  }
 0x48c   :  { %v18750_v38 = vadd.f32 %v7979_v57, %v18574_v20  ;;  %v8076_v43 = vpop.f32.mrf.mxu0  ;;  %8926 = vmatprep.subr.bf16.mxu0 %v16022_v4  ;;  %v18758_v20 = vadd.f32 %v18636_v9, %v9386_v11  ;;  %v16034_v11 = vld [vmem:[#allocation6 + $0xfac] ss:$16 sps:$4 sm:$0xff]  }
 0x48d   :  { %v9390_v25 = vmax.f32 %v8075_v7, 0.0  ;;  %v8077_v39 = vadd.f32 %v8076_v43, %v18694_v62  ;;  %v7981_v47 = vpop.f32.mrf.mxu1  ;;  %v18769_v7 = vadd.f32 %v18642_v60, %v9387_v24  ;;  %v16035_v24 = vld [vmem:[#allocation6 + $0xd48] ss:$16 sps:$4 sm:$0xff]   ;;  %v16043_v43 = vld [vmem:[#allocation6 + $0xd2c] ss:$16 sps:$4 sm:$0xff]  }
 0x48e   :  { %v18754_v8 = vadd.f32 %v7981_v47, %v18579_v51  ;;  %v8080_v32 = vpop.f32.mrf.mxu0  ;;  %8757 = vmatmul.mubr.bf16.gmra.mxu0 %v20325_v40  ;;  %8820 = vmatpush2.bf16.msra.mxu1 %v16023_v28  ;;  %20360 = vst [vmem:[#allocation68_spill] sm:$0xff] %v18758_v20  ;;  %v16026_v51 = vld [vmem:[#allocation6 + $0xfc8] ss:$16 sps:$4 sm:$0xff]   ;;  %v16037_v47 = vld [vmem:[#allocation6 + $0xd4c] ss:$16 sps:$4 sm:$0xff]  }
 0x48f   :  { %v18761_v57 = vadd.f32 %v18636_v9, %v9390_v25  ;;  %v9391_v4 = vmax.f32 %v8077_v39, 0.0  ;;  %v8081_v10 = vadd.f32 %v8080_v32, %v18707_v50  ;;  %8927 = vmatpush2.bf16.msra.mxu0 %v16020_v2  ;;  %8766 = vmatprep.mubr.bf16.mxu0 %v20326_v61  ;;  %v7983_v62 = vpop.f32.mrf.mxu1  ;;  %20362 = vst [vmem:[#allocation72_spill] sm:$0xff] %v18769_v7  ;;  %v20364_v39 = vld [vmem:[#allocation78_spill] sm:$0xff] }
 0x490   :  { %v18766_v29 = vadd.f32 %v7983_v62, %v18582_v55  ;;  %v8082_v28 = vpop.f32.mrf.mxu0  ;;  %8928 = vmatprep.subr.bf16.mxu0 %v16028_v44  ;;  %8821 = vmatprep.subr.bf16.mxu1 %v16031_v36  ;;  %v20365_v36 = vld [vmem:[#allocation86_spill] sm:$0xff] }
 0x491   :  { %20361 = vst [vmem:[#allocation69_spill] sm:$0xff] %v18761_v57  ;;  %v18774_v50 = vadd.f32 %v18642_v60, %v9391_v4  ;;  %v8083_v2 = vadd.f32 %v8082_v28, %v18714_v1  ;;  %v7987_v25 = vpop.f32.mrf.mxu1  ;;  %8664 = vmatmul.mubr.bf16.gmra.mxu1 %v20364_v39  ;;  %v9394_v32 = vmax.f32 %v8081_v10, 0.0  ;;  %v16032_v4 = vld [vmem:[#allocation6 + $0xfa8] ss:$16 sps:$4 sm:$0xff]   ;;  %v16097_v61 = vld [vmem:[#allocation6 + $0x100c] ss:$16 sps:$4 sm:$0xff]  }
 0x492   :  { %v18779_v55 = vadd.f32 %v7987_v25, %v18586_v26  ;;  %v8084_v44 = vpop.f32.mrf.mxu0  ;;  %8673 = vmatprep.mubr.bf16.mxu1 %v20365_v36  ;;  %8822 = vmatpush2.bf16.msra.mxu1 %v16029_v27  ;;  %v16040_v25 = vld [vmem:[#allocation6 + $0xf8c] ss:$16 sps:$4 sm:$0xff]  }
 0x493   :  { %20363 = vst [vmem:[#allocation73_spill] sm:$0xff] %v18774_v50  ;;  %v8085_v62 = vadd.f32 %v8084_v44, %v18718_v22  ;;  %8929 = vmatpush2.bf16.msra.mxu0 %v16026_v51  ;;  %v7989_v15 = vpop.f32.mrf.mxu1  ;;  %8823 = vmatprep.subr.bf16.mxu1 %v16037_v47  ;;  %v9395_v63 = vmax.f32 %v8083_v2, 0.0  ;;  %v16041_v47 = vld [vmem:[#allocation6 + $0xd28] ss:$16 sps:$4 sm:$0xff]  }
 0x494   :  { %v18786_v28 = vadd.f32 %v7989_v15, %v18590_v49  ;;  %v8086_v26 = vpop.f32.mrf.mxu0  ;;  %8930 = vmatprep.subr.bf16.mxu0 %v16034_v11  ;;  %v18794_v49 = vadd.f32 %v18636_v9, %v9394_v32  ;;  %v16046_v32 = vld [vmem:[#allocation6 + $0xf6c] ss:$16 sps:$4 sm:$0xff]  }
 0x495   :  { %v9398_v27 = vmax.f32 %v8085_v62, 0.0  ;;  %v8087_v10 = vadd.f32 %v8086_v26, %v18730_v14  ;;  %v7991_v54 = vpop.f32.mrf.mxu1  ;;  %v18805_v62 = vadd.f32 %v18642_v60, %v9395_v63  ;;  %v16047_v63 = vld [vmem:[#allocation6 + $0xd08] ss:$16 sps:$4 sm:$0xff]  }
 0x496   :  { %v18790_v22 = vadd.f32 %v7991_v54, %v18595_v48  ;;  %v8090_v51 = vpop.f32.mrf.mxu0  ;;  %8767 = vmatmul.mubr.bf16.gmra.mxu0 %v20327_v18  ;;  %8824 = vmatpush2.bf16.msra.mxu1 %v16035_v24  ;;  %20366 = vst [vmem:[#allocation76_spill] sm:$0xff] %v18794_v49  ;;  %v16038_v48 = vld [vmem:[#allocation6 + $0xf88] ss:$16 sps:$4 sm:$0xff]   ;;  %v16049_v54 = vld [vmem:[#allocation6 + $0xd0c] ss:$16 sps:$4 sm:$0xff]  }
 0x497   :  { %v18797_v15 = vadd.f32 %v18636_v9, %v9398_v27  ;;  %v9399_v11 = vmax.f32 %v8087_v10, 0.0  ;;  %v8091_v2 = vadd.f32 %v8090_v51, %v18743_v35  ;;  %8931 = vmatpush2.bf16.msra.mxu0 %v16032_v4  ;;  %8776 = vmatprep.mubr.bf16.mxu0 %v20328_v42  ;;  %v7993_v14 = vpop.f32.mrf.mxu1  ;;  %20368 = vst [vmem:[#allocation44_spill] sm:$0xff] %v18805_v62  ;;  %v20370_v10 = vld [vmem:[#allocation81_spill] sm:$0xff]  ;;  %v20376_v53 = vld [vmem:[#allocation30_spill] sm:$0xff] }
 0x498   :  { %v18802_v44 = vadd.f32 %v7993_v14, %v18598_v52  ;;  %v8092_v24 = vpop.f32.mrf.mxu0  ;;  %8932 = vmatprep.subr.bf16.mxu0 %v16040_v25  ;;  %8825 = vmatprep.subr.bf16.mxu1 %v16043_v43  ;;  %v20371_v43 = vld [vmem:[#allocation53_spill] sm:$0xff] }
 0x499   :  { %20367 = vst [vmem:[#allocation43_spill] sm:$0xff] %v18797_v15  ;;  %v18810_v35 = vadd.f32 %v18642_v60, %v9399_v11  ;;  %v8093_v4 = vadd.f32 %v8092_v24, %v18750_v38  ;;  %v7997_v27 = vpop.f32.mrf.mxu1  ;;  %8674 = vmatmul.mubr.bf16.gmra.mxu1 %v20370_v10  ;;  %v9402_v51 = vmax.f32 %v8091_v2, 0.0  ;;  %v16044_v11 = vld [vmem:[#allocation6 + $0xf68] ss:$16 sps:$4 sm:$0xff]  }
 0x49a   :  { %v18815_v52 = vadd.f32 %v7997_v27, %v18602_v58  ;;  %v8094_v25 = vpop.f32.mrf.mxu0  ;;  %8826 = vmatpush2.bf16.msra.mxu1 %v16041_v47  ;;  %8829 = vmatprep.mubr.bf16.mxu1 %v20371_v43  ;;  %v16052_v27 = vld [vmem:[#allocation6 + $0xf4c] ss:$16 sps:$4 sm:$0xff]   ;;  %v16086_v15 = vld [vmem:[#allocation6 + $0x1288] ss:$16 sps:$4 sm:$0xff]  }
 0x49b   :  { %20369 = vst [vmem:[#allocation45_spill] sm:$0xff] %v18810_v35  ;;  %v8095_v14 = vadd.f32 %v8094_v25, %v18754_v8  ;;  %8933 = vmatpush2.bf16.msra.mxu0 %v16038_v48  ;;  %v7999_v1 = vpop.f32.mrf.mxu1  ;;  %8827 = vmatprep.subr.bf16.mxu1 %v16049_v54  ;;  %v16055_v47 = vld [vmem:[#allocation6 + $0x10ec] ss:$16 sps:$4 sm:$0xff]   ;;  %v9403_v26 = vmax.f32 %v8093_v4, 0.0  ;;  %v16053_v54 = vld [vmem:[#allocation6 + $0x10e8] ss:$16 sps:$4 sm:$0xff]  }
 0x49c   :  { %v18822_v24 = vadd.f32 %v7999_v1, %v18608_v16  ;;  %v8096_v58 = vpop.f32.mrf.mxu0  ;;  %8934 = vmatprep.subr.bf16.mxu0 %v16046_v32  ;;  %v18830_v16 = vadd.f32 %v18636_v9, %v9402_v51  ;;  %v16058_v51 = vld [vmem:[#allocation6 + $0xf2c] ss:$16 sps:$4 sm:$0xff]  }
 0x49d   :  { %v9406_v43 = vmax.f32 %v8095_v14, 0.0  ;;  %v8097_v2 = vadd.f32 %v8096_v58, %v18766_v29  ;;  %v8001_v46 = vpop.f32.mrf.mxu1  ;;  %v20373_v29 = vld [vmem:[#allocation90_spill] sm:$0xff]  ;;  %v18841_v58 = vadd.f32 %v18642_v60, %v9403_v26 }
 0x49e   :  { %v18826_v8 = vadd.f32 %v8001_v46, %v18615_v30  ;;  %v8100_v48 = vpop.f32.mrf.mxu0  ;;  %8777 = vmatmul.mubr.bf16.gmra.mxu0 %v20330_v45  ;;  %8828 = vmatpush2.bf16.msra.mxu1 %v16047_v63  ;;  %20372 = vst [vmem:[#allocation67_spill] sm:$0xff] %v18830_v16  ;;  %v16050_v30 = vld [vmem:[#allocation6 + $0xf48] ss:$16 sps:$4 sm:$0xff]   ;;  %v16061_v46 = vld [vmem:[#allocation6 + $0x10cc] ss:$16 sps:$4 sm:$0xff]  }
 0x49f   :  { %v18833_v1 = vadd.f32 %v18636_v9, %v9406_v43  ;;  %v9407_v32 = vmax.f32 %v8097_v2, 0.0  ;;  %v8101_v4 = vadd.f32 %v8100_v48, %v18779_v55  ;;  %8935 = vmatpush2.bf16.msra.mxu0 %v16044_v11  ;;  %8786 = vmatprep.mubr.bf16.mxu0 %v20373_v29  ;;  %v8003_v25 = vpop.f32.mrf.mxu1  ;;  %v20374_v48 = vld [vmem:[#allocation52_spill] sm:$0xff] }
 0x4a0   :  { %v18838_v14 = vadd.f32 %v8003_v25, %v18620_v33  ;;  %v8102_v63 = vpop.f32.mrf.mxu0  ;;  %8936 = vmatprep.subr.bf16.mxu0 %v16052_v27  ;;  %9023 = vmatprep.subr.bf16.mxu1 %v16055_v47  ;;  %v20375_v25 = vld [vmem:[#allocation55_spill] sm:$0xff]  ;;  %v16059_v27 = vld [vmem:[#allocation6 + $0x10c8] ss:$16 sps:$4 sm:$0xff]   ;;  %v16067_v29 = vld [vmem:[#allocation6 + $0x10ac] ss:$16 sps:$4 sm:$0xff]  }
 0x4a1   :  { %v18846_v55 = vadd.f32 %v18642_v60, %v9407_v32  ;;  %v8103_v11 = vadd.f32 %v8102_v63, %v18786_v28  ;;  %v18849_v2 = vpop.f32.mrf.mxu1  ;;  %8830 = vmatmul.mubr.bf16.vlgmr.msra.gmra.mxu1 %v20374_v48  ;;  %v9410_v47 = vmax.f32 %v8101_v4, 0.0  ;;  %v16056_v43 = vld [vmem:[#allocation6 + $0xf28] ss:$16 sps:$4 sm:$0xff]   ;;  %v16064_v63 = vld [vmem:[#allocation6 + $0xf0c] ss:$16 sps:$4 sm:$0xff]   ;;  %v18858_v4 = vsub.s32 3, %v20376_v53 }
 0x4a2   :  { %v8104_v33 = vpop.f32.mrf.mxu0  ;;  %8839 = vmatprep.mubr.bf16.mxu1 %v20375_v25  ;;  %9024 = vmatpush1.bf16.msra.mxu1 %v16053_v54  ;;  %v16062_v53 = vld [vmem:[#allocation6 + $0xf08] ss:$16 sps:$4 sm:$0xff]  }
 0x4a3   :  { %v8105_v26 = vadd.f32 %v8104_v33, %v18790_v22  ;;  %8937 = vmatpush2.bf16.msra.mxu0 %v16050_v30  ;;  %v8155_v38 = vpop.f32.mrf.mxu1  ;;  %9025 = vmatprep.subr.bf16.mxu1 %v16061_v46  ;;  %v9411_v48 = vmax.f32 %v8103_v11, 0.0  ;;  %20377 = vst [vmem:[#allocation71_spill] sm:$0xff] %v18858_v4  ;;  %v20378_v30 = vld [vmem:[#allocation91_spill] sm:$0xff]  ;;  %v16065_v46 = vld [vmem:[#allocation6 + $0x10a8] ss:$16 sps:$4 sm:$0xff]   ;;  %v18862_v33 = vadd.f32 %v18636_v9, %v9410_v47 }
 0x4a4   :  { %v8106_v28 = vpop.f32.mrf.mxu0  ;;  %8938 = vmatprep.subr.bf16.mxu0 %v16058_v51  ;;  %v16070_v47 = vld [vmem:[#allocation6 + $0x12ec] ss:$16 sps:$4 sm:$0xff]  }
 0x4a5   :  { %v9414_v45 = vmax.f32 %v8105_v26, 0.0  ;;  %v8107_v6 = vadd.f32 %v8106_v28, %v18802_v44  ;;  %v8157_v54 = vpop.f32.mrf.mxu1  ;;  %v16073_v26 = vld [vmem:[#allocation6 + $0x108c] ss:$16 sps:$4 sm:$0xff]   ;;  %v16537_v28 = vld [vmem:[#allocation7] ss:$2 sm:$0xf] }
 0x4a6   :  { %v8110_v22 = vpop.f32.mrf.mxu0  ;;  %8787 = vmatmul.mubr.bf16.gmra.mxu0 %v20378_v30  ;;  %9026 = vmatpush1.bf16.msra.mxu1 %v16059_v27  ;;  %v20379_v30 = vld [vmem:[#allocation38_spill] sm:$0xff] }
 0x4a7   :  { %v18865_v51 = vadd.f32 %v18636_v9, %v9414_v45  ;;  %v9415_v32 = vmax.f32 %v8107_v6, 0.0  ;;  %v8111_v11 = vadd.f32 %v8110_v22, %v18815_v52  ;;  %8939 = vmatpush2.bf16.msra.mxu0 %v16056_v43  ;;  %8942 = vmatprep.mubr.bf16.mxu0 %v20334_v0  ;;  %v18869_v44 = vpop.f32.mrf.mxu1  ;;  %v18872_v27 = vrot.slane %v16537_v28, %v20379_v30  ;;  %v20380_v22 = vld [vmem:[#allocation54_spill] sm:$0xff] }
 0x4a8   :  { %v8112_v42 = vpop.f32.mrf.mxu0  ;;  %8940 = vmatprep.subr.bf16.mxu0 %v16064_v63  ;;  %9027 = vmatprep.subr.bf16.mxu1 %v16067_v29  ;;  %v18875_v45 = vadd.f32 %v18642_v60, %v9411_v48  ;;  %v18887_v30 = vrot.slane %v16537_v28, %v18858_v4  ;;  %v20381_v63 = vld [vmem:[#allocation57_spill] sm:$0xff]  ;;  %v16071_v48 = vld [vmem:[#allocation6 + $0x1088] ss:$16 sps:$4 sm:$0xff]   ;;  %v16079_v28 = vld [vmem:[#allocation6 + $0x106c] ss:$16 sps:$4 sm:$0xff]  }
 0x4a9   :  { %v18880_v0 = vadd.f32 %v18642_v60, %v9415_v32  ;;  %v8113_v52 = vadd.f32 %v8112_v42, %v18822_v24  ;;  %v18883_v43 = vpop.f32.mrf.mxu1  ;;  %8840 = vmatmul.mubr.bf16.gmra.mxu1 %v20380_v22  ;;  %v9418_v18 = vmax.f32 %v8111_v11, 0.0  ;;  %v8154_v4 = vadd.f32 %v18849_v2, %v18872_v27 }
 0x4aa   :  { %v8114_v29 = vpop.f32.mrf.mxu0  ;;  %8849 = vmatprep.mubr.bf16.mxu1 %v20381_v63  ;;  %9028 = vmatpush1.bf16.msra.mxu1 %v16065_v46 }
 0x4ab   :  { %v8115_v6 = vadd.f32 %v8114_v29, %v18826_v8  ;;  %8941 = vmatpush2.bf16.msra.mxu0 %v16062_v53  ;;  %v8165_v32 = vpop.f32.mrf.mxu1  ;;  %9029 = vmatprep.subr.bf16.mxu1 %v16073_v26  ;;  %v9419_v20 = vmax.f32 %v8113_v52, 0.0  ;;  %v8156_v8 = vadd.f32 %v8155_v38, %v18887_v30  ;;  %v20382_v29 = vld [vmem:[#allocation58_spill] sm:$0xff]  ;;  %v18899_v42 = vadd.f32 %v18636_v9, %v9418_v18 }
 0x4ac   :  { %v8116_v24 = vpop.f32.mrf.mxu0  ;;  %9136 = vmatprep.subr.bf16.mxu0 %v16070_v47  ;;  %v16077_v26 = vld [vmem:[#allocation6 + $0x1068] ss:$16 sps:$4 sm:$0xff]   ;;  %v16085_v38 = vld [vmem:[#allocation6 + $0x104c] ss:$16 sps:$4 sm:$0xff]  }
 0x4ad   :  { %v9422_v46 = vmax.f32 %v8115_v6, 0.0  ;;  %v8117_v11 = vadd.f32 %v8116_v24, %v18838_v14  ;;  %v8167_v57 = vpop.f32.mrf.mxu1  ;;  %v20383_v6 = vld [vmem:[#allocation59_spill] sm:$0xff]  ;;  %v16074_v52 = vld [vmem:[#allocation6 + $0x12c8] ss:$16 sps:$4 sm:$0xff]   ;;  %v8158_v24 = vadd.f32 %v8157_v54, %v18872_v27  ;;  %v18909_v18 = vadd.f32 %v18642_v60, %v9419_v20  ;;  %v20385_v54 = vld [vmem:[#allocation33_spill] sm:$0xff] }
 0x4ae   :  { %v8266_v53 = vpop.f32.mrf.mxu0  ;;  %8943 = vmatmul.mubr.bf16.vlgmr.msra.gmra.mxu0 %v20382_v29  ;;  %9030 = vmatpush1.bf16.msra.mxu1 %v16071_v48  ;;  %v16082_v48 = vld [vmem:[#allocation6 + $0x12ac] ss:$16 sps:$4 sm:$0xff]   ;;  %v8160_v20 = vadd.f32 %v18869_v44, %v18887_v30 }
 0x4af   :  { %v18902_v47 = vadd.f32 %v18636_v9, %v9422_v46  ;;  %v9423_v7 = vmax.f32 %v8117_v11, 0.0  ;;  %v18904_v2 = vadd.f32 %v8266_v53, %v8154_v4  ;;  %9137 = vmatpush1.bf16.msra.mxu0 %v16068_v13  ;;  %8952 = vmatprep.mubr.bf16.mxu0 %v20383_v6  ;;  %v8169_v14 = vpop.f32.mrf.mxu1  ;;  %v20384_v11 = vld [vmem:[#allocation56_spill] sm:$0xff] }
 0x4b0   :  { %v8268_v29 = vpop.f32.mrf.mxu0  ;;  %9138 = vmatprep.subr.bf16.mxu0 %v16076_v34  ;;  %9031 = vmatprep.subr.bf16.mxu1 %v16079_v28  ;;  %v16083_v34 = vld [vmem:[#allocation6 + $0x1048] ss:$16 sps:$4 sm:$0xff]  }
 0x4b1   :  { %v18914_v4 = vadd.f32 %v18642_v60, %v9423_v7  ;;  %v18916_v13 = vadd.f32 %v8268_v29, %v8156_v8  ;;  %v8173_v46 = vpop.f32.mrf.mxu1  ;;  %8850 = vmatmul.mubr.bf16.gmra.mxu1 %v20384_v11  ;;  %v16080_v9 = vld [vmem:[#allocation6 + $0x12a8] ss:$16 sps:$4 sm:$0xff]   ;;  %v16088_v8 = vld [vmem:[#allocation6 + $0x128c] ss:$16 sps:$4 sm:$0xff]   ;;  %v20387_v60 = vld [vmem:[#allocation63_spill] sm:$0xff] }
 0x4b2   :  { %v8270_v53 = vpop.f32.mrf.mxu0  ;;  %8859 = vmatprep.mubr.bf16.mxu1 %v20385_v54  ;;  %9032 = vmatpush1.bf16.msra.mxu1 %v16077_v26  ;;  %v16091_v29 = vld [vmem:[#allocation6 + $0x102c] ss:$16 sps:$4 sm:$0xff]   ;;  %v8164_v26 = vadd.f32 %v18883_v43, %v18872_v27 }
 0x4b3   :  { %v18922_v28 = vadd.f32 %v8270_v53, %v8158_v24  ;;  %9139 = vmatpush1.bf16.msra.mxu0 %v16074_v52  ;;  %v8175_v6 = vpop.f32.mrf.mxu1  ;;  %9033 = vmatprep.subr.bf16.mxu1 %v16085_v38  ;;  %v20386_v24 = vld [vmem:[#allocation62_spill] sm:$0xff]  ;;  %v8166_v38 = vadd.f32 %v8165_v32, %v18887_v30 }
 0x4b4   :  { %v8272_v7 = vpop.f32.mrf.mxu0  ;;  %9140 = vmatprep.subr.bf16.mxu0 %v16082_v48  ;;  %v16089_v52 = vld [vmem:[#allocation6 + $0x1028] ss:$16 sps:$4 sm:$0xff]   ;;  %v16094_v43 = vld [vmem:[#allocation6 + $0x126c] ss:$16 sps:$4 sm:$0xff]  }
 0x4b5   :  { %v18928_v50 = vadd.f32 %v8272_v7, %v8160_v20  ;;  %v8177_v49 = vpop.f32.mrf.mxu1  ;;  %v8168_v20 = vadd.f32 %v8167_v57, %v18872_v27  ;;  %v16103_v57 = vld [vmem:[#allocation6 + $0x11ec] ss:$16 sps:$4 sm:$0xff]  }
 0x4b6   :  { %v8276_v44 = vpop.f32.mrf.mxu0  ;;  %8953 = vmatmul.mubr.bf16.gmra.mxu0 %v20386_v24  ;;  %9034 = vmatpush1.bf16.msra.mxu1 %v16083_v34  ;;  %v20388_v24 = vld [vmem:[#allocation26_spill] sm:$0xff] }
 0x4b7   :  { %v18932_v53 = vadd.f32 %v8276_v44, %v8164_v26  ;;  %9141 = vmatpush1.bf16.msra.mxu0 %v16080_v9  ;;  %8962 = vmatprep.mubr.bf16.mxu0 %v20387_v60  ;;  %v8179_v48 = vpop.f32.mrf.mxu1  ;;  %v20389_v26 = vld [vmem:[#allocation34_spill] sm:$0xff]  ;;  %v8170_v60 = vadd.f32 %v8169_v14, %v18887_v30 }
 0x4b8   :  { %v8278_v40 = vpop.f32.mrf.mxu0  ;;  %9142 = vmatprep.subr.bf16.mxu0 %v16088_v8  ;;  %9035 = vmatprep.subr.bf16.mxu1 %v16091_v29  ;;  %v16095_v9 = vld [vmem:[#allocation6 + $0x1008] ss:$16 sps:$4 sm:$0xff]  }
 0x4b9   :  { %v18936_v7 = vadd.f32 %v8278_v40, %v8166_v38  ;;  %v8183_v34 = vpop.f32.mrf.mxu1  ;;  %8860 = vmatmul.mubr.bf16.gmra.mxu1 %v20388_v24  ;;  %v16092_v29 = vld [vmem:[#allocation6 + $0x1268] ss:$16 sps:$4 sm:$0xff]   ;;  %v16100_v40 = vld [vmem:[#allocation6 + $0x124c] ss:$16 sps:$4 sm:$0xff]   ;;  %v8174_v38 = vadd.f32 %v8173_v46, %v18872_v27  ;;  %v8178_v46 = vadd.f32 %v8177_v49, %v18872_v27 }
 0x4ba   :  { %v8280_v32 = vpop.f32.mrf.mxu0  ;;  %8869 = vmatprep.mubr.bf16.mxu1 %v20389_v26  ;;  %9036 = vmatpush1.bf16.msra.mxu1 %v16089_v52  ;;  %v16101_v14 = vld [vmem:[#allocation6 + $0x11e8] ss:$16 sps:$4 sm:$0xff]   ;;  %v8176_v52 = vadd.f32 %v8175_v6, %v18887_v30  ;;  %v16112_v49 = vld [vmem:[#allocation6 + $0x120c] ss:$16 sps:$4 sm:$0xff]  }
 0x4bb   :  { %v18941_v44 = vadd.f32 %v8280_v32, %v8168_v20  ;;  %9143 = vmatpush1.bf16.msra.mxu0 %v16086_v15  ;;  %v8185_v8 = vpop.f32.mrf.mxu1  ;;  %9037 = vmatprep.subr.bf16.mxu1 %v16097_v61  ;;  %v16109_v20 = vld [vmem:[#allocation6 + $0x11cc] ss:$16 sps:$4 sm:$0xff]  }
 0x4bc   :  { %v8282_v62 = vpop.f32.mrf.mxu0  ;;  %9144 = vmatprep.subr.bf16.mxu0 %v16094_v43  ;;  %v16098_v43 = vld [vmem:[#allocation6 + $0x1248] ss:$16 sps:$4 sm:$0xff]  }
 0x4bd   :  { %v18944_v24 = vadd.f32 %v8282_v62, %v8170_v60  ;;  %v8187_v35 = vpop.f32.mrf.mxu1  ;;  %v16106_v62 = vld [vmem:[#allocation6 + $0x122c] ss:$16 sps:$4 sm:$0xff]  }
 0x4be   :  { %v8286_v26 = vpop.f32.mrf.mxu0  ;;  %8963 = vmatmul.mubr.bf16.gmra.mxu0 %v20346_v5  ;;  %9038 = vmatpush1.bf16.msra.mxu1 %v16095_v9  ;;  %v20390_v5 = vld [vmem:[#allocation25_spill] sm:$0xff] }
 0x4bf   :  { %v18948_v15 = vadd.f32 %v8286_v26, %v8174_v38  ;;  %9145 = vmatpush1.bf16.msra.mxu0 %v16092_v29  ;;  %8972 = vmatprep.mubr.bf16.mxu0 %v20347_v37  ;;  %v8189_v61 = vpop.f32.mrf.mxu1  ;;  %v20391_v26 = vld [vmem:[#allocation27_spill] sm:$0xff]  ;;  %v16107_v29 = vld [vmem:[#allocation6 + $0x11c8] ss:$16 sps:$4 sm:$0xff]   ;;  %v8180_v37 = vadd.f32 %v8179_v48, %v18887_v30 }
 0x4c0   :  { %v8288_v32 = vpop.f32.mrf.mxu0  ;;  %9146 = vmatprep.subr.bf16.mxu0 %v16100_v40  ;;  %9039 = vmatprep.subr.bf16.mxu1 %v16103_v57  ;;  %v16104_v57 = vld [vmem:[#allocation6 + $0x1228] ss:$16 sps:$4 sm:$0xff]  }
 0x4c1   :  { %v18952_v60 = vadd.f32 %v8288_v32, %v8176_v52  ;;  %v8193_v9 = vpop.f32.mrf.mxu1  ;;  %8870 = vmatmul.mubr.bf16.gmra.mxu1 %v20390_v5  ;;  %v16115_v52 = vld [vmem:[#allocation6 + $0x11ac] ss:$16 sps:$4 sm:$0xff]   ;;  %v8184_v32 = vadd.f32 %v8183_v34, %v18872_v27  ;;  %v16113_v48 = vld [vmem:[#allocation6 + $0x11a8] ss:$16 sps:$4 sm:$0xff]   ;;  %v8188_v34 = vadd.f32 %v8187_v35, %v18872_v27 }
 0x4c2   :  { %v8290_v6 = vpop.f32.mrf.mxu0  ;;  %8879 = vmatprep.mubr.bf16.mxu1 %v20391_v26  ;;  %9040 = vmatpush2.bf16.msra.mxu1 %v16101_v14  ;;  %v8186_v14 = vadd.f32 %v8185_v8, %v18887_v30  ;;  %v16124_v35 = vld [vmem:[#allocation6 + $0x13cc] ss:$16 sps:$4 sm:$0xff]  }
 0x4c3   :  { %v18957_v38 = vadd.f32 %v8290_v6, %v8178_v46  ;;  %9147 = vmatpush1.bf16.msra.mxu0 %v16098_v43  ;;  %v8195_v40 = vpop.f32.mrf.mxu1  ;;  %9041 = vmatprep.subr.bf16.mxu1 %v16109_v20  ;;  %v16121_v46 = vld [vmem:[#allocation6 + $0x118c] ss:$16 sps:$4 sm:$0xff]  }
 0x4c4   :  { %v8292_v54 = vpop.f32.mrf.mxu0  ;;  %9148 = vmatprep.subr.bf16.mxu0 %v16106_v62  ;;  %v16110_v62 = vld [vmem:[#allocation6 + $0x1208] ss:$16 sps:$4 sm:$0xff]  }
 0x4c5   :  { %v18960_v5 = vadd.f32 %v8292_v54, %v8180_v37  ;;  %v8197_v16 = vpop.f32.mrf.mxu1  ;;  %v16118_v54 = vld [vmem:[#allocation6 + $0x13ec] ss:$16 sps:$4 sm:$0xff]  }
 0x4c6   :  { %v8296_v26 = vpop.f32.mrf.mxu0  ;;  %8973 = vmatmul.mubr.bf16.gmra.mxu0 %v20352_v23  ;;  %9042 = vmatpush2.bf16.msra.mxu1 %v16107_v29  ;;  %v20394_v23 = vld [vmem:[#allocation36_spill] sm:$0xff] }
 0x4c7   :  { %v18964_v43 = vadd.f32 %v8296_v26, %v8184_v32  ;;  %9149 = vmatpush1.bf16.msra.mxu0 %v16104_v57  ;;  %8982 = vmatprep.mubr.bf16.mxu0 %v20353_v17  ;;  %v8199_v20 = vpop.f32.mrf.mxu1  ;;  %v20395_v26 = vld [vmem:[#allocation28_spill] sm:$0xff]  ;;  %v8190_v17 = vadd.f32 %v8189_v61, %v18887_v30 }
 0x4c8   :  { %v8298_v6 = vpop.f32.mrf.mxu0  ;;  %9150 = vmatprep.subr.bf16.mxu0 %v16112_v49  ;;  %9043 = vmatprep.subr.bf16.mxu1 %v16115_v52  ;;  %v16119_v57 = vld [vmem:[#allocation6 + $0x1188] ss:$16 sps:$4 sm:$0xff]  }
 0x4c9   :  { %20392 = vst [vmem:[#allocation75_spill] sm:$0xff] %v18964_v43  ;;  %v18968_v37 = vadd.f32 %v8298_v6, %v8186_v14  ;;  %v8203_v29 = vpop.f32.mrf.mxu1  ;;  %8880 = vmatmul.mubr.bf16.gmra.mxu1 %v20394_v23  ;;  %v16116_v52 = vld [vmem:[#allocation6 + $0x13e8] ss:$16 sps:$4 sm:$0xff]   ;;  %v16127_v14 = vld [vmem:[#allocation6 + $0x116c] ss:$16 sps:$4 sm:$0xff]   ;;  %v8194_v6 = vadd.f32 %v8193_v9, %v18872_v27 }
 0x4ca   :  { %v8300_v8 = vpop.f32.mrf.mxu0  ;;  %8889 = vmatprep.mubr.bf16.mxu1 %v20395_v26  ;;  %9044 = vmatpush2.bf16.msra.mxu1 %v16113_v48  ;;  %v16125_v61 = vld [vmem:[#allocation6 + $0x1168] ss:$16 sps:$4 sm:$0xff]   ;;  %v8196_v48 = vadd.f32 %v8195_v40, %v18887_v30  ;;  %v16130_v9 = vld [vmem:[#allocation6 + $0x13ac] ss:$16 sps:$4 sm:$0xff]  }
 0x4cb   :  { %20393 = vst [vmem:[#allocation86_spill] sm:$0xff] %v18968_v37  ;;  %v18973_v32 = vadd.f32 %v8300_v8, %v8188_v34  ;;  %9151 = vmatpush1.bf16.msra.mxu0 %v16110_v62  ;;  %v8205_v49 = vpop.f32.mrf.mxu1  ;;  %9045 = vmatprep.subr.bf16.mxu1 %v16121_v46  ;;  %v16133_v34 = vld [vmem:[#allocation6 + $0x114c] ss:$16 sps:$4 sm:$0xff]  }
 0x4cc   :  { %v8302_v43 = vpop.f32.mrf.mxu0  ;;  %9152 = vmatprep.subr.bf16.mxu0 %v16118_v54  ;;  %v16122_v54 = vld [vmem:[#allocation6 + $0x13c8] ss:$16 sps:$4 sm:$0xff]  }
 0x4cd   :  { %v18976_v23 = vadd.f32 %v8302_v43, %v8190_v17  ;;  %v8207_v37 = vpop.f32.mrf.mxu1  ;;  %v8198_v43 = vadd.f32 %v8197_v16, %v18872_v27  ;;  %v16136_v16 = vld [vmem:[#allocation6 + $0x138c] ss:$16 sps:$4 sm:$0xff]  }
 0x4ce   :  { %v8306_v26 = vpop.f32.mrf.mxu0  ;;  %8983 = vmatmul.mubr.bf16.gmra.mxu0 %v20358_v19  ;;  %9046 = vmatpush2.bf16.msra.mxu1 %v16119_v57  ;;  %v20398_v19 = vld [vmem:[#allocation37_spill] sm:$0xff] }
 0x4cf   :  { %v18980_v62 = vadd.f32 %v8306_v26, %v8194_v6  ;;  %9153 = vmatpush2.bf16.msra.mxu0 %v16116_v52  ;;  %8992 = vmatprep.mubr.bf16.mxu0 %v20359_v3  ;;  %v8209_v46 = vpop.f32.mrf.mxu1  ;;  %v20399_v26 = vld [vmem:[#allocation40_spill] sm:$0xff]  ;;  %v8200_v3 = vadd.f32 %v8199_v20, %v18887_v30 }
 0x4d0   :  { %v8308_v8 = vpop.f32.mrf.mxu0  ;;  %9154 = vmatprep.subr.bf16.mxu0 %v16124_v35  ;;  %9047 = vmatprep.subr.bf16.mxu1 %v16127_v14  ;;  %v16131_v52 = vld [vmem:[#allocation6 + $0x1148] ss:$16 sps:$4 sm:$0xff]  }
 0x4d1   :  { %20396 = vst [vmem:[#allocation81_spill] sm:$0xff] %v18980_v62  ;;  %v18984_v17 = vadd.f32 %v8308_v8, %v8196_v48  ;;  %v8213_v57 = vpop.f32.mrf.mxu1  ;;  %8890 = vmatmul.mubr.bf16.gmra.mxu1 %v20398_v19  ;;  %v16128_v14 = vld [vmem:[#allocation6 + $0x13a8] ss:$16 sps:$4 sm:$0xff]   ;;  %v16139_v48 = vld [vmem:[#allocation6 + $0x112c] ss:$16 sps:$4 sm:$0xff]   ;;  %v8204_v8 = vadd.f32 %v8203_v29, %v18872_v27 }
 0x4d2   :  { %v8310_v40 = vpop.f32.mrf.mxu0  ;;  %8899 = vmatprep.mubr.bf16.mxu1 %v20399_v26  ;;  %9048 = vmatpush2.bf16.msra.mxu1 %v16125_v61  ;;  %v16137_v20 = vld [vmem:[#allocation6 + $0x1128] ss:$16 sps:$4 sm:$0xff]   ;;  %v8206_v61 = vadd.f32 %v8205_v49, %v18887_v30  ;;  %v16142_v29 = vld [vmem:[#allocation6 + $0x136c] ss:$16 sps:$4 sm:$0xff]  }
 0x4d3   :  { %20397 = vst [vmem:[#allocation53_spill] sm:$0xff] %v18984_v17  ;;  %v18989_v6 = vadd.f32 %v8310_v40, %v8198_v43  ;;  %9155 = vmatpush2.bf16.msra.mxu0 %v16122_v54  ;;  %v8215_v35 = vpop.f32.mrf.mxu1  ;;  %9049 = vmatprep.subr.bf16.mxu1 %v16133_v34  ;;  %v16145_v43 = vld [vmem:[#allocation6 + $0x110c] ss:$16 sps:$4 sm:$0xff]  }
 0x4d4   :  { %v8312_v62 = vpop.f32.mrf.mxu0  ;;  %9156 = vmatprep.subr.bf16.mxu0 %v16130_v9  ;;  %v16134_v9 = vld [vmem:[#allocation6 + $0x1388] ss:$16 sps:$4 sm:$0xff]  }
 0x4d5   :  { %v18992_v19 = vadd.f32 %v8312_v62, %v8200_v3  ;;  %v8217_v17 = vpop.f32.mrf.mxu1  ;;  %v8208_v62 = vadd.f32 %v8207_v37, %v18872_v27  ;;  %v16148_v37 = vld [vmem:[#allocation6 + $0x134c] ss:$16 sps:$4 sm:$0xff]  }
 0x4d6   :  { %v8316_v26 = vpop.f32.mrf.mxu0  ;;  %8993 = vmatmul.mubr.bf16.gmra.mxu0 %v20364_v39  ;;  %9050 = vmatpush2.bf16.msra.mxu1 %v16131_v52  ;;  %v20402_v39 = vld [vmem:[#allocation39_spill] sm:$0xff] }
 0x4d7   :  { %v18996_v54 = vadd.f32 %v8316_v26, %v8204_v8  ;;  %9157 = vmatpush2.bf16.msra.mxu0 %v16128_v14  ;;  %9002 = vmatprep.mubr.bf16.mxu0 %v20365_v36  ;;  %v8219_v34 = vpop.f32.mrf.mxu1  ;;  %v20403_v26 = vld [vmem:[#allocation64_spill] sm:$0xff]  ;;  %v8210_v36 = vadd.f32 %v8209_v46, %v18887_v30 }
 0x4d8   :  { %v8318_v40 = vpop.f32.mrf.mxu0  ;;  %9158 = vmatprep.subr.bf16.mxu0 %v16136_v16  ;;  %9051 = vmatprep.subr.bf16.mxu1 %v16139_v48  ;;  %v16143_v14 = vld [vmem:[#allocation6 + $0x1108] ss:$16 sps:$4 sm:$0xff]  }
 0x4d9   :  { %20400 = vst [vmem:[#allocation52_spill] sm:$0xff] %v18996_v54  ;;  %v19000_v3 = vadd.f32 %v8318_v40, %v8206_v61  ;;  %v8223_v52 = vpop.f32.mrf.mxu1  ;;  %8900 = vmatmul.mubr.bf16.gmra.mxu1 %v20402_v39  ;;  %v16140_v48 = vld [vmem:[#allocation6 + $0x1368] ss:$16 sps:$4 sm:$0xff]   ;;  %v16157_v61 = vld [vmem:[#allocation6 + $0x14ec] ss:$16 sps:$4 sm:$0xff]   ;;  %v8214_v40 = vadd.f32 %v8213_v57, %v18872_v27 }
 0x4da   :  { %v8320_v49 = vpop.f32.mrf.mxu0  ;;  %9052 = vmatpush2.bf16.msra.mxu1 %v16137_v20  ;;  %9055 = vmatprep.mubr.bf16.mxu1 %v20403_v26  ;;  %v16155_v46 = vld [vmem:[#allocation6 + $0x14e8] ss:$16 sps:$4 sm:$0xff]   ;;  %v16160_v26 = vld [vmem:[#allocation6 + $0x14cc] ss:$16 sps:$4 sm:$0xff]  }
 0x4db   :  { %20401 = vst [vmem:[#allocation55_spill] sm:$0xff] %v19000_v3  ;;  %v19005_v8 = vadd.f32 %v8320_v49, %v8208_v62  ;;  %9159 = vmatpush2.bf16.msra.mxu0 %v16134_v9  ;;  %v8225_v16 = vpop.f32.mrf.mxu1  ;;  %9053 = vmatprep.subr.bf16.mxu1 %v16145_v43  ;;  %v8216_v62 = vadd.f32 %v8215_v35, %v18887_v30  ;;  %v20405_v43 = vld [vmem:[#allocation87_spill] sm:$0xff]  ;;  %v16146_v49 = vld [vmem:[#allocation6 + $0x1348] ss:$16 sps:$4 sm:$0xff]   ;;  %v16151_v57 = vld [vmem:[#allocation6 + $0x132c] ss:$16 sps:$4 sm:$0xff]  }
 0x4dc   :  { %v8322_v54 = vpop.f32.mrf.mxu0  ;;  %9160 = vmatprep.subr.bf16.mxu0 %v16142_v29 }
 0x4dd   :  { %20404 = vst [vmem:[#allocation30_spill] sm:$0xff] %v19005_v8  ;;  %v19008_v39 = vadd.f32 %v8322_v54, %v8210_v36  ;;  %v8227_v20 = vpop.f32.mrf.mxu1  ;;  %v8218_v54 = vadd.f32 %v8217_v17, %v18872_v27 }
 0x4de   :  { %v8326_v3 = vpop.f32.mrf.mxu0  ;;  %9003 = vmatmul.mubr.bf16.gmra.mxu0 %v20370_v10  ;;  %9054 = vmatpush2.bf16.msra.mxu1 %v16143_v14 }
 0x4df   :  { %v19012_v9 = vadd.f32 %v8326_v3, %v8214_v40  ;;  %9161 = vmatpush2.bf16.msra.mxu0 %v16140_v48  ;;  %9012 = vmatprep.mubr.bf16.mxu0 %v20405_v43  ;;  %v8229_v29 = vpop.f32.mrf.mxu1  ;;  %v16158_v48 = vld [vmem:[#allocation6 + $0x14c8] ss:$16 sps:$4 sm:$0xff]   ;;  %v8220_v40 = vadd.f32 %v8219_v34, %v18887_v30 }
 0x4e0   :  { %v8328_v8 = vpop.f32.mrf.mxu0  ;;  %9162 = vmatprep.subr.bf16.mxu0 %v16148_v37  ;;  %9249 = vmatprep.subr.bf16.mxu1 %v16157_v61  ;;  %v16149_v61 = vld [vmem:[#allocation6 + $0x1328] ss:$16 sps:$4 sm:$0xff]  }
 0x4e1   :  { %v19016_v36 = vadd.f32 %v8328_v8, %v8216_v62  ;;  %v8379_v14 = vpop.f32.mrf.mxu1  ;;  %9056 = vmatmul.mubr.bf16.vlgmr.msra.gmra.mxu1 %v20319_v21  ;;  %v16154_v21 = vld [vmem:[#allocation6 + $0x130c] ss:$16 sps:$4 sm:$0xff]  }
 0x4e2   :  { %v8330_v35 = vpop.f32.mrf.mxu0  ;;  %v8380_v3 = vadd.f32 %v8379_v14, %v18904_v2  ;;  %9065 = vmatprep.mubr.bf16.mxu1 %v20320_v12  ;;  %9250 = vmatpush1.bf16.msra.mxu1 %v16155_v46  ;;  %v16163_v62 = vld [vmem:[#allocation6 + $0x14ac] ss:$16 sps:$4 sm:$0xff]   ;;  %v8224_v2 = vadd.f32 %v8223_v52, %v18872_v27 }
 0x4e3   :  { %v19022_v43 = vadd.f32 %v8330_v35, %v8218_v54  ;;  %9163 = vmatpush2.bf16.msra.mxu0 %v16146_v49  ;;  %v8381_v37 = vpop.f32.mrf.mxu1  ;;  %9251 = vmatprep.subr.bf16.mxu1 %v16160_v26  ;;  %v20406_v54 = vld [vmem:[#allocation84_spill] sm:$0xff]  ;;  %v8226_v26 = vadd.f32 %v8225_v16, %v18887_v30 }
 0x4e4   :  { %v8332_v17 = vpop.f32.mrf.mxu0  ;;  %v8382_v8 = vadd.f32 %v8381_v37, %v18916_v13  ;;  %9164 = vmatprep.subr.bf16.mxu0 %v16151_v57  ;;  %v16161_v49 = vld [vmem:[#allocation6 + $0x14a8] ss:$16 sps:$4 sm:$0xff]   ;;  %v16166_v52 = vld [vmem:[#allocation6 + $0x148c] ss:$16 sps:$4 sm:$0xff]  }
 0x4e5   :  { %v19026_v14 = vadd.f32 %v8332_v17, %v8220_v40  ;;  %v8383_v12 = vpop.f32.mrf.mxu1  ;;  %v16152_v57 = vld [vmem:[#allocation6 + $0x1308] ss:$16 sps:$4 sm:$0xff]  }
 0x4e6   :  { %v8336_v46 = vpop.f32.mrf.mxu0  ;;  %v8384_v34 = vadd.f32 %v8383_v12, %v18922_v28  ;;  %9013 = vmatmul.mubr.bf16.gmra.mxu0 %v20406_v54  ;;  %9252 = vmatpush1.bf16.msra.mxu1 %v16158_v48  ;;  %v8228_v28 = vadd.f32 %v8227_v20, %v18872_v27  ;;  %v20407_v27 = vpack.c.bf16 %v18914_v4, %v18909_v18 }
 0x4e7   :  { %v19031_v35 = vadd.f32 %v8336_v46, %v8224_v2  ;;  %9165 = vmatpush2.bf16.msra.mxu0 %v16149_v61  ;;  %9168 = vmatprep.mubr.bf16.mxu0 %v20375_v25  ;;  %v8385_v13 = vpop.f32.mrf.mxu1  ;;  %v16164_v25 = vld [vmem:[#allocation6 + $0x1488] ss:$16 sps:$4 sm:$0xff]   ;;  %v8230_v2 = vadd.f32 %v8229_v29, %v18887_v30  ;;  %v20408_v18 = vpack.c.bf16 %v18902_v47, %v18899_v42 }
 0x4e8   :  { %v8338_v40 = vpop.f32.mrf.mxu0  ;;  %v8386_v37 = vadd.f32 %v8385_v13, %v18928_v50  ;;  %9166 = vmatprep.subr.bf16.mxu0 %v16154_v21  ;;  %9253 = vmatprep.subr.bf16.mxu1 %v16163_v62  ;;  %v16169_v21 = vld [vmem:[#allocation6 + $0x146c] ss:$16 sps:$4 sm:$0xff]   ;;  %v16167_v30 = vld [vmem:[#allocation6 + $0x1468] ss:$16 sps:$4 sm:$0xff]  }
 0x4e9   :  { %v19036_v17 = vadd.f32 %v8338_v40, %v8226_v26  ;;  %v8389_v48 = vpop.f32.mrf.mxu1  ;;  %9066 = vmatmul.mubr.bf16.gmra.mxu1 %v20321_v56  ;;  %v20412_v40 = vld [vmem:[#allocation67_spill] sm:$0xff] }
 0x4ea   :  { %v8340_v16 = vpop.f32.mrf.mxu0  ;;  %v8390_v61 = vadd.f32 %v8389_v48, %v18932_v53  ;;  %9075 = vmatprep.mubr.bf16.mxu1 %v20322_v41  ;;  %9254 = vmatpush1.bf16.msra.mxu1 %v16161_v49  ;;  %v20409_v49 = vpack.c.bf16 %v18880_v0, %v18875_v45  ;;  %v20410_v45 = vpack.c.bf16 %v18865_v51, %v18862_v33  ;;  %v16173_v33 = vld [vmem:[#allocation6 + $0x1428] ss:$16 sps:$4 sm:$0xff]  }
 0x4eb   :  { %v19042_v12 = vadd.f32 %v8340_v16, %v8228_v28  ;;  %9167 = vmatpush2.bf16.msra.mxu0 %v16152_v57  ;;  %v8391_v50 = vpop.f32.mrf.mxu1  ;;  %9255 = vmatprep.subr.bf16.mxu1 %v16166_v52  ;;  %v16178_v28 = vld [vmem:[#allocation6 + $0x140c] ss:$16 sps:$4 sm:$0xff]  }
 0x4ec   :  { %9577 = vmatprep.subr.bf16.mxu0 %v20407_v27  ;;  %v8342_v20 = vpop.f32.mrf.mxu0  ;;  %v8392_v56 = vadd.f32 %v8391_v50, %v18936_v7  ;;  %v16172_v7 = vld [vmem:[#allocation6 + $0x144c] ss:$16 sps:$4 sm:$0xff]   ;;  %v20419_v50 = vld [vmem:[#allocation75_spill] sm:$0xff] }
 0x4ed   :  { %v19048_v53 = vadd.f32 %v8342_v20, %v8230_v2  ;;  %v8393_v41 = vpop.f32.mrf.mxu1  ;;  %v20416_v48 = vld [vmem:[#allocation44_spill] sm:$0xff]  ;;  %v20418_v2 = vld [vmem:[#allocation77_spill] sm:$0xff]  ;;  %v20420_v20 = vld [vmem:[#allocation79_spill] sm:$0xff] }
 0x4ee   :  { %v8394_v62 = vadd.f32 %v8393_v41, %v18941_v44  ;;  %v8492_v46 = vpop.f32.mrf.mxu0  ;;  %9169 = vmatmul.mubr.bf16.vlgmr.msra.gmra.mxu0 %v20380_v22  ;;  %9256 = vmatpush1.bf16.msra.mxu1 %v16164_v25 }
 0x4ef   :  { %v19052_v29 = vadd.f32 %v8492_v46, %v8380_v3  ;;  %9578 = vmatpush1.bf16.msra.mxu0 %v20408_v18  ;;  %9178 = vmatprep.mubr.bf16.mxu0 %v20381_v63  ;;  %v8395_v4 = vpop.f32.mrf.mxu1  ;;  %v16170_v63 = vld [vmem:[#allocation6 + $0x1448] ss:$16 sps:$4 sm:$0xff]   ;;  %v20421_v46 = vld [vmem:[#allocation43_spill] sm:$0xff] }
 0x4f0   :  { %9579 = vmatprep.subr.bf16.mxu0 %v20409_v49  ;;  %v8396_v44 = vadd.f32 %v8395_v4, %v18944_v24  ;;  %v8494_v26 = vpop.f32.mrf.mxu0  ;;  %9257 = vmatprep.subr.bf16.mxu1 %v16169_v21  ;;  %v20411_v24 = vpack.c.bf16 %v18846_v55, %v18841_v58  ;;  %v20413_v58 = vpack.c.bf16 %v18833_v1, %v20412_v40  ;;  %v20414_v55 = vld [vmem:[#allocation33_spill] sm:$0xff]  ;;  %v16176_v21 = vld [vmem:[#allocation6 + $0x1408] ss:$16 sps:$4 sm:$0xff]  }
 0x4f1   :  { %v19062_v22 = vadd.f32 %v8494_v26, %v8382_v8  ;;  %v8399_v3 = vpop.f32.mrf.mxu1  ;;  %9076 = vmatmul.mubr.bf16.gmra.mxu1 %v20323_v59  ;;  %v16175_v8 = vld [vmem:[#allocation6 + $0x142c] ss:$16 sps:$4 sm:$0xff]   ;;  %v20433_v40 = vld [vmem:[#allocation65_spill] sm:$0xff] }
 0x4f2   :  { %v8400_v42 = vadd.f32 %v8399_v3, %v18948_v15  ;;  %v8496_v47 = vpop.f32.mrf.mxu0  ;;  %9085 = vmatprep.mubr.bf16.mxu1 %v20324_v31  ;;  %9258 = vmatpush1.bf16.msra.mxu1 %v16167_v30  ;;  %v20422_v30 = vld [vmem:[#allocation76_spill] sm:$0xff]  ;;  %v20427_v49 = vld [vmem:[#allocation86_spill] sm:$0xff] }
 0x4f3   :  { %v19067_v13 = vadd.f32 %v8496_v47, %v8384_v34  ;;  %9580 = vmatpush1.bf16.msra.mxu0 %v20410_v45  ;;  %v8401_v0 = vpop.f32.mrf.mxu1  ;;  %9259 = vmatprep.subr.bf16.mxu1 %v16172_v7  ;;  %v20423_v18 = vpack.c.bf16 %v20421_v46, %v20422_v30  ;;  %v20425_v4 = vld [vmem:[#allocation72_spill] sm:$0xff] }
 0x4f4   :  { %9581 = vmatprep.subr.bf16.mxu0 %v20411_v24  ;;  %v8402_v59 = vadd.f32 %v8401_v0, %v18952_v60  ;;  %v8498_v15 = vpop.f32.mrf.mxu0  ;;  %v20428_v0 = vld [vmem:[#allocation26_spill] sm:$0xff] }
 0x4f5   :  { %v19076_v57 = vadd.f32 %v8498_v15, %v8386_v37  ;;  %v8403_v31 = vpop.f32.mrf.mxu1  ;;  %v20415_v37 = vld [vmem:[#allocation45_spill] sm:$0xff] }
 0x4f6   :  { %v8404_v34 = vadd.f32 %v8403_v31, %v18957_v38  ;;  %v8502_v52 = vpop.f32.mrf.mxu0  ;;  %9179 = vmatmul.mubr.bf16.gmra.mxu0 %v20384_v11  ;;  %9260 = vmatpush1.bf16.msra.mxu1 %v16170_v63  ;;  %v20417_v16 = vpack.c.bf16 %v20415_v37, %v20416_v48  ;;  %v20429_v15 = vld [vmem:[#allocation69_spill] sm:$0xff]  ;;  %v20436_v37 = vld [vmem:[#allocation80_spill] sm:$0xff] }
 0x4f7   :  { %v19080_v51 = vadd.f32 %v8502_v52, %v8390_v61  ;;  %9582 = vmatpush1.bf16.msra.mxu0 %v20413_v58  ;;  %9188 = vmatprep.mubr.bf16.mxu0 %v20414_v55  ;;  %v8405_v60 = vpop.f32.mrf.mxu1  ;;  %v20432_v52 = vld [vmem:[#allocation34_spill] sm:$0xff]  ;;  %v20434_v58 = vld [vmem:[#allocation61_spill] sm:$0xff] }
 0x4f8   :  { %9583 = vmatprep.subr.bf16.mxu0 %v20417_v16  ;;  %v8406_v38 = vadd.f32 %v8405_v60, %v18960_v5  ;;  %v8504_v25 = vpop.f32.mrf.mxu0  ;;  %9261 = vmatprep.subr.bf16.mxu1 %v16175_v8  ;;  %v20430_v8 = vld [vmem:[#allocation68_spill] sm:$0xff] }
 0x4f9   :  { %v19090_v11 = vadd.f32 %v8504_v25, %v8392_v56  ;;  %v8409_v61 = vpop.f32.mrf.mxu1  ;;  %9086 = vmatmul.mubr.bf16.gmra.mxu1 %v20418_v2  ;;  %v20424_v56 = vld [vmem:[#allocation73_spill] sm:$0xff]  ;;  %v20431_v31 = vpack.c.bf16 %v20429_v15, %v20430_v8  ;;  %v20438_v25 = vld [vmem:[#allocation82_spill] sm:$0xff]  ;;  %v20439_v2 = vld [vmem:[#allocation60_spill] sm:$0xff] }
 0x4fa   :  { %v8410_v1 = vadd.f32 %v8409_v61, %v20419_v50  ;;  %v8506_v27 = vpop.f32.mrf.mxu0  ;;  %9095 = vmatprep.mubr.bf16.mxu1 %v20420_v20  ;;  %9262 = vmatpush1.bf16.msra.mxu1 %v16173_v33  ;;  %v20426_v7 = vpack.c.bf16 %v20424_v56, %v20425_v4  ;;  %v20440_v50 = vld [vmem:[#allocation47_spill] sm:$0xff] }
 0x4fb   :  { %v19095_v41 = vadd.f32 %v8506_v27, %v8394_v62  ;;  %9584 = vmatpush1.bf16.msra.mxu0 %v20423_v18  ;;  %v8411_v5 = vpop.f32.mrf.mxu1  ;;  %9263 = vmatprep.subr.bf16.mxu1 %v16178_v28  ;;  %v20441_v27 = vpack.c.bf16 %v20439_v2, %v20440_v50  ;;  %v20451_v8 = vld [vmem:[#allocation51_spill] sm:$0xff] }
 0x4fc   :  { %9585 = vmatprep.subr.bf16.mxu0 %v20426_v7  ;;  %v8412_v26 = vadd.f32 %v8411_v5, %v20427_v49  ;;  %v8508_v3 = vpop.f32.mrf.mxu0 }
 0x4fd   :  { %v19104_v47 = vadd.f32 %v8508_v3, %v8396_v44  ;;  %v8413_v63 = vpop.f32.mrf.mxu1  ;;  %v20435_v44 = vpack.c.bf16 %v20433_v40, %v20434_v58  ;;  %v20447_v3 = vld [vmem:[#allocation50_spill] sm:$0xff]  ;;  %v20455_v58 = vld [vmem:[#allocation52_spill] sm:$0xff] }
 0x4fe   :  { %v8414_v45 = vadd.f32 %v8413_v63, %v18973_v32  ;;  %v8512_v62 = vpop.f32.mrf.mxu0  ;;  %9189 = vmatmul.mubr.bf16.gmra.mxu0 %v20428_v0  ;;  %9264 = vmatpush1.bf16.msra.mxu1 %v16176_v21  ;;  %v20442_v21 = vld [vmem:[#allocation46_spill] sm:$0xff]  ;;  %v20448_v63 = vld [vmem:[#allocation35_spill] sm:$0xff] }
 0x4ff   :  { %v19108_v24 = vadd.f32 %v8512_v62, %v8400_v42  ;;  %9586 = vmatpush1.bf16.msra.mxu0 %v20431_v31  ;;  %9198 = vmatprep.mubr.bf16.mxu0 %v20432_v52  ;;  %v8415_v33 = vpop.f32.mrf.mxu1  ;;  %v20437_v42 = vld [vmem:[#allocation81_spill] sm:$0xff]  ;;  %v20449_v62 = vpack.c.bf16 %v20447_v3, %v20448_v63  ;;  %v20450_v0 = vld [vmem:[#allocation27_spill] sm:$0xff]  ;;  %v20452_v31 = vld [vmem:[#allocation48_spill] sm:$0xff] }
 0x500   :  { %9587 = vmatprep.subr.bf16.mxu0 %v20435_v44  ;;  %v8416_v55 = vadd.f32 %v8415_v33, %v18976_v23  ;;  %v8514_v32 = vpop.f32.mrf.mxu0  ;;  %v20443_v23 = vld [vmem:[#allocation42_spill] sm:$0xff]  ;;  %v20453_v52 = vpack.c.bf16 %v20451_v8, %v20452_v31 }
 0x501   :  { %v19118_v60 = vadd.f32 %v8514_v32, %v8402_v59  ;;  %v8419_v28 = vpop.f32.mrf.mxu1  ;;  %9096 = vmatmul.mubr.bf16.gmra.mxu1 %v20436_v37  ;;  %v20444_v46 = vpack.c.bf16 %v20442_v21, %v20443_v23  ;;  %v20445_v59 = vld [vmem:[#allocation53_spill] sm:$0xff]  ;;  %v20461_v21 = vld [vmem:[#allocation30_spill] sm:$0xff] }
 0x502   :  { %v8420_v48 = vadd.f32 %v8419_v28, %v20437_v42  ;;  %v8516_v16 = vpop.f32.mrf.mxu0  ;;  %9105 = vmatprep.mubr.bf16.mxu1 %v20438_v25  ;;  %v20456_v28 = vld [vmem:[#allocation90_spill] sm:$0xff]  ;;  %v20457_v42 = vld [vmem:[#allocation49_spill] sm:$0xff] }
 0x503   :  { %v19123_v61 = vadd.f32 %v8516_v16, %v8404_v34  ;;  %9588 = vmatpush1.bf16.msra.mxu0 %v20441_v27  ;;  %v8421_v20 = vpop.f32.mrf.mxu1  ;;  %v20446_v34 = vld [vmem:[#allocation25_spill] sm:$0xff]  ;;  %v20458_v16 = vld [vmem:[#allocation92_spill] sm:$0xff] }
 0x504   :  { %9589 = vmatprep.subr.bf16.mxu0 %v20444_v46  ;;  %v8422_v30 = vadd.f32 %v8421_v20, %v20445_v59  ;;  %v8518_v18 = vpop.f32.mrf.mxu0  ;;  %v20459_v25 = vpack.c.bf16 %v20457_v42, %v20458_v16  ;;  %v20462_v59 = vld [vmem:[#allocation36_spill] sm:$0xff]  ;;  %v20468_v42 = vld [vmem:[#allocation89_spill] sm:$0xff] }
 0x505   :  { %v19132_v5 = vadd.f32 %v8518_v18, %v8406_v38  ;;  %v8423_v56 = vpop.f32.mrf.mxu1 }
 0x506   :  { %v8424_v4 = vadd.f32 %v8423_v56, %v18989_v6  ;;  %v8522_v7 = vpop.f32.mrf.mxu0  ;;  %9199 = vmatmul.mubr.bf16.gmra.mxu0 %v20446_v34 }
 0x507   :  { %v19136_v49 = vadd.f32 %v8522_v7, %v8410_v1  ;;  %9590 = vmatpush1.bf16.msra.mxu0 %v20449_v62  ;;  %9208 = vmatprep.mubr.bf16.mxu0 %v20450_v0  ;;  %v8425_v15 = vpop.f32.mrf.mxu1  ;;  %v20454_v1 = vld [vmem:[#allocation83_spill] sm:$0xff] }
 0x508   :  { %9591 = vmatprep.subr.bf16.mxu0 %v20453_v52  ;;  %v19146_v38 = vadd.f32 %v8425_v15, %v18992_v19  ;;  %v8524_v6 = vpop.f32.mrf.mxu0  ;;  %v20460_v19 = vld [vmem:[#allocation55_spill] sm:$0xff]  ;;  %v20465_v15 = vld [vmem:[#allocation88_spill] sm:$0xff] }
 0x509   :  { %v19148_v33 = vadd.f32 %v8524_v6, %v8412_v26  ;;  %v8429_v40 = vpop.f32.mrf.mxu1  ;;  %9106 = vmatmul.mubr.bf16.gmra.mxu1 %v20454_v1 }
 0x50a   :  { %v8430_v44 = vadd.f32 %v8429_v40, %v20455_v58  ;;  %v8526_v32 = vpop.f32.mrf.mxu0  ;;  %9115 = vmatprep.mubr.bf16.mxu1 %v20456_v28  ;;  %v20466_v40 = vld [vmem:[#allocation37_spill] sm:$0xff]  ;;  %v20467_v58 = vld [vmem:[#allocation40_spill] sm:$0xff] }
 0x50b   :  { %v19153_v37 = vadd.f32 %v8526_v32, %v8414_v45  ;;  %9592 = vmatpush1.bf16.msra.mxu0 %v20459_v25  ;;  %v8431_v2 = vpop.f32.mrf.mxu1  ;;  %v20463_v45 = vld [vmem:[#allocation28_spill] sm:$0xff]  ;;  %v20469_v25 = vmov 0  }
 0x50c   :  { %v8432_v50 = vadd.f32 %v8431_v2, %v20460_v19  ;;  %v8528_v27 = vpop.f32.mrf.mxu0 }
 0x50d   :  { %v19159_v26 = vadd.f32 %v8528_v27, %v8416_v55  ;;  %v8433_v20 = vpop.f32.mrf.mxu1  ;;  %v20464_v55 = vld [vmem:[#allocation91_spill] sm:$0xff] }
 0x50e   :  { %v8434_v23 = vadd.f32 %v8433_v20, %v20461_v21  ;;  %v8532_v46 = vpop.f32.mrf.mxu0  ;;  %9209 = vmatmul.mubr.bf16.gmra.mxu0 %v20462_v59  ;;  %v20470_v21 = vld [vmem:[#allocation39_spill] sm:$0xff]  ;;  %v20471_v59 = vld [vmem:[#allocation41_spill] sm:$0xff] }
 0x50f   :  { %v19163_v18 = vadd.f32 %v8532_v46, %v8420_v48  ;;  %9218 = vmatprep.mubr.bf16.mxu0 %v20463_v45  ;;  %v8435_v56 = vpop.f32.mrf.mxu1 }
 0x510   :  { %v19167_v7 = vadd.f32 %v8435_v56, %v19008_v39  ;;  %v8534_v34 = vpop.f32.mrf.mxu0 }
 0x511   :  { %v19169_v3 = vadd.f32 %v8534_v34, %v8422_v30  ;;  %v8439_v63 = vpop.f32.mrf.mxu1  ;;  %9116 = vmatmul.mubr.bf16.gmra.mxu1 %v20464_v55  ;;  %v20472_v34 = vld [vmem:[#allocation62_spill] sm:$0xff] }
 0x512   :  { %v8440_v62 = vadd.f32 %v8439_v63, %v19012_v9  ;;  %v8536_v0 = vpop.f32.mrf.mxu0  ;;  %9125 = vmatprep.mubr.bf16.mxu1 %v20465_v15 }
 0x513   :  { %v19174_v8 = vadd.f32 %v8536_v0, %v8424_v4  ;;  %v8441_v48 = vpop.f32.mrf.mxu1 }
 0x514   :  { %v8442_v31 = vadd.f32 %v8441_v48, %v19016_v36  ;;  %v19177_v52 = vpop.f32.mrf.mxu0 }
 0x515   :  { %v8443_v39 = vpop.f32.mrf.mxu1 }
 0x516   :  { %v8444_v6 = vadd.f32 %v8443_v39, %v19022_v43  ;;  %v8542_v30 = vpop.f32.mrf.mxu0  ;;  %9219 = vmatmul.mubr.bf16.gmra.mxu0 %v20466_v40  ;;  %v20473_v39 = vld [vmem:[#allocation29_spill] sm:$0xff] }
 0x517   :  { %v19181_v1 = vadd.f32 %v8542_v30, %v8430_v44  ;;  %9228 = vmatprep.mubr.bf16.mxu0 %v20467_v58  ;;  %v8445_v9 = vpop.f32.mrf.mxu1 }
 0x518   :  { %v19185_v32 = vadd.f32 %v8445_v9, %v19026_v14  ;;  %v8544_v4 = vpop.f32.mrf.mxu0 }
 0x519   :  { %v19187_v28 = vadd.f32 %v8544_v4, %v8432_v50  ;;  %v8449_v36 = vpop.f32.mrf.mxu1  ;;  %9126 = vmatmul.mubr.bf16.gmra.mxu1 %v20468_v42  ;;  %v20474_v4 = vld [vmem:[#allocation66_spill] sm:$0xff] }
 0x51a   :  { %v8450_v16 = vadd.f32 %v8449_v36, %v19031_v35  ;;  %v8546_v43 = vpop.f32.mrf.mxu0  ;;  %9281 = vmatprep.mubr.bf16.mxu1 %v20469_v25 }
 0x51b   :  { %v19192_v2 = vadd.f32 %v8546_v43, %v8434_v23  ;;  %v8451_v44 = vpop.f32.mrf.mxu1 }
 0x51c   :  { %v8452_v19 = vadd.f32 %v8451_v44, %v19036_v17  ;;  %v19195_v27 = vpop.f32.mrf.mxu0 }
 0x51d   :  { %v8453_v14 = vpop.f32.mrf.mxu1 }
 0x51e   :  { %v8454_v20 = vadd.f32 %v8453_v14, %v19042_v12  ;;  %v8552_v50 = vpop.f32.mrf.mxu0  ;;  %9229 = vmatmul.mubr.bf16.gmra.mxu0 %v20470_v21 }
 0x51f   :  { %v19199_v46 = vadd.f32 %v8552_v50, %v8440_v62  ;;  %9238 = vmatprep.mubr.bf16.mxu0 %v20471_v59  ;;  %v8455_v35 = vpop.f32.mrf.mxu1 }
 0x520   :  { %v19203_v45 = vadd.f32 %v8455_v35, %v19048_v53  ;;  %v8554_v23 = vpop.f32.mrf.mxu0  ;;  %v20476_v35 = vld [vmem:[#allocation70_spill] sm:$0xff] }
 0x521   :  { %v19205_v56 = vadd.f32 %v8554_v23, %v8442_v31  ;;  %v8605_v17 = vpop.f32.mrf.mxu1  ;;  %9282 = vmatmul.mubr.bf16.vlgmr.msra.gmra.mxu1 %v20472_v34 }
 0x522   :  { %v8556_v63 = vpop.f32.mrf.mxu0  ;;  %v8606_v12 = vadd.f32 %v8605_v17, %v19052_v29  ;;  %9291 = vmatprep.mubr.bf16.mxu1 %v20469_v25 }
 0x523   :  { %v19210_v55 = vadd.f32 %v8556_v63, %v8444_v6  ;;  %v8607_v62 = vpop.f32.mrf.mxu1 }
 0x524   :  { %v19212_v0 = vpop.f32.mrf.mxu0  ;;  %v8608_v15 = vadd.f32 %v8607_v62, %v19062_v22 }
 0x525   :  { %v8609_v53 = vpop.f32.mrf.mxu1 }
 0x526   :  { %v8562_v48 = vpop.f32.mrf.mxu0  ;;  %v8610_v31 = vadd.f32 %v8609_v53, %v19067_v13  ;;  %9239 = vmatmul.mubr.bf16.gmra.mxu0 %v20473_v39 }
 0x527   :  { %v19217_v30 = vadd.f32 %v8562_v48, %v8450_v16  ;;  %v8611_v40 = vpop.f32.mrf.mxu1  ;;  %9609 = vmatprep.mubr.bf16.mxu0 %v20469_v25 }
 0x528   :  { %v8564_v29 = vpop.f32.mrf.mxu0  ;;  %v19221_v6 = vadd.f32 %v8611_v40, %v19076_v57  ;;  %v20477_v40 = vld [vmem:[#allocation74_spill] sm:$0xff] }
 0x529   :  { %v19223_v58 = vadd.f32 %v8564_v29, %v8452_v19  ;;  %v8615_v9 = vpop.f32.mrf.mxu1  ;;  %9292 = vmatmul.mubr.bf16.gmra.mxu1 %v20474_v4 }
 0x52a   :  { %v8566_v22 = vpop.f32.mrf.mxu0  ;;  %v8616_v36 = vadd.f32 %v8615_v9, %v19080_v51  ;;  %9301 = vmatprep.mubr.bf16.mxu1 %v20469_v25 }
 0x52b   :  { %v19228_v13 = vadd.f32 %v8566_v22, %v8454_v20  ;;  %v8617_v42 = vpop.f32.mrf.mxu1 }
 0x52c   :  { %v19230_v16 = vpop.f32.mrf.mxu0  ;;  %v8618_v43 = vadd.f32 %v8617_v42, %v19090_v11 }
 0x52d   :  { %20475 = vst [vmem:[#allocation54_spill] sm:$0xff] %v19230_v16  ;;  %v8619_v44 = vpop.f32.mrf.mxu1 }
 0x52e   :  { %v8620_v57 = vadd.f32 %v8619_v44, %v19095_v41  ;;  %v8718_v19 = vpop.f32.mrf.mxu0 }
 0x52f   :  { %v19234_v14 = vadd.f32 %v8718_v19, %v8606_v12  ;;  %v8621_v50 = vpop.f32.mrf.mxu1 }
 0x530   :  { %v19237_v21 = vadd.f32 %v8621_v50, %v19104_v47  ;;  %v8720_v51 = vpop.f32.mrf.mxu0 }
 0x531   :  { %v19239_v59 = vadd.f32 %v8720_v51, %v8608_v15  ;;  %v8625_v20 = vpop.f32.mrf.mxu1  ;;  %9302 = vmatmul.mubr.bf16.gmra.mxu1 %v20476_v35  ;;  %v20478_v51 = vld [vmem:[#allocation78_spill] sm:$0xff] }
 0x532   :  { %v8626_v23 = vadd.f32 %v8625_v20, %v19108_v24  ;;  %v8722_v17 = vpop.f32.mrf.mxu0  ;;  %9311 = vmatprep.mubr.bf16.mxu1 %v20469_v25 }
 0x533   :  { %v19244_v11 = vadd.f32 %v8722_v17, %v8610_v31  ;;  %v8627_v41 = vpop.f32.mrf.mxu1 }
 0x534   :  { %v8628_v34 = vadd.f32 %v8627_v41, %v19118_v60  ;;  %v19247_v63 = vpop.f32.mrf.mxu0 }
 0x535   :  { %v8629_v47 = vpop.f32.mrf.mxu1 }
 0x536   :  { %v8630_v12 = vadd.f32 %v8629_v47, %v19123_v61  ;;  %v8728_v62 = vpop.f32.mrf.mxu0 }
 0x537   :  { %v19250_v15 = vadd.f32 %v8728_v62, %v8616_v36  ;;  %v8631_v53 = vpop.f32.mrf.mxu1 }
 0x538   :  { %v19253_v48 = vadd.f32 %v8631_v53, %v19132_v5  ;;  %v8730_v24 = vpop.f32.mrf.mxu0 }
 0x539   :  { %v19255_v39 = vadd.f32 %v8730_v24, %v8618_v43  ;;  %v8635_v31 = vpop.f32.mrf.mxu1  ;;  %9312 = vmatmul.mubr.bf16.gmra.mxu1 %v20477_v40 }
 0x53a   :  { %v8636_v60 = vadd.f32 %v8635_v31, %v19136_v49  ;;  %v8732_v29 = vpop.f32.mrf.mxu0  ;;  %9321 = vmatprep.mubr.bf16.mxu1 %v20469_v25 }
 0x53b   :  { %v19260_v9 = vadd.f32 %v8732_v29, %v8620_v57  ;;  %v8637_v61 = vpop.f32.mrf.mxu1 }
 0x53c   :  { %v8638_v4 = vadd.f32 %v8637_v61, %v19148_v33  ;;  %v19263_v22 = vpop.f32.mrf.mxu0 }
 0x53d   :  { %v8639_v5 = vpop.f32.mrf.mxu1 }
 0x53e   :  { %v8640_v36 = vadd.f32 %v8639_v5, %v19153_v37  ;;  %v8738_v42 = vpop.f32.mrf.mxu0 }
 0x53f   :  { %v19266_v43 = vadd.f32 %v8738_v42, %v8626_v23  ;;  %v8641_v44 = vpop.f32.mrf.mxu1 }
 0x540   :  { %v19269_v19 = vadd.f32 %v8641_v44, %v19159_v26  ;;  %v8740_v49 = vpop.f32.mrf.mxu0 }
 0x541   :  { %v19271_v50 = vadd.f32 %v8740_v49, %v8628_v34  ;;  %v8645_v57 = vpop.f32.mrf.mxu1  ;;  %9322 = vmatmul.mubr.bf16.gmra.mxu1 %v20478_v51 }
 0x542   :  { %v8646_v33 = vadd.f32 %v8645_v57, %v19163_v18  ;;  %v8742_v20 = vpop.f32.mrf.mxu0  ;;  %9331 = vmatprep.mubr.bf16.mxu1 %v20469_v25 }
 0x543   :  { %v19276_v35 = vadd.f32 %v8742_v20, %v8630_v12  ;;  %v8647_v37 = vpop.f32.mrf.mxu1 }
 0x544   :  { %v8648_v23 = vadd.f32 %v8647_v37, %v19169_v3  ;;  %v19279_v17 = vpop.f32.mrf.mxu0 }
 0x545   :  { %v8649_v26 = vpop.f32.mrf.mxu1 }
 0x546   :  { %v8650_v41 = vadd.f32 %v8649_v26, %v19174_v8  ;;  %v8748_v34 = vpop.f32.mrf.mxu0 }
 0x547   :  { %v19282_v47 = vadd.f32 %v8748_v34, %v8636_v60  ;;  %v19284_v62 = vpop.f32.mrf.mxu1 }
 0x548   :  { %v8750_v53 = vpop.f32.mrf.mxu0 }
 0x549   :  { %v19286_v18 = vadd.f32 %v8750_v53, %v8638_v4  ;;  %v8655_v24 = vpop.f32.mrf.mxu1  ;;  %9332 = vmatmul.mubr.bf16.gmra.mxu1 %v20370_v10  ;;  %v20479_v53 = vld [vmem:[#allocation85_spill] sm:$0xff] }
 0x54a   :  { %v8656_v12 = vadd.f32 %v8655_v24, %v19181_v1  ;;  %v8752_v31 = vpop.f32.mrf.mxu0  ;;  %9341 = vmatprep.mubr.bf16.mxu1 %v20469_v25 }
 0x54b   :  { %v19291_v3 = vadd.f32 %v8752_v31, %v8640_v36  ;;  %v8657_v40 = vpop.f32.mrf.mxu1 }
 0x54c   :  { %v8658_v8 = vadd.f32 %v8657_v40, %v19187_v28  ;;  %v19294_v60 = vpop.f32.mrf.mxu0 }
 0x54d   :  { %v8659_v29 = vpop.f32.mrf.mxu1 }
 0x54e   :  { %v8660_v61 = vadd.f32 %v8659_v29, %v19192_v2  ;;  %v8758_v4 = vpop.f32.mrf.mxu0 }
 0x54f   :  { %v19297_v5 = vadd.f32 %v8758_v4, %v8646_v33  ;;  %v19299_v42 = vpop.f32.mrf.mxu1 }
 0x550   :  { %v8760_v10 = vpop.f32.mrf.mxu0 }
 0x551   :  { %v19301_v1 = vadd.f32 %v8760_v10, %v8648_v23  ;;  %v8665_v44 = vpop.f32.mrf.mxu1  ;;  %9342 = vmatmul.mubr.bf16.gmra.mxu1 %v20406_v54 }
 0x552   :  { %v8666_v36 = vadd.f32 %v8665_v44, %v19199_v46  ;;  %v8762_v49 = vpop.f32.mrf.mxu0  ;;  %9351 = vmatprep.mubr.bf16.mxu1 %v20469_v25 }
 0x553   :  { %v19306_v28 = vadd.f32 %v8762_v49, %v8650_v41  ;;  %v8667_v57 = vpop.f32.mrf.mxu1 }
 0x554   :  { %v8668_v2 = vadd.f32 %v8667_v57, %v19205_v56  ;;  %v19309_v51 = vpop.f32.mrf.mxu0 }
 0x555   :  { %v8669_v33 = vpop.f32.mrf.mxu1 }
 0x556   :  { %v8670_v20 = vadd.f32 %v8669_v33, %v19210_v55  ;;  %v8768_v37 = vpop.f32.mrf.mxu0 }
 0x557   :  { %v19312_v23 = vadd.f32 %v8768_v37, %v8656_v12  ;;  %v19314_v26 = vpop.f32.mrf.mxu1 }
 0x558   :  { %v8770_v54 = vpop.f32.mrf.mxu0 }
 0x559   :  { %v19316_v46 = vadd.f32 %v8770_v54, %v8658_v8  ;;  %v8675_v34 = vpop.f32.mrf.mxu1  ;;  %9352 = vmatmul.mubr.bf16.gmra.mxu1 %v20479_v53 }
 0x55a   :  { %v8676_v41 = vadd.f32 %v8675_v34, %v19217_v30  ;;  %v8772_v24 = vpop.f32.mrf.mxu0  ;;  %9682 = vmatprep.mubr.bf16.mxu1 %v20469_v25 }
 0x55b   :  { %v19321_v56 = vadd.f32 %v8772_v24, %v8660_v61  ;;  %v8677_v31 = vpop.f32.mrf.mxu1 }
 0x55c   :  { %v8678_v55 = vadd.f32 %v8677_v31, %v19223_v58  ;;  %v19324_v12 = vpop.f32.mrf.mxu0 }
 0x55d   :  { %v8679_v40 = vpop.f32.mrf.mxu1 }
 0x55e   :  { %v8680_v29 = vadd.f32 %v8679_v40, %v19228_v13  ;;  %v8778_v8 = vpop.f32.mrf.mxu0 }
 0x55f   :  { %v19327_v4 = vadd.f32 %v8778_v8, %v8666_v36  ;;  %v19329_v10 = vpop.f32.mrf.mxu1 }
 0x560   :  { %20480 = vst [vmem:[#allocation57_spill] sm:$0xff] %v19329_v10  ;;  %v8780_v44 = vpop.f32.mrf.mxu0 }
 0x561   :  { %v19331_v30 = vadd.f32 %v8780_v44, %v8668_v2  ;;  %v8831_v49 = vpop.f32.mrf.mxu1 }
 0x562   :  { %v8782_v57 = vpop.f32.mrf.mxu0  ;;  %v8832_v61 = vadd.f32 %v8831_v49, %v19234_v14 }
 0x563   :  { %v19334_v33 = vadd.f32 %v8782_v57, %v8670_v20  ;;  %v8833_v58 = vpop.f32.mrf.mxu1 }
 0x564   :  { %v19336_v37 = vpop.f32.mrf.mxu0  ;;  %v8834_v54 = vadd.f32 %v8833_v58, %v19239_v59 }
 0x565   :  { %v8835_v13 = vpop.f32.mrf.mxu1 }
 0x566   :  { %v8788_v34 = vpop.f32.mrf.mxu0  ;;  %v8836_v36 = vadd.f32 %v8835_v13, %v19244_v11 }
 0x567   :  { %v19340_v53 = vadd.f32 %v8788_v34, %v8676_v41  ;;  %v19342_v24 = vpop.f32.mrf.mxu1 }
 0x568   :  { %v8790_v2 = vpop.f32.mrf.mxu0 }
 0x569   :  { %v19344_v31 = vadd.f32 %v8790_v2, %v8678_v55  ;;  %v8841_v40 = vpop.f32.mrf.mxu1 }
 0x56a   :  { %v8792_v14 = vpop.f32.mrf.mxu0  ;;  %v8842_v20 = vadd.f32 %v8841_v40, %v19250_v15 }
 0x56b   :  { %v19347_v8 = vadd.f32 %v8792_v14, %v8680_v29  ;;  %v8843_v44 = vpop.f32.mrf.mxu1 }
 0x56c   :  { %v19349_v49 = vpop.f32.mrf.mxu0  ;;  %v8844_v59 = vadd.f32 %v8843_v44, %v19255_v39 }
 0x56d   :  { %20481 = vst [vmem:[#allocation58_spill] sm:$0xff] %v19349_v49  ;;  %v8845_v57 = vpop.f32.mrf.mxu1 }
 0x56e   :  { %v8846_v11 = vadd.f32 %v8845_v57, %v19260_v9  ;;  %v8944_v41 = vpop.f32.mrf.mxu0 }
 0x56f   :  { %v19353_v58 = vadd.f32 %v8944_v41, %v8832_v61  ;;  %v8847_v13 = vpop.f32.mrf.mxu1 }
 0x570   :  { %v8946_v55 = vpop.f32.mrf.mxu0 }
 0x571   :  { %v19355_v34 = vadd.f32 %v8946_v55, %v8834_v54  ;;  %v8851_v2 = vpop.f32.mrf.mxu1  ;;  %v8735_v55 = vadd.f32 %v19263_v22, %v19237_v21 }
 0x572   :  { %v8852_v15 = vadd.f32 %v8851_v2, %v19266_v43  ;;  %v8948_v29 = vpop.f32.mrf.mxu0 }
 0x573   :  { %v19358_v40 = vadd.f32 %v8948_v29, %v8836_v36  ;;  %v8853_v14 = vpop.f32.mrf.mxu1 }
 0x574   :  { %v8854_v49 = vadd.f32 %v8853_v14, %v19271_v50  ;;  %v19361_v39 = vpop.f32.mrf.mxu0  ;;  %v19371_v50 = vld [vmem:[#allocation9] sm:$0xff]   ;;  %v8848_v14 = vadd.f32 %v8847_v13, %v8735_v55 }
 0x575   :  { %v8855_v44 = vpop.f32.mrf.mxu1  ;;  %20482 = vst [vmem:[#allocation59_spill] sm:$0xff] %v19371_v50  ;;  %9610 = vmatmul.mubr.bf16.vlgmr.msra.gmra.mxu0 %v19371_v50 }
 0x576   :  { %v8856_v9 = vadd.f32 %v8855_v44, %v19276_v35  ;;  %v8954_v61 = vpop.f32.mrf.mxu0  ;;  %9619 = vmatprep.mubr.bf16.mxu0 %v20469_v25 }
 0x577   :  { %v19364_v57 = vadd.f32 %v8954_v61, %v8842_v20  ;;  %v8857_v41 = vpop.f32.mrf.mxu1 }
 0x578   :  { %v8956_v54 = vpop.f32.mrf.mxu0 }
 0x579   :  { %v19368_v43 = vadd.f32 %v8956_v54, %v8844_v59  ;;  %v8861_v36 = vpop.f32.mrf.mxu1 }
 0x57a   :  { %v8862_v2 = vadd.f32 %v8861_v36, %v19282_v47  ;;  %v8958_v29 = vpop.f32.mrf.mxu0 }
 0x57b   :  { %v19373_v10 = vadd.f32 %v8958_v29, %v8846_v11  ;;  %v8863_v35 = vpop.f32.mrf.mxu1  ;;  %v8745_v11 = vadd.f32 %v19279_v17, %v19253_v48 }
 0x57c   :  { %v8864_v20 = vadd.f32 %v8863_v35, %v19286_v18  ;;  %v8960_v44 = vpop.f32.mrf.mxu0 }
 0x57d   :  { %v19377_v61 = vadd.f32 %v8960_v44, %v8848_v14  ;;  %v8865_v21 = vpop.f32.mrf.mxu1  ;;  %v8858_v14 = vadd.f32 %v8857_v41, %v8745_v11 }
 0x57e   :  { %v8866_v22 = vadd.f32 %v8865_v21, %v19291_v3  ;;  %v8964_v47 = vpop.f32.mrf.mxu0 }
 0x57f   :  { %v19381_v59 = vadd.f32 %v8964_v47, %v8852_v15  ;;  %v8867_v54 = vpop.f32.mrf.mxu1 }
 0x580   :  { %v8966_v13 = vpop.f32.mrf.mxu0 }
 0x581   :  { %v19385_v55 = vadd.f32 %v8966_v13, %v8854_v49  ;;  %v8871_v18 = vpop.f32.mrf.mxu1 }
 0x582   :  { %v8872_v36 = vadd.f32 %v8871_v18, %v19297_v5  ;;  %v8968_v29 = vpop.f32.mrf.mxu0  ;;  %v8755_v5 = vadd.f32 %v19294_v60, %v19269_v19 }
 0x583   :  { %v19388_v35 = vadd.f32 %v8968_v29, %v8856_v9  ;;  %v8873_v44 = vpop.f32.mrf.mxu1 }
 0x584   :  { %v8874_v3 = vadd.f32 %v8873_v44, %v19301_v1  ;;  %v8970_v21 = vpop.f32.mrf.mxu0  ;;  %v8868_v11 = vadd.f32 %v8867_v54, %v8755_v5 }
 0x585   :  { %v19391_v15 = vadd.f32 %v8970_v21, %v8858_v14  ;;  %v8875_v47 = vpop.f32.mrf.mxu1 }
 0x586   :  { %v8876_v50 = vadd.f32 %v8875_v47, %v19306_v28  ;;  %v8974_v16 = vpop.f32.mrf.mxu0 }
 0x587   :  { %v19394_v48 = vadd.f32 %v8974_v16, %v8862_v2  ;;  %v8877_v17 = vpop.f32.mrf.mxu1  ;;  %v8539_v16 = vadd.f32 %v19177_v52, %v19146_v38 }
 0x588   :  { %v8976_v49 = vpop.f32.mrf.mxu0 }
 0x589   :  { %v19398_v41 = vadd.f32 %v8976_v49, %v8864_v20  ;;  %v8881_v9 = vpop.f32.mrf.mxu1  ;;  %v8652_v20 = vadd.f32 %v19284_v62, %v8539_v16  ;;  %v8549_v62 = vadd.f32 %v19195_v27, %v19167_v7 }
 0x58a   :  { %v8882_v13 = vadd.f32 %v8881_v9, %v19312_v23  ;;  %v8978_v1 = vpop.f32.mrf.mxu0 }
 0x58b   :  { %v19401_v18 = vadd.f32 %v8978_v1, %v8866_v22  ;;  %v8883_v29 = vpop.f32.mrf.mxu1  ;;  %v8765_v21 = vadd.f32 %v19309_v51, %v8652_v20 }
 0x58c   :  { %v8884_v28 = vadd.f32 %v8883_v29, %v19316_v46  ;;  %v8980_v14 = vpop.f32.mrf.mxu0  ;;  %v8662_v29 = vadd.f32 %v19299_v42, %v8549_v62 }
 0x58d   :  { %v19406_v2 = vadd.f32 %v8980_v14, %v8868_v11  ;;  %v8885_v44 = vpop.f32.mrf.mxu1  ;;  %v8878_v52 = vadd.f32 %v8877_v17, %v8765_v21 }
 0x58e   :  { %v8886_v19 = vadd.f32 %v8885_v44, %v19321_v56  ;;  %v8984_v60 = vpop.f32.mrf.mxu0 }
 0x58f   :  { %v19410_v23 = vadd.f32 %v8984_v60, %v8872_v36  ;;  %v8887_v54 = vpop.f32.mrf.mxu1 }
 0x590   :  { %v8986_v22 = vpop.f32.mrf.mxu0 }
 0x591   :  { %v19413_v47 = vadd.f32 %v8986_v22, %v8874_v3  ;;  %v8891_v46 = vpop.f32.mrf.mxu1 }
 0x592   :  { %v8892_v49 = vadd.f32 %v8891_v46, %v19327_v4  ;;  %v8988_v38 = vpop.f32.mrf.mxu0 }
 0x593   :  { %v19416_v5 = vadd.f32 %v8988_v38, %v8876_v50  ;;  %v8893_v9 = vpop.f32.mrf.mxu1  ;;  %v19427_v50 = vld [vmem:[#allocation9 + $0x8] sm:$0xff]  }
 0x594   :  { %v8894_v56 = vadd.f32 %v8893_v9, %v19331_v30  ;;  %v8990_v1 = vpop.f32.mrf.mxu0  ;;  %20483 = vst [vmem:[#allocation56_spill] sm:$0xff] %v19427_v50  ;;  %v8775_v30 = vadd.f32 %v19324_v12, %v8662_v29  ;;  %9620 = vmatmul.mubr.bf16.gmra.mxu0 %v19427_v50  ;;  %v8559_v12 = vadd.f32 %v19212_v0, %v19185_v32 }
 0x595   :  { %v19421_v36 = vadd.f32 %v8990_v1, %v8878_v52  ;;  %v8895_v11 = vpop.f32.mrf.mxu1  ;;  %9629 = vmatprep.mubr.bf16.mxu0 %v20469_v25 }
 0x596   :  { %v8896_v51 = vadd.f32 %v8895_v11, %v19334_v33  ;;  %v8994_v3 = vpop.f32.mrf.mxu0  ;;  %v8888_v33 = vadd.f32 %v8887_v54, %v8775_v30  ;;  %v8672_v46 = vadd.f32 %v19314_v26, %v8559_v12 }
 0x597   :  { %v19425_v4 = vadd.f32 %v8994_v3, %v8882_v13  ;;  %v8897_v17 = vpop.f32.mrf.mxu1 }
 0x598   :  { %v8996_v14 = vpop.f32.mrf.mxu0 }
 0x599   :  { %v19430_v16 = vadd.f32 %v8996_v14, %v8884_v28  ;;  %v8901_v44 = vpop.f32.mrf.mxu1 }
 0x59a   :  { %v8902_v7 = vadd.f32 %v8901_v44, %v19340_v53  ;;  %v8998_v27 = vpop.f32.mrf.mxu0 }
 0x59b   :  { %v19435_v42 = vadd.f32 %v8998_v27, %v8886_v19  ;;  %v8903_v13 = vpop.f32.mrf.mxu1 }
 0x59c   :  { %v8904_v60 = vadd.f32 %v8903_v13, %v19344_v31  ;;  %v9000_v20 = vpop.f32.mrf.mxu0  ;;  %v8785_v31 = vadd.f32 %v19336_v37, %v8672_v46  ;;  %v8725_v13 = vadd.f32 %v19247_v63, %v19221_v6 }
 0x59d   :  { %v19440_v28 = vadd.f32 %v9000_v20, %v8888_v33  ;;  %v8905_v22 = vpop.f32.mrf.mxu1 }
 0x59e   :  { %v19443_v21 = vadd.f32 %v8905_v22, %v19347_v8  ;;  %v9004_v53 = vpop.f32.mrf.mxu0  ;;  %v8898_v1 = vadd.f32 %v8897_v17, %v8785_v31 }
 0x59f   :  { %v19446_v38 = vadd.f32 %v9004_v53, %v8892_v49  ;;  %v19448_v19 = vpop.f32.mrf.mxu1 }
 0x5a0   :  { %v9006_v54 = vpop.f32.mrf.mxu0 }
 0x5a1   :  { %v19451_v52 = vadd.f32 %v9006_v54, %v8894_v56  ;;  %v9057_v9 = vpop.f32.mrf.mxu1 }
 0x5a2   :  { %v9008_v32 = vpop.f32.mrf.mxu0  ;;  %v9058_v0 = vadd.f32 %v9057_v9, %v19353_v58 }
 0x5a3   :  { %v19454_v62 = vadd.f32 %v9008_v32, %v8896_v51  ;;  %v9059_v8 = vpop.f32.mrf.mxu1 }
 0x5a4   :  { %v9010_v11 = vpop.f32.mrf.mxu0  ;;  %v9060_v26 = vadd.f32 %v9059_v8, %v19355_v34 }
 0x5a5   :  { %v19457_v49 = vadd.f32 %v9010_v11, %v8898_v1  ;;  %v9061_v3 = vpop.f32.mrf.mxu1 }
 0x5a6   :  { %v9014_v29 = vpop.f32.mrf.mxu0  ;;  %v9062_v14 = vadd.f32 %v9061_v3, %v19358_v40 }
 0x5a7   :  { %v19460_v37 = vadd.f32 %v9014_v29, %v8902_v7  ;;  %v9063_v56 = vpop.f32.mrf.mxu1 }
 0x5a8   :  { %v9016_v30 = vpop.f32.mrf.mxu0 }
 0x5a9   :  { %v19462_v44 = vadd.f32 %v9016_v30, %v8904_v60  ;;  %v9067_v58 = vpop.f32.mrf.mxu1  ;;  %v8838_v60 = vadd.f32 %v19342_v24, %v8725_v13 }
 0x5aa   :  { %v19464_v17 = vpop.f32.mrf.mxu0  ;;  %v9068_v51 = vadd.f32 %v9067_v58, %v19364_v57 }
 0x5ab   :  { %v9069_v27 = vpop.f32.mrf.mxu1  ;;  %v8951_v46 = vadd.f32 %v19361_v39, %v8838_v60 }
 0x5ac   :  { %v19467_v33 = vpop.f32.mrf.mxu0  ;;  %v9070_v34 = vadd.f32 %v9069_v27, %v19368_v43 }
 0x5ad   :  { %v9071_v40 = vpop.f32.mrf.mxu1  ;;  %v9064_v63 = vadd.f32 %v9063_v56, %v8951_v46 }
 0x5ae   :  { %v9072_v7 = vadd.f32 %v9071_v40, %v19373_v10  ;;  %v9170_v20 = vpop.f32.mrf.mxu0 }
 0x5af   :  { %v19474_v12 = vadd.f32 %v9170_v20, %v9058_v0  ;;  %v9073_v22 = vpop.f32.mrf.mxu1 }
 0x5b0   :  { %v9074_v53 = vadd.f32 %v9073_v22, %v19377_v61  ;;  %v9172_v57 = vpop.f32.mrf.mxu0 }
 0x5b1   :  { %v19478_v54 = vadd.f32 %v9172_v57, %v9060_v26  ;;  %v9077_v43 = vpop.f32.mrf.mxu1 }
 0x5b2   :  { %v9078_v31 = vadd.f32 %v9077_v43, %v19381_v59  ;;  %v9174_v6 = vpop.f32.mrf.mxu0 }
 0x5b3   :  { %v19481_v9 = vadd.f32 %v9174_v6, %v9062_v14  ;;  %v9079_v10 = vpop.f32.mrf.mxu1 }
 0x5b4   :  { %v19484_v24 = vadd.f32 %v9079_v10, %v19385_v55  ;;  %v9176_v32 = vpop.f32.mrf.mxu0 }
 0x5b5   :  { %v19486_v0 = vadd.f32 %v9176_v32, %v9064_v63  ;;  %v9081_v61 = vpop.f32.mrf.mxu1 }
 0x5b6   :  { %v19489_v1 = vadd.f32 %v9081_v61, %v19388_v35  ;;  %v9180_v39 = vpop.f32.mrf.mxu0  ;;  %v19548_v61 = vld [vmem:[#allocation9 + $0x10] sm:$0xff]  }
 0x5b7   :  { %v19491_v8 = vadd.f32 %v9180_v39, %v9068_v51  ;;  %v9083_v11 = vpop.f32.mrf.mxu1  ;;  %20484 = vst [vmem:[#allocation63_spill] sm:$0xff] %v19548_v61  ;;  %9630 = vmatmul.mubr.bf16.gmra.mxu0 %v19548_v61 }
 0x5b8   :  { %v19494_v59 = vadd.f32 %v9083_v11, %v19391_v15  ;;  %v9182_v26 = vpop.f32.mrf.mxu0  ;;  %9639 = vmatprep.mubr.bf16.mxu0 %v20469_v25 }
 0x5b9   :  { %v19496_v3 = vadd.f32 %v9182_v26, %v9070_v34  ;;  %v9087_v29 = vpop.f32.mrf.mxu1 }
 0x5ba   :  { %v19499_v55 = vadd.f32 %v9087_v29, %v19394_v48  ;;  %v9184_v14 = vpop.f32.mrf.mxu0 }
 0x5bb   :  { %v19501_v56 = vadd.f32 %v9184_v14, %v9072_v7  ;;  %v9089_v30 = vpop.f32.mrf.mxu1 }
 0x5bc   :  { %v19504_v35 = vadd.f32 %v9089_v30, %v19398_v41  ;;  %v9186_v58 = vpop.f32.mrf.mxu0  ;;  %v19568_v30 = vld [vmem:[#allocation9 + $0x18] sm:$0xff]  }
 0x5bd   :  { %v19506_v51 = vadd.f32 %v9186_v58, %v9074_v53  ;;  %v9091_v27 = vpop.f32.mrf.mxu1  ;;  %20485 = vst [vmem:[#allocation64_spill] sm:$0xff] %v19568_v30 }
 0x5be   :  { %v19509_v15 = vadd.f32 %v9091_v27, %v19401_v18  ;;  %v9190_v34 = vpop.f32.mrf.mxu0 }
 0x5bf   :  { %v19511_v13 = vadd.f32 %v9190_v34, %v9078_v31  ;;  %v9093_v40 = vpop.f32.mrf.mxu1  ;;  %9640 = vmatmul.mubr.bf16.gmra.mxu0 %v19568_v30 }
 0x5c0   :  { %v19514_v48 = vadd.f32 %v9093_v40, %v19406_v2  ;;  %v19519_v41 = vpop.f32.mrf.mxu0 }
 0x5c1   :  { %v9097_v7 = vpop.f32.mrf.mxu1 }
 0x5c2   :  { %v19517_v20 = vadd.f32 %v9097_v7, %v19410_v23  ;;  %v19527_v57 = vpop.f32.mrf.mxu0 }
 0x5c3   :  { %v9099_v60 = vpop.f32.mrf.mxu1 }
 0x5c4   :  { %v19522_v22 = vadd.f32 %v9099_v60, %v19413_v47  ;;  %v19535_v31 = vpop.f32.mrf.mxu0  ;;  %v16183_v60 = vld [vmem:[#allocation10 + $0x78] sm:$0xff]  }
 0x5c5   :  { %v9101_v53 = vpop.f32.mrf.mxu1  ;;  %14488 = vmatprep.subr.bf16.mxu0 %v16183_v60  ;;  %v16188_v60 = vld [vmem:[#allocation10 + $0x28] sm:$0xff]  }
 0x5c6   :  { %v19525_v18 = vadd.f32 %v9101_v53, %v19416_v5  ;;  %v19543_v10 = vpop.f32.mrf.mxu0  ;;  %v16184_v53 = vld [vmem:[#allocation10 + $0x38] sm:$0xff]  }
 0x5c7   :  { %v9103_v46 = vpop.f32.mrf.mxu1  ;;  %14489 = vmatpush3.bf16.msra.mxu0 %v16184_v53  ;;  %v20487_v53 = vld [vmem:[#allocation71_spill] sm:$0xff] }
 0x5c8   :  { %v19530_v2 = vadd.f32 %v9103_v46, %v19421_v36  ;;  %v16185_v46 = vld [vmem:[#allocation10 + $0x70] sm:$0xff]  }
 0x5c9   :  { %v9107_v43 = vpop.f32.mrf.mxu1  ;;  %14490 = vmatprep.subr.bf16.mxu0 %v16185_v46 }
 0x5ca   :  { %v19533_v23 = vadd.f32 %v9107_v43, %v19425_v4 }
 0x5cb   :  { %v9109_v6 = vpop.f32.mrf.mxu1 }
 0x5cc   :  { %v19538_v47 = vadd.f32 %v9109_v6, %v19430_v16  ;;  %v19554_v16 = vpop.f32.mrf.mxu0 }
 0x5cd   :  { %v9111_v63 = vpop.f32.mrf.mxu1 }
 0x5ce   :  { %v19541_v5 = vadd.f32 %v9111_v63, %v19435_v42  ;;  %v19563_v29 = vpop.f32.mrf.mxu0 }
 0x5cf   :  { %v9113_v32 = vpop.f32.mrf.mxu1 }
 0x5d0   :  { %v19546_v36 = vadd.f32 %v9113_v32, %v19440_v28  ;;  %v16186_v32 = vld [vmem:[#allocation10 + $0x30] sm:$0xff]  }
 0x5d1   :  { %v9117_v4 = vpop.f32.mrf.mxu1  ;;  %14491 = vmatpush3.bf16.msra.mxu0 %v16186_v32 }
 0x5d2   :  { %v19551_v39 = vadd.f32 %v9117_v4, %v19446_v38  ;;  %v16187_v4 = vld [vmem:[#allocation10 + $0x68] sm:$0xff]  }
 0x5d3   :  { %v9119_v11 = vpop.f32.mrf.mxu1  ;;  %14492 = vmatprep.subr.bf16.mxu0 %v16187_v4 }
 0x5d4   :  { %v19558_v42 = vadd.f32 %v9119_v11, %v19451_v52  ;;  %v19574_v52 = vpop.f32.mrf.mxu0 }
 0x5d5   :  { %v9121_v26 = vpop.f32.mrf.mxu1  ;;  %14493 = vmatpush3.bf16.msra.mxu0 %v16188_v60  ;;  %v16196_v60 = vld [vmem:[#allocation10 + $0x8] sm:$0xff]  }
 0x5d6   :  { %v19561_v28 = vadd.f32 %v9121_v26, %v19454_v62  ;;  %v19581_v7 = vpop.f32.mrf.mxu0 }
 0x5d7   :  { %v9123_v14 = vpop.f32.mrf.mxu1 }
 0x5d8   :  { %v19566_v38 = vadd.f32 %v9123_v14, %v19457_v49  ;;  %v19586_v6 = vpop.f32.mrf.mxu0  ;;  %v16538_v14 = vld [vmem:[#allocation7 + $0x1] ss:$2 sm:$0xf] }
 0x5d9   :  { %v9127_v58 = vpop.f32.mrf.mxu1  ;;  %v19596_v50 = vrot.slane %v16538_v14, %v20487_v53  ;;  %v16192_v53 = vld [vmem:[#allocation10 + $0x18] sm:$0xff]  }
 0x5da   :  { %v19571_v27 = vadd.f32 %v9127_v58, %v19460_v37  ;;  %v20486_v58 = vld [vmem:[#allocation38_spill] sm:$0xff]  ;;  %v19593_v61 = vpop.f32.mrf.mxu0 }
 0x5db   :  { %v9129_v34 = vpop.f32.mrf.mxu1 }
 0x5dc   :  { %v19577_v62 = vadd.f32 %v9129_v34, %v19462_v44  ;;  %v19590_v34 = vrot.slane %v16538_v14, %v20486_v58  ;;  %v19606_v25 = vpop.f32.mrf.mxu0  ;;  %v16190_v14 = vld [vmem:[#allocation10 + $0x20] sm:$0xff]  }
 0x5dd   :  { %v19579_v40 = vpop.f32.mrf.mxu1 }
 0x5df   :  { %v19583_v49 = vpop.f32.mrf.mxu1 }
 0x5e1   :  { %v9283_v43 = vpop.f32.mrf.mxu1 }
 0x5e2   :  { %v9284_v37 = vadd.f32 %v9283_v43, %v19474_v12 }
 0x5e3   :  { %v9285_v63 = vpop.f32.mrf.mxu1 }
 0x5e4   :  { %v9286_v44 = vadd.f32 %v9285_v63, %v19478_v54  ;;  %v9364_v26 = vmax.f32 %v9284_v37, 0.0  ;;  %v16189_v37 = vld [vmem:[#allocation10 + $0x60] sm:$0xff]  }
 0x5e5   :  { %v9287_v11 = vpop.f32.mrf.mxu1  ;;  %14494 = vmatprep.subr.bf16.mxu0 %v16189_v37  ;;  %v9193_v37 = vadd.f32 %v19519_v41, %v19484_v24  ;;  %v16197_v41 = vld [vmem:[#allocation10 + $0x40] sm:$0xff]  }
 0x5e6   :  { %v9288_v30 = vadd.f32 %v9287_v11, %v19481_v9  ;;  %v9365_v43 = vmax.f32 %v9286_v44, 0.0  ;;  %v19600_v58 = vadd.f32 %v19590_v34, %v9364_v26  ;;  %14495 = vmatpush3.bf16.msra.mxu0 %v16190_v14 }
 0x5e7   :  { %v9289_v12 = vpop.f32.mrf.mxu1 }
 0x5e8   :  { %v9368_v54 = vmax.f32 %v9288_v30, 0.0  ;;  %v9290_v46 = vadd.f32 %v9289_v12, %v19486_v0  ;;  %20488 = vst [vmem:[#allocation87_spill] sm:$0xff] %v19600_v58  ;;  %v19609_v30 = vadd.f32 %v19596_v50, %v9365_v43  ;;  %v16191_v12 = vld [vmem:[#allocation10 + $0x58] sm:$0xff]  }
 0x5e9   :  { %v9293_v63 = vpop.f32.mrf.mxu1  ;;  %14496 = vmatprep.subr.bf16.mxu0 %v16191_v12  ;;  %v16194_v12 = vld [vmem:[#allocation10 + $0x10] sm:$0xff]  }
 0x5ea   :  { %v19603_v9 = vadd.f32 %v19590_v34, %v9368_v54  ;;  %v9369_v11 = vmax.f32 %v9290_v46, 0.0  ;;  %v9294_v32 = vadd.f32 %v9293_v63, %v19491_v8  ;;  %v19620_v63 = vpop.f32.mrf.mxu0  ;;  %14497 = vmatpush3.bf16.msra.mxu0 %v16192_v53 }
 0x5eb   :  { %v9295_v44 = vpop.f32.mrf.mxu1 }
 0x5ec   :  { %v19614_v4 = vadd.f32 %v19596_v50, %v9369_v11  ;;  %v9296_v26 = vadd.f32 %v9295_v44, %v19496_v3  ;;  %v9372_v8 = vmax.f32 %v9294_v32, 0.0  ;;  %v16193_v3 = vld [vmem:[#allocation10 + $0x50] sm:$0xff]  }
 0x5ed   :  { %v9297_v54 = vpop.f32.mrf.mxu1  ;;  %14498 = vmatprep.subr.bf16.mxu0 %v16193_v3 }
 0x5ee   :  { %v9298_v46 = vadd.f32 %v9297_v54, %v19501_v56  ;;  %v9373_v0 = vmax.f32 %v9296_v26, 0.0  ;;  %v19626_v56 = vadd.f32 %v19590_v34, %v9372_v8  ;;  %v9195_v26 = vadd.f32 %v19527_v57, %v19489_v1  ;;  %14499 = vmatpush3.bf16.msra.mxu0 %v16194_v12 }
 0x5ef   :  { %v9299_v43 = vpop.f32.mrf.mxu1  ;;  %v9197_v1 = vadd.f32 %v19535_v31, %v19494_v59  ;;  %v9203_v59 = vadd.f32 %v19554_v16, %v19504_v35 }
 0x5f0   :  { %v9376_v58 = vmax.f32 %v9298_v46, 0.0  ;;  %v9300_v11 = vadd.f32 %v9299_v43, %v19506_v51  ;;  %v19634_v46 = vpop.f32.mrf.mxu0  ;;  %v19637_v24 = vadd.f32 %v19596_v50, %v9373_v0 }
 0x5f1   :  { %v9303_v32 = vpop.f32.mrf.mxu1 }
 0x5f2   :  { %v19629_v44 = vadd.f32 %v19590_v34, %v9376_v58  ;;  %v9377_v54 = vmax.f32 %v9300_v11, 0.0  ;;  %v9304_v14 = vadd.f32 %v9303_v32, %v19511_v13  ;;  %v16195_v13 = vld [vmem:[#allocation10 + $0x48] sm:$0xff]   ;;  %v19648_v0 = vpop.f32.mrf.mxu0 }
 0x5f3   :  { %v9305_v51 = vpop.f32.mrf.mxu1  ;;  %14500 = vmatprep.subr.bf16.mxu0 %v16195_v13  ;;  %v16198_v13 = vld [vmem:[#allocation10] sm:$0xff]  }
 0x5f4   :  { %v19642_v58 = vadd.f32 %v19596_v50, %v9377_v54  ;;  %v9306_v8 = vadd.f32 %v9305_v51, %v9193_v37  ;;  %v9380_v57 = vmax.f32 %v9304_v14, 0.0  ;;  %v9201_v54 = vadd.f32 %v19543_v10, %v19499_v55  ;;  %v9226_v10 = vpop.f32.mrf.mxu0  ;;  %14501 = vmatpush3.bf16.msra.mxu0 %v16196_v60 }
 0x5f5   :  { %v9307_v43 = vpop.f32.mrf.mxu1  ;;  %v9205_v55 = vadd.f32 %v19563_v29, %v19509_v15  ;;  %14502 = vmatprep.subr.bf16.mxu0 %v16197_v41  ;;  %v9207_v15 = vadd.f32 %v19574_v52, %v19514_v48  ;;  %v9213_v41 = vadd.f32 %v19586_v6, %v19522_v22 }
 0x5f6   :  { %v9308_v11 = vadd.f32 %v9307_v43, %v9195_v26  ;;  %v9381_v37 = vmax.f32 %v9306_v8, 0.0  ;;  %v19655_v14 = vadd.f32 %v19590_v34, %v9380_v57 }
 0x5f7   :  { %v9309_v32 = vpop.f32.mrf.mxu1 }
 0x5f8   :  { %v9384_v3 = vmax.f32 %v9308_v11, 0.0  ;;  %v9310_v51 = vadd.f32 %v9309_v32, %v9197_v1  ;;  %v19663_v1 = vadd.f32 %v19596_v50, %v9381_v37  ;;  %v16199_v11 = vld [vmem:[#allocation10 + $0x178] sm:$0xff]   ;;  %v9230_v37 = vpop.f32.mrf.mxu0  ;;  %14503 = vmatpush3.bf16.msra.mxu0 %v16198_v13  ;;  %v9215_v13 = vadd.f32 %v19593_v61, %v19525_v18 }
 0x5f9   :  { %v9313_v31 = vpop.f32.mrf.mxu1  ;;  %14532 = vmatprep.subr.bf16.mxu0 %v16199_v11 }
 0x5fa   :  { %v19658_v26 = vadd.f32 %v19590_v34, %v9384_v3  ;;  %v9385_v12 = vmax.f32 %v9310_v51, 0.0  ;;  %v9314_v43 = vadd.f32 %v9313_v31, %v9201_v54  ;;  %v9211_v51 = vadd.f32 %v19581_v7, %v19517_v20  ;;  %v9232_v20 = vpop.f32.mrf.mxu0 }
 0x5fb   :  { %v9315_v8 = vpop.f32.mrf.mxu1 }
 0x5fc   :  { %v9523_v35 = vpack.c.bf16 %v19658_v26, %v19655_v14  ;;  %v19668_v16 = vadd.f32 %v19596_v50, %v9385_v12  ;;  %v9316_v57 = vadd.f32 %v9315_v8, %v9203_v59  ;;  %v9388_v29 = vmax.f32 %v9314_v43, 0.0  ;;  %v9234_v61 = vpop.f32.mrf.mxu0  ;;  %v16200_v26 = vld [vmem:[#allocation10 + $0x138] sm:$0xff]  }
 0x5fd   :  { %v9317_v32 = vpop.f32.mrf.mxu1 }
 0x5fe   :  { %v9318_v54 = vadd.f32 %v9317_v32, %v9205_v55  ;;  %v9524_v60 = vpack.c.bf16 %v19668_v16, %v19663_v1  ;;  %v9389_v31 = vmax.f32 %v9316_v57, 0.0  ;;  %v19679_v48 = vadd.f32 %v19590_v34, %v9388_v29 }
 0x5ff   :  { %v9319_v3 = vpop.f32.mrf.mxu1 }
 0x600   :  { %v9392_v12 = vmax.f32 %v9318_v54, 0.0  ;;  %v9320_v59 = vadd.f32 %v9319_v3, %v9207_v15  ;;  %v19687_v57 = vadd.f32 %v19596_v50, %v9389_v31  ;;  %v9217_v15 = vadd.f32 %v19606_v25, %v19530_v2 }
 0x601   :  { %v9323_v8 = vpop.f32.mrf.mxu1 }
 0x602   :  { %v19682_v52 = vadd.f32 %v19590_v34, %v9392_v12  ;;  %v9393_v43 = vmax.f32 %v9320_v59, 0.0  ;;  %v9324_v55 = vadd.f32 %v9323_v8, %v9211_v51  ;;  %v9221_v51 = vadd.f32 %v19620_v63, %v19533_v23 }
 0x603   :  { %v9325_v7 = vpop.f32.mrf.mxu1 }
 0x604   :  { %v9527_v22 = vpack.c.bf16 %v19682_v52, %v19679_v48  ;;  %v19692_v6 = vadd.f32 %v19596_v50, %v9393_v43  ;;  %v9326_v11 = vadd.f32 %v9325_v7, %v9213_v41  ;;  %v9396_v29 = vmax.f32 %v9324_v55, 0.0  ;;  %v9236_v7 = vpop.f32.mrf.mxu0  ;;  %v16203_v52 = vld [vmem:[#allocation10 + $0x168] sm:$0xff]  }
 0x605   :  { %v9327_v32 = vpop.f32.mrf.mxu1  ;;  %v9223_v41 = vadd.f32 %v19634_v46, %v19538_v47  ;;  %v20494_v48 = vpack.c.bf16 %v19614_v4, %v19609_v30  ;;  %v16210_v30 = vld [vmem:[#allocation10 + $0xf0] sm:$0xff]  }
 0x606   :  { %v9328_v54 = vadd.f32 %v9327_v32, %v9215_v13  ;;  %v9528_v18 = vpack.c.bf16 %v19692_v6, %v19687_v57  ;;  %v9397_v31 = vmax.f32 %v9326_v11, 0.0  ;;  %v19703_v43 = vadd.f32 %v19590_v34, %v9396_v29  ;;  %v16202_v4 = vld [vmem:[#allocation10 + $0x130] sm:$0xff]  }
 0x607   :  { %v9329_v3 = vpop.f32.mrf.mxu1  ;;  %v9225_v13 = vadd.f32 %v19648_v0, %v19541_v5  ;;  %v9240_v0 = vpop.f32.mrf.mxu0  ;;  %v20493_v6 = vpack.c.bf16 %v19629_v44, %v19626_v56  ;;  %v16208_v56 = vld [vmem:[#allocation10 + $0xb8] sm:$0xff]  }
 0x608   :  { %v9400_v12 = vmax.f32 %v9328_v54, 0.0  ;;  %v9330_v59 = vadd.f32 %v9329_v3, %v9217_v15  ;;  %v19711_v63 = vadd.f32 %v19596_v50, %v9397_v31  ;;  %v9227_v15 = vadd.f32 %v9226_v10, %v19546_v36  ;;  %v20497_v44 = vld [vmem:[#allocation59_spill] sm:$0xff] }
 0x609   :  { %v9333_v8 = vpop.f32.mrf.mxu1 }
 0x60a   :  { %v19706_v25 = vadd.f32 %v19590_v34, %v9400_v12  ;;  %v9401_v2 = vmax.f32 %v9330_v59, 0.0  ;;  %v9334_v55 = vadd.f32 %v9333_v8, %v9221_v51  ;;  %v9231_v51 = vadd.f32 %v9230_v37, %v19551_v39  ;;  %v20489_v8 = vld [vmem:[#allocation54_spill] sm:$0xff]  ;;  %v9242_v37 = vpop.f32.mrf.mxu0 }
 0x60b   :  { %v9335_v23 = vpop.f32.mrf.mxu1  ;;  %v9235_v39 = vadd.f32 %v9234_v61, %v19561_v28  ;;  %v9019_v28 = vadd.f32 %v19464_v17, %v19443_v21 }
 0x60c   :  { %v9531_v47 = vpack.c.bf16 %v19706_v25, %v19703_v43  ;;  %v19716_v46 = vadd.f32 %v19596_v50, %v9401_v2  ;;  %v9336_v11 = vadd.f32 %v9335_v23, %v9223_v41  ;;  %v9404_v29 = vmax.f32 %v9334_v55, 0.0  ;;  %v9244_v61 = vpop.f32.mrf.mxu0  ;;  %v16204_v25 = vld [vmem:[#allocation10 + $0x128] sm:$0xff]  }
 0x60d   :  { %v9337_v32 = vpop.f32.mrf.mxu1  ;;  %v8569_v2 = vadd.f32 %v20489_v8, %v19203_v45  ;;  %v9233_v41 = vadd.f32 %v9232_v20, %v19558_v42 }
 0x60e   :  { %v9338_v54 = vadd.f32 %v9337_v32, %v9225_v13  ;;  %v9532_v5 = vpack.c.bf16 %v19716_v46, %v19711_v63  ;;  %v9405_v31 = vmax.f32 %v9336_v11, 0.0  ;;  %v19726_v36 = vadd.f32 %v19590_v34, %v9404_v29  ;;  %v20490_v32 = vld [vmem:[#allocation57_spill] sm:$0xff]  ;;  %v16205_v63 = vld [vmem:[#allocation10 + $0x160] sm:$0xff]  }
 0x60f   :  { %v9339_v3 = vpop.f32.mrf.mxu1  ;;  %v8682_v53 = vadd.f32 %v20490_v32, %v8569_v2  ;;  %v16218_v46 = vld [vmem:[#allocation10 + $0xe0] sm:$0xff]  }
 0x610   :  { %v9408_v12 = vmax.f32 %v9338_v54, 0.0  ;;  %v9340_v59 = vadd.f32 %v9339_v3, %v9227_v15  ;;  %v9492_v15 = vadd.f32 %v19596_v50, %v9405_v31  ;;  %v20491_v54 = vld [vmem:[#allocation58_spill] sm:$0xff] }
 0x611   :  { %v9343_v23 = vpop.f32.mrf.mxu1  ;;  %v8795_v29 = vadd.f32 %v20491_v54, %v8682_v53 }
 0x612   :  { %v9495_v10 = vadd.f32 %v19590_v34, %v9408_v12  ;;  %v9409_v55 = vmax.f32 %v9340_v59, 0.0  ;;  %v9344_v13 = vadd.f32 %v9343_v23, %v9231_v51  ;;  %v9237_v12 = vadd.f32 %v9236_v7, %v19566_v38 }
 0x613   :  { %v9345_v11 = vpop.f32.mrf.mxu1  ;;  %v8908_v2 = vadd.f32 %v19448_v19, %v8795_v29  ;;  %v9241_v23 = vadd.f32 %v9240_v0, %v19571_v27  ;;  %v9243_v38 = vadd.f32 %v9242_v37, %v19577_v62  ;;  %v9246_v27 = vpop.f32.mrf.mxu0 }
 0x614   :  { %v9535_v45 = vpack.c.bf16 %v9495_v10, %v19726_v36  ;;  %v9496_v42 = vadd.f32 %v19596_v50, %v9409_v55  ;;  %v9346_v20 = vadd.f32 %v9345_v11, %v9233_v41  ;;  %v9412_v59 = vmax.f32 %v9344_v13, 0.0 }
 0x615   :  { %v9347_v3 = vpop.f32.mrf.mxu1  ;;  %v9021_v53 = vadd.f32 %v19467_v33, %v8908_v2  ;;  %v9132_v55 = vadd.f32 %v19579_v40, %v9019_v28 }
 0x616   :  { %v9348_v51 = vadd.f32 %v9347_v3, %v9235_v39  ;;  %v9536_v8 = vpack.c.bf16 %v9496_v42, %v9492_v15  ;;  %v9413_v36 = vmax.f32 %v9346_v20, 0.0  ;;  %v9499_v13 = vadd.f32 %v19590_v34, %v9412_v59 }
 0x617   :  { %v9349_v31 = vpop.f32.mrf.mxu1  ;;  %v9134_v17 = vadd.f32 %v19583_v49, %v9021_v53  ;;  %v9245_v39 = vadd.f32 %v9244_v61, %v9132_v55  ;;  %v16213_v53 = vld [vmem:[#allocation10 + $0x150] sm:$0xff]   ;;  %v16224_v55 = vld [vmem:[#allocation10 + $0x98] sm:$0xff]  }
 0x618   :  { %v9416_v10 = vmax.f32 %v9348_v51, 0.0  ;;  %v9350_v41 = vadd.f32 %v9349_v31, %v9237_v12  ;;  %v9500_v11 = vadd.f32 %v19596_v50, %v9413_v36  ;;  %v16220_v36 = vld [vmem:[#allocation10 + $0xa0] sm:$0xff]  }
 0x619   :  { %v9353_v7 = vpop.f32.mrf.mxu1  ;;  %v9247_v62 = vadd.f32 %v9246_v27, %v9134_v17  ;;  %v16221_v27 = vld [vmem:[#allocation10 + $0x140] sm:$0xff]  }
 0x61a   :  { %v9503_v19 = vadd.f32 %v19590_v34, %v9416_v10  ;;  %v9417_v32 = vmax.f32 %v9350_v41, 0.0  ;;  %v9354_v21 = vadd.f32 %v9353_v7, %v9241_v23  ;;  %v16222_v10 = vld [vmem:[#allocation10 + $0xd8] sm:$0xff]   ;;  %v16215_v7 = vld [vmem:[#allocation10 + $0x110] sm:$0xff]  }
 0x61b   :  { %v9355_v0 = vpop.f32.mrf.mxu1  ;;  %v16211_v41 = vld [vmem:[#allocation10 + $0x118] sm:$0xff]  }
 0x61c   :  { %v9539_v15 = vpack.c.bf16 %v9503_v19, %v9499_v13  ;;  %v9504_v33 = vadd.f32 %v19596_v50, %v9417_v32  ;;  %v9356_v40 = vadd.f32 %v9355_v0, %v9243_v38  ;;  %v9420_v37 = vmax.f32 %v9354_v21, 0.0  ;;  %v16226_v38 = vld [vmem:[#allocation10 + $0xd0] sm:$0xff]   ;;  %v20500_v13 = vld [vmem:[#allocation63_spill] sm:$0xff]  ;;  %v16217_v19 = vld [vmem:[#allocation10 + $0x148] sm:$0xff]  }
 0x61d   :  { %v9357_v42 = vpop.f32.mrf.mxu1  ;;  %v16228_v21 = vld [vmem:[#allocation10 + $0x90] sm:$0xff]  }
 0x61e   :  { %v9358_v20 = vadd.f32 %v9357_v42, %v9245_v39  ;;  %v9540_v54 = vpack.c.bf16 %v9504_v33, %v9500_v11  ;;  %v9421_v3 = vmax.f32 %v9356_v40, 0.0  ;;  %v9507_v49 = vadd.f32 %v19590_v34, %v9420_v37  ;;  %v16219_v39 = vld [vmem:[#allocation10 + $0x108] sm:$0xff]   ;;  %v16223_v40 = vld [vmem:[#allocation10 + $0x100] sm:$0xff]  }
 0x61f   :  { %v9359_v29 = vpop.f32.mrf.mxu1  ;;  %v20501_v42 = vld [vmem:[#allocation64_spill] sm:$0xff] }
 0x620   :  { %v9424_v12 = vmax.f32 %v9358_v20, 0.0  ;;  %v9360_v59 = vadd.f32 %v9359_v29, %v9247_v62  ;;  %v9508_v28 = vadd.f32 %v19596_v50, %v9421_v3 }
 0x622   :  { %v9511_v51 = vadd.f32 %v19590_v34, %v9424_v12  ;;  %v9425_v2 = vmax.f32 %v9360_v59, 0.0  ;;  %v20492_v34 = vpack.c.bf16 %v19642_v58, %v19637_v24  ;;  %v20495_v24 = vld [vmem:[#allocation87_spill] sm:$0xff] }
 0x623   :  { %v20496_v58 = vpack.c.bf16 %v19603_v9, %v20495_v24  ;;  %v16214_v9 = vld [vmem:[#allocation10 + $0xe8] sm:$0xff]   ;;  %v16227_v12 = vld [vmem:[#allocation10 + $0x238] sm:$0xff]  }
 0x624   :  { %v9543_v61 = vpack.c.bf16 %v9511_v51, %v9507_v49  ;;  %v9512_v31 = vadd.f32 %v19596_v50, %v9425_v2  ;;  %v16229_v49 = vld [vmem:[#allocation10 + $0x270] sm:$0xff]   ;;  %v16233_v2 = vld [vmem:[#allocation10 + $0x268] sm:$0xff]  }
 0x625   :  { %v16231_v51 = vld [vmem:[#allocation10 + $0x230] sm:$0xff]   ;;  %v16232_v24 = vld [vmem:[#allocation10 + $0x88] sm:$0xff]  }
 0x626   :  { %v9544_v23 = vpack.c.bf16 %v9512_v31, %v9508_v28  ;;  %v16235_v28 = vld [vmem:[#allocation10 + $0x228] sm:$0xff]   ;;  %v16239_v31 = vld [vmem:[#allocation10 + $0x220] sm:$0xff]  }
 0x628   :  { %9650 = vmatprep.subr.bf16.mxu1 %v9544_v23  ;;  %v16241_v23 = vld [vmem:[#allocation10 + $0x258] sm:$0xff]  }
 0x629   :  { %9651 = vmatpush1.bf16.msra.mxu1 %v9543_v61  ;;  %v16237_v61 = vld [vmem:[#allocation10 + $0x260] sm:$0xff]  }
 0x62a   :  { %9652 = vmatprep.subr.bf16.mxu1 %v9540_v54  ;;  %v16225_v54 = vld [vmem:[#allocation10 + $0x278] sm:$0xff]  }
 0x62d   :  { %9653 = vmatpush1.bf16.msra.mxu1 %v9539_v15 }
 0x62e   :  { %9654 = vmatprep.subr.bf16.mxu1 %v9536_v8  ;;  %v16209_v8 = vld [vmem:[#allocation10 + $0x158] sm:$0xff]  }
 0x631   :  { %9655 = vmatpush1.bf16.msra.mxu1 %v9535_v45  ;;  %v20499_v45 = vld [vmem:[#allocation56_spill] sm:$0xff] }
 0x632   :  { %9656 = vmatprep.subr.bf16.mxu1 %v9532_v5  ;;  %v16207_v5 = vld [vmem:[#allocation10 + $0x120] sm:$0xff]  }
 0x635   :  { %9657 = vmatpush1.bf16.msra.mxu1 %v9531_v47  ;;  %v9611_v50 = vpop.f32.mrf.mxu0  ;;  %v16216_v47 = vld [vmem:[#allocation10 + $0xa8] sm:$0xff]  }
 0x636   :  { %9658 = vmatprep.subr.bf16.mxu1 %v9528_v18  ;;  %v16212_v18 = vld [vmem:[#allocation10 + $0xb0] sm:$0xff]  }
 0x637   :  { %v9613_v43 = vpop.f32.mrf.mxu0 }
 0x639   :  { %9659 = vmatpush1.bf16.msra.mxu1 %v9527_v22  ;;  %v9615_v57 = vpop.f32.mrf.mxu0  ;;  %v20498_v22 = vmov 0  }
 0x63a   :  { %9660 = vmatprep.subr.bf16.mxu1 %v9524_v60  ;;  %v19779_v1 = vpack.c.bf16 %v9615_v57, %v9611_v50  ;;  %v16206_v60 = vld [vmem:[#allocation10 + $0xf8] sm:$0xff]   ;;  %v16249_v57 = vld [vmem:[#allocation10 + $0x248] sm:$0xff]  }
 0x63b   :  { %v9617_v16 = vpop.f32.mrf.mxu0  ;;  %v16243_v50 = vld [vmem:[#allocation10 + $0x218] sm:$0xff]  }
 0x63c   :  { %v19781_v14 = vpack.c.bf16 %v9617_v16, %v9613_v43  ;;  %v9747_v15 = vrot.slane %v19779_v1, 4  ;;  %v16247_v43 = vld [vmem:[#allocation10 + $0x210] sm:$0xff]   ;;  %v16257_v16 = vld [vmem:[#allocation10 + $0x378] sm:$0xff]  }
 0x63d   :  { %9661 = vmatpush1.bf16.msra.mxu1 %v9523_v35  ;;  %v16201_v35 = vld [vmem:[#allocation10 + $0x170] sm:$0xff]  }
 0x63e   :  { %9662 = vmatprep.subr.bf16.mxu1 %v20492_v34  ;;  %11624 = vmatprep.mubr.bf16.mxu0 %v19781_v14  ;;  %v9750_v62 = vrot.slane %v19781_v14, 4  ;;  %v16245_v34 = vld [vmem:[#allocation10 + $0x250] sm:$0xff]  }
 0x63f   :  { %11625 = vmatmul.mubr.bf16.vlgmr.msra.gmra.mxu0 %v19779_v1  ;;  %v16255_v1 = vld [vmem:[#allocation10 + $0x200] sm:$0xff]   ;;  %v16261_v14 = vld [vmem:[#allocation10 + $0x370] sm:$0xff]  }
 0x640   :  { %14533 = vmatpush3.bf16.msra.mxu0 %v16200_v26  ;;  %v16230_v26 = vld [vmem:[#allocation10 + $0xc8] sm:$0xff]  }
 0x641   :  { %9663 = vmatpush1.bf16.msra.mxu1 %v20493_v6  ;;  %14534 = vmatprep.subr.bf16.mxu0 %v16201_v35  ;;  %v16251_v6 = vld [vmem:[#allocation10 + $0x208] sm:$0xff]   ;;  %v16263_v35 = vld [vmem:[#allocation10 + $0x330] sm:$0xff]  }
 0x642   :  { %9664 = vmatprep.subr.bf16.mxu1 %v20494_v48  ;;  %v16253_v48 = vld [vmem:[#allocation10 + $0x240] sm:$0xff]  }
 0x644   :  { %14535 = vmatpush3.bf16.msra.mxu0 %v16202_v4  ;;  %v16236_v4 = vld [vmem:[#allocation10 + $0x80] sm:$0xff]  }
 0x645   :  { %9665 = vmatpush1.bf16.msra.mxu1 %v20496_v58  ;;  %14536 = vmatprep.subr.bf16.mxu0 %v16203_v52  ;;  %v16265_v58 = vld [vmem:[#allocation10 + $0x368] sm:$0xff]   ;;  %v16271_v52 = vld [vmem:[#allocation10 + $0x320] sm:$0xff]  }
 0x646   :  { %14510 = vmatprep.subr.bf16.mxu1 %v16206_v60  ;;  %v16259_v60 = vld [vmem:[#allocation10 + $0x338] sm:$0xff]  }
 0x648   :  { %9683 = vmatmul.mubr.bf16.vlgmr.msra.gmra.mxu1 %v20497_v44  ;;  %14537 = vmatpush3.bf16.msra.mxu0 %v16204_v25  ;;  %v16269_v44 = vld [vmem:[#allocation10 + $0x360] sm:$0xff]   ;;  %v16277_v25 = vld [vmem:[#allocation10 + $0x350] sm:$0xff]  }
 0x649   :  { %9692 = vmatprep.mubr.bf16.mxu1 %v20498_v22  ;;  %14511 = vmatpush3.bf16.msra.mxu1 %v16208_v56  ;;  %v16267_v56 = vld [vmem:[#allocation10 + $0x328] sm:$0xff]  }
 0x64a   :  { %14512 = vmatprep.subr.bf16.mxu1 %v16210_v30  ;;  %14538 = vmatprep.subr.bf16.mxu0 %v16205_v63  ;;  %v16234_v30 = vld [vmem:[#allocation10 + $0xc0] sm:$0xff]  }
 0x64c   :  { %14539 = vmatpush3.bf16.msra.mxu0 %v16207_v5  ;;  %v16281_v5 = vld [vmem:[#allocation10 + $0x348] sm:$0xff]  }
 0x64d   :  { %14513 = vmatpush3.bf16.msra.mxu1 %v16212_v18  ;;  %14540 = vmatprep.subr.bf16.mxu0 %v16209_v8  ;;  %v16273_v18 = vld [vmem:[#allocation10 + $0x358] sm:$0xff]   ;;  %v16283_v8 = vld [vmem:[#allocation10 + $0x308] sm:$0xff]  }
 0x64e   :  { %14514 = vmatprep.subr.bf16.mxu1 %v16214_v9  ;;  %v16275_v9 = vld [vmem:[#allocation10 + $0x318] sm:$0xff]  }
 0x650   :  { %9693 = vmatmul.mubr.bf16.gmra.mxu1 %v20499_v45  ;;  %14541 = vmatpush3.bf16.msra.mxu0 %v16211_v41  ;;  %v16285_v41 = vld [vmem:[#allocation10 + $0x340] sm:$0xff]  }
 0x651   :  { %9702 = vmatprep.mubr.bf16.mxu1 %v20498_v22  ;;  %14515 = vmatpush3.bf16.msra.mxu1 %v16216_v47  ;;  %v16279_v47 = vld [vmem:[#allocation10 + $0x310] sm:$0xff]  }
 0x652   :  { %14516 = vmatprep.subr.bf16.mxu1 %v16218_v46  ;;  %14542 = vmatprep.subr.bf16.mxu0 %v16213_v53 }
 0x654   :  { %v9621_v32 = vpop.f32.mrf.mxu0  ;;  %14543 = vmatpush3.bf16.msra.mxu0 %v16215_v7 }
 0x655   :  { %14517 = vmatpush3.bf16.msra.mxu1 %v16220_v36  ;;  %14544 = vmatprep.subr.bf16.mxu0 %v16217_v19  ;;  %v16289_v19 = vld [vmem:[#allocation10 + $0x478] sm:$0xff]  }
 0x656   :  { %14518 = vmatprep.subr.bf16.mxu1 %v16222_v10  ;;  %v9623_v17 = vpop.f32.mrf.mxu0 }
 0x658   :  { %9703 = vmatmul.mubr.bf16.gmra.mxu1 %v20500_v13  ;;  %v9625_v0 = vpop.f32.mrf.mxu0  ;;  %14545 = vmatpush3.bf16.msra.mxu0 %v16219_v39  ;;  %v16295_v39 = vld [vmem:[#allocation10 + $0x430] sm:$0xff]  }
 0x659   :  { %9712 = vmatprep.mubr.bf16.mxu1 %v20498_v22  ;;  %14519 = vmatpush3.bf16.msra.mxu1 %v16224_v55  ;;  %v19794_v11 = vpack.c.bf16 %v9625_v0, %v9621_v32  ;;  %v16238_v22 = vld [vmem:[#allocation10 + $0x1f8] sm:$0xff]   ;;  %v16287_v55 = vld [vmem:[#allocation10 + $0x300] sm:$0xff]   ;;  %v16299_v0 = vld [vmem:[#allocation10 + $0x428] sm:$0xff]  }
 0x65a   :  { %14520 = vmatprep.subr.bf16.mxu1 %v16226_v38  ;;  %v9627_v33 = vpop.f32.mrf.mxu0  ;;  %14546 = vmatprep.subr.bf16.mxu0 %v16221_v27  ;;  %v16297_v27 = vld [vmem:[#allocation10 + $0x468] sm:$0xff]  }
 0x65b   :  { %v9748_v37 = vrot.slane %v19794_v11, 4  ;;  %v19800_v20 = vpack.c.bf16 %v9627_v33, %v9623_v17  ;;  %v16293_v17 = vld [vmem:[#allocation10 + $0x470] sm:$0xff]   ;;  %v16303_v33 = vld [vmem:[#allocation10 + $0x420] sm:$0xff]  }
 0x65c   :  { %14547 = vmatpush3.bf16.msra.mxu0 %v16223_v40  ;;  %v16307_v40 = vld [vmem:[#allocation10 + $0x418] sm:$0xff]  }
 0x65d   :  { %14521 = vmatpush3.bf16.msra.mxu1 %v16228_v21  ;;  %v9751_v29 = vrot.slane %v19800_v20, 4  ;;  %v9749_v3 = vsel %vm2722_vm1, %v9747_v15, %v9748_v37  ;;  %14576 = vmatprep.subr.bf16.mxu0 %v16225_v54  ;;  %v16291_v21 = vld [vmem:[#allocation10 + $0x438] sm:$0xff]   ;;  %v16301_v15 = vld [vmem:[#allocation10 + $0x460] sm:$0xff]  }
 0x65e   :  { %14522 = vmatprep.subr.bf16.mxu1 %v16230_v26  ;;  %v16317_v54 = vld [vmem:[#allocation10 + $0x440] sm:$0xff]  }
 0x65f   :  { %v9752_v59 = vsel %vm2722_vm1, %v9750_v62, %v9751_v29  ;;  %v16311_v62 = vld [vmem:[#allocation10 + $0x410] sm:$0xff]  }
 0x660   :  { %9713 = vmatmul.mubr.bf16.gmra.mxu1 %v20501_v42  ;;  %11706 = vmatprep.mubr.bf16.mxu0 %v9752_v59  ;;  %v16309_v42 = vld [vmem:[#allocation10 + $0x450] sm:$0xff]  }
 0x661   :  { %11707 = vmatmul.mubr.bf16.vlgmr.msra.gmra.mxu0 %v9749_v3  ;;  %14523 = vmatpush3.bf16.msra.mxu1 %v16232_v24  ;;  %v16321_v3 = vld [vmem:[#allocation10 + $0x578] sm:$0xff]   ;;  %v16325_v59 = vld [vmem:[#allocation10 + $0x570] sm:$0xff]  }
 0x662   :  { %14577 = vmatpush3.bf16.msra.mxu0 %v16227_v12  ;;  %11788 = vmatprep.mubr.bf16.mxu0 %v19800_v20  ;;  %v16315_v20 = vld [vmem:[#allocation10 + $0x408] sm:$0xff]   ;;  %v16323_v12 = vld [vmem:[#allocation10 + $0x538] sm:$0xff]  }
 0x663   :  { %14578 = vmatprep.subr.bf16.mxu0 %v16229_v49  ;;  %14524 = vmatprep.subr.bf16.mxu1 %v16234_v30  ;;  %v16327_v49 = vld [vmem:[#allocation10 + $0x530] sm:$0xff]  }
 0x665   :  { %14525 = vmatpush3.bf16.msra.mxu1 %v16236_v4  ;;  %v16361_v4 = vld [vmem:[#allocation10 + $0x678] sm:$0xff]  }
 0x666   :  { %14579 = vmatpush3.bf16.msra.mxu0 %v16231_v51  ;;  %14554 = vmatprep.subr.bf16.mxu1 %v16238_v22  ;;  %v16329_v51 = vld [vmem:[#allocation10 + $0x568] sm:$0xff]   ;;  %v16366_v22 = vld [vmem:[#allocation10 + $0x630] sm:$0xff]  }
 0x667   :  { %14580 = vmatprep.subr.bf16.mxu0 %v16233_v2  ;;  %v16331_v2 = vld [vmem:[#allocation10 + $0x528] sm:$0xff]  }
 0x66a   :  { %14581 = vmatpush3.bf16.msra.mxu0 %v16235_v28  ;;  %v16333_v28 = vld [vmem:[#allocation10 + $0x560] sm:$0xff]  }
 0x66b   :  { %14582 = vmatprep.subr.bf16.mxu0 %v16237_v61  ;;  %v16335_v61 = vld [vmem:[#allocation10 + $0x520] sm:$0xff]  }
 0x66e   :  { %14583 = vmatpush3.bf16.msra.mxu0 %v16239_v31  ;;  %v16337_v31 = vld [vmem:[#allocation10 + $0x558] sm:$0xff]  }
 0x66f   :  { %14584 = vmatprep.subr.bf16.mxu0 %v16241_v23  ;;  %v16339_v23 = vld [vmem:[#allocation10 + $0x518] sm:$0xff]  }
 0x672   :  { %14585 = vmatpush3.bf16.msra.mxu0 %v16243_v50  ;;  %v16341_v50 = vld [vmem:[#allocation10 + $0x550] sm:$0xff]  }
 0x673   :  { %14586 = vmatprep.subr.bf16.mxu0 %v16245_v34 }
 0x676   :  { %14587 = vmatpush3.bf16.msra.mxu0 %v16247_v43  ;;  %v16343_v43 = vld [vmem:[#allocation10 + $0x510] sm:$0xff]  }
 0x677   :  { %14588 = vmatprep.subr.bf16.mxu0 %v16249_v57  ;;  %v9631_v63 = vpop.f32.mrf.mxu0 }
 0x679   :  { %v9633_v46 = vpop.f32.mrf.mxu0 }
 0x67a   :  { %14589 = vmatpush3.bf16.msra.mxu0 %v16251_v6  ;;  %v16345_v6 = vld [vmem:[#allocation10 + $0x548] sm:$0xff]  }
 0x67b   :  { %14590 = vmatprep.subr.bf16.mxu0 %v16253_v48  ;;  %v9635_v45 = vpop.f32.mrf.mxu0 }
 0x67c   :  { %v19813_v53 = vpack.c.bf16 %v9635_v45, %v9631_v63 }
 0x67d   :  { %v9637_v36 = vpop.f32.mrf.mxu0 }
 0x67e   :  { %14591 = vmatpush3.bf16.msra.mxu0 %v16255_v1  ;;  %v19811_v10 = vpack.c.bf16 %v9637_v36, %v9633_v46  ;;  %v9767_v7 = vrot.slane %v19813_v53, 4  ;;  %v16347_v1 = vld [vmem:[#allocation10 + $0x508] sm:$0xff]   ;;  %v16373_v46 = vld [vmem:[#allocation10 + $0x660] sm:$0xff]   ;;  %v16240_v36 = vld [vmem:[#allocation10 + $0x1b8] sm:$0xff]  }
 0x67f   :  { %14620 = vmatprep.subr.bf16.mxu0 %v16257_v16  ;;  %v9641_v34 = vpop.f32.mrf.mxu0 }
 0x680   :  { %v9769_v38 = vrot.slane %v19811_v10, 4  ;;  %v9768_v32 = vsel %vm2722_vm1, %v9748_v37, %v9767_v7  ;;  %v16313_v37 = vld [vmem:[#allocation10 + $0x448] sm:$0xff]  }
 0x681   :  { %11789 = vmatmul.mubr.bf16.vlgmr.msra.gmra.mxu0 %v19794_v11  ;;  %v16305_v11 = vld [vmem:[#allocation10 + $0x458] sm:$0xff]   ;;  %v9643_v57 = vpop.f32.mrf.mxu0 }
 0x682   :  { %14621 = vmatpush3.bf16.msra.mxu0 %v16259_v60  ;;  %v9770_v13 = vsel %vm2722_vm1, %v9751_v29, %v9769_v38  ;;  %v16319_v29 = vld [vmem:[#allocation10 + $0x400] sm:$0xff]  }
 0x683   :  { %14622 = vmatprep.subr.bf16.mxu0 %v16261_v14  ;;  %11870 = vmatprep.mubr.bf16.mxu0 %v9770_v13  ;;  %v9645_v48 = vpop.f32.mrf.mxu0  ;;  %v16349_v14 = vld [vmem:[#allocation10 + $0x540] sm:$0xff]   ;;  %v16244_v13 = vld [vmem:[#allocation10 + $0x1b0] sm:$0xff]  }
 0x684   :  { %v19829_v26 = vpack.c.bf16 %v9645_v48, %v9641_v34  ;;  %v16272_v34 = vld [vmem:[#allocation10 + $0x2b8] sm:$0xff]   ;;  %v16278_v48 = vld [vmem:[#allocation10 + $0x2e8] sm:$0xff]  }
 0x685   :  { %v9647_v16 = vpop.f32.mrf.mxu0 }
 0x686   :  { %14623 = vmatpush3.bf16.msra.mxu0 %v16263_v35  ;;  %v9736_v60 = vpack.c.bf16 %v9647_v16, %v9643_v57  ;;  %v16351_v35 = vld [vmem:[#allocation10 + $0x500] sm:$0xff]  }
 0x687   :  { %14624 = vmatprep.subr.bf16.mxu0 %v16265_v58  ;;  %v9783_v58 = vrot.slane %v19829_v26, 4  ;;  %v16282_v16 = vld [vmem:[#allocation10 + $0x2e0] sm:$0xff]  }
 0x688   :  { %v9785_v24 = vrot.slane %v9736_v60, 4 }
 0x689   :  { %v9784_v30 = vsel %vm2722_vm1, %v9767_v7, %v9783_v58  ;;  %v16290_v58 = vld [vmem:[#allocation10 + $0x2d0] sm:$0xff]  }
 0x68a   :  { %14625 = vmatpush3.bf16.msra.mxu0 %v16267_v56  ;;  %v9786_v56 = vsel %vm2722_vm1, %v9769_v38, %v9785_v24  ;;  %v16378_v38 = vld [vmem:[#allocation10 + $0x618] sm:$0xff]  }
 0x68b   :  { %14626 = vmatprep.subr.bf16.mxu0 %v16269_v44  ;;  %v16362_v44 = vld [vmem:[#allocation10 + $0x638] sm:$0xff]  }
 0x68c   :  { %v16288_v24 = vld [vmem:[#allocation10 + $0x298] sm:$0xff]  }
 0x68e   :  { %14627 = vmatpush3.bf16.msra.mxu0 %v16271_v52  ;;  %v16365_v52 = vld [vmem:[#allocation10 + $0x670] sm:$0xff]  }
 0x68f   :  { %14628 = vmatprep.subr.bf16.mxu0 %v16273_v18 }
 0x692   :  { %14629 = vmatpush3.bf16.msra.mxu0 %v16275_v9  ;;  %v16369_v9 = vld [vmem:[#allocation10 + $0x668] sm:$0xff]  }
 0x693   :  { %14630 = vmatprep.subr.bf16.mxu0 %v16277_v25  ;;  %v16370_v25 = vld [vmem:[#allocation10 + $0x628] sm:$0xff]  }
 0x696   :  { %14631 = vmatpush3.bf16.msra.mxu0 %v16279_v47 }
 0x697   :  { %14632 = vmatprep.subr.bf16.mxu0 %v16281_v5  ;;  %v16374_v5 = vld [vmem:[#allocation10 + $0x620] sm:$0xff]  }
 0x69a   :  { %14633 = vmatpush3.bf16.msra.mxu0 %v16283_v8 }
 0x69b   :  { %14634 = vmatprep.subr.bf16.mxu0 %v16285_v41  ;;  %v16242_v41 = vld [vmem:[#allocation10 + $0x1f0] sm:$0xff]  }
 0x69e   :  { %14635 = vmatpush3.bf16.msra.mxu0 %v16287_v55  ;;  %v16377_v55 = vld [vmem:[#allocation10 + $0x658] sm:$0xff]  }
 0x69f   :  { %14664 = vmatprep.subr.bf16.mxu0 %v16289_v19  ;;  %v16246_v19 = vld [vmem:[#allocation10 + $0x1e8] sm:$0xff]  }
 0x6a1   :  { %11871 = vmatmul.mubr.bf16.vlgmr.msra.gmra.mxu0 %v9768_v32 }
 0x6a2   :  { %14665 = vmatpush3.bf16.msra.mxu0 %v16291_v21  ;;  %11952 = vmatprep.mubr.bf16.mxu0 %v19811_v10  ;;  %v16381_v21 = vld [vmem:[#allocation10 + $0x650] sm:$0xff]  }
 0x6a3   :  { %14666 = vmatprep.subr.bf16.mxu0 %v16293_v17  ;;  %v16382_v17 = vld [vmem:[#allocation10 + $0x610] sm:$0xff]  }
 0x6a6   :  { %14667 = vmatpush3.bf16.msra.mxu0 %v16295_v39 }
 0x6a7   :  { %14668 = vmatprep.subr.bf16.mxu0 %v16297_v27  ;;  %v16248_v27 = vld [vmem:[#allocation10 + $0x1a8] sm:$0xff]  }
 0x6aa   :  { %14669 = vmatpush3.bf16.msra.mxu0 %v16299_v0 }
 0x6ab   :  { %14670 = vmatprep.subr.bf16.mxu0 %v16301_v15  ;;  %v16250_v15 = vld [vmem:[#allocation10 + $0x1e0] sm:$0xff]  }
 0x6ae   :  { %14671 = vmatpush3.bf16.msra.mxu0 %v16303_v33  ;;  %v16385_v33 = vld [vmem:[#allocation10 + $0x648] sm:$0xff]  }
 0x6af   :  { %14672 = vmatprep.subr.bf16.mxu0 %v16305_v11 }
 0x6b2   :  { %14673 = vmatpush3.bf16.msra.mxu0 %v16307_v40 }
 0x6b3   :  { %14674 = vmatprep.subr.bf16.mxu0 %v16309_v42  ;;  %v16386_v42 = vld [vmem:[#allocation10 + $0x608] sm:$0xff]  }
 0x6b6   :  { %14675 = vmatpush3.bf16.msra.mxu0 %v16311_v62  ;;  %v16252_v62 = vld [vmem:[#allocation10 + $0x1a0] sm:$0xff]  }
 0x6b7   :  { %14676 = vmatprep.subr.bf16.mxu0 %v16313_v37 }
 0x6ba   :  { %14677 = vmatpush3.bf16.msra.mxu0 %v16315_v20  ;;  %v16254_v20 = vld [vmem:[#allocation10 + $0x1d8] sm:$0xff]  }
 0x6bb   :  { %14678 = vmatprep.subr.bf16.mxu0 %v16317_v54  ;;  %v16389_v54 = vld [vmem:[#allocation10 + $0x640] sm:$0xff]  }
 0x6be   :  { %14679 = vmatpush3.bf16.msra.mxu0 %v16319_v29  ;;  %v16390_v29 = vld [vmem:[#allocation10 + $0x600] sm:$0xff]  }
 0x6bf   :  { %14708 = vmatprep.subr.bf16.mxu0 %v16321_v3  ;;  %v16256_v3 = vld [vmem:[#allocation10 + $0x198] sm:$0xff]  }
 0x6c1   :  { %11953 = vmatmul.mubr.bf16.vlgmr.msra.gmra.mxu0 %v19813_v53 }
 0x6c2   :  { %14709 = vmatpush3.bf16.msra.mxu0 %v16323_v12  ;;  %12034 = vmatprep.mubr.bf16.mxu0 %v9786_v56  ;;  %v16258_v12 = vld [vmem:[#allocation10 + $0x1d0] sm:$0xff]  }
 0x6c3   :  { %14710 = vmatprep.subr.bf16.mxu0 %v16325_v59  ;;  %v16260_v59 = vld [vmem:[#allocation10 + $0x190] sm:$0xff]  }
 0x6c6   :  { %14711 = vmatpush3.bf16.msra.mxu0 %v16327_v49  ;;  %v16262_v49 = vld [vmem:[#allocation10 + $0x1c8] sm:$0xff]  }
 0x6c7   :  { %14712 = vmatprep.subr.bf16.mxu0 %v16329_v51  ;;  %v16264_v51 = vld [vmem:[#allocation10 + $0x188] sm:$0xff]  }
 0x6ca   :  { %14713 = vmatpush3.bf16.msra.mxu0 %v16331_v2  ;;  %v16266_v2 = vld [vmem:[#allocation10 + $0x1c0] sm:$0xff]  }
 0x6cb   :  { %14714 = vmatprep.subr.bf16.mxu0 %v16333_v28 }
 0x6ce   :  { %14715 = vmatpush3.bf16.msra.mxu0 %v16335_v61  ;;  %v16268_v61 = vld [vmem:[#allocation10 + $0x180] sm:$0xff]  }
 0x6cf   :  { %14716 = vmatprep.subr.bf16.mxu0 %v16337_v31  ;;  %v16270_v31 = vld [vmem:[#allocation10 + $0x2f8] sm:$0xff]  }
 0x6d2   :  { %14717 = vmatpush3.bf16.msra.mxu0 %v16339_v23 }
 0x6d3   :  { %14718 = vmatprep.subr.bf16.mxu0 %v16341_v50 }
 0x6d6   :  { %14719 = vmatpush3.bf16.msra.mxu0 %v16343_v43  ;;  %v16274_v43 = vld [vmem:[#allocation10 + $0x2f0] sm:$0xff]  }
 0x6d7   :  { %14720 = vmatprep.subr.bf16.mxu0 %v16345_v6  ;;  %v16276_v6 = vld [vmem:[#allocation10 + $0x2b0] sm:$0xff]  }
 0x6da   :  { %14721 = vmatpush3.bf16.msra.mxu0 %v16347_v1  ;;  %v16280_v1 = vld [vmem:[#allocation10 + $0x2a8] sm:$0xff]  }
 0x6db   :  { %14722 = vmatprep.subr.bf16.mxu0 %v16349_v14 }
 0x6de   :  { %14723 = vmatpush3.bf16.msra.mxu0 %v16351_v35 }
 0x6df   :  { %14752 = vmatprep.subr.bf16.mxu0 %v16361_v4  ;;  %v16294_v4 = vld [vmem:[#allocation10 + $0x2c8] sm:$0xff]  }
 0x6e1   :  { %12035 = vmatmul.mubr.bf16.vlgmr.msra.gmra.mxu0 %v9784_v30  ;;  %v16292_v30 = vld [vmem:[#allocation10 + $0x290] sm:$0xff]  }
 0x6e2   :  { %12116 = vmatprep.mubr.bf16.mxu0 %v9736_v60  ;;  %14753 = vmatpush3.bf16.msra.mxu0 %v16362_v44  ;;  %v16284_v60 = vld [vmem:[#allocation10 + $0x2a0] sm:$0xff]  }
 0x6e3   :  { %14754 = vmatprep.subr.bf16.mxu0 %v16365_v52  ;;  %v16296_v52 = vld [vmem:[#allocation10 + $0x288] sm:$0xff]  }
 0x6e6   :  { %14755 = vmatpush3.bf16.msra.mxu0 %v16366_v22  ;;  %v16298_v22 = vld [vmem:[#allocation10 + $0x2c0] sm:$0xff]  }
 0x6e7   :  { %14756 = vmatprep.subr.bf16.mxu0 %v16369_v9  ;;  %v16300_v9 = vld [vmem:[#allocation10 + $0x280] sm:$0xff]  }
 0x6ea   :  { %14757 = vmatpush3.bf16.msra.mxu0 %v16370_v25  ;;  %v16302_v25 = vld [vmem:[#allocation10 + $0x3f8] sm:$0xff]  }
 0x6eb   :  { %14758 = vmatprep.subr.bf16.mxu0 %v16373_v46  ;;  %v16306_v46 = vld [vmem:[#allocation10 + $0x3f0] sm:$0xff]  }
 0x6ee   :  { %14759 = vmatpush3.bf16.msra.mxu0 %v16374_v5 }
 0x6ef   :  { %14760 = vmatprep.subr.bf16.mxu0 %v16377_v55  ;;  %v16320_v55 = vld [vmem:[#allocation10 + $0x398] sm:$0xff]  }
 0x6f2   :  { %14761 = vmatpush3.bf16.msra.mxu0 %v16378_v38  ;;  %v16322_v38 = vld [vmem:[#allocation10 + $0x3d0] sm:$0xff]  }
 0x6f3   :  { %14762 = vmatprep.subr.bf16.mxu0 %v16381_v21 }
 0x6f6   :  { %14763 = vmatpush3.bf16.msra.mxu0 %v16382_v17  ;;  %v16332_v17 = vld [vmem:[#allocation10 + $0x380] sm:$0xff]  }
 0x6f7   :  { %14764 = vmatprep.subr.bf16.mxu0 %v16385_v33 }
 0x6fa   :  { %14765 = vmatpush3.bf16.msra.mxu0 %v16386_v42  ;;  %v16344_v42 = vld [vmem:[#allocation10 + $0x4a8] sm:$0xff]  }
 0x6fb   :  { %14766 = vmatprep.subr.bf16.mxu0 %v16389_v54  ;;  %v16350_v54 = vld [vmem:[#allocation10 + $0x4d8] sm:$0xff]  }
 0x6fe   :  { %14767 = vmatpush3.bf16.msra.mxu0 %v16390_v29 }
 0x701   :  { %12117 = vmatmul.mubr.bf16.vlgmr.msra.gmra.mxu0 %v19829_v26  ;;  %v16286_v26 = vld [vmem:[#allocation10 + $0x2d8] sm:$0xff]  }
 0x708   :  { %v9684_v18 = vpop.f32.mrf.mxu1 }
 0x70a   :  { %v9686_v63 = vpop.f32.mrf.mxu1 }
 0x70c   :  { %v9688_v47 = vpop.f32.mrf.mxu1 }
 0x70d   :  { %v19838_v10 = vpack.c.bf16 %v9688_v47, %v9684_v18  ;;  %v16304_v47 = vld [vmem:[#allocation10 + $0x3b8] sm:$0xff]  }
 0x70e   :  { %v9690_v45 = vpop.f32.mrf.mxu1 }
 0x70f   :  { %v9726_v8 = vpack.c.bf16 %v9690_v45, %v9686_v63  ;;  %v9753_v50 = vrot.slane %v19838_v10, 4  ;;  %v16308_v45 = vld [vmem:[#allocation10 + $0x3b0] sm:$0xff]  }
 0x710   :  { %v9694_v53 = vpop.f32.mrf.mxu1 }
 0x711   :  { %11665 = vmatprep.mubr.bf16.mxu1 %v9726_v8  ;;  %v9756_v11 = vrot.slane %v9726_v8, 4  ;;  %v16310_v8 = vld [vmem:[#allocation10 + $0x3e8] sm:$0xff]  }
 0x712   :  { %11666 = vmatmul.mubr.bf16.vlgmr.msra.gmra.mxu1 %v19838_v10  ;;  %v9696_v7 = vpop.f32.mrf.mxu1  ;;  %v16314_v10 = vld [vmem:[#allocation10 + $0x3e0] sm:$0xff]  }
 0x713   :  { %14555 = vmatpush3.bf16.msra.mxu1 %v16240_v36  ;;  %v16312_v36 = vld [vmem:[#allocation10 + $0x3a8] sm:$0xff]  }
 0x714   :  { %14556 = vmatprep.subr.bf16.mxu1 %v16242_v41  ;;  %v9698_v32 = vpop.f32.mrf.mxu1  ;;  %v16316_v41 = vld [vmem:[#allocation10 + $0x3a0] sm:$0xff]  }
 0x715   :  { %v19848_v28 = vpack.c.bf16 %v9698_v32, %v9694_v53  ;;  %v16318_v53 = vld [vmem:[#allocation10 + $0x3d8] sm:$0xff]   ;;  %v16330_v32 = vld [vmem:[#allocation10 + $0x3c0] sm:$0xff]  }
 0x716   :  { %v9700_v39 = vpop.f32.mrf.mxu1 }
 0x717   :  { %14557 = vmatpush3.bf16.msra.mxu1 %v16244_v13  ;;  %v19841_v0 = vpack.c.bf16 %v9700_v39, %v9696_v7  ;;  %v9754_v23 = vrot.slane %v19848_v28, 4  ;;  %v16324_v7 = vld [vmem:[#allocation10 + $0x390] sm:$0xff]   ;;  %v16326_v13 = vld [vmem:[#allocation10 + $0x3c8] sm:$0xff]   ;;  %v16334_v39 = vld [vmem:[#allocation10 + $0x4f8] sm:$0xff]  }
 0x718   :  { %14558 = vmatprep.subr.bf16.mxu1 %v16246_v19  ;;  %v9704_v14 = vpop.f32.mrf.mxu1  ;;  %v16328_v19 = vld [vmem:[#allocation10 + $0x388] sm:$0xff]  }
 0x719   :  { %v9757_v40 = vrot.slane %v19841_v0, 4  ;;  %v9755_v57 = vsel %vm2722_vm1, %v9753_v50, %v9754_v23  ;;  %v16359_v50 = vld [vmem:[#allocation10 + $0x5f8] sm:$0xff]  }
 0x71a   :  { %v9706_v35 = vpop.f32.mrf.mxu1 }
 0x71b   :  { %14559 = vmatpush3.bf16.msra.mxu1 %v16248_v27  ;;  %v9758_v37 = vsel %vm2722_vm1, %v9756_v11, %v9757_v40  ;;  %v16340_v11 = vld [vmem:[#allocation10 + $0x4b0] sm:$0xff]  }
 0x71c   :  { %14560 = vmatprep.subr.bf16.mxu1 %v16250_v15  ;;  %11747 = vmatprep.mubr.bf16.mxu1 %v9758_v37  ;;  %v9708_v56 = vpop.f32.mrf.mxu1  ;;  %v16338_v15 = vld [vmem:[#allocation10 + $0x4f0] sm:$0xff]   ;;  %v16348_v37 = vld [vmem:[#allocation10 + $0x4a0] sm:$0xff]  }
 0x71d   :  { %v19865_v21 = vpack.c.bf16 %v9708_v56, %v9704_v14  ;;  %v16372_v14 = vld [vmem:[#allocation10 + $0x5a0] sm:$0xff]   ;;  %v16383_v56 = vld [vmem:[#allocation10 + $0x5c8] sm:$0xff]  }
 0x71e   :  { %v9710_v44 = vpop.f32.mrf.mxu1 }
 0x71f   :  { %14561 = vmatpush3.bf16.msra.mxu1 %v16252_v62  ;;  %v19856_v18 = vpack.c.bf16 %v9710_v44, %v9706_v35  ;;  %v9771_v27 = vrot.slane %v19865_v21, 4  ;;  %v16346_v62 = vld [vmem:[#allocation10 + $0x4e0] sm:$0xff]   ;;  %v16376_v35 = vld [vmem:[#allocation10 + $0x598] sm:$0xff]  }
 0x720   :  { %14562 = vmatprep.subr.bf16.mxu1 %v16254_v20  ;;  %v9714_v20 = vpop.f32.mrf.mxu1 }
 0x721   :  { %v9773_v63 = vrot.slane %v19856_v18, 4  ;;  %v9772_v33 = vsel %vm2722_vm1, %v9754_v23, %v9771_v27  ;;  %v16358_v23 = vld [vmem:[#allocation10 + $0x480] sm:$0xff]  }
 0x722   :  { %v9716_v29 = vpop.f32.mrf.mxu1 }
 0x723   :  { %14563 = vmatpush3.bf16.msra.mxu1 %v16256_v3  ;;  %v9774_v5 = vsel %vm2722_vm1, %v9757_v40, %v9773_v63  ;;  %v16342_v40 = vld [vmem:[#allocation10 + $0x4e8] sm:$0xff]   ;;  %v16352_v3 = vld [vmem:[#allocation10 + $0x498] sm:$0xff]  }
 0x724   :  { %14564 = vmatprep.subr.bf16.mxu1 %v16258_v12  ;;  %v16353_v12 = vld [vmem:[#allocation10 + $0x4d0] sm:$0xff]  }
 0x727   :  { %14565 = vmatpush3.bf16.msra.mxu1 %v16260_v59  ;;  %v9718_v59 = vpop.f32.mrf.mxu1 }
 0x728   :  { %14566 = vmatprep.subr.bf16.mxu1 %v16262_v49  ;;  %v16354_v49 = vld [vmem:[#allocation10 + $0x490] sm:$0xff]   ;;  %v9737_v44 = vpack.c.bf16 %v9718_v59, %v9714_v20  ;;  %v16434_v59 = vld [vmem:[#allocation13 + $0x68] ss:$16 sps:$4 sm:$0xff]  }
 0x729   :  { %v16425_v20 = vld [vmem:[#allocation13 + $0x80] ss:$16 sps:$4 sm:$0xff]  }
 0x72b   :  { %14567 = vmatpush3.bf16.msra.mxu1 %v16264_v51  ;;  %v16355_v51 = vld [vmem:[#allocation10 + $0x4c8] sm:$0xff]  }
 0x72c   :  { %14568 = vmatprep.subr.bf16.mxu1 %v16266_v2  ;;  %v9720_v2 = vpop.f32.mrf.mxu1 }
 0x72f   :  { %14569 = vmatpush3.bf16.msra.mxu1 %v16268_v61  ;;  %v16357_v61 = vld [vmem:[#allocation10 + $0x4c0] sm:$0xff]  }
 0x730   :  { %14598 = vmatprep.subr.bf16.mxu1 %v16270_v31  ;;  %v9738_v31 = vpack.c.bf16 %v9720_v2, %v9716_v29  ;;  %v16433_v29 = vld [vmem:[#allocation13 + $0x64] ss:$16 sps:$4 sm:$0xff]   ;;  %v16437_v2 = vld [vmem:[#allocation13 + $0x40] ss:$16 sps:$4 sm:$0xff]  }
 0x732   :  { %11748 = vmatmul.mubr.bf16.vlgmr.msra.gmra.mxu1 %v9755_v57  ;;  %v16363_v57 = vld [vmem:[#allocation10 + $0x5f0] sm:$0xff]  }
 0x733   :  { %14599 = vmatpush3.bf16.msra.mxu1 %v16272_v34  ;;  %11829 = vmatprep.mubr.bf16.mxu1 %v19841_v0  ;;  %v16336_v0 = vld [vmem:[#allocation10 + $0x4b8] sm:$0xff]   ;;  %v9789_v34 = vrot.slane %v9738_v31, 4 }
 0x734   :  { %14600 = vmatprep.subr.bf16.mxu1 %v16274_v43  ;;  %v16360_v43 = vld [vmem:[#allocation10 + $0x5b8] sm:$0xff]  }
 0x737   :  { %14601 = vmatpush3.bf16.msra.mxu1 %v16276_v6  ;;  %v9790_v6 = vsel %vm2722_vm1, %v9773_v63, %v9789_v34  ;;  %v16451_v34 = vld [vmem:[#allocation13 + $0x4] ss:$16 sps:$4 sm:$0xff]  }
 0x738   :  { %14602 = vmatprep.subr.bf16.mxu1 %v16278_v48  ;;  %v16364_v48 = vld [vmem:[#allocation10 + $0x5b0] sm:$0xff]  }
 0x73b   :  { %14603 = vmatpush3.bf16.msra.mxu1 %v16280_v1  ;;  %v16367_v1 = vld [vmem:[#allocation10 + $0x5e8] sm:$0xff]  }
 0x73c   :  { %14604 = vmatprep.subr.bf16.mxu1 %v16282_v16  ;;  %v16368_v16 = vld [vmem:[#allocation10 + $0x5a8] sm:$0xff]  }
 0x73f   :  { %14605 = vmatpush3.bf16.msra.mxu1 %v16284_v60  ;;  %v16371_v60 = vld [vmem:[#allocation10 + $0x5e0] sm:$0xff]  }
 0x740   :  { %14606 = vmatprep.subr.bf16.mxu1 %v16286_v26  ;;  %v16375_v26 = vld [vmem:[#allocation10 + $0x5d8] sm:$0xff]  }
 0x743   :  { %14607 = vmatpush3.bf16.msra.mxu1 %v16288_v24  ;;  %v16379_v24 = vld [vmem:[#allocation10 + $0x5d0] sm:$0xff]  }
 0x744   :  { %14608 = vmatprep.subr.bf16.mxu1 %v16290_v58  ;;  %v16380_v58 = vld [vmem:[#allocation10 + $0x590] sm:$0xff]  }
 0x747   :  { %14609 = vmatpush3.bf16.msra.mxu1 %v16292_v30  ;;  %v16384_v30 = vld [vmem:[#allocation10 + $0x588] sm:$0xff]  }
 0x748   :  { %14610 = vmatprep.subr.bf16.mxu1 %v16294_v4  ;;  %v16387_v4 = vld [vmem:[#allocation10 + $0x5c0] sm:$0xff]  }
 0x74b   :  { %14611 = vmatpush3.bf16.msra.mxu1 %v16296_v52  ;;  %v16388_v52 = vld [vmem:[#allocation10 + $0x580] sm:$0xff]  }
 0x74c   :  { %14612 = vmatprep.subr.bf16.mxu1 %v16298_v22  ;;  %v16391_v22 = vld [vmem:[#allocation10 + $0x6f8] sm:$0xff]  }
 0x74f   :  { %14613 = vmatpush3.bf16.msra.mxu1 %v16300_v9  ;;  %v16392_v9 = vld [vmem:[#allocation10 + $0x6b8] sm:$0xff]  }
 0x750   :  { %14642 = vmatprep.subr.bf16.mxu1 %v16302_v25  ;;  %v16393_v25 = vld [vmem:[#allocation10 + $0x6f0] sm:$0xff]  }
 0x752   :  { %11830 = vmatmul.mubr.bf16.vlgmr.msra.gmra.mxu1 %v19848_v28  ;;  %v16356_v28 = vld [vmem:[#allocation10 + $0x488] sm:$0xff]  }
 0x753   :  { %14643 = vmatpush3.bf16.msra.mxu1 %v16304_v47  ;;  %11911 = vmatprep.mubr.bf16.mxu1 %v9774_v5  ;;  %v16394_v47 = vld [vmem:[#allocation10 + $0x6b0] sm:$0xff]   ;;  %v16396_v5 = vld [vmem:[#allocation10 + $0x6a8] sm:$0xff]  }
 0x754   :  { %14644 = vmatprep.subr.bf16.mxu1 %v16306_v46  ;;  %v16395_v46 = vld [vmem:[#allocation10 + $0x6e8] sm:$0xff]  }
 0x757   :  { %14645 = vmatpush3.bf16.msra.mxu1 %v16308_v45  ;;  %v16397_v45 = vld [vmem:[#allocation10 + $0x6e0] sm:$0xff]  }
 0x758   :  { %14646 = vmatprep.subr.bf16.mxu1 %v16310_v8  ;;  %v16398_v8 = vld [vmem:[#allocation10 + $0x6a0] sm:$0xff]  }
 0x75b   :  { %14647 = vmatpush3.bf16.msra.mxu1 %v16312_v36  ;;  %v16399_v36 = vld [vmem:[#allocation10 + $0x6d8] sm:$0xff]  }
 0x75c   :  { %14648 = vmatprep.subr.bf16.mxu1 %v16314_v10  ;;  %v16400_v10 = vld [vmem:[#allocation10 + $0x698] sm:$0xff]  }
 0x75f   :  { %14649 = vmatpush3.bf16.msra.mxu1 %v16316_v41  ;;  %v16401_v41 = vld [vmem:[#allocation10 + $0x6d0] sm:$0xff]  }
 0x760   :  { %14650 = vmatprep.subr.bf16.mxu1 %v16318_v53  ;;  %v16402_v53 = vld [vmem:[#allocation10 + $0x690] sm:$0xff]  }
 0x763   :  { %14651 = vmatpush3.bf16.msra.mxu1 %v16320_v55  ;;  %v16403_v55 = vld [vmem:[#allocation10 + $0x6c8] sm:$0xff]  }
 0x764   :  { %14652 = vmatprep.subr.bf16.mxu1 %v16322_v38  ;;  %v16404_v38 = vld [vmem:[#allocation10 + $0x688] sm:$0xff]  }
 0x767   :  { %14653 = vmatpush3.bf16.msra.mxu1 %v16324_v7  ;;  %v16405_v7 = vld [vmem:[#allocation10 + $0x6c0] sm:$0xff]  }
 0x768   :  { %14654 = vmatprep.subr.bf16.mxu1 %v16326_v13  ;;  %v16406_v13 = vld [vmem:[#allocation10 + $0x680] sm:$0xff]  }
 0x76b   :  { %14655 = vmatpush3.bf16.msra.mxu1 %v16328_v19  ;;  %v16407_v19 = vld [vmem:[#allocation13 + $0xe0] ss:$16 sps:$4 sm:$0xff]  }
 0x76c   :  { %14656 = vmatprep.subr.bf16.mxu1 %v16330_v32  ;;  %v16409_v32 = vld [vmem:[#allocation13 + $0xe4] ss:$16 sps:$4 sm:$0xff]  }
 0x76d   :  { %12585 = vmatprep.subr.bf16.mxu0 %v16409_v32  ;;  %v16504_v32 = vld [vmem:[#allocation16 + $0xf8] sm:$0xff]  }
 0x76e   :  { %12586 = vmatpush1.bf16.msra.mxu0 %v16407_v19  ;;  %v16503_v19 = vld [vmem:[#allocation16 + $0x78] sm:$0xff]  }
 0x76f   :  { %14657 = vmatpush3.bf16.msra.mxu1 %v16332_v17  ;;  %v16412_v17 = vld [vmem:[#allocation13 + $0xec] ss:$16 sps:$4 sm:$0xff]  }
 0x770   :  { %14686 = vmatprep.subr.bf16.mxu1 %v16334_v39  ;;  %v16415_v39 = vld [vmem:[#allocation13 + $0xc4] ss:$16 sps:$4 sm:$0xff]  }
 0x771   :  { %12587 = vmatprep.subr.bf16.mxu0 %v16415_v39 }
 0x772   :  { %11912 = vmatmul.mubr.bf16.vlgmr.msra.gmra.mxu1 %v9772_v33  ;;  %v16421_v33 = vld [vmem:[#allocation13 + $0xa4] ss:$16 sps:$4 sm:$0xff]  }
 0x773   :  { %14687 = vmatpush3.bf16.msra.mxu1 %v16336_v0  ;;  %11993 = vmatprep.mubr.bf16.mxu1 %v19856_v18  ;;  %v9787_v18 = vrot.slane %v9737_v44, 4  ;;  %v16413_v0 = vld [vmem:[#allocation13 + $0xc0] ss:$16 sps:$4 sm:$0xff]  }
 0x774   :  { %14688 = vmatprep.subr.bf16.mxu1 %v16338_v15  ;;  %v16416_v15 = vld [vmem:[#allocation13 + $0xc8] ss:$16 sps:$4 sm:$0xff]   ;;  %12588 = vmatpush1.bf16.msra.mxu0 %v16413_v0 }
 0x775   :  { %v9788_v63 = vsel %vm2722_vm1, %v9771_v27, %v9787_v18  ;;  %v16418_v27 = vld [vmem:[#allocation13 + $0xcc] ss:$16 sps:$4 sm:$0xff]   ;;  %12589 = vmatprep.subr.bf16.mxu0 %v16421_v33  ;;  %v16476_v18 = vld [vmem:[#allocation13 + $0x188] ss:$16 sps:$4 sm:$0xff]  }
 0x777   :  { %14689 = vmatpush3.bf16.msra.mxu1 %v16340_v11  ;;  %v16424_v11 = vld [vmem:[#allocation13 + $0xac] ss:$16 sps:$4 sm:$0xff]  }
 0x778   :  { %14690 = vmatprep.subr.bf16.mxu1 %v16342_v40  ;;  %v16419_v40 = vld [vmem:[#allocation13 + $0xa0] ss:$16 sps:$4 sm:$0xff]  }
 0x779   :  { %12590 = vmatpush1.bf16.msra.mxu0 %v16419_v40 }
 0x77b   :  { %14691 = vmatpush3.bf16.msra.mxu1 %v16344_v42  ;;  %v16422_v42 = vld [vmem:[#allocation13 + $0xa8] ss:$16 sps:$4 sm:$0xff]  }
 0x77c   :  { %14692 = vmatprep.subr.bf16.mxu1 %v16346_v62  ;;  %v16427_v62 = vld [vmem:[#allocation13 + $0x84] ss:$16 sps:$4 sm:$0xff]  }
 0x77d   :  { %12591 = vmatprep.subr.bf16.mxu0 %v16427_v62 }
 0x77e   :  { %12592 = vmatpush1.bf16.msra.mxu0 %v16425_v20 }
 0x77f   :  { %14693 = vmatpush3.bf16.msra.mxu1 %v16348_v37  ;;  %v16430_v37 = vld [vmem:[#allocation13 + $0x8c] ss:$16 sps:$4 sm:$0xff]   ;;  %12593 = vmatprep.subr.bf16.mxu0 %v16433_v29 }
 0x780   :  { %14694 = vmatprep.subr.bf16.mxu1 %v16350_v54  ;;  %v16428_v54 = vld [vmem:[#allocation13 + $0x88] ss:$16 sps:$4 sm:$0xff]  }
 0x783   :  { %14695 = vmatpush3.bf16.msra.mxu1 %v16352_v3  ;;  %v16436_v3 = vld [vmem:[#allocation13 + $0x6c] ss:$16 sps:$4 sm:$0xff]  }
 0x784   :  { %14696 = vmatprep.subr.bf16.mxu1 %v16353_v12  ;;  %v16431_v12 = vld [vmem:[#allocation13 + $0x60] ss:$16 sps:$4 sm:$0xff]  }
 0x785   :  { %12594 = vmatpush1.bf16.msra.mxu0 %v16431_v12 }
 0x787   :  { %14697 = vmatpush3.bf16.msra.mxu1 %v16354_v49  ;;  %v16439_v49 = vld [vmem:[#allocation13 + $0x44] ss:$16 sps:$4 sm:$0xff]  }
 0x788   :  { %14698 = vmatprep.subr.bf16.mxu1 %v16355_v51  ;;  %v16442_v51 = vld [vmem:[#allocation13 + $0x4c] ss:$16 sps:$4 sm:$0xff]   ;;  %12595 = vmatprep.subr.bf16.mxu0 %v16439_v49 }
 0x789   :  { %12596 = vmatpush1.bf16.msra.mxu0 %v16437_v2 }
 0x78b   :  { %14699 = vmatpush3.bf16.msra.mxu1 %v16356_v28  ;;  %v16440_v28 = vld [vmem:[#allocation13 + $0x48] ss:$16 sps:$4 sm:$0xff]  }
 0x78c   :  { %14700 = vmatprep.subr.bf16.mxu1 %v16357_v61  ;;  %v16443_v61 = vld [vmem:[#allocation13 + $0x20] ss:$16 sps:$4 sm:$0xff]  }
 0x78f   :  { %14701 = vmatpush3.bf16.msra.mxu1 %v16358_v23  ;;  %v16446_v23 = vld [vmem:[#allocation13 + $0x28] ss:$16 sps:$4 sm:$0xff]  }
 0x790   :  { %14730 = vmatprep.subr.bf16.mxu1 %v16359_v50  ;;  %v16448_v50 = vld [vmem:[#allocation13 + $0x2c] ss:$16 sps:$4 sm:$0xff]  }
 0x792   :  { %11994 = vmatmul.mubr.bf16.vlgmr.msra.gmra.mxu1 %v19865_v21  ;;  %v16410_v21 = vld [vmem:[#allocation13 + $0xe8] ss:$16 sps:$4 sm:$0xff]  }
 0x793   :  { %14731 = vmatpush3.bf16.msra.mxu1 %v16360_v43  ;;  %12075 = vmatprep.mubr.bf16.mxu1 %v9790_v6  ;;  %v16454_v43 = vld [vmem:[#allocation13 + $0xc] ss:$16 sps:$4 sm:$0xff]   ;;  %v16452_v6 = vld [vmem:[#allocation13 + $0x8] ss:$16 sps:$4 sm:$0xff]  }
 0x794   :  { %14732 = vmatprep.subr.bf16.mxu1 %v16363_v57  ;;  %v16449_v57 = vld [vmem:[#allocation13] ss:$16 sps:$4 sm:$0xff]  }
 0x797   :  { %14733 = vmatpush3.bf16.msra.mxu1 %v16364_v48  ;;  %v16457_v48 = vld [vmem:[#allocation13 + $0x1e4] ss:$16 sps:$4 sm:$0xff]  }
 0x798   :  { %14734 = vmatprep.subr.bf16.mxu1 %v16367_v1  ;;  %v16460_v1 = vld [vmem:[#allocation13 + $0x1ec] ss:$16 sps:$4 sm:$0xff]  }
 0x79b   :  { %14735 = vmatpush3.bf16.msra.mxu1 %v16368_v16  ;;  %v16455_v16 = vld [vmem:[#allocation13 + $0x1e0] ss:$16 sps:$4 sm:$0xff]  }
 0x79c   :  { %14736 = vmatprep.subr.bf16.mxu1 %v16371_v60  ;;  %v16458_v60 = vld [vmem:[#allocation13 + $0x1e8] ss:$16 sps:$4 sm:$0xff]  }
 0x79f   :  { %14737 = vmatpush3.bf16.msra.mxu1 %v16372_v14  ;;  %v16463_v14 = vld [vmem:[#allocation13 + $0x1c4] ss:$16 sps:$4 sm:$0xff]  }
 0x7a0   :  { %14738 = vmatprep.subr.bf16.mxu1 %v16375_v26  ;;  %v16466_v26 = vld [vmem:[#allocation13 + $0x1cc] ss:$16 sps:$4 sm:$0xff]  }
 0x7a3   :  { %14739 = vmatpush3.bf16.msra.mxu1 %v16376_v35  ;;  %v16461_v35 = vld [vmem:[#allocation13 + $0x1c0] ss:$16 sps:$4 sm:$0xff]  }
 0x7a4   :  { %14740 = vmatprep.subr.bf16.mxu1 %v16379_v24  ;;  %v16464_v24 = vld [vmem:[#allocation13 + $0x1c8] ss:$16 sps:$4 sm:$0xff]  }
 0x7a7   :  { %14741 = vmatpush3.bf16.msra.mxu1 %v16380_v58  ;;  %v16469_v58 = vld [vmem:[#allocation13 + $0x1a4] ss:$16 sps:$4 sm:$0xff]  }
 0x7a8   :  { %14742 = vmatprep.subr.bf16.mxu1 %v16383_v56  ;;  %v16472_v56 = vld [vmem:[#allocation13 + $0x1ac] ss:$16 sps:$4 sm:$0xff]  }
 0x7ab   :  { %14743 = vmatpush3.bf16.msra.mxu1 %v16384_v30  ;;  %v16467_v30 = vld [vmem:[#allocation13 + $0x1a0] ss:$16 sps:$4 sm:$0xff]  }
 0x7ac   :  { %14744 = vmatprep.subr.bf16.mxu1 %v16387_v4  ;;  %v16470_v4 = vld [vmem:[#allocation13 + $0x1a8] ss:$16 sps:$4 sm:$0xff]  }
 0x7af   :  { %14745 = vmatpush3.bf16.msra.mxu1 %v16388_v52  ;;  %v16478_v52 = vld [vmem:[#allocation13 + $0x18c] ss:$16 sps:$4 sm:$0xff]  }
 0x7b0   :  { %14774 = vmatprep.subr.bf16.mxu1 %v16391_v22  ;;  %v16473_v22 = vld [vmem:[#allocation13 + $0x180] ss:$16 sps:$4 sm:$0xff]  }
 0x7b2   :  { %12076 = vmatmul.mubr.bf16.vlgmr.msra.gmra.mxu1 %v9788_v63  ;;  %v16479_v63 = vld [vmem:[#allocation13 + $0x160] ss:$16 sps:$4 sm:$0xff]  }
 0x7b3   :  { %14775 = vmatpush3.bf16.msra.mxu1 %v16392_v9  ;;  %12157 = vmatprep.mubr.bf16.mxu1 %v9738_v31  ;;  %v16445_v31 = vld [vmem:[#allocation13 + $0x24] ss:$16 sps:$4 sm:$0xff]  }
 0x7b4   :  { %14776 = vmatprep.subr.bf16.mxu1 %v16393_v25  ;;  %12597 = vmatprep.subr.bf16.mxu0 %v16445_v31  ;;  %v16481_v9 = vld [vmem:[#allocation13 + $0x164] ss:$16 sps:$4 sm:$0xff]   ;;  %v16484_v25 = vld [vmem:[#allocation13 + $0x16c] ss:$16 sps:$4 sm:$0xff]  }
 0x7b5   :  { %12598 = vmatpush1.bf16.msra.mxu0 %v16443_v61 }
 0x7b6   :  { %12599 = vmatprep.subr.bf16.mxu0 %v16451_v34 }
 0x7b7   :  { %14777 = vmatpush3.bf16.msra.mxu1 %v16394_v47  ;;  %v16482_v47 = vld [vmem:[#allocation13 + $0x168] ss:$16 sps:$4 sm:$0xff]  }
 0x7b8   :  { %14778 = vmatprep.subr.bf16.mxu1 %v16395_v46  ;;  %v16487_v46 = vld [vmem:[#allocation13 + $0x144] ss:$16 sps:$4 sm:$0xff]  }
 0x7b9   :  { %12600 = vmatpush1.bf16.msra.mxu0 %v16449_v57 }
 0x7ba   :  { %12601 = vmatprep.subr.bf16.mxu0 %v16457_v48 }
 0x7bb   :  { %14779 = vmatpush3.bf16.msra.mxu1 %v16396_v5  ;;  %v16490_v5 = vld [vmem:[#allocation13 + $0x14c] ss:$16 sps:$4 sm:$0xff]  }
 0x7bc   :  { %14780 = vmatprep.subr.bf16.mxu1 %v16397_v45  ;;  %v16485_v45 = vld [vmem:[#allocation13 + $0x140] ss:$16 sps:$4 sm:$0xff]  }
 0x7bd   :  { %12602 = vmatpush2.bf16.msra.mxu0 %v16455_v16  ;;  %v13900_v16 = vld [vmem:[#allocation12] ss:$0 sm:$0xff] }
 0x7be   :  { %12603 = vmatprep.subr.bf16.mxu0 %v16463_v14 }
 0x7bf   :  { %14781 = vmatpush3.bf16.msra.mxu1 %v16398_v8  ;;  %v16488_v8 = vld [vmem:[#allocation13 + $0x148] ss:$16 sps:$4 sm:$0xff]  }
 0x7c0   :  { %14782 = vmatprep.subr.bf16.mxu1 %v16399_v36  ;;  %v16493_v36 = vld [vmem:[#allocation13 + $0x124] ss:$16 sps:$4 sm:$0xff]  }
 0x7c1   :  { %12604 = vmatpush2.bf16.msra.mxu0 %v16461_v35 }
 0x7c2   :  { %12605 = vmatprep.subr.bf16.mxu0 %v16469_v58 }
 0x7c3   :  { %14783 = vmatpush3.bf16.msra.mxu1 %v16400_v10  ;;  %v16496_v10 = vld [vmem:[#allocation13 + $0x12c] ss:$16 sps:$4 sm:$0xff]  }
 0x7c4   :  { %14784 = vmatprep.subr.bf16.mxu1 %v16401_v41  ;;  %v16491_v41 = vld [vmem:[#allocation13 + $0x120] ss:$16 sps:$4 sm:$0xff]  }
 0x7c5   :  { %12606 = vmatpush2.bf16.msra.mxu0 %v16467_v30 }
 0x7c7   :  { %14785 = vmatpush3.bf16.msra.mxu1 %v16402_v53  ;;  %v16494_v53 = vld [vmem:[#allocation13 + $0x128] ss:$16 sps:$4 sm:$0xff]  }
 0x7c8   :  { %14786 = vmatprep.subr.bf16.mxu1 %v16403_v55  ;;  %v16497_v55 = vld [vmem:[#allocation13 + $0x100] ss:$16 sps:$4 sm:$0xff]  }
 0x7cb   :  { %14787 = vmatpush3.bf16.msra.mxu1 %v16404_v38  ;;  %v16499_v38 = vld [vmem:[#allocation13 + $0x104] ss:$16 sps:$4 sm:$0xff]  }
 0x7cc   :  { %14788 = vmatprep.subr.bf16.mxu1 %v16405_v7  ;;  %v16500_v7 = vld [vmem:[#allocation13 + $0x108] ss:$16 sps:$4 sm:$0xff]  }
 0x7cf   :  { %14789 = vmatpush3.bf16.msra.mxu1 %v16406_v13  ;;  %v16502_v13 = vld [vmem:[#allocation13 + $0x10c] ss:$16 sps:$4 sm:$0xff]  }
 0x7d0   :  { %12626 = vmatprep.subr.bf16.mxu1 %v16412_v17 }
 0x7d2   :  { %12158 = vmatmul.mubr.bf16.vlgmr.msra.gmra.mxu1 %v9737_v44  ;;  %v16475_v44 = vld [vmem:[#allocation13 + $0x184] ss:$16 sps:$4 sm:$0xff]   ;;  %v14526_v0 = vpop.f32.mrf.mxu1 }
 0x7d3   :  { %12627 = vmatpush1.bf16.msra.mxu1 %v16410_v21  ;;  %12607 = vmatprep.subr.bf16.mxu0 %v16475_v44  ;;  %v14504_v21 = vpop.f32.mrf.mxu0 }
 0x7d4   :  { %12628 = vmatprep.subr.bf16.mxu1 %v16418_v27  ;;  %12608 = vmatpush2.bf16.msra.mxu0 %v16473_v22  ;;  %v14527_v33 = vpop.f32.mrf.mxu1 }
 0x7d5   :  { %12609 = vmatprep.subr.bf16.mxu0 %v16481_v9  ;;  %v14505_v17 = vpop.f32.mrf.mxu0 }
 0x7d6   :  { %v14529_v40 = vpop.f32.mrf.mxu1 }
 0x7d7   :  { %12629 = vmatpush1.bf16.msra.mxu1 %v16416_v15  ;;  %v14507_v39 = vpop.f32.mrf.mxu0 }
 0x7d8   :  { %12630 = vmatprep.subr.bf16.mxu1 %v16424_v11  ;;  %12610 = vmatpush2.bf16.msra.mxu0 %v16479_v63  ;;  %v14530_v62 = vpop.f32.mrf.mxu1 }
 0x7d9   :  { %12611 = vmatprep.subr.bf16.mxu0 %v16487_v46  ;;  %v14508_v27 = vpop.f32.mrf.mxu0 }
 0x7db   :  { %12631 = vmatpush1.bf16.msra.mxu1 %v16422_v42  ;;  %v14548_v15 = vpop.f32.mrf.mxu0 }
 0x7dc   :  { %12632 = vmatprep.subr.bf16.mxu1 %v16430_v37  ;;  %12612 = vmatpush2.bf16.msra.mxu0 %v16485_v45 }
 0x7dd   :  { %12613 = vmatprep.subr.bf16.mxu0 %v16493_v36  ;;  %v14549_v11 = vpop.f32.mrf.mxu0 }
 0x7de   :  { %v14550_v22 = vadd.f32 %v14549_v11, %v14548_v15 }
 0x7df   :  { %12633 = vmatpush1.bf16.msra.mxu1 %v16428_v54  ;;  %v14551_v42 = vpop.f32.mrf.mxu0 }
 0x7e0   :  { %12634 = vmatprep.subr.bf16.mxu1 %v16436_v3  ;;  %12614 = vmatpush2.bf16.msra.mxu0 %v16491_v41 }
 0x7e1   :  { %12615 = vmatprep.subr.bf16.mxu0 %v16499_v38  ;;  %v14552_v37 = vpop.f32.mrf.mxu0 }
 0x7e2   :  { %v14553_v46 = vadd.f32 %v14552_v37, %v14551_v42 }
 0x7e3   :  { %12635 = vmatpush1.bf16.msra.mxu1 %v16434_v59  ;;  %v14592_v54 = vpop.f32.mrf.mxu0 }
 0x7e4   :  { %12636 = vmatprep.subr.bf16.mxu1 %v16442_v51  ;;  %12616 = vmatpush2.bf16.msra.mxu0 %v16497_v55 }
 0x7e5   :  { %14796 = vmatprep.subr.bf16.mxu0 %v16503_v19  ;;  %v14593_v3 = vpop.f32.mrf.mxu0 }
 0x7e7   :  { %12637 = vmatpush1.bf16.msra.mxu1 %v16440_v28  ;;  %v14595_v59 = vpop.f32.mrf.mxu0 }
 0x7e8   :  { %12638 = vmatprep.subr.bf16.mxu1 %v16448_v50 }
 0x7e9   :  { %v14596_v51 = vpop.f32.mrf.mxu0 }
 0x7eb   :  { %12639 = vmatpush1.bf16.msra.mxu1 %v16446_v23  ;;  %v14636_v28 = vpop.f32.mrf.mxu0 }
 0x7ec   :  { %12640 = vmatprep.subr.bf16.mxu1 %v16454_v43 }
 0x7ed   :  { %v14637_v31 = vpop.f32.mrf.mxu0 }
 0x7ef   :  { %12641 = vmatpush1.bf16.msra.mxu1 %v16452_v6  ;;  %v14639_v50 = vpop.f32.mrf.mxu0 }
 0x7f0   :  { %12642 = vmatprep.subr.bf16.mxu1 %v16460_v1  ;;  %v14506_v1 = vadd.f32 %v14505_v17, %v14504_v21 }
 0x7f1   :  { %v14640_v57 = vpop.f32.mrf.mxu0 }
 0x7f2   :  { %v14570_v20 = vpop.f32.mrf.mxu1  ;;  %v11627_v35 = vadd.f32 %v14506_v1, %v13900_v16 }
 0x7f3   :  { %12643 = vmatpush2.bf16.msra.mxu1 %v16458_v60  ;;  %v14680_v48 = vpop.f32.mrf.mxu0 }
 0x7f4   :  { %12644 = vmatprep.subr.bf16.mxu1 %v16466_v26  ;;  %v14571_v29 = vpop.f32.mrf.mxu1  ;;  %v14528_v26 = vadd.f32 %v14527_v33, %v14526_v0 }
 0x7f5   :  { %v14681_v14 = vpop.f32.mrf.mxu0 }
 0x7f6   :  { %v14573_v12 = vpop.f32.mrf.mxu1  ;;  %v11668_v30 = vadd.f32 %v14528_v26, %v11627_v35 }
 0x7f7   :  { %12645 = vmatpush2.bf16.msra.mxu1 %v16464_v24  ;;  %v14509_v24 = vadd.f32 %v14508_v27, %v14507_v39  ;;  %v14638_v39 = vadd.f32 %v14637_v31, %v14636_v28 }
 0x7f8   :  { %12646 = vmatprep.subr.bf16.mxu1 %v16472_v56  ;;  %v14574_v49 = vpop.f32.mrf.mxu1  ;;  %v14683_v56 = vpop.f32.mrf.mxu0 }
 0x7f9   :  { %v14575_v45 = vadd.f32 %v14574_v49, %v14573_v12 }
 0x7fa   :  { %v14684_v9 = vpop.f32.mrf.mxu0 }
 0x7fb   :  { %12647 = vmatpush2.bf16.msra.mxu1 %v16470_v4  ;;  %v14531_v4 = vadd.f32 %v14530_v62, %v14529_v40  ;;  %v14641_v40 = vadd.f32 %v14640_v57, %v14639_v50 }
 0x7fc   :  { %12648 = vmatprep.subr.bf16.mxu1 %v16478_v52  ;;  %v11630_v52 = vadd.f32 %v14509_v24, %v13900_v16 }
 0x7fe   :  { %v11671_v63 = vadd.f32 %v14531_v4, %v11630_v52 }
 0x7ff   :  { %12649 = vmatpush2.bf16.msra.mxu1 %v16476_v18  ;;  %v14572_v18 = vadd.f32 %v14571_v29, %v14570_v20 }
 0x800   :  { %12650 = vmatprep.subr.bf16.mxu1 %v16484_v25  ;;  %v11709_v25 = vadd.f32 %v14550_v22, %v11668_v30  ;;  %v11712_v36 = vadd.f32 %v14553_v46, %v11671_v63  ;;  %v14125_v46 = vld [vmem:[#allocation12 + $0x1] ss:$0 sm:$0xff] }
 0x802   :  { %v11753_v38 = vadd.f32 %v14575_v45, %v11712_v36 }
 0x803   :  { %12651 = vmatpush2.bf16.msra.mxu1 %v16482_v47 }
 0x804   :  { %12652 = vmatprep.subr.bf16.mxu1 %v16490_v5  ;;  %v11750_v5 = vadd.f32 %v14572_v18, %v11709_v25 }
 0x807   :  { %12653 = vmatpush2.bf16.msra.mxu1 %v16488_v8  ;;  %v14724_v8 = vpop.f32.mrf.mxu0 }
 0x808   :  { %12654 = vmatprep.subr.bf16.mxu1 %v16496_v10  ;;  %v14594_v10 = vadd.f32 %v14593_v3, %v14592_v54  ;;  %v14682_v54 = vadd.f32 %v14681_v14, %v14680_v48 }
 0x80a   :  { %v11791_v55 = vadd.f32 %v14594_v10, %v11750_v5 }
 0x80b   :  { %12655 = vmatpush2.bf16.msra.mxu1 %v16494_v53 }
 0x80c   :  { %12656 = vmatprep.subr.bf16.mxu1 %v16502_v13  ;;  %v14597_v13 = vadd.f32 %v14596_v51, %v14595_v59 }
 0x80e   :  { %v11794_v17 = vadd.f32 %v14597_v13, %v11753_v38  ;;  %v16508_v38 = vld [vmem:[#allocation16 + $0xf0] sm:$0xff]  }
 0x80f   :  { %12657 = vmatpush2.bf16.msra.mxu1 %v16500_v7  ;;  %v14725_v7 = vpop.f32.mrf.mxu0  ;;  %v16510_v13 = vld [vmem:[#allocation16 + $0xb0] sm:$0xff]  }
 0x810   :  { %14818 = vmatprep.subr.bf16.mxu1 %v16504_v32 }
 0x811   :  { %v14727_v0 = vpop.f32.mrf.mxu0 }
 0x812   :  { %v14614_v2 = vpop.f32.mrf.mxu1 }
 0x813   :  { %v14728_v37 = vpop.f32.mrf.mxu0 }
 0x814   :  { %v14615_v61 = vpop.f32.mrf.mxu1  ;;  %v14729_v16 = vadd.f32 %v14728_v37, %v14727_v0  ;;  %v16517_v0 = vld [vmem:[#allocation16 + $0x20] sm:$0xff]   ;;  %v16524_v37 = vld [vmem:[#allocation16 + $0xd0] sm:$0xff]  }
 0x815   :  { %v14616_v41 = vadd.f32 %v14615_v61, %v14614_v2  ;;  %v14768_v12 = vpop.f32.mrf.mxu0  ;;  %v14685_v2 = vadd.f32 %v14684_v9, %v14683_v56 }
 0x816   :  { %v14617_v23 = vpop.f32.mrf.mxu1 }
 0x817   :  { %v11832_v19 = vadd.f32 %v14616_v41, %v11791_v55  ;;  %v14769_v31 = vpop.f32.mrf.mxu0  ;;  %v16505_v41 = vld [vmem:[#allocation16 + $0x38] sm:$0xff]   ;;  %v16507_v55 = vld [vmem:[#allocation16 + $0x70] sm:$0xff]  }
 0x818   :  { %v14618_v34 = vpop.f32.mrf.mxu1  ;;  %v14770_v26 = vadd.f32 %v14769_v31, %v14768_v12  ;;  %v16529_v12 = vld [vmem:[#allocation16 + $0x8] sm:$0xff]   ;;  %v20502_v31 = vld [vmem:[#allocation31_spill] sm:$0xff] }
 0x819   :  { %v14619_v32 = vadd.f32 %v14618_v34, %v14617_v23  ;;  %v11873_v11 = vadd.f32 %v14638_v39, %v11832_v19  ;;  %v14726_v34 = vadd.f32 %v14725_v7, %v14724_v8  ;;  %v14771_v1 = vpop.f32.mrf.mxu0  ;;  %v16509_v7 = vld [vmem:[#allocation16 + $0x30] sm:$0xff]   ;;  %v16511_v19 = vld [vmem:[#allocation16 + $0x68] sm:$0xff]   ;;  %v16515_v39 = vld [vmem:[#allocation16 + $0x60] sm:$0xff]  }
 0x81b   :  { %v11835_v33 = vadd.f32 %v14619_v32, %v11794_v17  ;;  %v14772_v24 = vpop.f32.mrf.mxu0  ;;  %v16512_v32 = vld [vmem:[#allocation16 + $0xe8] sm:$0xff]  }
 0x81c   :  { %v14773_v52 = vadd.f32 %v14772_v24, %v14771_v1  ;;  %v16514_v17 = vld [vmem:[#allocation16 + $0xa8] sm:$0xff]  }
 0x81d   :  { %v11876_v29 = vadd.f32 %v14641_v40, %v11835_v33  ;;  %v16519_v33 = vld [vmem:[#allocation16 + $0x58] sm:$0xff]  }
 0x81e   :  { %v16521_v40 = vld [vmem:[#allocation16 + $0x18] sm:$0xff]  }
 0x832   :  { %v14658_v43 = vpop.f32.mrf.mxu1 }
 0x834   :  { %v14659_v6 = vpop.f32.mrf.mxu1 }
 0x835   :  { %v14660_v27 = vadd.f32 %v14659_v6, %v14658_v43 }
 0x836   :  { %v14661_v60 = vpop.f32.mrf.mxu1 }
 0x837   :  { %v11914_v42 = vadd.f32 %v14660_v27, %v11873_v11  ;;  %v16516_v27 = vld [vmem:[#allocation16 + $0xe0] sm:$0xff]   ;;  %v16520_v11 = vld [vmem:[#allocation16 + $0xd8] sm:$0xff]  }
 0x838   :  { %v14662_v58 = vpop.f32.mrf.mxu1 }
 0x839   :  { %v14663_v62 = vadd.f32 %v14662_v58, %v14661_v60  ;;  %v11955_v59 = vadd.f32 %v14682_v54, %v11914_v42  ;;  %v16522_v42 = vld [vmem:[#allocation16 + $0x98] sm:$0xff]   ;;  %v16526_v54 = vld [vmem:[#allocation16 + $0x90] sm:$0xff]  }
 0x83b   :  { %v11917_v49 = vadd.f32 %v14663_v62, %v11876_v29  ;;  %v16523_v62 = vld [vmem:[#allocation16 + $0x50] sm:$0xff]   ;;  %v16527_v29 = vld [vmem:[#allocation16 + $0x48] sm:$0xff]  }
 0x83d   :  { %v11958_v23 = vadd.f32 %v14685_v2, %v11917_v49  ;;  %v16531_v49 = vld [vmem:[#allocation16 + $0x40] sm:$0xff]  }
 0x83e   :  { %v16533_v2 = vld [vmem:[#allocation16] sm:$0xff]  }
 0x852   :  { %v14702_v44 = vpop.f32.mrf.mxu1 }
 0x854   :  { %v14703_v47 = vpop.f32.mrf.mxu1 }
 0x855   :  { %v14704_v3 = vadd.f32 %v14703_v47, %v14702_v44 }
 0x856   :  { %v14705_v53 = vpop.f32.mrf.mxu1 }
 0x857   :  { %v11996_v61 = vadd.f32 %v14704_v3, %v11955_v59  ;;  %v16528_v3 = vld [vmem:[#allocation16 + $0xc8] sm:$0xff]  }
 0x858   :  { %v14706_v21 = vpop.f32.mrf.mxu1  ;;  %v16530_v59 = vld [vmem:[#allocation16 + $0x88] sm:$0xff]  }
 0x859   :  { %v14707_v28 = vadd.f32 %v14706_v21, %v14705_v53  ;;  %v12037_v57 = vadd.f32 %v14726_v34, %v11996_v61  ;;  %v16506_v53 = vld [vmem:[#allocation16 + $0xb8] sm:$0xff]   ;;  %v16513_v21 = vld [vmem:[#allocation16 + $0x28] sm:$0xff]   ;;  %v16534_v61 = vld [vmem:[#allocation16 + $0x80] sm:$0xff]  }
 0x85a   :  { %v20503_v34 = vld [vmem:[#allocation38_spill] sm:$0xff] }
 0x85b   :  { %v11999_v50 = vadd.f32 %v14707_v28, %v11958_v23  ;;  %v12243_v28 = vld [vmem:[#allocation15] sm:$0xf] }
 0x85c   :  { %v12248_v23 = vrot.slane %v12243_v28, %v20502_v31 }
 0x85d   :  { %v12040_v35 = vadd.f32 %v14729_v16, %v11999_v50 }
 0x872   :  { %v14746_v15 = vpop.f32.mrf.mxu1 }
 0x874   :  { %v14747_v20 = vpop.f32.mrf.mxu1 }
 0x875   :  { %v14748_v43 = vadd.f32 %v14747_v20, %v14746_v15  ;;  %v16518_v15 = vld [vmem:[#allocation16 + $0xa0] sm:$0xff]   ;;  %v16525_v20 = vld [vmem:[#allocation16 + $0x10] sm:$0xff]  }
 0x876   :  { %v14749_v51 = vpop.f32.mrf.mxu1 }
 0x877   :  { %v12078_v60 = vadd.f32 %v14748_v43, %v12037_v57  ;;  %v12256_v43 = vrot.slane %v12243_v28, %v20503_v34  ;;  %v20505_v57 = vld [vmem:[#allocation71_spill] sm:$0xff] }
 0x878   :  { %v14750_v6 = vpop.f32.mrf.mxu1  ;;  %v12260_v1 = vrot.slane %v12243_v28, %v20505_v57 }
 0x879   :  { %v14751_v48 = vadd.f32 %v14750_v6, %v14749_v51  ;;  %v12119_v30 = vadd.f32 %v14770_v26, %v12078_v60  ;;  %v16532_v51 = vld [vmem:[#allocation16 + $0xc0] sm:$0xff]  }
 0x87a   :  { %v20504_v6 = vld [vmem:[#allocation32_spill] sm:$0xff] }
 0x87b   :  { %v12081_v56 = vadd.f32 %v14751_v48, %v12040_v35  ;;  %v12252_v50 = vrot.slane %v12243_v28, %v20504_v6 }
 0x87d   :  { %v12122_v9 = vadd.f32 %v14773_v52, %v12081_v56 }
 0x892   :  { %v14790_v14 = vpop.f32.mrf.mxu1 }
 0x894   :  { %v14791_v58 = vpop.f32.mrf.mxu1 }
 0x895   :  { %v14792_v4 = vadd.f32 %v14791_v58, %v14790_v14 }
 0x896   :  { %v14793_v44 = vpop.f32.mrf.mxu1 }
 0x897   :  { %v12160_v22 = vadd.f32 %v14792_v4, %v12119_v30 }
 0x898   :  { %v14794_v18 = vpop.f32.mrf.mxu1 }
 0x899   :  { %v14795_v25 = vadd.f32 %v14794_v18, %v14793_v44  ;;  %v12166_v63 = vmax.f32 %v12160_v22, 0.0 }
 0x89b   :  { %v12163_v47 = vadd.f32 %v14795_v25, %v12122_v9  ;;  %v12173_v45 = vadd.f32 %v14125_v46, %v12166_v63 }
 0x89d   :  { %v12167_v5 = vmax.f32 %v12163_v47, 0.0 }
 0x89f   :  { %v12174_v8 = vadd.f32 %v14125_v46, %v12167_v5 }
 0x8a1   :  { %v12175_v36 = vpack.c.bf16 %v12174_v8, %v12173_v45  ;;  %v14190_v8 = vld [vmem:[#allocation18] ss:$0 sm:$0xff] }
 0x8a3   :  { %v12177_v10 = vrot.slane %v12175_v36, 4 }
 0x8a5   :  { %12617 = vmatprep.mubr.bf16.mxu0 %v12177_v10  ;;  %12658 = vmatprep.mubr.bf16.mxu1 %v12177_v10 }
 0x8a6   :  { %12618 = vmatmul.mubr.bf16.vlgmr.msra.gmra.mxu0 %v12175_v36  ;;  %12659 = vmatmul.mubr.bf16.vlgmr.msra.gmra.mxu1 %v12175_v36 }
 0x8a7   :  { %14797 = vmatpush3.bf16.msra.mxu0 %v16505_v41  ;;  %14819 = vmatpush3.bf16.msra.mxu1 %v16506_v53 }
 0x8a8   :  { %14798 = vmatprep.subr.bf16.mxu0 %v16507_v55  ;;  %14820 = vmatprep.subr.bf16.mxu1 %v16508_v38 }
 0x8ab   :  { %14799 = vmatpush3.bf16.msra.mxu0 %v16509_v7  ;;  %14821 = vmatpush3.bf16.msra.mxu1 %v16510_v13 }
 0x8ac   :  { %14800 = vmatprep.subr.bf16.mxu0 %v16511_v19  ;;  %14822 = vmatprep.subr.bf16.mxu1 %v16512_v32 }
 0x8af   :  { %14801 = vmatpush3.bf16.msra.mxu0 %v16513_v21  ;;  %14823 = vmatpush3.bf16.msra.mxu1 %v16514_v17 }
 0x8b0   :  { %14802 = vmatprep.subr.bf16.mxu0 %v16515_v39  ;;  %14824 = vmatprep.subr.bf16.mxu1 %v16516_v27 }
 0x8b3   :  { %14803 = vmatpush3.bf16.msra.mxu0 %v16517_v0  ;;  %14825 = vmatpush3.bf16.msra.mxu1 %v16518_v15 }
 0x8b4   :  { %14804 = vmatprep.subr.bf16.mxu0 %v16519_v33  ;;  %14826 = vmatprep.subr.bf16.mxu1 %v16520_v11 }
 0x8b7   :  { %14805 = vmatpush3.bf16.msra.mxu0 %v16521_v40  ;;  %14827 = vmatpush3.bf16.msra.mxu1 %v16522_v42 }
 0x8b8   :  { %14806 = vmatprep.subr.bf16.mxu0 %v16523_v62  ;;  %14828 = vmatprep.subr.bf16.mxu1 %v16524_v37 }
 0x8bb   :  { %14807 = vmatpush3.bf16.msra.mxu0 %v16525_v20  ;;  %14829 = vmatpush3.bf16.msra.mxu1 %v16526_v54 }
 0x8bc   :  { %14808 = vmatprep.subr.bf16.mxu0 %v16527_v29  ;;  %14830 = vmatprep.subr.bf16.mxu1 %v16528_v3 }
 0x8bf   :  { %14809 = vmatpush3.bf16.msra.mxu0 %v16529_v12  ;;  %14831 = vmatpush3.bf16.msra.mxu1 %v16530_v59 }
 0x8c0   :  { %14810 = vmatprep.subr.bf16.mxu0 %v16531_v49  ;;  %14832 = vmatprep.subr.bf16.mxu1 %v16532_v51 }
 0x8c3   :  { %14811 = vmatpush3.bf16.msra.mxu0 %v16533_v2  ;;  %14833 = vmatpush3.bf16.msra.mxu1 %v16534_v61 }
 0x966   :  { %v12619_v16 = vpop.f32.mrf.mxu0  ;;  %v12660_v60 = vpop.f32.mrf.mxu1 }
 0x967   :  { %v12620_v48 = vadd.f32 %v12619_v16, %v12248_v23  ;;  %v12661_v14 = vadd.f32 %v12660_v60, %v12256_v43 }
 0x968   :  { %v12621_v26 = vpop.f32.mrf.mxu0  ;;  %v12662_v35 = vpop.f32.mrf.mxu1 }
 0x969   :  { %v12622_v24 = vadd.f32 %v12621_v26, %v12252_v50  ;;  %v12663_v58 = vadd.f32 %v12662_v35, %v12260_v1  ;;  %v12667_v30 = vmax.f32 %v12620_v48, 0.0  ;;  %v12669_v56 = vmax.f32 %v12661_v14, 0.0 }
 0x96a   :  { %v12623_v4 = vpop.f32.mrf.mxu0  ;;  %v12664_v44 = vpop.f32.mrf.mxu1 }
 0x96b   :  { %v12668_v52 = vmax.f32 %v12622_v24, 0.0  ;;  %v12670_v22 = vmax.f32 %v12663_v58, 0.0  ;;  %v12671_v47 = vpack.c.bf16 %v12667_v30, %v12667_v30  ;;  %v12673_v46 = vpack.c.bf16 %v12669_v56, %v12669_v56 }
 0x96c   :  { %v12624_v18 = vpop.f32.mrf.mxu0  ;;  %v12665_v9 = vpop.f32.mrf.mxu1 }
 0x96d   :  { %v12672_v25 = vpack.c.bf16 %v12668_v52, %v12668_v52  ;;  %v12674_v63 = vpack.c.bf16 %v12670_v22, %v12670_v22 }
 0x96f   :  { %12970 = vmatprep.mubr.bf16.mxu0 %v12672_v25  ;;  %13010 = vmatprep.mubr.bf16.mxu1 %v12674_v63 }
 0x970   :  { %12971 = vmatmul.mubr.bf16.vlgmr.msra.gmra.mxu0 %v12671_v47  ;;  %13011 = vmatmul.mubr.bf16.vlgmr.msra.gmra.mxu1 %v12673_v46 }
 0xa30   :  { %v14812_v5 = vpop.f32.mrf.mxu0  ;;  %v14834_v45 = vpop.f32.mrf.mxu1 }
 0xa32   :  { %v14813_v36 = vpop.f32.mrf.mxu0  ;;  %v14835_v10 = vpop.f32.mrf.mxu1 }
 0xa33   :  { %v14814_v41 = vadd.f32 %v14813_v36, %v14812_v5  ;;  %v14836_v7 = vadd.f32 %v14835_v10, %v14834_v45 }
 0xa34   :  { %v14815_v53 = vpop.f32.mrf.mxu0  ;;  %v14837_v55 = vpop.f32.mrf.mxu1 }
 0xa35   :  { %v12973_v38 = vadd.f32 %v14814_v41, %v14190_v8 }
 0xa36   :  { %v14816_v13 = vpop.f32.mrf.mxu0  ;;  %v14838_v19 = vpop.f32.mrf.mxu1 }
 0xa37   :  { %v13013_v32 = vadd.f32 %v14836_v7, %v12973_v38 }
 0xa39   :  { %13018 = vst [vmem:[%s19900_s12] sm:$0xff] %v13013_v32 }
 0xa3a   :  { %13023 = vsyncpa [#allocation3], 1 }
 0xa3b   :  { %13024 = vsyncpa [#allocation5], 1 }
 0xa3c   :  { %13025 = vsyncpa [#allocation8], 1 }
 0xa3d   :  { %13026 = vsyncpa [#allocation11], 1 }
 0xa3e   :  { %13027 = vsyncpa [#allocation14], 1 }
 0xa3f   :  { %13028 = vsyncpa [#allocation17], 1 }

</bundles_post_ra>
